<compile_context>
chip_gen: v7x
topology: tpu7x:2x2x1
jax: 0.10.0
libtpu: 0.0.40
codegen_flags: <defaults>
</compile_context>

<pallas_src>
import functools
import math

import jax
import jax.numpy as jnp
from jax.experimental import pallas as pl
from jax.experimental.pallas import tpu as pltpu

NUM_CLASSES = 40   # GeometricShapes num_classes
K_NN = 16          # knn_graph(k=16) hard-coded in the module's forward
HIDDEN = 32

# --------------------------------------------------------------------------- #
# math helpers used INSIDE the kernel (channels-first: operands are (3, E) / (1, E))
# --------------------------------------------------------------------------- #
_PI = 3.141592653589793
_PI_2 = 1.5707963267948966
_PI_4 = 0.7853981633974483
_TAN_3PI_8 = 2.414213562373095
_TAN_PI_8 = 0.4142135623730951


def _atan_nonneg(z):
  # arctan(z) for z >= 0, Cephes-atanf style polynomial; divides -> EUP reciprocal.
  big = z > _TAN_3PI_8
  mid = jnp.logical_and(z > _TAN_PI_8, jnp.logical_not(big))
  safe = jnp.where(big, z, 1.0)
  x = jnp.where(big, -pl.reciprocal(safe, approx=True),
                jnp.where(mid, (z - 1.0) * pl.reciprocal(z + 1.0, approx=True), z))
  y0 = jnp.where(big, _PI_2, jnp.where(mid, _PI_4, 0.0))
  zz = x * x
  p = (((8.05374449538e-2 * zz - 1.38776856032e-1) * zz + 1.99777106478e-1)
       * zz - 3.33329491539e-1) * zz * x + x
  return y0 + p


def _atan2_nonneg(y, x):
  # atan2(y, x) for y >= 0 (y is a vector norm), result in [0, pi];
  # matches torch.atan2 conventions incl. atan2(0, 0) == 0 and atan2(0, x<0) == pi.
  ax = jnp.abs(x)
  t = _atan_nonneg(y * pl.reciprocal(jnp.where(ax > 0.0, ax, 1.0), approx=True))
  return jnp.where(x > 0.0, t,
                   jnp.where(x < 0.0, _PI - t,
                             jnp.where(y > 0.0, _PI_2, 0.0)))


def _dot3(a, b):          # (3, E) x (3, E) -> (1, E)
  return a[0:1] * b[0:1] + a[1:2] * b[1:2] + a[2:3] * b[2:3]


def _cross_norm3(a, b):   # ||a x b|| -> (1, E)
  c0 = a[1:2] * b[2:3] - a[2:3] * b[1:2]
  c1 = a[2:3] * b[0:1] - a[0:1] * b[2:3]
  c2 = a[0:1] * b[1:2] - a[1:2] * b[0:1]
  return jnp.sqrt(c0 * c0 + c1 * c1 + c2 * c2)


# --------------------------------------------------------------------------- #
# fused per-graph kernel: PPF features -> conv1 -> conv2 -> max pool
# --------------------------------------------------------------------------- #
def _ppfnet_kernel(pc_ref, nc_ref, pj_ref, nj_ref, idx_ref,
                   w1a_ref, b1a_ref, w1b_ref, b1b_ref,
                   w2x_ref, w2p_ref, b2a_ref, w2b_ref, b2b_ref,
                   o_ref, *, n_points, k_slots):
  n = n_points
  e = n_points * k_slots

  pc = pc_ref[0]            # (3, E) center  (target node) positions, tiled per slot
  nc = nc_ref[0]            # (3, E) center normals
  pj = pj_ref[0]            # (3, E) neighbor (source node) positions
  nj = nj_ref[0]            # (3, E) neighbor normals
  idx_e = idx_ref[0]        # (1, E) int32 neighbor node index per edge

  # point_pair_features(pos_i, pos_j, n_i, n_j) -- exactly as torch_geometric,
  # computed once for both convs.  Edge ordering: e = k*N + n.
  d = pj - pc
  dist = jnp.sqrt(_dot3(d, d))                                   # (1, E)
  a1 = _atan2_nonneg(_cross_norm3(nc, d), _dot3(nc, d))
  a2 = _atan2_nonneg(_cross_norm3(nj, d), _dot3(nj, d))
  a3 = _atan2_nonneg(_cross_norm3(nc, nj), _dot3(nc, nj))
  ppf = jnp.concatenate([dist, a1, a2, a3], axis=0)              # (4, E) sublane stack

  # ---- conv1 local_nn = Linear(4,32) . ReLU . Linear(32,32), channels-first --------
  h = jnp.dot(w1a_ref[...], ppf, preferred_element_type=jnp.float32) + b1a_ref[...]
  h = jnp.maximum(h, 0.0)
  g = jnp.dot(w1b_ref[...], h, preferred_element_type=jnp.float32) + b1b_ref[...]

  # aggr='max' over the K neighbor slots (128-aligned lane slices) + trailing relu
  x1 = g[:, 0:n]
  for kk in range(1, k_slots):
    x1 = jnp.maximum(x1, g[:, kk * n:(kk + 1) * n])
  x1 = jnp.maximum(x1, 0.0)                                      # (32, N)

  # ---- in-kernel x_j gather for conv2: one-hot selection matrix on the MXU ----------
  rows = jax.lax.broadcasted_iota(jnp.int32, (n, e), 0)          # node id per row
  sel = jnp.where(rows == idx_e, 1.0, 0.0)                       # (N, E) one-hot cols
  xj = jnp.dot(x1, sel, preferred_element_type=jnp.float32)      # (32, E) = x[:, idx]

  # ---- conv2 local_nn = Linear(36,32) . ReLU . Linear(32,32): split dot, no concat --
  h2 = (jnp.dot(w2x_ref[...], xj, preferred_element_type=jnp.float32)
        + jnp.dot(w2p_ref[...], ppf, preferred_element_type=jnp.float32)
        + b2a_ref[...])
  h2 = jnp.maximum(h2, 0.0)
  g2 = jnp.dot(w2b_ref[...], h2, preferred_element_type=jnp.float32) + b2b_ref[...]

  # fused aggr='max' + relu + global_max_pool:  relu(max_n max_k g2) == max(0, max_e g2)
  pooled = jnp.maximum(jnp.max(g2, axis=1, keepdims=True), 0.0)  # (32, 1)
  o_ref[0] = pooled


def ppf_fused(pc_e, nc_e, pj_e, nj_e, idx_e, params, n_points, k_slots):
  """Runs both PPFConv layers + global max pool.  Inputs are channels-first
  per-edge tensors [B, 3, E] and neighbor indices [B, 1, E]; returns [B, HIDDEN]."""
  B, _, E = pc_e.shape
  w1a, b1a, w1b, b1b = params["mlp1"]
  w2a, b2a, w2b, b2b = params["mlp2"]
  w2x, w2p = w2a[:, :HIDDEN], w2a[:, HIDDEN:]   # split: x_j block | ppf block

  edge_spec = pl.BlockSpec((1, 3, E), lambda b: (b, 0, 0))
  full = lambda shape: pl.BlockSpec(shape, lambda b: (0, 0))

  pooled = pl.pallas_call(
      functools.partial(_ppfnet_kernel, n_points=n_points, k_slots=k_slots),
      out_shape=jax.ShapeDtypeStruct((B, HIDDEN, 1), jnp.float32),
      grid=(B,),
      in_specs=[
          edge_spec, edge_spec, edge_spec, edge_spec,            # pc, nc, pj, nj
          pl.BlockSpec((1, 1, E), lambda b: (b, 0, 0)),          # neighbor indices
          full((HIDDEN, 4)), full((HIDDEN, 1)),                  # conv1 Linear(4,32)
          full((HIDDEN, HIDDEN)), full((HIDDEN, 1)),             # conv1 Linear(32,32)
          full((HIDDEN, HIDDEN)), full((HIDDEN, 4)),             # conv2 Linear(36,32) split
          full((HIDDEN, 1)),
          full((HIDDEN, HIDDEN)), full((HIDDEN, 1)),             # conv2 Linear(32,32)
      ],
      out_specs=pl.BlockSpec((1, HIDDEN, 1), lambda b: (b, 0, 0)),
      compiler_params=pltpu.CompilerParams(
          dimension_semantics=("parallel",)),   # graphs shard across v7x TensorCores
  )(pc_e, nc_e, pj_e, nj_e, idx_e,
    w1a, b1a, w1b, b1b, w2x, w2p, b2a, w2b, b2b)
  return pooled[:, :, 0]                                          # (B, HIDDEN)


# --------------------------------------------------------------------------- #
# full forward
# --------------------------------------------------------------------------- #
def ppfnet_forward(pos, normal, params, k=K_NN):
  B, N, _ = pos.shape

  # knn_graph(pos, k=16, batch, loop=False): plain-JAX graph construction.
  # TODO(synk): top-k nearest-neighbor selection has no clean Pallas equivalent.
  d2 = jnp.sum((pos[:, :, None, :] - pos[:, None, :, :]) ** 2, axis=-1)   # (B,N,N)
  d2 = jnp.where(jnp.eye(N, dtype=bool)[None], jnp.inf, d2)
  _, idx = jax.lax.top_k(-d2, k)                                          # (B,N,k)
  # PPFConv(add_self_loops=True) appends a self-loop edge per node.
  idx = jnp.concatenate(
      [idx, jnp.broadcast_to(jnp.arange(N, dtype=idx.dtype)[None, :, None],
                             (B, N, 1))], axis=-1)                        # (B,N,K)
  K = k + 1
  E = K * N

  # Edge ordering e = slot*N + node  ->  per-node messages sit at 128-aligned lane slices.
  idx_flat = jnp.transpose(idx, (0, 2, 1)).reshape(B, E).astype(jnp.int32)  # (B, E)

  # channels-first per-edge geometry (small, one-time XLA gathers/tiles).
  pos_cf = jnp.transpose(pos, (0, 2, 1)).astype(jnp.float32)     # (B, 3, N)
  nrm_cf = jnp.transpose(normal, (0, 2, 1)).astype(jnp.float32)  # (B, 3, N)
  pc_e = jnp.tile(pos_cf, (1, 1, K))                             # center pos per edge
  nc_e = jnp.tile(nrm_cf, (1, 1, K))                             # center normal per edge
  gidx = jnp.broadcast_to(idx_flat[:, None, :], (B, 3, E))
  pj_e = jnp.take_along_axis(pos_cf, gidx, axis=2)               # neighbor pos per edge
  nj_e = jnp.take_along_axis(nrm_cf, gidx, axis=2)               # neighbor normal per edge
  idx_e = idx_flat[:, None, :]                                   # (B, 1, E)

  pooled = ppf_fused(pc_e, nc_e, pj_e, nj_e, idx_e, params, N, K)   # (B, 32)

  # classifier Linear(32, num_classes) as a plain XLA matmul (tiny; per review).
  return pooled @ params["cls_w"].T + params["cls_b"][:, 0]       # (B, num_classes)


# --------------------------------------------------------------------------- #
# deterministic parameter init (shapes from the module's __init__, torch [out, in])
# --------------------------------------------------------------------------- #
def init_params(key, num_classes=NUM_CLASSES):
  def linear(kk, fin, fout):
    kw, kb = jax.random.split(kk)
    bound = 1.0 / math.sqrt(fin)
    w = jax.random.uniform(kw, (fout, fin), jnp.float32, -bound, bound)  # [out, in]
    b = jax.random.uniform(kb, (fout, 1), jnp.float32, -bound, bound)    # [out, 1]
    return w, b
  ks = jax.random.split(key, 5)
  w1a, b1a = linear(ks[0], 4, HIDDEN)               # mlp1: Linear(4, 32)
  w1b, b1b = linear(ks[1], HIDDEN, HIDDEN)          #       Linear(32, 32)
  w2a, b2a = linear(ks[2], HIDDEN + 4, HIDDEN)      # mlp2: Linear(36, 32)
  w2b, b2b = linear(ks[3], HIDDEN, HIDDEN)          #       Linear(32, 32)
  wc, bc = linear(ks[4], HIDDEN, num_classes)       # classifier: Linear(32, 40)
  return {"mlp1": (w1a, b1a, w1b, b1b),
          "mlp2": (w2a, b2a, w2b, b2b),
          "cls_w": wc, "cls_b": bc}


if __name__ == "__main__":
  key = jax.random.PRNGKey(0)
  kp, kn, kw = jax.random.split(key, 3)

  # SamplePoints(128) -> 128 points per cloud; 2 graphs per batch.
  B, N = 2, 128
  pos = jax.random.normal(kp, (B, N, 3), jnp.float32)
  normal = jax.random.normal(kn, (B, N, 3), jnp.float32)
  normal = normal / jnp.linalg.norm(normal, axis=-1, keepdims=True)
  # PyG-style batch vector is implicit in the dense [B, N] layout:
  # batch = jnp.repeat(jnp.arange(B), N)

  params = init_params(kw)

  fwd = jax.jit(lambda p, n: ppfnet_forward(p, n, params))
  logits = fwd(pos, normal)
  jax.block_until_ready(logits)
  assert logits.shape == (B, NUM_CLASSES) and logits.dtype == jnp.float32
  print("KERNEL_OK")
</pallas_src>

<mosaic_0001>
module attributes {stable_mosaic.version = 11 : i64} {
  func.func @_ppfnet_kernel(%arg0: i32, %arg1: memref<1x3x2176xf32, #tpu.memory_space<vmem>>, %arg2: memref<1x3x2176xf32, #tpu.memory_space<vmem>>, %arg3: memref<1x3x2176xf32, #tpu.memory_space<vmem>>, %arg4: memref<1x3x2176xf32, #tpu.memory_space<vmem>>, %arg5: memref<1x1x2176xi32, #tpu.memory_space<vmem>>, %arg6: memref<32x4xf32, #tpu.memory_space<vmem>>, %arg7: memref<32x1xf32, #tpu.memory_space<vmem>>, %arg8: memref<32x32xf32, #tpu.memory_space<vmem>>, %arg9: memref<32x1xf32, #tpu.memory_space<vmem>>, %arg10: memref<32x32xf32, #tpu.memory_space<vmem>>, %arg11: memref<32x4xf32, #tpu.memory_space<vmem>>, %arg12: memref<32x1xf32, #tpu.memory_space<vmem>>, %arg13: memref<32x32xf32, #tpu.memory_space<vmem>>, %arg14: memref<32x1xf32, #tpu.memory_space<vmem>>, %arg15: memref<1x32x1xf32, #tpu.memory_space<vmem>>) attributes {dimension_semantics = [#tpu.dimension_semantics<parallel>], iteration_bounds = array<i64: 2>, scalar_prefetch = 0 : i64, scratch_operands = 0 : i64, tpu.core_type = #tpu.core_type<tc>, window_params = [{transform_indices = @transform_0, window_bounds = array<i64: 1, 3, 2176>}, {transform_indices = @transform_1, window_bounds = array<i64: 1, 3, 2176>}, {transform_indices = @transform_2, window_bounds = array<i64: 1, 3, 2176>}, {transform_indices = @transform_3, window_bounds = array<i64: 1, 3, 2176>}, {transform_indices = @transform_4, window_bounds = array<i64: 1, 1, 2176>}, {pipeline_mode = #tpu.pipeline_mode<synchronous>, transform_indices = @transform_5, window_bounds = array<i64: 32, 4>}, {pipeline_mode = #tpu.pipeline_mode<synchronous>, transform_indices = @transform_6, window_bounds = array<i64: 32, 1>}, {pipeline_mode = #tpu.pipeline_mode<synchronous>, transform_indices = @transform_7, window_bounds = array<i64: 32, 32>}, {pipeline_mode = #tpu.pipeline_mode<synchronous>, transform_indices = @transform_8, window_bounds = array<i64: 32, 1>}, {pipeline_mode = #tpu.pipeline_mode<synchronous>, transform_indices = @transform_9, window_bounds = array<i64: 32, 32>}, {pipeline_mode = #tpu.pipeline_mode<synchronous>, transform_indices = @transform_10, window_bounds = array<i64: 32, 4>}, {pipeline_mode = #tpu.pipeline_mode<synchronous>, transform_indices = @transform_11, window_bounds = array<i64: 32, 1>}, {pipeline_mode = #tpu.pipeline_mode<synchronous>, transform_indices = @transform_12, window_bounds = array<i64: 32, 32>}, {pipeline_mode = #tpu.pipeline_mode<synchronous>, transform_indices = @transform_13, window_bounds = array<i64: 32, 1>}, {transform_indices = @transform_14, window_bounds = array<i64: 1, 32, 1>}]} {
    %c0 = arith.constant 0 : index
    %c0_0 = arith.constant 0 : index
    %c0_1 = arith.constant 0 : index
    %0 = vector.load %arg1[%c0, %c0_0, %c0_1] : memref<1x3x2176xf32, #tpu.memory_space<vmem>>, vector<1x3x2176xf32>
    %1 = vector.shape_cast %0 : vector<1x3x2176xf32> to vector<3x2176xf32>
    %c0_2 = arith.constant 0 : index
    %c0_3 = arith.constant 0 : index
    %c0_4 = arith.constant 0 : index
    %2 = vector.load %arg2[%c0_2, %c0_3, %c0_4] : memref<1x3x2176xf32, #tpu.memory_space<vmem>>, vector<1x3x2176xf32>
    %3 = vector.shape_cast %2 : vector<1x3x2176xf32> to vector<3x2176xf32>
    %c0_5 = arith.constant 0 : index
    %c0_6 = arith.constant 0 : index
    %c0_7 = arith.constant 0 : index
    %4 = vector.load %arg3[%c0_5, %c0_6, %c0_7] : memref<1x3x2176xf32, #tpu.memory_space<vmem>>, vector<1x3x2176xf32>
    %5 = vector.shape_cast %4 : vector<1x3x2176xf32> to vector<3x2176xf32>
    %c0_8 = arith.constant 0 : index
    %c0_9 = arith.constant 0 : index
    %c0_10 = arith.constant 0 : index
    %6 = vector.load %arg4[%c0_8, %c0_9, %c0_10] : memref<1x3x2176xf32, #tpu.memory_space<vmem>>, vector<1x3x2176xf32>
    %7 = vector.shape_cast %6 : vector<1x3x2176xf32> to vector<3x2176xf32>
    %c0_11 = arith.constant 0 : index
    %c0_12 = arith.constant 0 : index
    %c0_13 = arith.constant 0 : index
    %8 = vector.load %arg5[%c0_11, %c0_12, %c0_13] : memref<1x1x2176xi32, #tpu.memory_space<vmem>>, vector<1x1x2176xi32>
    %9 = vector.shape_cast %8 : vector<1x1x2176xi32> to vector<1x2176xi32>
    %10 = arith.subf %5, %1 : vector<3x2176xf32>
    %11 = vector.extract_strided_slice %10 {offsets = [0, 0], sizes = [1, 2176], strides = [1, 1]} : vector<3x2176xf32> to vector<1x2176xf32>
    %12 = vector.extract_strided_slice %10 {offsets = [0, 0], sizes = [1, 2176], strides = [1, 1]} : vector<3x2176xf32> to vector<1x2176xf32>
    %13 = arith.mulf %11, %12 : vector<1x2176xf32>
    %14 = vector.extract_strided_slice %10 {offsets = [1, 0], sizes = [1, 2176], strides = [1, 1]} : vector<3x2176xf32> to vector<1x2176xf32>
    %15 = vector.extract_strided_slice %10 {offsets = [1, 0], sizes = [1, 2176], strides = [1, 1]} : vector<3x2176xf32> to vector<1x2176xf32>
    %16 = arith.mulf %14, %15 : vector<1x2176xf32>
    %17 = arith.addf %13, %16 : vector<1x2176xf32>
    %18 = vector.extract_strided_slice %10 {offsets = [2, 0], sizes = [1, 2176], strides = [1, 1]} : vector<3x2176xf32> to vector<1x2176xf32>
    %19 = vector.extract_strided_slice %10 {offsets = [2, 0], sizes = [1, 2176], strides = [1, 1]} : vector<3x2176xf32> to vector<1x2176xf32>
    %20 = arith.mulf %18, %19 : vector<1x2176xf32>
    %21 = arith.addf %17, %20 : vector<1x2176xf32>
    %22 = math.sqrt %21 : vector<1x2176xf32>
    %23 = vector.extract_strided_slice %3 {offsets = [1, 0], sizes = [1, 2176], strides = [1, 1]} : vector<3x2176xf32> to vector<1x2176xf32>
    %24 = vector.extract_strided_slice %10 {offsets = [2, 0], sizes = [1, 2176], strides = [1, 1]} : vector<3x2176xf32> to vector<1x2176xf32>
    %25 = arith.mulf %23, %24 : vector<1x2176xf32>
    %26 = vector.extract_strided_slice %3 {offsets = [2, 0], sizes = [1, 2176], strides = [1, 1]} : vector<3x2176xf32> to vector<1x2176xf32>
    %27 = vector.extract_strided_slice %10 {offsets = [1, 0], sizes = [1, 2176], strides = [1, 1]} : vector<3x2176xf32> to vector<1x2176xf32>
    %28 = arith.mulf %26, %27 : vector<1x2176xf32>
    %29 = arith.subf %25, %28 : vector<1x2176xf32>
    %30 = vector.extract_strided_slice %3 {offsets = [2, 0], sizes = [1, 2176], strides = [1, 1]} : vector<3x2176xf32> to vector<1x2176xf32>
    %31 = vector.extract_strided_slice %10 {offsets = [0, 0], sizes = [1, 2176], strides = [1, 1]} : vector<3x2176xf32> to vector<1x2176xf32>
    %32 = arith.mulf %30, %31 : vector<1x2176xf32>
    %33 = vector.extract_strided_slice %3 {offsets = [0, 0], sizes = [1, 2176], strides = [1, 1]} : vector<3x2176xf32> to vector<1x2176xf32>
    %34 = vector.extract_strided_slice %10 {offsets = [2, 0], sizes = [1, 2176], strides = [1, 1]} : vector<3x2176xf32> to vector<1x2176xf32>
    %35 = arith.mulf %33, %34 : vector<1x2176xf32>
    %36 = arith.subf %32, %35 : vector<1x2176xf32>
    %37 = vector.extract_strided_slice %3 {offsets = [0, 0], sizes = [1, 2176], strides = [1, 1]} : vector<3x2176xf32> to vector<1x2176xf32>
    %38 = vector.extract_strided_slice %10 {offsets = [1, 0], sizes = [1, 2176], strides = [1, 1]} : vector<3x2176xf32> to vector<1x2176xf32>
    %39 = arith.mulf %37, %38 : vector<1x2176xf32>
    %40 = vector.extract_strided_slice %3 {offsets = [1, 0], sizes = [1, 2176], strides = [1, 1]} : vector<3x2176xf32> to vector<1x2176xf32>
    %41 = vector.extract_strided_slice %10 {offsets = [0, 0], sizes = [1, 2176], strides = [1, 1]} : vector<3x2176xf32> to vector<1x2176xf32>
    %42 = arith.mulf %40, %41 : vector<1x2176xf32>
    %43 = arith.subf %39, %42 : vector<1x2176xf32>
    %44 = arith.mulf %29, %29 : vector<1x2176xf32>
    %45 = arith.mulf %36, %36 : vector<1x2176xf32>
    %46 = arith.addf %44, %45 : vector<1x2176xf32>
    %47 = arith.mulf %43, %43 : vector<1x2176xf32>
    %48 = arith.addf %46, %47 : vector<1x2176xf32>
    %49 = math.sqrt %48 : vector<1x2176xf32>
    %50 = vector.extract_strided_slice %3 {offsets = [0, 0], sizes = [1, 2176], strides = [1, 1]} : vector<3x2176xf32> to vector<1x2176xf32>
    %51 = vector.extract_strided_slice %10 {offsets = [0, 0], sizes = [1, 2176], strides = [1, 1]} : vector<3x2176xf32> to vector<1x2176xf32>
    %52 = arith.mulf %50, %51 : vector<1x2176xf32>
    %53 = vector.extract_strided_slice %3 {offsets = [1, 0], sizes = [1, 2176], strides = [1, 1]} : vector<3x2176xf32> to vector<1x2176xf32>
    %54 = vector.extract_strided_slice %10 {offsets = [1, 0], sizes = [1, 2176], strides = [1, 1]} : vector<3x2176xf32> to vector<1x2176xf32>
    %55 = arith.mulf %53, %54 : vector<1x2176xf32>
    %56 = arith.addf %52, %55 : vector<1x2176xf32>
    %57 = vector.extract_strided_slice %3 {offsets = [2, 0], sizes = [1, 2176], strides = [1, 1]} : vector<3x2176xf32> to vector<1x2176xf32>
    %58 = vector.extract_strided_slice %10 {offsets = [2, 0], sizes = [1, 2176], strides = [1, 1]} : vector<3x2176xf32> to vector<1x2176xf32>
    %59 = arith.mulf %57, %58 : vector<1x2176xf32>
    %60 = arith.addf %56, %59 : vector<1x2176xf32>
    %61 = math.absf %60 : vector<1x2176xf32>
    %cst = arith.constant 0.000000e+00 : f32
    %62 = vector.broadcast %cst : f32 to vector<1x2176xf32>
    %63 = arith.cmpf ogt, %61, %62 : vector<1x2176xf32>
    %cst_14 = arith.constant 1.000000e+00 : f32
    %64 = vector.broadcast %cst_14 : f32 to vector<1x2176xf32>
    %65 = arith.select %63, %61, %64 : vector<1x2176xi1>, vector<1x2176xf32>
    %66 = tpu.reciprocal %65 {approx = true} : vector<1x2176xf32> -> vector<1x2176xf32>
    %67 = arith.mulf %49, %66 : vector<1x2176xf32>
    %cst_15 = arith.constant 2.41421366 : f32
    %68 = vector.broadcast %cst_15 : f32 to vector<1x2176xf32>
    %69 = arith.cmpf ogt, %67, %68 : vector<1x2176xf32>
    %cst_16 = arith.constant 0.414213568 : f32
    %70 = vector.broadcast %cst_16 : f32 to vector<1x2176xf32>
    %71 = arith.cmpf ogt, %67, %70 : vector<1x2176xf32>
    %cst_17 = arith.constant dense<true> : vector<1x2176xi1>
    %72 = arith.xori %69, %cst_17 : vector<1x2176xi1>
    %73 = arith.andi %71, %72 : vector<1x2176xi1>
    %cst_18 = arith.constant 1.000000e+00 : f32
    %74 = vector.broadcast %cst_18 : f32 to vector<1x2176xf32>
    %75 = arith.select %69, %67, %74 : vector<1x2176xi1>, vector<1x2176xf32>
    %76 = tpu.reciprocal %75 {approx = true} : vector<1x2176xf32> -> vector<1x2176xf32>
    %cst_19 = arith.constant 0.000000e+00 : f32
    %77 = vector.broadcast %cst_19 : f32 to vector<1x2176xf32>
    %78 = arith.subf %77, %76 : vector<1x2176xf32>
    %cst_20 = arith.constant 1.000000e+00 : f32
    %79 = vector.broadcast %cst_20 : f32 to vector<1x2176xf32>
    %80 = arith.subf %67, %79 : vector<1x2176xf32>
    %cst_21 = arith.constant 1.000000e+00 : f32
    %81 = vector.broadcast %cst_21 : f32 to vector<1x2176xf32>
    %82 = arith.addf %67, %81 : vector<1x2176xf32>
    %83 = tpu.reciprocal %82 {approx = true} : vector<1x2176xf32> -> vector<1x2176xf32>
    %84 = arith.mulf %80, %83 : vector<1x2176xf32>
    %85 = arith.select %73, %84, %67 : vector<1x2176xi1>, vector<1x2176xf32>
    %86 = arith.select %69, %78, %85 : vector<1x2176xi1>, vector<1x2176xf32>
    %cst_22 = arith.constant 0.785398185 : f32
    %cst_23 = arith.constant 0.000000e+00 : f32
    %87 = vector.broadcast %cst_22 : f32 to vector<1x2176xf32>
    %88 = vector.broadcast %cst_23 : f32 to vector<1x2176xf32>
    %89 = arith.select %73, %87, %88 : vector<1x2176xi1>, vector<1x2176xf32>
    %cst_24 = arith.constant 1.57079637 : f32
    %90 = vector.broadcast %cst_24 : f32 to vector<1x2176xf32>
    %91 = arith.select %69, %90, %89 : vector<1x2176xi1>, vector<1x2176xf32>
    %92 = arith.mulf %86, %86 : vector<1x2176xf32>
    %cst_25 = arith.constant 0.0805374458 : f32
    %93 = vector.broadcast %cst_25 : f32 to vector<1x2176xf32>
    %94 = arith.mulf %93, %92 : vector<1x2176xf32>
    %cst_26 = arith.constant 0.138776854 : f32
    %95 = vector.broadcast %cst_26 : f32 to vector<1x2176xf32>
    %96 = arith.subf %94, %95 : vector<1x2176xf32>
    %97 = arith.mulf %96, %92 : vector<1x2176xf32>
    %cst_27 = arith.constant 0.199777111 : f32
    %98 = vector.broadcast %cst_27 : f32 to vector<1x2176xf32>
    %99 = arith.addf %97, %98 : vector<1x2176xf32>
    %100 = arith.mulf %99, %92 : vector<1x2176xf32>
    %cst_28 = arith.constant 0.333329499 : f32
    %101 = vector.broadcast %cst_28 : f32 to vector<1x2176xf32>
    %102 = arith.subf %100, %101 : vector<1x2176xf32>
    %103 = arith.mulf %102, %92 : vector<1x2176xf32>
    %104 = arith.mulf %103, %86 : vector<1x2176xf32>
    %105 = arith.addf %104, %86 : vector<1x2176xf32>
    %106 = arith.addf %91, %105 : vector<1x2176xf32>
    %cst_29 = arith.constant 0.000000e+00 : f32
    %107 = vector.broadcast %cst_29 : f32 to vector<1x2176xf32>
    %108 = arith.cmpf ogt, %60, %107 : vector<1x2176xf32>
    %cst_30 = arith.constant 0.000000e+00 : f32
    %109 = vector.broadcast %cst_30 : f32 to vector<1x2176xf32>
    %110 = arith.cmpf olt, %60, %109 : vector<1x2176xf32>
    %cst_31 = arith.constant 3.14159274 : f32
    %111 = vector.broadcast %cst_31 : f32 to vector<1x2176xf32>
    %112 = arith.subf %111, %106 : vector<1x2176xf32>
    %cst_32 = arith.constant 0.000000e+00 : f32
    %113 = vector.broadcast %cst_32 : f32 to vector<1x2176xf32>
    %114 = arith.cmpf ogt, %49, %113 : vector<1x2176xf32>
    %cst_33 = arith.constant 1.57079637 : f32
    %cst_34 = arith.constant 0.000000e+00 : f32
    %115 = vector.broadcast %cst_33 : f32 to vector<1x2176xf32>
    %116 = vector.broadcast %cst_34 : f32 to vector<1x2176xf32>
    %117 = arith.select %114, %115, %116 : vector<1x2176xi1>, vector<1x2176xf32>
    %118 = arith.select %110, %112, %117 : vector<1x2176xi1>, vector<1x2176xf32>
    %119 = arith.select %108, %106, %118 : vector<1x2176xi1>, vector<1x2176xf32>
    %120 = vector.extract_strided_slice %7 {offsets = [1, 0], sizes = [1, 2176], strides = [1, 1]} : vector<3x2176xf32> to vector<1x2176xf32>
    %121 = vector.extract_strided_slice %10 {offsets = [2, 0], sizes = [1, 2176], strides = [1, 1]} : vector<3x2176xf32> to vector<1x2176xf32>
    %122 = arith.mulf %120, %121 : vector<1x2176xf32>
    %123 = vector.extract_strided_slice %7 {offsets = [2, 0], sizes = [1, 2176], strides = [1, 1]} : vector<3x2176xf32> to vector<1x2176xf32>
    %124 = vector.extract_strided_slice %10 {offsets = [1, 0], sizes = [1, 2176], strides = [1, 1]} : vector<3x2176xf32> to vector<1x2176xf32>
    %125 = arith.mulf %123, %124 : vector<1x2176xf32>
    %126 = arith.subf %122, %125 : vector<1x2176xf32>
    %127 = vector.extract_strided_slice %7 {offsets = [2, 0], sizes = [1, 2176], strides = [1, 1]} : vector<3x2176xf32> to vector<1x2176xf32>
    %128 = vector.extract_strided_slice %10 {offsets = [0, 0], sizes = [1, 2176], strides = [1, 1]} : vector<3x2176xf32> to vector<1x2176xf32>
    %129 = arith.mulf %127, %128 : vector<1x2176xf32>
    %130 = vector.extract_strided_slice %7 {offsets = [0, 0], sizes = [1, 2176], strides = [1, 1]} : vector<3x2176xf32> to vector<1x2176xf32>
    %131 = vector.extract_strided_slice %10 {offsets = [2, 0], sizes = [1, 2176], strides = [1, 1]} : vector<3x2176xf32> to vector<1x2176xf32>
    %132 = arith.mulf %130, %131 : vector<1x2176xf32>
    %133 = arith.subf %129, %132 : vector<1x2176xf32>
    %134 = vector.extract_strided_slice %7 {offsets = [0, 0], sizes = [1, 2176], strides = [1, 1]} : vector<3x2176xf32> to vector<1x2176xf32>
    %135 = vector.extract_strided_slice %10 {offsets = [1, 0], sizes = [1, 2176], strides = [1, 1]} : vector<3x2176xf32> to vector<1x2176xf32>
    %136 = arith.mulf %134, %135 : vector<1x2176xf32>
    %137 = vector.extract_strided_slice %7 {offsets = [1, 0], sizes = [1, 2176], strides = [1, 1]} : vector<3x2176xf32> to vector<1x2176xf32>
    %138 = vector.extract_strided_slice %10 {offsets = [0, 0], sizes = [1, 2176], strides = [1, 1]} : vector<3x2176xf32> to vector<1x2176xf32>
    %139 = arith.mulf %137, %138 : vector<1x2176xf32>
    %140 = arith.subf %136, %139 : vector<1x2176xf32>
    %141 = arith.mulf %126, %126 : vector<1x2176xf32>
    %142 = arith.mulf %133, %133 : vector<1x2176xf32>
    %143 = arith.addf %141, %142 : vector<1x2176xf32>
    %144 = arith.mulf %140, %140 : vector<1x2176xf32>
    %145 = arith.addf %143, %144 : vector<1x2176xf32>
    %146 = math.sqrt %145 : vector<1x2176xf32>
    %147 = vector.extract_strided_slice %7 {offsets = [0, 0], sizes = [1, 2176], strides = [1, 1]} : vector<3x2176xf32> to vector<1x2176xf32>
    %148 = vector.extract_strided_slice %10 {offsets = [0, 0], sizes = [1, 2176], strides = [1, 1]} : vector<3x2176xf32> to vector<1x2176xf32>
    %149 = arith.mulf %147, %148 : vector<1x2176xf32>
    %150 = vector.extract_strided_slice %7 {offsets = [1, 0], sizes = [1, 2176], strides = [1, 1]} : vector<3x2176xf32> to vector<1x2176xf32>
    %151 = vector.extract_strided_slice %10 {offsets = [1, 0], sizes = [1, 2176], strides = [1, 1]} : vector<3x2176xf32> to vector<1x2176xf32>
    %152 = arith.mulf %150, %151 : vector<1x2176xf32>
    %153 = arith.addf %149, %152 : vector<1x2176xf32>
    %154 = vector.extract_strided_slice %7 {offsets = [2, 0], sizes = [1, 2176], strides = [1, 1]} : vector<3x2176xf32> to vector<1x2176xf32>
    %155 = vector.extract_strided_slice %10 {offsets = [2, 0], sizes = [1, 2176], strides = [1, 1]} : vector<3x2176xf32> to vector<1x2176xf32>
    %156 = arith.mulf %154, %155 : vector<1x2176xf32>
    %157 = arith.addf %153, %156 : vector<1x2176xf32>
    %158 = math.absf %157 : vector<1x2176xf32>
    %cst_35 = arith.constant 0.000000e+00 : f32
    %159 = vector.broadcast %cst_35 : f32 to vector<1x2176xf32>
    %160 = arith.cmpf ogt, %158, %159 : vector<1x2176xf32>
    %cst_36 = arith.constant 1.000000e+00 : f32
    %161 = vector.broadcast %cst_36 : f32 to vector<1x2176xf32>
    %162 = arith.select %160, %158, %161 : vector<1x2176xi1>, vector<1x2176xf32>
    %163 = tpu.reciprocal %162 {approx = true} : vector<1x2176xf32> -> vector<1x2176xf32>
    %164 = arith.mulf %146, %163 : vector<1x2176xf32>
    %cst_37 = arith.constant 2.41421366 : f32
    %165 = vector.broadcast %cst_37 : f32 to vector<1x2176xf32>
    %166 = arith.cmpf ogt, %164, %165 : vector<1x2176xf32>
    %cst_38 = arith.constant 0.414213568 : f32
    %167 = vector.broadcast %cst_38 : f32 to vector<1x2176xf32>
    %168 = arith.cmpf ogt, %164, %167 : vector<1x2176xf32>
    %cst_39 = arith.constant dense<true> : vector<1x2176xi1>
    %169 = arith.xori %166, %cst_39 : vector<1x2176xi1>
    %170 = arith.andi %168, %169 : vector<1x2176xi1>
    %cst_40 = arith.constant 1.000000e+00 : f32
    %171 = vector.broadcast %cst_40 : f32 to vector<1x2176xf32>
    %172 = arith.select %166, %164, %171 : vector<1x2176xi1>, vector<1x2176xf32>
    %173 = tpu.reciprocal %172 {approx = true} : vector<1x2176xf32> -> vector<1x2176xf32>
    %cst_41 = arith.constant 0.000000e+00 : f32
    %174 = vector.broadcast %cst_41 : f32 to vector<1x2176xf32>
    %175 = arith.subf %174, %173 : vector<1x2176xf32>
    %cst_42 = arith.constant 1.000000e+00 : f32
    %176 = vector.broadcast %cst_42 : f32 to vector<1x2176xf32>
    %177 = arith.subf %164, %176 : vector<1x2176xf32>
    %cst_43 = arith.constant 1.000000e+00 : f32
    %178 = vector.broadcast %cst_43 : f32 to vector<1x2176xf32>
    %179 = arith.addf %164, %178 : vector<1x2176xf32>
    %180 = tpu.reciprocal %179 {approx = true} : vector<1x2176xf32> -> vector<1x2176xf32>
    %181 = arith.mulf %177, %180 : vector<1x2176xf32>
    %182 = arith.select %170, %181, %164 : vector<1x2176xi1>, vector<1x2176xf32>
    %183 = arith.select %166, %175, %182 : vector<1x2176xi1>, vector<1x2176xf32>
    %cst_44 = arith.constant 0.785398185 : f32
    %cst_45 = arith.constant 0.000000e+00 : f32
    %184 = vector.broadcast %cst_44 : f32 to vector<1x2176xf32>
    %185 = vector.broadcast %cst_45 : f32 to vector<1x2176xf32>
    %186 = arith.select %170, %184, %185 : vector<1x2176xi1>, vector<1x2176xf32>
    %cst_46 = arith.constant 1.57079637 : f32
    %187 = vector.broadcast %cst_46 : f32 to vector<1x2176xf32>
    %188 = arith.select %166, %187, %186 : vector<1x2176xi1>, vector<1x2176xf32>
    %189 = arith.mulf %183, %183 : vector<1x2176xf32>
    %cst_47 = arith.constant 0.0805374458 : f32
    %190 = vector.broadcast %cst_47 : f32 to vector<1x2176xf32>
    %191 = arith.mulf %190, %189 : vector<1x2176xf32>
    %cst_48 = arith.constant 0.138776854 : f32
    %192 = vector.broadcast %cst_48 : f32 to vector<1x2176xf32>
    %193 = arith.subf %191, %192 : vector<1x2176xf32>
    %194 = arith.mulf %193, %189 : vector<1x2176xf32>
    %cst_49 = arith.constant 0.199777111 : f32
    %195 = vector.broadcast %cst_49 : f32 to vector<1x2176xf32>
    %196 = arith.addf %194, %195 : vector<1x2176xf32>
    %197 = arith.mulf %196, %189 : vector<1x2176xf32>
    %cst_50 = arith.constant 0.333329499 : f32
    %198 = vector.broadcast %cst_50 : f32 to vector<1x2176xf32>
    %199 = arith.subf %197, %198 : vector<1x2176xf32>
    %200 = arith.mulf %199, %189 : vector<1x2176xf32>
    %201 = arith.mulf %200, %183 : vector<1x2176xf32>
    %202 = arith.addf %201, %183 : vector<1x2176xf32>
    %203 = arith.addf %188, %202 : vector<1x2176xf32>
    %cst_51 = arith.constant 0.000000e+00 : f32
    %204 = vector.broadcast %cst_51 : f32 to vector<1x2176xf32>
    %205 = arith.cmpf ogt, %157, %204 : vector<1x2176xf32>
    %cst_52 = arith.constant 0.000000e+00 : f32
    %206 = vector.broadcast %cst_52 : f32 to vector<1x2176xf32>
    %207 = arith.cmpf olt, %157, %206 : vector<1x2176xf32>
    %cst_53 = arith.constant 3.14159274 : f32
    %208 = vector.broadcast %cst_53 : f32 to vector<1x2176xf32>
    %209 = arith.subf %208, %203 : vector<1x2176xf32>
    %cst_54 = arith.constant 0.000000e+00 : f32
    %210 = vector.broadcast %cst_54 : f32 to vector<1x2176xf32>
    %211 = arith.cmpf ogt, %146, %210 : vector<1x2176xf32>
    %cst_55 = arith.constant 1.57079637 : f32
    %cst_56 = arith.constant 0.000000e+00 : f32
    %212 = vector.broadcast %cst_55 : f32 to vector<1x2176xf32>
    %213 = vector.broadcast %cst_56 : f32 to vector<1x2176xf32>
    %214 = arith.select %211, %212, %213 : vector<1x2176xi1>, vector<1x2176xf32>
    %215 = arith.select %207, %209, %214 : vector<1x2176xi1>, vector<1x2176xf32>
    %216 = arith.select %205, %203, %215 : vector<1x2176xi1>, vector<1x2176xf32>
    %217 = vector.extract_strided_slice %3 {offsets = [1, 0], sizes = [1, 2176], strides = [1, 1]} : vector<3x2176xf32> to vector<1x2176xf32>
    %218 = vector.extract_strided_slice %7 {offsets = [2, 0], sizes = [1, 2176], strides = [1, 1]} : vector<3x2176xf32> to vector<1x2176xf32>
    %219 = arith.mulf %217, %218 : vector<1x2176xf32>
    %220 = vector.extract_strided_slice %3 {offsets = [2, 0], sizes = [1, 2176], strides = [1, 1]} : vector<3x2176xf32> to vector<1x2176xf32>
    %221 = vector.extract_strided_slice %7 {offsets = [1, 0], sizes = [1, 2176], strides = [1, 1]} : vector<3x2176xf32> to vector<1x2176xf32>
    %222 = arith.mulf %220, %221 : vector<1x2176xf32>
    %223 = arith.subf %219, %222 : vector<1x2176xf32>
    %224 = vector.extract_strided_slice %3 {offsets = [2, 0], sizes = [1, 2176], strides = [1, 1]} : vector<3x2176xf32> to vector<1x2176xf32>
    %225 = vector.extract_strided_slice %7 {offsets = [0, 0], sizes = [1, 2176], strides = [1, 1]} : vector<3x2176xf32> to vector<1x2176xf32>
    %226 = arith.mulf %224, %225 : vector<1x2176xf32>
    %227 = vector.extract_strided_slice %3 {offsets = [0, 0], sizes = [1, 2176], strides = [1, 1]} : vector<3x2176xf32> to vector<1x2176xf32>
    %228 = vector.extract_strided_slice %7 {offsets = [2, 0], sizes = [1, 2176], strides = [1, 1]} : vector<3x2176xf32> to vector<1x2176xf32>
    %229 = arith.mulf %227, %228 : vector<1x2176xf32>
    %230 = arith.subf %226, %229 : vector<1x2176xf32>
    %231 = vector.extract_strided_slice %3 {offsets = [0, 0], sizes = [1, 2176], strides = [1, 1]} : vector<3x2176xf32> to vector<1x2176xf32>
    %232 = vector.extract_strided_slice %7 {offsets = [1, 0], sizes = [1, 2176], strides = [1, 1]} : vector<3x2176xf32> to vector<1x2176xf32>
    %233 = arith.mulf %231, %232 : vector<1x2176xf32>
    %234 = vector.extract_strided_slice %3 {offsets = [1, 0], sizes = [1, 2176], strides = [1, 1]} : vector<3x2176xf32> to vector<1x2176xf32>
    %235 = vector.extract_strided_slice %7 {offsets = [0, 0], sizes = [1, 2176], strides = [1, 1]} : vector<3x2176xf32> to vector<1x2176xf32>
    %236 = arith.mulf %234, %235 : vector<1x2176xf32>
    %237 = arith.subf %233, %236 : vector<1x2176xf32>
    %238 = arith.mulf %223, %223 : vector<1x2176xf32>
    %239 = arith.mulf %230, %230 : vector<1x2176xf32>
    %240 = arith.addf %238, %239 : vector<1x2176xf32>
    %241 = arith.mulf %237, %237 : vector<1x2176xf32>
    %242 = arith.addf %240, %241 : vector<1x2176xf32>
    %243 = math.sqrt %242 : vector<1x2176xf32>
    %244 = vector.extract_strided_slice %3 {offsets = [0, 0], sizes = [1, 2176], strides = [1, 1]} : vector<3x2176xf32> to vector<1x2176xf32>
    %245 = vector.extract_strided_slice %7 {offsets = [0, 0], sizes = [1, 2176], strides = [1, 1]} : vector<3x2176xf32> to vector<1x2176xf32>
    %246 = arith.mulf %244, %245 : vector<1x2176xf32>
    %247 = vector.extract_strided_slice %3 {offsets = [1, 0], sizes = [1, 2176], strides = [1, 1]} : vector<3x2176xf32> to vector<1x2176xf32>
    %248 = vector.extract_strided_slice %7 {offsets = [1, 0], sizes = [1, 2176], strides = [1, 1]} : vector<3x2176xf32> to vector<1x2176xf32>
    %249 = arith.mulf %247, %248 : vector<1x2176xf32>
    %250 = arith.addf %246, %249 : vector<1x2176xf32>
    %251 = vector.extract_strided_slice %3 {offsets = [2, 0], sizes = [1, 2176], strides = [1, 1]} : vector<3x2176xf32> to vector<1x2176xf32>
    %252 = vector.extract_strided_slice %7 {offsets = [2, 0], sizes = [1, 2176], strides = [1, 1]} : vector<3x2176xf32> to vector<1x2176xf32>
    %253 = arith.mulf %251, %252 : vector<1x2176xf32>
    %254 = arith.addf %250, %253 : vector<1x2176xf32>
    %255 = math.absf %254 : vector<1x2176xf32>
    %cst_57 = arith.constant 0.000000e+00 : f32
    %256 = vector.broadcast %cst_57 : f32 to vector<1x2176xf32>
    %257 = arith.cmpf ogt, %255, %256 : vector<1x2176xf32>
    %cst_58 = arith.constant 1.000000e+00 : f32
    %258 = vector.broadcast %cst_58 : f32 to vector<1x2176xf32>
    %259 = arith.select %257, %255, %258 : vector<1x2176xi1>, vector<1x2176xf32>
    %260 = tpu.reciprocal %259 {approx = true} : vector<1x2176xf32> -> vector<1x2176xf32>
    %261 = arith.mulf %243, %260 : vector<1x2176xf32>
    %cst_59 = arith.constant 2.41421366 : f32
    %262 = vector.broadcast %cst_59 : f32 to vector<1x2176xf32>
    %263 = arith.cmpf ogt, %261, %262 : vector<1x2176xf32>
    %cst_60 = arith.constant 0.414213568 : f32
    %264 = vector.broadcast %cst_60 : f32 to vector<1x2176xf32>
    %265 = arith.cmpf ogt, %261, %264 : vector<1x2176xf32>
    %cst_61 = arith.constant dense<true> : vector<1x2176xi1>
    %266 = arith.xori %263, %cst_61 : vector<1x2176xi1>
    %267 = arith.andi %265, %266 : vector<1x2176xi1>
    %cst_62 = arith.constant 1.000000e+00 : f32
    %268 = vector.broadcast %cst_62 : f32 to vector<1x2176xf32>
    %269 = arith.select %263, %261, %268 : vector<1x2176xi1>, vector<1x2176xf32>
    %270 = tpu.reciprocal %269 {approx = true} : vector<1x2176xf32> -> vector<1x2176xf32>
    %cst_63 = arith.constant 0.000000e+00 : f32
    %271 = vector.broadcast %cst_63 : f32 to vector<1x2176xf32>
    %272 = arith.subf %271, %270 : vector<1x2176xf32>
    %cst_64 = arith.constant 1.000000e+00 : f32
    %273 = vector.broadcast %cst_64 : f32 to vector<1x2176xf32>
    %274 = arith.subf %261, %273 : vector<1x2176xf32>
    %cst_65 = arith.constant 1.000000e+00 : f32
    %275 = vector.broadcast %cst_65 : f32 to vector<1x2176xf32>
    %276 = arith.addf %261, %275 : vector<1x2176xf32>
    %277 = tpu.reciprocal %276 {approx = true} : vector<1x2176xf32> -> vector<1x2176xf32>
    %278 = arith.mulf %274, %277 : vector<1x2176xf32>
    %279 = arith.select %267, %278, %261 : vector<1x2176xi1>, vector<1x2176xf32>
    %280 = arith.select %263, %272, %279 : vector<1x2176xi1>, vector<1x2176xf32>
    %cst_66 = arith.constant 0.785398185 : f32
    %cst_67 = arith.constant 0.000000e+00 : f32
    %281 = vector.broadcast %cst_66 : f32 to vector<1x2176xf32>
    %282 = vector.broadcast %cst_67 : f32 to vector<1x2176xf32>
    %283 = arith.select %267, %281, %282 : vector<1x2176xi1>, vector<1x2176xf32>
    %cst_68 = arith.constant 1.57079637 : f32
    %284 = vector.broadcast %cst_68 : f32 to vector<1x2176xf32>
    %285 = arith.select %263, %284, %283 : vector<1x2176xi1>, vector<1x2176xf32>
    %286 = arith.mulf %280, %280 : vector<1x2176xf32>
    %cst_69 = arith.constant 0.0805374458 : f32
    %287 = vector.broadcast %cst_69 : f32 to vector<1x2176xf32>
    %288 = arith.mulf %287, %286 : vector<1x2176xf32>
    %cst_70 = arith.constant 0.138776854 : f32
    %289 = vector.broadcast %cst_70 : f32 to vector<1x2176xf32>
    %290 = arith.subf %288, %289 : vector<1x2176xf32>
    %291 = arith.mulf %290, %286 : vector<1x2176xf32>
    %cst_71 = arith.constant 0.199777111 : f32
    %292 = vector.broadcast %cst_71 : f32 to vector<1x2176xf32>
    %293 = arith.addf %291, %292 : vector<1x2176xf32>
    %294 = arith.mulf %293, %286 : vector<1x2176xf32>
    %cst_72 = arith.constant 0.333329499 : f32
    %295 = vector.broadcast %cst_72 : f32 to vector<1x2176xf32>
    %296 = arith.subf %294, %295 : vector<1x2176xf32>
    %297 = arith.mulf %296, %286 : vector<1x2176xf32>
    %298 = arith.mulf %297, %280 : vector<1x2176xf32>
    %299 = arith.addf %298, %280 : vector<1x2176xf32>
    %300 = arith.addf %285, %299 : vector<1x2176xf32>
    %cst_73 = arith.constant 0.000000e+00 : f32
    %301 = vector.broadcast %cst_73 : f32 to vector<1x2176xf32>
    %302 = arith.cmpf ogt, %254, %301 : vector<1x2176xf32>
    %cst_74 = arith.constant 0.000000e+00 : f32
    %303 = vector.broadcast %cst_74 : f32 to vector<1x2176xf32>
    %304 = arith.cmpf olt, %254, %303 : vector<1x2176xf32>
    %cst_75 = arith.constant 3.14159274 : f32
    %305 = vector.broadcast %cst_75 : f32 to vector<1x2176xf32>
    %306 = arith.subf %305, %300 : vector<1x2176xf32>
    %cst_76 = arith.constant 0.000000e+00 : f32
    %307 = vector.broadcast %cst_76 : f32 to vector<1x2176xf32>
    %308 = arith.cmpf ogt, %243, %307 : vector<1x2176xf32>
    %cst_77 = arith.constant 1.57079637 : f32
    %cst_78 = arith.constant 0.000000e+00 : f32
    %309 = vector.broadcast %cst_77 : f32 to vector<1x2176xf32>
    %310 = vector.broadcast %cst_78 : f32 to vector<1x2176xf32>
    %311 = arith.select %308, %309, %310 : vector<1x2176xi1>, vector<1x2176xf32>
    %312 = arith.select %304, %306, %311 : vector<1x2176xi1>, vector<1x2176xf32>
    %313 = arith.select %302, %300, %312 : vector<1x2176xi1>, vector<1x2176xf32>
    %314 = tpu.concatenate %22, %119, %216, %313 in 0 : vector<1x2176xf32>, vector<1x2176xf32>, vector<1x2176xf32>, vector<1x2176xf32> -> vector<4x2176xf32>
    %c0_79 = arith.constant 0 : index
    %c0_80 = arith.constant 0 : index
    %315 = vector.load %arg6[%c0_79, %c0_80] : memref<32x4xf32, #tpu.memory_space<vmem>>, vector<32x4xf32>
    %cst_81 = arith.constant dense<0.000000e+00> : vector<32x2176xf32>
    %316 = tpu.matmul %315, %314, %cst_81 {dimension_numbers = #tpu.dot_dimension_numbers<[1], [0], [0], [1], [0, 0, 1, 1], [], []>} : vector<32x4xf32>, vector<4x2176xf32>, vector<32x2176xf32> -> vector<32x2176xf32>
    %c0_82 = arith.constant 0 : index
    %c0_83 = arith.constant 0 : index
    %317 = vector.load %arg7[%c0_82, %c0_83] : memref<32x1xf32, #tpu.memory_space<vmem>>, vector<32x1xf32>
    %318 = vector.broadcast %317 : vector<32x1xf32> to vector<32x2176xf32>
    %319 = arith.addf %316, %318 : vector<32x2176xf32>
    %cst_84 = arith.constant 0.000000e+00 : f32
    %320 = vector.broadcast %cst_84 : f32 to vector<32x2176xf32>
    %321 = arith.maximumf %319, %320 : vector<32x2176xf32>
    %c0_85 = arith.constant 0 : index
    %c0_86 = arith.constant 0 : index
    %322 = vector.load %arg8[%c0_85, %c0_86] : memref<32x32xf32, #tpu.memory_space<vmem>>, vector<32x32xf32>
    %cst_87 = arith.constant dense<0.000000e+00> : vector<32x2176xf32>
    %323 = tpu.matmul %322, %321, %cst_87 {dimension_numbers = #tpu.dot_dimension_numbers<[1], [0], [0], [1], [0, 0, 1, 1], [], []>} : vector<32x32xf32>, vector<32x2176xf32>, vector<32x2176xf32> -> vector<32x2176xf32>
    %c0_88 = arith.constant 0 : index
    %c0_89 = arith.constant 0 : index
    %324 = vector.load %arg9[%c0_88, %c0_89] : memref<32x1xf32, #tpu.memory_space<vmem>>, vector<32x1xf32>
    %325 = vector.broadcast %324 : vector<32x1xf32> to vector<32x2176xf32>
    %326 = arith.addf %323, %325 : vector<32x2176xf32>
    %327 = vector.extract_strided_slice %326 {offsets = [0, 0], sizes = [32, 128], strides = [1, 1]} : vector<32x2176xf32> to vector<32x128xf32>
    %328 = vector.extract_strided_slice %326 {offsets = [0, 128], sizes = [32, 128], strides = [1, 1]} : vector<32x2176xf32> to vector<32x128xf32>
    %329 = arith.maximumf %327, %328 : vector<32x128xf32>
    %330 = vector.extract_strided_slice %326 {offsets = [0, 256], sizes = [32, 128], strides = [1, 1]} : vector<32x2176xf32> to vector<32x128xf32>
    %331 = arith.maximumf %329, %330 : vector<32x128xf32>
    %332 = vector.extract_strided_slice %326 {offsets = [0, 384], sizes = [32, 128], strides = [1, 1]} : vector<32x2176xf32> to vector<32x128xf32>
    %333 = arith.maximumf %331, %332 : vector<32x128xf32>
    %334 = vector.extract_strided_slice %326 {offsets = [0, 512], sizes = [32, 128], strides = [1, 1]} : vector<32x2176xf32> to vector<32x128xf32>
    %335 = arith.maximumf %333, %334 : vector<32x128xf32>
    %336 = vector.extract_strided_slice %326 {offsets = [0, 640], sizes = [32, 128], strides = [1, 1]} : vector<32x2176xf32> to vector<32x128xf32>
    %337 = arith.maximumf %335, %336 : vector<32x128xf32>
    %338 = vector.extract_strided_slice %326 {offsets = [0, 768], sizes = [32, 128], strides = [1, 1]} : vector<32x2176xf32> to vector<32x128xf32>
    %339 = arith.maximumf %337, %338 : vector<32x128xf32>
    %340 = vector.extract_strided_slice %326 {offsets = [0, 896], sizes = [32, 128], strides = [1, 1]} : vector<32x2176xf32> to vector<32x128xf32>
    %341 = arith.maximumf %339, %340 : vector<32x128xf32>
    %342 = vector.extract_strided_slice %326 {offsets = [0, 1024], sizes = [32, 128], strides = [1, 1]} : vector<32x2176xf32> to vector<32x128xf32>
    %343 = arith.maximumf %341, %342 : vector<32x128xf32>
    %344 = vector.extract_strided_slice %326 {offsets = [0, 1152], sizes = [32, 128], strides = [1, 1]} : vector<32x2176xf32> to vector<32x128xf32>
    %345 = arith.maximumf %343, %344 : vector<32x128xf32>
    %346 = vector.extract_strided_slice %326 {offsets = [0, 1280], sizes = [32, 128], strides = [1, 1]} : vector<32x2176xf32> to vector<32x128xf32>
    %347 = arith.maximumf %345, %346 : vector<32x128xf32>
    %348 = vector.extract_strided_slice %326 {offsets = [0, 1408], sizes = [32, 128], strides = [1, 1]} : vector<32x2176xf32> to vector<32x128xf32>
    %349 = arith.maximumf %347, %348 : vector<32x128xf32>
    %350 = vector.extract_strided_slice %326 {offsets = [0, 1536], sizes = [32, 128], strides = [1, 1]} : vector<32x2176xf32> to vector<32x128xf32>
    %351 = arith.maximumf %349, %350 : vector<32x128xf32>
    %352 = vector.extract_strided_slice %326 {offsets = [0, 1664], sizes = [32, 128], strides = [1, 1]} : vector<32x2176xf32> to vector<32x128xf32>
    %353 = arith.maximumf %351, %352 : vector<32x128xf32>
    %354 = vector.extract_strided_slice %326 {offsets = [0, 1792], sizes = [32, 128], strides = [1, 1]} : vector<32x2176xf32> to vector<32x128xf32>
    %355 = arith.maximumf %353, %354 : vector<32x128xf32>
    %356 = vector.extract_strided_slice %326 {offsets = [0, 1920], sizes = [32, 128], strides = [1, 1]} : vector<32x2176xf32> to vector<32x128xf32>
    %357 = arith.maximumf %355, %356 : vector<32x128xf32>
    %358 = vector.extract_strided_slice %326 {offsets = [0, 2048], sizes = [32, 128], strides = [1, 1]} : vector<32x2176xf32> to vector<32x128xf32>
    %359 = arith.maximumf %357, %358 : vector<32x128xf32>
    %cst_90 = arith.constant 0.000000e+00 : f32
    %360 = vector.broadcast %cst_90 : f32 to vector<32x128xf32>
    %361 = arith.maximumf %359, %360 : vector<32x128xf32>
    %362 = tpu.iota {dimensions = array<i32: 0>} : vector<128x2176xi32>
    %363 = vector.broadcast %9 : vector<1x2176xi32> to vector<128x2176xi32>
    %364 = arith.cmpi eq, %362, %363 : vector<128x2176xi32>
    %cst_91 = arith.constant 1.000000e+00 : f32
    %cst_92 = arith.constant 0.000000e+00 : f32
    %365 = vector.broadcast %cst_91 : f32 to vector<128x2176xf32>
    %366 = vector.broadcast %cst_92 : f32 to vector<128x2176xf32>
    %367 = arith.select %364, %365, %366 : vector<128x2176xi1>, vector<128x2176xf32>
    %cst_93 = arith.constant dense<0.000000e+00> : vector<32x2176xf32>
    %368 = tpu.matmul %361, %367, %cst_93 {dimension_numbers = #tpu.dot_dimension_numbers<[1], [0], [0], [1], [0, 0, 1, 1], [], []>} : vector<32x128xf32>, vector<128x2176xf32>, vector<32x2176xf32> -> vector<32x2176xf32>
    %c0_94 = arith.constant 0 : index
    %c0_95 = arith.constant 0 : index
    %369 = vector.load %arg10[%c0_94, %c0_95] : memref<32x32xf32, #tpu.memory_space<vmem>>, vector<32x32xf32>
    %cst_96 = arith.constant dense<0.000000e+00> : vector<32x2176xf32>
    %370 = tpu.matmul %369, %368, %cst_96 {dimension_numbers = #tpu.dot_dimension_numbers<[1], [0], [0], [1], [0, 0, 1, 1], [], []>} : vector<32x32xf32>, vector<32x2176xf32>, vector<32x2176xf32> -> vector<32x2176xf32>
    %c0_97 = arith.constant 0 : index
    %c0_98 = arith.constant 0 : index
    %371 = vector.load %arg11[%c0_97, %c0_98] : memref<32x4xf32, #tpu.memory_space<vmem>>, vector<32x4xf32>
    %cst_99 = arith.constant dense<0.000000e+00> : vector<32x2176xf32>
    %372 = tpu.matmul %371, %314, %cst_99 {dimension_numbers = #tpu.dot_dimension_numbers<[1], [0], [0], [1], [0, 0, 1, 1], [], []>} : vector<32x4xf32>, vector<4x2176xf32>, vector<32x2176xf32> -> vector<32x2176xf32>
    %373 = arith.addf %370, %372 : vector<32x2176xf32>
    %c0_100 = arith.constant 0 : index
    %c0_101 = arith.constant 0 : index
    %374 = vector.load %arg12[%c0_100, %c0_101] : memref<32x1xf32, #tpu.memory_space<vmem>>, vector<32x1xf32>
    %375 = vector.broadcast %374 : vector<32x1xf32> to vector<32x2176xf32>
    %376 = arith.addf %373, %375 : vector<32x2176xf32>
    %cst_102 = arith.constant 0.000000e+00 : f32
    %377 = vector.broadcast %cst_102 : f32 to vector<32x2176xf32>
    %378 = arith.maximumf %376, %377 : vector<32x2176xf32>
    %c0_103 = arith.constant 0 : index
    %c0_104 = arith.constant 0 : index
    %379 = vector.load %arg13[%c0_103, %c0_104] : memref<32x32xf32, #tpu.memory_space<vmem>>, vector<32x32xf32>
    %cst_105 = arith.constant dense<0.000000e+00> : vector<32x2176xf32>
    %380 = tpu.matmul %379, %378, %cst_105 {dimension_numbers = #tpu.dot_dimension_numbers<[1], [0], [0], [1], [0, 0, 1, 1], [], []>} : vector<32x32xf32>, vector<32x2176xf32>, vector<32x2176xf32> -> vector<32x2176xf32>
    %c0_106 = arith.constant 0 : index
    %c0_107 = arith.constant 0 : index
    %381 = vector.load %arg14[%c0_106, %c0_107] : memref<32x1xf32, #tpu.memory_space<vmem>>, vector<32x1xf32>
    %382 = vector.broadcast %381 : vector<32x1xf32> to vector<32x2176xf32>
    %383 = arith.addf %380, %382 : vector<32x2176xf32>
    %cst_108 = arith.constant dense<0xFF800000> : vector<32xf32>
    %384 = vector.multi_reduction <maximumf>, %383, %cst_108 [1] : vector<32x2176xf32> to vector<32xf32>
    %385 = vector.shape_cast %384 : vector<32xf32> to vector<32x1xf32>
    %cst_109 = arith.constant 0.000000e+00 : f32
    %386 = vector.broadcast %cst_109 : f32 to vector<32x1xf32>
    %387 = arith.maximumf %385, %386 : vector<32x1xf32>
    %c0_110 = arith.constant 0 : index
    %c0_111 = arith.constant 0 : index
    %c0_112 = arith.constant 0 : index
    %388 = vector.load %arg15[%c0_110, %c0_111, %c0_112] : memref<1x32x1xf32, #tpu.memory_space<vmem>>, vector<1x32x1xf32>
    %389 = vector.shape_cast %388 : vector<1x32x1xf32> to vector<32x1xf32>
    %390 = vector.shape_cast %387 : vector<32x1xf32> to vector<1x32x1xf32>
    tpu.vector_store %arg15[%c0_110, %c0_111, %c0_112], %390 {strides = array<i32>} : memref<1x32x1xf32, #tpu.memory_space<vmem>>, vector<1x32x1xf32>,
    return
  }
  func.func @transform_0(%arg0: i32) -> (i32, i32, i32) {
    %c0_i32 = arith.constant 0 : i32
    %c0_i32_0 = arith.constant 0 : i32
    %c0_i32_1 = arith.constant 0 : i32
    return %arg0, %c0_i32, %c0_i32_0 : i32, i32, i32
  }
  func.func @transform_1(%arg0: i32) -> (i32, i32, i32) {
    %c0_i32 = arith.constant 0 : i32
    %c0_i32_0 = arith.constant 0 : i32
    %c0_i32_1 = arith.constant 0 : i32
    return %arg0, %c0_i32, %c0_i32_0 : i32, i32, i32
  }
  func.func @transform_2(%arg0: i32) -> (i32, i32, i32) {
    %c0_i32 = arith.constant 0 : i32
    %c0_i32_0 = arith.constant 0 : i32
    %c0_i32_1 = arith.constant 0 : i32
    return %arg0, %c0_i32, %c0_i32_0 : i32, i32, i32
  }
  func.func @transform_3(%arg0: i32) -> (i32, i32, i32) {
    %c0_i32 = arith.constant 0 : i32
    %c0_i32_0 = arith.constant 0 : i32
    %c0_i32_1 = arith.constant 0 : i32
    return %arg0, %c0_i32, %c0_i32_0 : i32, i32, i32
  }
  func.func @transform_4(%arg0: i32) -> (i32, i32, i32) {
    %c0_i32 = arith.constant 0 : i32
    %c0_i32_0 = arith.constant 0 : i32
    %c0_i32_1 = arith.constant 0 : i32
    return %arg0, %c0_i32, %c0_i32_0 : i32, i32, i32
  }
  func.func @transform_5(%arg0: i32) -> (i32, i32) {
    %c0_i32 = arith.constant 0 : i32
    %c0_i32_0 = arith.constant 0 : i32
    %c0_i32_1 = arith.constant 0 : i32
    return %c0_i32, %c0_i32_0 : i32, i32
  }
  func.func @transform_6(%arg0: i32) -> (i32, i32) {
    %c0_i32 = arith.constant 0 : i32
    %c0_i32_0 = arith.constant 0 : i32
    %c0_i32_1 = arith.constant 0 : i32
    return %c0_i32, %c0_i32_0 : i32, i32
  }
  func.func @transform_7(%arg0: i32) -> (i32, i32) {
    %c0_i32 = arith.constant 0 : i32
    %c0_i32_0 = arith.constant 0 : i32
    %c0_i32_1 = arith.constant 0 : i32
    return %c0_i32, %c0_i32_0 : i32, i32
  }
  func.func @transform_8(%arg0: i32) -> (i32, i32) {
    %c0_i32 = arith.constant 0 : i32
    %c0_i32_0 = arith.constant 0 : i32
    %c0_i32_1 = arith.constant 0 : i32
    return %c0_i32, %c0_i32_0 : i32, i32
  }
  func.func @transform_9(%arg0: i32) -> (i32, i32) {
    %c0_i32 = arith.constant 0 : i32
    %c0_i32_0 = arith.constant 0 : i32
    %c0_i32_1 = arith.constant 0 : i32
    return %c0_i32, %c0_i32_0 : i32, i32
  }
  func.func @transform_10(%arg0: i32) -> (i32, i32) {
    %c0_i32 = arith.constant 0 : i32
    %c0_i32_0 = arith.constant 0 : i32
    %c0_i32_1 = arith.constant 0 : i32
    return %c0_i32, %c0_i32_0 : i32, i32
  }
  func.func @transform_11(%arg0: i32) -> (i32, i32) {
    %c0_i32 = arith.constant 0 : i32
    %c0_i32_0 = arith.constant 0 : i32
    %c0_i32_1 = arith.constant 0 : i32
    return %c0_i32, %c0_i32_0 : i32, i32
  }
  func.func @transform_12(%arg0: i32) -> (i32, i32) {
    %c0_i32 = arith.constant 0 : i32
    %c0_i32_0 = arith.constant 0 : i32
    %c0_i32_1 = arith.constant 0 : i32
    return %c0_i32, %c0_i32_0 : i32, i32
  }
  func.func @transform_13(%arg0: i32) -> (i32, i32) {
    %c0_i32 = arith.constant 0 : i32
    %c0_i32_0 = arith.constant 0 : i32
    %c0_i32_1 = arith.constant 0 : i32
    return %c0_i32, %c0_i32_0 : i32, i32
  }
  func.func @transform_14(%arg0: i32) -> (i32, i32, i32) {
    %c0_i32 = arith.constant 0 : i32
    %c0_i32_0 = arith.constant 0 : i32
    %c0_i32_1 = arith.constant 0 : i32
    return %arg0, %c0_i32, %c0_i32_0 : i32, i32, i32
  }
}

</mosaic_0001>

<bundles_post_ra>
// kernel: tile.14
= control target key start
LH: loop header
LB: loop body
LE: loop exit
PB: predicated region body
PF: predicated region fallthrough
CT: control target
= control target key end

     0   :  { %s12_s10 = smov 3  ;;  %s41_s13 = smov 3  ;;  %s712_s0 = inlined_call_operand.vmem [shape: f32[2,3,17,128], index: 0, kind: input, shape index: {}]   ;;  %s713_s1 = inlined_call_operand.vmem [shape: f32[2,3,2176], index: 1, kind: output, shape index: {}]  }
   0x1   :  { %v2_v0 = vld [vmem:[%s712_s0] sm:$0xff]   ;;  %v440_v1 = vld [vmem:[%s712_s0 + $0x8] sm:$0xff]   ;;  %v444_v5 = vld [vmem:[%s712_s0 + $0x30] sm:$0xff]   ;;  %s70_s20 = smov 3 }
   0x2   :  { %v442_v2 = vld [vmem:[%s712_s0 + $0x19] sm:$0xff]   ;;  %3 = vst [vmem:[#allocation0] ss:$8 sm:$0xf] %v2_v0   ;;  %v443_v4 = vld [vmem:[%s712_s0 + $0x21] sm:$0xff]   ;;  %v447_v8 = vld [vmem:[%s712_s0 + $0x49] sm:$0xff]  }
   0x3   :  { %4 = vst [vmem:[#allocation0] ss:$8 sm:$0xf0] %v2_v0   ;;  %8 = vst [vmem:[#allocation0 + $0x40] ss:$8 sm:$0xf] %v440_v1  }
   0x4   :  { %10 = vst [vmem:[#allocation0 + $0x40] ss:$8 sm:$0xf0] %v440_v1   ;;  %v441_v3 = vld [vmem:[%s712_s0 + $0x10] ss:$8 sm:%s12_s10]  }
   0x5   :  { %19 = vst [vmem:[#allocation0 + $0x9] ss:$8 sm:$0xf] %v442_v2   ;;  %21 = vst [vmem:[#allocation0 + $0x9] ss:$8 sm:$0xf0] %v442_v2  }
   0x6   :  { %15 = vst [vmem:[#allocation0 + $0x80] ss:$-127 sm:$0x3] %v441_v3   ;;  %25 = vst [vmem:[#allocation0 + $0x49] ss:$8 sm:$0xf] %v443_v4  }
   0x7   :  { %27 = vst [vmem:[#allocation0 + $0x49] ss:$8 sm:$0xf0] %v443_v4   ;;  %31 = vst [vmem:[#allocation0 + $0x88] ss:$8 sm:$0xf] %v444_v5  }
   0x8   :  { %33 = vst [vmem:[#allocation0 + $0x88] ss:$8 sm:$0xf0] %v444_v5   ;;  %v445_v6 = vld [vmem:[%s712_s0 + $0x38] sm:$0xff]   ;;  %v449_v10 = vld [vmem:[%s712_s0 + $0x60] sm:$0xff]   ;;  %v450_v11 = vld [vmem:[%s712_s0 + $0x68] sm:$0xff]  }
   0x9   :  { %v446_v7 = vld [vmem:[%s712_s0 + $0x40] ss:$8 sm:%s41_s13]   ;;  %37 = vst [vmem:[#allocation0 + $0xc8] ss:$8 sm:$0xf] %v445_v6  }
   0xa   :  { %39 = vst [vmem:[#allocation0 + $0xc8] ss:$8 sm:$0xf0] %v445_v6   ;;  %44 = vst [vmem:[#allocation0 + $0x108] ss:$-127 sm:$0x3] %v446_v7  }
   0xb   :  { %48 = vst [vmem:[#allocation0 + $0x91] ss:$8 sm:$0xf] %v447_v8   ;;  %50 = vst [vmem:[#allocation0 + $0x91] ss:$8 sm:$0xf0] %v447_v8  }
   0xc   :  { %v448_v9 = vld [vmem:[%s712_s0 + $0x51] sm:$0xff]   ;;  %60 = vst [vmem:[#allocation0 + $0x110] ss:$8 sm:$0xf] %v449_v10   ;;  %v452_v13 = vld [vmem:[%s712_s0 + $0x79] sm:$0xff]   ;;  %v453_v14 = vld [vmem:[%s712_s0 + $0x81] sm:$0xff]  }
   0xd   :  { %54 = vst [vmem:[#allocation0 + $0xd1] ss:$8 sm:$0xf] %v448_v9   ;;  %56 = vst [vmem:[#allocation0 + $0xd1] ss:$8 sm:$0xf0] %v448_v9  }
   0xe   :  { %62 = vst [vmem:[#allocation0 + $0x110] ss:$8 sm:$0xf0] %v449_v10   ;;  %66 = vst [vmem:[#allocation0 + $0x150] ss:$8 sm:$0xf] %v450_v11  }
   0xf   :  { %68 = vst [vmem:[#allocation0 + $0x150] ss:$8 sm:$0xf0] %v450_v11   ;;  %v451_v12 = vld [vmem:[%s712_s0 + $0x70] ss:$8 sm:%s70_s20]  }
  0x10   :  { %73 = vst [vmem:[#allocation0 + $0x190] ss:$-127 sm:$0x3] %v451_v12   ;;  %77 = vst [vmem:[#allocation0 + $0x119] ss:$8 sm:$0xf] %v452_v13  }
  0x11   :  { %79 = vst [vmem:[#allocation0 + $0x119] ss:$8 sm:$0xf0] %v452_v13   ;;  %83 = vst [vmem:[#allocation0 + $0x159] ss:$8 sm:$0xf] %v453_v14  }
  0x12   :  { %85 = vst [vmem:[#allocation0 + $0x159] ss:$8 sm:$0xf0] %v453_v14   ;;  %v93_v15 = vld [vmem:[#allocation0 + $0x8] sm:$0x3] }
  0x13   :  { %v98_v16 = vld [vmem:[#allocation0 + $0x10] sm:$0x3]  ;;  %v104_v17 = vld [vmem:[#allocation0 + $0x18] sm:$0x3]  ;;  %v89_v18 = vld [vmem:[#allocation0] sm:$0x3] }
  0x14   :  { %454 = vst [vmem:[%s713_s1 + $0x2] sm:$0x3] %v93_v15  ;;  %455 = vst [vmem:[%s713_s1 + $0x4] sm:$0x3] %v98_v16  ;;  %v110_v19 = vld [vmem:[#allocation0 + $0x20] sm:$0x3] }
  0x15   :  { %456 = vst [vmem:[%s713_s1 + $0x6] sm:$0x3] %v104_v17  ;;  %v116_v20 = vld [vmem:[#allocation0 + $0x28] sm:$0x3]  ;;  %91 = vst [vmem:[%s713_s1] sm:$0x3] %v89_v18 }
  0x16   :  { %457 = vst [vmem:[%s713_s1 + $0x8] sm:$0x3] %v110_v19  ;;  %458 = vst [vmem:[%s713_s1 + $0xa] sm:$0x3] %v116_v20  ;;  %v122_v21 = vld [vmem:[#allocation0 + $0x30] sm:$0x3] }
  0x17   :  { %v128_v22 = vld [vmem:[#allocation0 + $0x38] sm:$0x3]  ;;  %v134_v23 = vld [vmem:[#allocation0 + $0x40] sm:$0x3]  ;;  %459 = vst [vmem:[%s713_s1 + $0xc] sm:$0x3] %v122_v21 }
  0x18   :  { %460 = vst [vmem:[%s713_s1 + $0xe] sm:$0x3] %v128_v22  ;;  %461 = vst [vmem:[%s713_s1 + $0x10] sm:$0x3] %v134_v23  ;;  %v140_v24 = vld [vmem:[#allocation0 + $0x48] sm:$0x3] }
  0x19   :  { %v146_v25 = vld [vmem:[#allocation0 + $0x50] sm:$0x3]  ;;  %v152_v26 = vld [vmem:[#allocation0 + $0x58] sm:$0x3]  ;;  %462 = vst [vmem:[%s713_s1 + $0x12] sm:$0x3] %v140_v24 }
  0x1a   :  { %463 = vst [vmem:[%s713_s1 + $0x14] sm:$0x3] %v146_v25  ;;  %464 = vst [vmem:[%s713_s1 + $0x16] sm:$0x3] %v152_v26  ;;  %v158_v27 = vld [vmem:[#allocation0 + $0x60] sm:$0x3] }
  0x1b   :  { %v164_v28 = vld [vmem:[#allocation0 + $0x68] sm:$0x3]  ;;  %v170_v29 = vld [vmem:[#allocation0 + $0x70] sm:$0x3]  ;;  %465 = vst [vmem:[%s713_s1 + $0x18] sm:$0x3] %v158_v27 }
  0x1c   :  { %466 = vst [vmem:[%s713_s1 + $0x1a] sm:$0x3] %v164_v28  ;;  %467 = vst [vmem:[%s713_s1 + $0x1c] sm:$0x3] %v170_v29  ;;  %v176_v30 = vld [vmem:[#allocation0 + $0x78] sm:$0x3] }
  0x1d   :  { %v182_v31 = vld [vmem:[#allocation0 + $0x80] sm:$0x3]  ;;  %v188_v32 = vld [vmem:[#allocation0 + $0x88] sm:$0x3]  ;;  %468 = vst [vmem:[%s713_s1 + $0x1e] sm:$0x3] %v176_v30 }
  0x1e   :  { %469 = vst [vmem:[%s713_s1 + $0x20] sm:$0x3] %v182_v31  ;;  %470 = vst [vmem:[%s713_s1 + $0x22] sm:$0x3] %v188_v32  ;;  %v194_v33 = vld [vmem:[#allocation0 + $0x90] sm:$0x3] }
  0x1f   :  { %v200_v34 = vld [vmem:[#allocation0 + $0x98] sm:$0x3]  ;;  %v206_v35 = vld [vmem:[#allocation0 + $0xa0] sm:$0x3]  ;;  %471 = vst [vmem:[%s713_s1 + $0x24] sm:$0x3] %v194_v33 }
  0x20   :  { %472 = vst [vmem:[%s713_s1 + $0x26] sm:$0x3] %v200_v34  ;;  %473 = vst [vmem:[%s713_s1 + $0x28] sm:$0x3] %v206_v35  ;;  %v212_v36 = vld [vmem:[#allocation0 + $0xa8] sm:$0x3] }
  0x21   :  { %v218_v37 = vld [vmem:[#allocation0 + $0xb0] sm:$0x3]  ;;  %v224_v38 = vld [vmem:[#allocation0 + $0xb8] sm:$0x3]  ;;  %474 = vst [vmem:[%s713_s1 + $0x2a] sm:$0x3] %v212_v36 }
  0x22   :  { %475 = vst [vmem:[%s713_s1 + $0x2c] sm:$0x3] %v218_v37  ;;  %476 = vst [vmem:[%s713_s1 + $0x2e] sm:$0x3] %v224_v38  ;;  %v230_v39 = vld [vmem:[#allocation0 + $0xc0] sm:$0x3] }
  0x23   :  { %v236_v40 = vld [vmem:[#allocation0 + $0xc8] sm:$0x3]  ;;  %v242_v41 = vld [vmem:[#allocation0 + $0xd0] sm:$0x3]  ;;  %477 = vst [vmem:[%s713_s1 + $0x30] sm:$0x3] %v230_v39 }
  0x24   :  { %478 = vst [vmem:[%s713_s1 + $0x32] sm:$0x3] %v236_v40  ;;  %479 = vst [vmem:[%s713_s1 + $0x34] sm:$0x3] %v242_v41  ;;  %v248_v42 = vld [vmem:[#allocation0 + $0xd8] sm:$0x3] }
  0x25   :  { %v254_v43 = vld [vmem:[#allocation0 + $0xe0] sm:$0x3]  ;;  %v260_v44 = vld [vmem:[#allocation0 + $0xe8] sm:$0x3]  ;;  %480 = vst [vmem:[%s713_s1 + $0x36] sm:$0x3] %v248_v42 }
  0x26   :  { %481 = vst [vmem:[%s713_s1 + $0x38] sm:$0x3] %v254_v43  ;;  %482 = vst [vmem:[%s713_s1 + $0x3a] sm:$0x3] %v260_v44  ;;  %v266_v45 = vld [vmem:[#allocation0 + $0xf0] sm:$0x3] }
  0x27   :  { %v272_v46 = vld [vmem:[#allocation0 + $0xf8] sm:$0x3]  ;;  %v278_v47 = vld [vmem:[#allocation0 + $0x100] sm:$0x3]  ;;  %483 = vst [vmem:[%s713_s1 + $0x3c] sm:$0x3] %v266_v45 }
  0x28   :  { %484 = vst [vmem:[%s713_s1 + $0x3e] sm:$0x3] %v272_v46  ;;  %485 = vst [vmem:[%s713_s1 + $0x40] sm:$0x3] %v278_v47  ;;  %v284_v48 = vld [vmem:[#allocation0 + $0x108] sm:$0x3] }
  0x29   :  { %v290_v49 = vld [vmem:[#allocation0 + $0x110] sm:$0x3]  ;;  %v296_v50 = vld [vmem:[#allocation0 + $0x118] sm:$0x3]  ;;  %486 = vst [vmem:[%s713_s1 + $0x42] sm:$0x3] %v284_v48 }
  0x2a   :  { %487 = vst [vmem:[%s713_s1 + $0x44] sm:$0x3] %v290_v49  ;;  %488 = vst [vmem:[%s713_s1 + $0x46] sm:$0x3] %v296_v50  ;;  %v302_v51 = vld [vmem:[#allocation0 + $0x120] sm:$0x3] }
  0x2b   :  { %v308_v52 = vld [vmem:[#allocation0 + $0x128] sm:$0x3]  ;;  %v314_v53 = vld [vmem:[#allocation0 + $0x130] sm:$0x3]  ;;  %489 = vst [vmem:[%s713_s1 + $0x48] sm:$0x3] %v302_v51 }
  0x2c   :  { %490 = vst [vmem:[%s713_s1 + $0x4a] sm:$0x3] %v308_v52  ;;  %491 = vst [vmem:[%s713_s1 + $0x4c] sm:$0x3] %v314_v53  ;;  %v320_v54 = vld [vmem:[#allocation0 + $0x138] sm:$0x3] }
  0x2d   :  { %v326_v55 = vld [vmem:[#allocation0 + $0x140] sm:$0x3]  ;;  %v332_v56 = vld [vmem:[#allocation0 + $0x148] sm:$0x3]  ;;  %492 = vst [vmem:[%s713_s1 + $0x4e] sm:$0x3] %v320_v54 }
  0x2e   :  { %493 = vst [vmem:[%s713_s1 + $0x50] sm:$0x3] %v326_v55  ;;  %494 = vst [vmem:[%s713_s1 + $0x52] sm:$0x3] %v332_v56  ;;  %v338_v57 = vld [vmem:[#allocation0 + $0x150] sm:$0x3] }
  0x2f   :  { %v344_v58 = vld [vmem:[#allocation0 + $0x158] sm:$0x3]  ;;  %v350_v59 = vld [vmem:[#allocation0 + $0x160] sm:$0x3]  ;;  %495 = vst [vmem:[%s713_s1 + $0x54] sm:$0x3] %v338_v57 }
  0x30   :  { %496 = vst [vmem:[%s713_s1 + $0x56] sm:$0x3] %v344_v58  ;;  %497 = vst [vmem:[%s713_s1 + $0x58] sm:$0x3] %v350_v59  ;;  %v356_v60 = vld [vmem:[#allocation0 + $0x168] sm:$0x3] }
  0x31   :  { %v362_v61 = vld [vmem:[#allocation0 + $0x170] sm:$0x3]  ;;  %v368_v62 = vld [vmem:[#allocation0 + $0x178] sm:$0x3]  ;;  %498 = vst [vmem:[%s713_s1 + $0x5a] sm:$0x3] %v356_v60 }
  0x32   :  { %499 = vst [vmem:[%s713_s1 + $0x5c] sm:$0x3] %v362_v61  ;;  %500 = vst [vmem:[%s713_s1 + $0x5e] sm:$0x3] %v368_v62  ;;  %v374_v63 = vld [vmem:[#allocation0 + $0x180] sm:$0x3] }
  0x33   :  { %v380_v0 = vld [vmem:[#allocation0 + $0x188] sm:$0x3]  ;;  %v386_v1 = vld [vmem:[#allocation0 + $0x190] sm:$0x3]  ;;  %501 = vst [vmem:[%s713_s1 + $0x60] sm:$0x3] %v374_v63 }
  0x34   :  { %502 = vst [vmem:[%s713_s1 + $0x62] sm:$0x3] %v380_v0  ;;  %503 = vst [vmem:[%s713_s1 + $0x64] sm:$0x3] %v386_v1 }

// kernel: _lambda_.1
= control target key start
LH: loop header
LB: loop body
LE: loop exit
PB: predicated region body
PF: predicated region fallthrough
CT: control target
= control target key end

     0   :  { %s11862_s29 = smov 0   ;;  %s17209_s0 = inlined_call_operand.vmem [shape: f32[2,3,2176], index: 0, kind: input, shape index: {}]   ;;  %s17210_s1 = inlined_call_operand.vmem [shape: f32[2,3,2176], index: 1, kind: input, shape index: {}]   ;;  %s17211_s2 = inlined_call_operand.vmem [shape: f32[2,3,2176], index: 2, kind: input, shape index: {}]   ;;  %s17212_s3 = inlined_call_operand.vmem [shape: f32[2,3,2176], index: 3, kind: input, shape index: {}]   ;;  %s17213_s4 = inlined_call_operand.vmem [shape: s32[2,1,2176], index: 4, kind: input, shape index: {}]   ;;  %s17214_s5 = inlined_call_operand.vmem [shape: f32[32,4], index: 5, kind: input, shape index: {}]   ;;  %s17215_s6 = inlined_call_operand.vmem [shape: f32[32,1], index: 6, kind: input, shape index: {}]   ;;  %s17216_s7 = inlined_call_operand.vmem [shape: f32[32,32], index: 7, kind: input, shape index: {}]   ;;  %s17217_s8 = inlined_call_operand.vmem [shape: f32[32,1], index: 8, kind: input, shape index: {}]   ;;  %s17218_s9 = inlined_call_operand.vmem [shape: f32[32,32], index: 9, kind: input, shape index: {}]   ;;  %s17219_s10 = inlined_call_operand.vmem [shape: f32[32,4], index: 10, kind: input, shape index: {}]   ;;  %s17220_s11 = inlined_call_operand.vmem [shape: f32[32,1], index: 11, kind: input, shape index: {}]   ;;  %s17221_s12 = inlined_call_operand.vmem [shape: f32[32,32], index: 12, kind: input, shape index: {}]   ;;  %s17222_s13 = inlined_call_operand.vmem [shape: f32[32,1], index: 13, kind: input, shape index: {}]   ;;  %s17223_s14 = inlined_call_operand.vmem [shape: f32[2,32,1], index: 14, kind: output, shape index: {}]  }
   0x1 LB: > { %s9991_s30 = sadd.s32 4294967295, %s11781_s29   ;;  %p9995_p0 = scmp.ge.s32.totalorder %s11781_s29, 1  ;;  %s11781_s29 = sphi %s11862_s29, %s24_s29  }
   0x2   : > { %p451_p1 = scmp.lt.s32.totalorder %s11781_s29, 3 }
   0x4   : > { %p452_p2 = pnand %p9995_p0, %p451_p1 }
   0x6   : > { %455 = sbr.rel (%p452_p2) target bundleno = 1982 (0x7be), region = 76 }
   0xd   : > { %p516_p3 = scmp.lt.s32.totalorder %s9991_s30, 1  ;;  %v17224_v0 = vmov 0.0   ;;  %vm11784_vm15 = vmmov 1  }
   0xe   : > { %4051 = vmatprep.mubr.f32.mxu0 %v17224_v0  ;;  %4069 = vmatprep.mubr.f32.mxu1 %v17224_v0 }
   0xf   : > { %s17665_s30 = smov (!%p516_p3, %s9991_s30), 1 }
  0x10   : > { %s11513_s15 = smul.u32 68, %s17665_s30 }
  0x11   : > { %s11514_s26 = smul.u32 17, %s17665_s30 }
  0x12   : > { %s11878_s18 = scalar_lea.vmem %s17209_s0, %s11513_s15  ;;  %s11883_s21 = scalar_lea.vmem %s17211_s2, %s11513_s15 }
  0x13   : > { %v545_v1 = vld [vmem:[%s11878_s18] sm:$0x77]  ;;  %s11889_s24 = scalar_lea.vmem %s17210_s1, %s11513_s15  ;;  %s11895_s27 = scalar_lea.vmem %s17212_s3, %s11513_s15 }
  0x14   : > { %v563_v2 = vld [vmem:[%s11883_s21] sm:$0x77]  ;;  %s15122_s16 = scalar_lea.vmem %s17213_s4, %s11514_s26  ;;  %s10788_s26 = sshll.u32 %s17665_s30, 5 }
  0x15   : > { %v584_v3 = vsub.f32 %v563_v2, %v545_v1  ;;  %v11898_v4 = vld [vmem:[%s11889_s24] sm:$0x77] }
  0x16   : > { %v11901_v9 = vld [vmem:[%s11895_s27] sm:$0x77] }
  0x17   : > { %v593_v5 = vmul.f32 %v584_v3, %v584_v3  ;;  %v755_v6 = vrot.slane %v584_v3, 5  ;;  %v791_v7 = vrot.slane %v584_v3, 7  ;;  %v863_v8 = vrot.slane %v584_v3, 6 }
  0x18   : > { %v1115_v10 = vmul.f32 %v584_v3, %v11898_v4  ;;  %v1961_v14 = vmul.f32 %v584_v3, %v11901_v9  ;;  %v2573_v33 = vrot.slane %v11901_v9, 7  ;;  %v10200_v39 = vrot.slane %v11901_v9, 9 }
  0x19   : > { %v10002_v11 = vrot.slane %v593_v5, 9  ;;  %v756_v12 = vrot.slane %v755_v6, 4  ;;  %v809_v13 = vmul.f32 %v791_v7, %v11898_v4  ;;  %v890_v15 = vrot.slane %v863_v8, 4 }
  0x1a   : > { %v10038_v16 = vrot.slane %v1115_v10, 9  ;;  %v10047_v17 = vrot.slane %v1115_v10, 10  ;;  %v10011_v18 = vrot.slane %v593_v5, 10  ;;  %v881_v21 = vmul.f32 %v863_v8, %v11898_v4 }
  0x1b   : > { %v782_v19 = vmul.f32 %v756_v12, %v11898_v4  ;;  %v10020_v20 = vrot.slane %v809_v13, 9  ;;  %v638_v22 = vadd.f32 %v10002_v11, %v593_v5  ;;  %v908_v23 = vmul.f32 %v890_v15, %v11898_v4 }
  0x1c   : > { %v1160_v24 = vadd.f32 %v10038_v16, %v1115_v10  ;;  %v1691_v25 = vmul.f32 %v791_v7, %v11901_v9  ;;  %v1682_v27 = vmul.f32 %v756_v12, %v11901_v9  ;;  %v1754_v28 = vmul.f32 %v890_v15, %v11901_v9 }
  0x1d   : > { %v854_v26 = vsub.f32 %v782_v19, %v10020_v20  ;;  %v10128_v29 = vrot.slane %v1961_v14, 9  ;;  %v926_v30 = vrot.slane %v908_v23, 6  ;;  %v1745_v34 = vmul.f32 %v863_v8, %v11901_v9 }
  0x1e   : > { %v11912_v31 = vadd.f32 %v10047_v17, %v1160_v24  ;;  %v10110_v32 = vrot.slane %v1691_v25, 9  ;;  %v10137_v35 = vrot.slane %v1961_v14, 10  ;;  %v11918_v40 = vadd.f32 %v10011_v18, %v638_v22 }
  0x1f   : > { %v944_v36 = vsub.f32 %v881_v21, %v926_v30  ;;  %v953_v37 = vmul.f32 %v854_v26, %v854_v26  ;;  %v1772_v42 = vrot.slane %v1754_v28, 6  ;;  %v2006_v43 = vadd.f32 %v10128_v29, %v1961_v14  ;;  %v546_v28 = vld [vmem:[%s11878_s18 + $0x8] sm:$0x77] }
  0x20   : > { %v1205_v38 = vand.u32 2147483647, %v11912_v31  ;;  %v1736_v41 = vsub.f32 %v1682_v27, %v10110_v32  ;;  %v2591_v45 = vmul.f32 %v2573_v33, %v11898_v4  ;;  %v2645_v46 = vrot.slane %v11901_v9, 6  ;;  %v564_v29 = vld [vmem:[%s11883_s21 + $0x8] sm:$0x77] }
  0x21   : > { %v962_v44 = vmul.f32 %v944_v36, %v944_v36  ;;  %v1790_v47 = vsub.f32 %v1745_v34, %v1772_v42  ;;  %v11922_v49 = vadd.f32 %v10137_v35, %v2006_v43  ;;  %v2897_v50 = vmul.f32 %v11901_v9, %v11898_v4 }
  0x22   : > { %vm1214_vm0 = vcmp.gt.f32.partialorder %v1205_v38, 0.0  ;;  %v1799_v48 = vmul.f32 %v1736_v41, %v1736_v41  ;;  %v1025_v52 = vrot.slane %v953_v37, 7  ;;  %v2564_v53 = vmul.f32 %v10200_v39, %v11898_v4 }
  0x23   : > { %v10029_v51 = vrot.slane %v962_v44, 9  ;;  %11529 = vrsqrt.f32 %v11918_v40  ;;  %v1223_v54 = vsel %vm1214_vm0, %v1205_v38, 1.0  ;;  %v1808_v55 = vmul.f32 %v1790_v47, %v1790_v47 }
  0x24   : > { %v2051_v56 = vand.u32 2147483647, %v11922_v49  ;;  %v1871_v58 = vrot.slane %v1799_v48, 7  ;;  %v10209_v59 = vrot.slane %v2591_v45, 9  ;;  %v2672_v60 = vrot.slane %v2645_v46, 4 }
  0x25   : > { %v1007_v57 = vadd.f32 %v10029_v51, %v953_v37  ;;  %v10119_v61 = vrot.slane %v1808_v55, 9  ;;  %v10227_v62 = vrot.slane %v2897_v50, 9  ;;  %v10236_v63 = vrot.slane %v2897_v50, 10 }
  0x26   : > { %vm2060_vm1 = vcmp.gt.f32.partialorder %v2051_v56, 0.0  ;;  %11531 = vrcp.f32 %v1223_v54  ;;  %v2690_v2 = vmul.f32 %v2672_v60, %v11898_v4  ;;  %v2636_v7 = vsub.f32 %v2564_v53, %v10209_v59 }
  0x27   : > { %v1043_v1 = vadd.f32 %v1025_v52, %v1007_v57  ;;  %v1853_v3 = vadd.f32 %v10119_v61, %v1799_v48  ;;  %v2069_v5 = vsel %vm2060_vm1, %v2051_v56, 1.0  ;;  %v2942_v6 = vadd.f32 %v10227_v62, %v2897_v50  ;;  %v11976_v56 = vld [vmem:[%s11889_s24 + $0x8] sm:$0x77] }
  0x28   : > { %v2663_v8 = vmul.f32 %v2645_v46, %v11898_v4  ;;  %v2708_v10 = vrot.slane %v2690_v2, 6  ;;  %v2735_v13 = vmul.f32 %v2636_v7, %v2636_v7  ;;  %v3473_v16 = vlaneseq  ;;  %v11979_v57 = vld [vmem:[%s11895_s27 + $0x8] sm:$0x77] }
  0x29   : > { %11533 = vrsqrt.f32 %v1043_v1  ;;  %v1889_v9 = vadd.f32 %v1871_v58, %v1853_v3  ;;  %v11931_v11 = vadd.f32 %v10236_v63, %v2942_v6  ;;  %vm685_vm3 = vcmp.eq.f32.partialorder %v11918_v40, inf }
  0x2a   : > { %11535 = vrcp.f32 %v2069_v5  ;;  %v2726_v12 = vsub.f32 %v2663_v8, %v2708_v10  ;;  %v2807_v20 = vrot.slane %v2735_v13, 7  ;;  %v11935_v22 = vshrl.u32 %v3473_v16, 7 }
  0x2b   : > { %11537 = vrsqrt.f32 %v1889_v9  ;;  %v2987_v14 = vand.u32 2147483647, %v11931_v11  ;;  %vm1054_vm4 = vcmp.eq.f32.partialorder %v1043_v1, inf  ;;  %v1057_v24 = vand.u32 2147483648, %v1043_v1 }
  0x2c   : > { %v2744_v17 = vmul.f32 %v2726_v12, %v2726_v12  ;;  %17245 = vst [vmem:[#allocation2_spill] sm:$0xff] %v11935_v22  ;;  %vm1056_vm5 = vcmp.eq.f32.partialorder %v1043_v1, 0.0  ;;  %vm687_vm6 = vcmp.eq.f32.partialorder %v11918_v40, 0.0  ;;  %v688_v32 = vand.u32 2147483648, %v11918_v40 }
  0x2d   : > { %v11530_v15 = vpop.eup %11529  ;;  %vm2996_vm2 = vcmp.gt.f32.partialorder %v2987_v14, 0.0  ;;  %vm1900_vm7 = vcmp.eq.f32.partialorder %v1889_v9, inf  ;;  %v1903_v37 = vand.u32 2147483648, %v1889_v9  ;;  %v585_v41 = vsub.f32 %v564_v29, %v546_v28 }
  0x2e   : > { %v10218_v19 = vrot.slane %v2744_v17, 9  ;;  %v684_v4 = vmul.f32 %v11530_v15, %v11918_v40  ;;  %v3005_v21 = vsel %vm2996_vm2, %v2987_v14, 1.0  ;;  %vm1902_vm8 = vcmp.eq.f32.partialorder %v1889_v9, 0.0 }
  0x2f   : > { %11539 = vrcp.f32 %v3005_v21  ;;  %v11952_v44 = vsub.s32 4, %v11935_v22  ;;  %v11959_v47 = vsub.s32 0, %v11935_v22  ;;  %v757_v48 = vrot.slane %v585_v41, 5 }
  0x30   : > { %v11532_v18 = vpop.eup %11531  ;;  %v2789_v25 = vadd.f32 %v10218_v19, %v2735_v13  ;;  %v686_v35 = vsel %vm685_vm3, %v11918_v40, %v684_v4  ;;  %v792_v54 = vrot.slane %v585_v41, 7  ;;  %v11981_v59 = vrot.slane %v585_v41, 6 }
  0x31   : > { %v1250_v27 = vrot.slane %v11532_v18, 7  ;;  %v11956_v45 = vsel %vm687_vm6, %v688_v32, %v686_v35  ;;  %v758_v58 = vrot.slane %v757_v48, 4  ;;  %v1116_v60 = vmul.f32 %v585_v41, %v11976_v56 }
  0x32   : > { %v11942_v33 = vadd.f32 %v2807_v20, %v2789_v25  ;;  %v3480_v53 = vrot.slane %v11956_v45, %v11952_v44  ;;  %v3476_v55 = vrot.slane %v11956_v45, %v11959_v47  ;;  %v10201_v61 = vrot.slane %v11979_v57, 9 }
  0x33   : > { %v11534_v23 = vpop.eup %11533  ;;  %v2574_v62 = vrot.slane %v11979_v57, 7  ;;  %v11991_v3 = vmul.f32 %v585_v41, %v585_v41  ;;  %v11994_v5 = vmul.f32 %v585_v41, %v11979_v57  ;;  %v810_v6 = vmul.f32 %v792_v54, %v11976_v56 }
  0x34   : > { %v1053_v26 = vmul.f32 %v11534_v23, %v1043_v1  ;;  %v11536_v30 = vpop.eup %11535  ;;  %11541 = vrsqrt.f32 %v11942_v33  ;;  %vm2836_vm11 = vcmp.eq.f32.partialorder %v11942_v33, inf  ;;  %vm2838_vm12 = vcmp.eq.f32.partialorder %v11942_v33, 0.0 }
  0x35   : > { %v11538_v34 = vpop.eup %11537  ;;  %v2096_v43 = vrot.slane %v11536_v30, 7  ;;  %v2839_v8 = vand.u32 2147483648, %v11942_v33  ;;  %v891_v10 = vrot.slane %v11981_v59, 4  ;;  %v10021_v14 = vrot.slane %v810_v6, 9 }
  0x36   : > { %v1055_v36 = vsel %vm1054_vm4, %v1043_v1, %v1053_v26  ;;  %v1899_v39 = vmul.f32 %v11538_v34, %v1889_v9  ;;  %v10039_v15 = vrot.slane %v1116_v60, 9  ;;  %v882_v16 = vmul.f32 %v11981_v59, %v11976_v56 }
  0x37   : > { %v11945_v38 = vsel %vm1056_vm5, %v1057_v24, %v1055_v36  ;;  %v909_v17 = vmul.f32 %v891_v10, %v11976_v56  ;;  %v1692_v18 = vmul.f32 %v792_v54, %v11979_v57  ;;  %v10048_v4 = vrot.slane %v1116_v60, 10 }
  0x38   : > { %v11949_v42 = vmul.f32 %v1250_v27, %v11945_v38  ;;  %v1901_v46 = vsel %vm1900_vm7, %v1889_v9, %v1899_v39  ;;  %v783_v9 = vmul.f32 %v758_v58, %v11976_v56  ;;  %vm1538_vm13 = vcmp.gt.f32.partialorder %v11945_v38, 0.0 }
  0x39   : > { %v11966_v52 = vsel %vm1902_vm8, %v1903_v37, %v1901_v46  ;;  %v11540_v63 = vpop.eup %11539  ;;  %v927_v24 = vrot.slane %v909_v17, 6  ;;  %v1161_v25 = vadd.f32 %v10039_v15, %v1116_v60  ;;  %v12021_v27 = vsel %vm1538_vm13, 1.5707964, %v17224_v0 }
  0x3a   : > { %vm1277_vm9 = vcmp.gt.f32.partialorder %v11949_v42, 2.4142137  ;;  %v1349_v50 = vadd.f32 1.0, %v11949_v42  ;;  %v11969_v40 = vmul.f32 %v2096_v43, %v11966_v52  ;;  %v3032_v13 = vrot.slane %v11540_v63, 7 }
  0x3b   : > { %v1313_v51 = vsel %vm1277_vm9, %v11949_v42, 1.0  ;;  %vm1286_vm14 = vcmp.gt.f32.partialorder %v11949_v42, 0.41421357  ;;  %vm1295_vm0 = vmxor %vm1277_vm9, %vm11784_vm15  ;;  %v10056_v19 = vadd.f32 -1.0, %v11949_v42  ;;  %v855_v23 = vsub.f32 %v783_v9, %v10021_v14 }
  0x3c   : > { %11543 = vrcp.f32 %v1313_v51  ;;  %vm2123_vm10 = vcmp.gt.f32.partialorder %v11969_v40, 2.4142137  ;;  %v2195_v2 = vadd.f32 1.0, %v11969_v40  ;;  %v10003_v29 = vrot.slane %v11991_v3, 9  ;;  %vm12030_vm1 = vmand %vm1286_vm14, %vm1295_vm0 }
  0x3d   : > { %11545 = vrcp.f32 %v1349_v50  ;;  %v2159_v1 = vsel %vm2123_vm10, %v11969_v40, 1.0  ;;  %v10012_v30 = vrot.slane %v11991_v3, 10  ;;  %v945_v35 = vsub.f32 %v882_v16, %v927_v24  ;;  %vm2141_vm3 = vmxor %vm2123_vm10, %vm11784_vm15 }
  0x3e   : > { %11547 = vrcp.f32 %v2159_v1  ;;  %v11542_v7 = vpop.eup %11541  ;;  %v1683_v36 = vmul.f32 %v758_v58, %v11979_v57  ;;  %v10111_v37 = vrot.slane %v1692_v18, 9  ;;  %vm2132_vm2 = vcmp.gt.f32.partialorder %v11969_v40, 0.41421357 }
  0x3f   : > { %11549 = vrcp.f32 %v2195_v2  ;;  %v2835_v12 = vmul.f32 %v11542_v7, %v11942_v33  ;;  %v10146_v39 = vadd.f32 -1.0, %v11969_v40  ;;  %v954_v46 = vmul.f32 %v855_v23, %v855_v23  ;;  %vm12057_vm5 = vmand %vm2132_vm2, %vm2141_vm3 }
  0x40   : > { %v12045_v48 = vadd.f32 %v10048_v4, %v1161_v25  ;;  %v963_v54 = vmul.f32 %v945_v35, %v945_v35  ;;  %v1755_v58 = vmul.f32 %v891_v10, %v11979_v57  ;;  %v1737_v6 = vsub.f32 %v1683_v36, %v10111_v37 }
  0x41   : > { %v2837_v20 = vsel %vm2836_vm11, %v11942_v33, %v2835_v12  ;;  %v639_v9 = vadd.f32 %v10003_v29, %v11991_v3  ;;  %v1746_v10 = vmul.f32 %v11981_v59, %v11979_v57  ;;  %vm2384_vm6 = vcmp.gt.f32.partialorder %v11966_v52, 0.0 }
  0x42   : > { %v12018_v21 = vsel %vm2838_vm12, %v2839_v8, %v2837_v20  ;;  %v10030_v12 = vrot.slane %v963_v54, 9  ;;  %v1206_v14 = vand.u32 2147483647, %v12045_v48  ;;  %v1394_v15 = vsel %vm12030_vm1, 0.7853982, %v17224_v0 }
  0x43   : > { %v12024_v28 = vmul.f32 %v3032_v13, %v12018_v21  ;;  %v1026_v13 = vrot.slane %v954_v46, 7  ;;  %v1773_v18 = vrot.slane %v1755_v58, 6  ;;  %v1800_v20 = vmul.f32 %v1737_v6, %v1737_v6 }
  0x44   : > { %v1008_v59 = vadd.f32 %v10030_v12, %v954_v46  ;;  %vm1215_vm7 = vcmp.gt.f32.partialorder %v1206_v14, 0.0  ;;  %v12094_v36 = vsel %vm2384_vm6, 1.5707964, %v17224_v0  ;;  %v10092_v54 = vrot.slane %v12021_v27, 9 }
  0x45   : > { %vm3059_vm4 = vcmp.gt.f32.partialorder %v12024_v28, 2.4142137  ;;  %v3131_v43 = vadd.f32 1.0, %v12024_v28  ;;  %v1224_v24 = vsel %vm1215_vm7, %v1206_v14, 1.0  ;;  %v1791_v25 = vsub.f32 %v1746_v10, %v1773_v18 }
  0x46   : > { %v11544_v26 = vpop.eup %11543  ;;  %v3095_v41 = vsel %vm3059_vm4, %v12024_v28, 1.0  ;;  %vm3068_vm8 = vcmp.gt.f32.partialorder %v12024_v28, 0.41421357  ;;  %v12084_v29 = vadd.f32 %v1026_v13, %v1008_v59  ;;  %vm3077_vm11 = vmxor %vm3059_vm4, %vm11784_vm15  ;;  %v1872_v37 = vrot.slane %v1800_v20, 7 }
  0x47   : > { %v11546_v32 = vpop.eup %11545  ;;  %v1331_v34 = vsub.f32 0.0, %v11544_v26  ;;  %11551 = vrcp.f32 %v3095_v41  ;;  %v10245_v26 = vadd.f32 -1.0, %v12024_v28  ;;  %v1809_v35 = vmul.f32 %v1791_v25, %v1791_v25  ;;  %vm12102_vm12 = vmand %vm3068_vm8, %vm3077_vm11 }
  0x48   : > { %v1367_v38 = vmul.f32 %v11546_v32, %v10056_v19  ;;  %v11548_v50 = vpop.eup %11547  ;;  %11553 = vrcp.f32 %v3131_v43  ;;  %v10129_v32 = vrot.slane %v11994_v5, 9  ;;  %v1403_v12 = vsel %vm1277_vm9, 1.5707964, %v1394_v15 }
  0x49   : > { %v11550_v60 = vpop.eup %11549  ;;  %v2177_v2 = vsub.f32 0.0, %v11548_v50  ;;  %11555 = vrcp.f32 %v1224_v24  ;;  %v10120_v46 = vrot.slane %v1809_v35, 9  ;;  %v2240_v13 = vsel %vm12057_vm5, 0.7853982, %v17224_v0 }
  0x4a   : > { %v1376_v51 = vsel %vm12030_vm1, %v1367_v38, %v11949_v42  ;;  %v2213_v8 = vmul.f32 %v11550_v60, %v10146_v39  ;;  %11557 = vrsqrt.f32 %v12084_v29  ;;  %v10138_v38 = vrot.slane %v11994_v5, 10 }
  0x4b   : > { %v12053_v63 = vsel %vm1277_vm9, %v1331_v34, %v1376_v51  ;;  %v2007_v50 = vadd.f32 %v10129_v32, %v11994_v5  ;;  %v12108_v60 = vadd.f32 %v10012_v30, %v639_v9  ;;  %v1854_v10 = vadd.f32 %v10120_v46, %v1800_v20 }
  0x4c   : > { %v1412_v7 = vmul.f32 %v12053_v63, %v12053_v63  ;;  %v2222_v17 = vsel %vm12057_vm5, %v2213_v8, %v11969_v40  ;;  %v10182_v14 = vrot.slane %v12094_v36, 9  ;;  %vm1061_vm9 = vcmp.eq.f32.partialorder %v12084_v29, inf }
  0x4d   : > { %v12076_v19 = vsel %vm2123_vm10, %v2177_v2, %v2222_v17  ;;  %v2646_v2 = vrot.slane %v11979_v57, 6  ;;  %v12123_v17 = vadd.f32 %v1872_v37, %v1854_v10  ;;  %vm1063_vm13 = vcmp.eq.f32.partialorder %v12084_v29, 0.0 }
  0x4e   : > { %v1421_v16 = vmul.f32 0.080537446, %v1412_v7  ;;  %v12080_v23 = vmul.f32 %v12076_v19, %v12076_v19  ;;  %vm1520_vm14 = vcmp.lt.f32.partialorder %v11912_v31, 0.0  ;;  %v2565_v24 = vmul.f32 %v10201_v61, %v11976_v56 }
  0x4f   : > { %v2673_v15 = vrot.slane %v2646_v2, 4  ;;  %11559 = vrsqrt.f32 %v12123_v17  ;;  %vm1511_vm1 = vcmp.gt.f32.partialorder %v11912_v31, 0.0  ;;  %v2664_v37 = vmul.f32 %v2646_v2, %v11976_v56 }
  0x50   : > { %v10065_v4 = vadd.f32 -0.13877685, %v1421_v16  ;;  %v2267_v34 = vmul.f32 0.080537446, %v12080_v23  ;;  %v12118_v16 = vadd.f32 %v10138_v38, %v2007_v50  ;;  %v2898_v38 = vmul.f32 %v11979_v57, %v11976_v56 }
  0x51   : > { %v11552_v39 = vpop.eup %11551  ;;  %v2691_v61 = vmul.f32 %v2673_v15, %v11976_v56  ;;  %vm2366_vm2 = vcmp.lt.f32.partialorder %v11922_v49, 0.0  ;;  %v2249_v57 = vsel %vm2123_vm10, 1.5707964, %v2240_v13  ;;  %vm2357_vm3 = vcmp.gt.f32.partialorder %v11922_v49, 0.0 }
  0x52   : > { %v1439_v33 = vmul.f32 %v10065_v4, %v1412_v7  ;;  %v10155_v43 = vadd.f32 -0.13877685, %v2267_v34  ;;  %v11554_v51 = vpop.eup %11553  ;;  %v3113_v58 = vsub.f32 0.0, %v11552_v39  ;;  %v2052_v1 = vand.u32 2147483647, %v12118_v16 }
  0x53   : > { %v3149_v5 = vmul.f32 %v11554_v51, %v10245_v26  ;;  %v1064_v4 = vand.u32 2147483648, %v12084_v29  ;;  %v11556_v25 = vpop.eup %11555  ;;  %v2709_v51 = vrot.slane %v2691_v61, 6  ;;  %vm3320_vm5 = vcmp.gt.f32.partialorder %v12018_v21, 0.0 }
  0x54   : > { %v1448_v41 = vadd.f32 0.19977711, %v1439_v33  ;;  %v2285_v8 = vmul.f32 %v10155_v43, %v12080_v23  ;;  %vm2061_vm0 = vcmp.gt.f32.partialorder %v2052_v1, 0.0  ;;  %v11558_v34 = vpop.eup %11557  ;;  %v1251_v46 = vrot.slane %v11556_v25, 7 }
  0x55   : > { %v3158_v9 = vsel %vm12102_vm12, %v3149_v5, %v12024_v28  ;;  %v2070_v35 = vsel %vm2061_vm0, %v2052_v1, 1.0  ;;  %v1060_v43 = vmul.f32 %v11558_v34, %v12084_v29  ;;  %vm1907_vm10 = vcmp.eq.f32.partialorder %v12123_v17, inf }
  0x56   : > { %v1457_v6 = vmul.f32 %v1448_v41, %v1412_v7  ;;  %v2294_v30 = vadd.f32 0.19977711, %v2285_v8  ;;  %v12127_v42 = vsel %vm3059_vm4, %v3113_v58, %v3158_v9  ;;  %11561 = vrcp.f32 %v2070_v35 }
  0x57   : > { %v12134_v20 = vmul.f32 %v12127_v42, %v12127_v42  ;;  %v10228_v8 = vrot.slane %v2898_v38, 9  ;;  %vm3840_vm6 = vcmask 1040384   ;;  %vm1909_vm8 = vcmp.eq.f32.partialorder %v12123_v17, 0.0 }
  0x58   : > { %v10074_v3 = vadd.f32 -0.3333295, %v1457_v6  ;;  %v2303_v59 = vmul.f32 %v2294_v30, %v12080_v23  ;;  %vm3302_vm11 = vcmp.lt.f32.partialorder %v11931_v11, 0.0 }
  0x59   : > { %v3203_v33 = vmul.f32 0.080537446, %v12134_v20  ;;  %v11560_v52 = vpop.eup %11559 }
  0x5a   : > { %v1475_v18 = vmul.f32 %v10074_v3, %v1412_v7  ;;  %v2592_v7 = vmul.f32 %v2574_v62, %v11976_v56  ;;  %v10164_v32 = vadd.f32 -0.3333295, %v2303_v59  ;;  %v1062_v56 = vsel %vm1061_vm9, %v12084_v29, %v1060_v43 }
  0x5b   : > { %v10254_v41 = vadd.f32 -0.13877685, %v3203_v33  ;;  %v3176_v3 = vsel %vm12102_vm12, 0.7853982, %v17224_v0  ;;  %vm3293_vm12 = vcmp.gt.f32.partialorder %v11931_v11, 0.0  ;;  %vm3858_vm9 = vcmask 1041408  }
  0x5c   : > { %v1484_v26 = vmul.f32 %v1475_v18, %v12053_v63  ;;  %v2321_v39 = vmul.f32 %v10164_v32, %v12080_v23  ;;  %v10210_v50 = vrot.slane %v2592_v7, 9  ;;  %v2727_v23 = vsub.f32 %v2664_v37, %v2709_v51 }
  0x5d   : > { %v3221_v6 = vmul.f32 %v10254_v41, %v12134_v20  ;;  %v2943_v18 = vadd.f32 %v10228_v8, %v2898_v38  ;;  %v10237_v7 = vrot.slane %v2898_v38, 10  ;;  %v1906_v37 = vmul.f32 %v11560_v52, %v12123_v17 }
  0x5e   : > { %v1493_v62 = vadd.f32 %v1484_v26, %v12053_v63  ;;  %v2330_v2 = vmul.f32 %v2321_v39, %v12076_v19  ;;  %v12166_v63 = vsel %vm1063_vm13, %v1064_v4, %v1062_v56  ;;  %v2637_v29 = vsub.f32 %v2565_v24, %v10210_v50 }
  0x5f   : > { %v12175_v40 = vmul.f32 %v1251_v46, %v12166_v63  ;;  %v2745_v15 = vmul.f32 %v2727_v23, %v2727_v23  ;;  %v1910_v26 = vand.u32 2147483648, %v12123_v17  ;;  %v1908_v36 = vsel %vm1907_vm10, %v12123_v17, %v1906_v37 }
  0x60   : > { %v1502_v58 = vadd.f32 %v1493_v62, %v1403_v12  ;;  %v2339_v10 = vadd.f32 %v2330_v2, %v12076_v19  ;;  %v3230_v12 = vadd.f32 0.19977711, %v3221_v6  ;;  %v2736_v34 = vmul.f32 %v2637_v29, %v2637_v29 }
  0x61   : > { %vm1278_vm7 = vcmp.gt.f32.partialorder %v12175_v40, 2.4142137  ;;  %v1350_v1 = vadd.f32 1.0, %v12175_v40  ;;  %v10219_v61 = vrot.slane %v2745_v15, 9  ;;  %v3185_v62 = vsel %vm3059_vm4, 1.5707964, %v3176_v3 }
  0x62   : > { %v1529_v5 = vsub.f32 3.1415927, %v1502_v58  ;;  %v10101_v30 = vrot.slane %v1502_v58, 9  ;;  %v2348_v9 = vadd.f32 %v2339_v10, %v2249_v57  ;;  %v3239_v19 = vmul.f32 %v3230_v12, %v12134_v20  ;;  %vm1296_vm13 = vmxor %vm1278_vm7, %vm11784_vm15  ;;  %v547_v15 = vld [vmem:[%s11878_s18 + $0x10] sm:$0x77] }
  0x63   : > { %v1314_v25 = vsel %vm1278_vm7, %v12175_v40, 1.0  ;;  %11563 = vrcp.f32 %v1350_v1  ;;  %v3329_v43 = vsel %vm3320_vm5, 1.5707964, %v17224_v0  ;;  %v12217_v50 = vsel %vm1909_vm8, %v1910_v26, %v1908_v36 }
  0x64   : > { %v10083_v13 = vrot.slane %v1529_v5, 9  ;;  %v2375_v4 = vsub.f32 3.1415927, %v2348_v9  ;;  %v10263_v24 = vadd.f32 -0.3333295, %v3239_v19  ;;  %v10191_v35 = vrot.slane %v2348_v9, 9 }
  0x65   : > { %11565 = vrcp.f32 %v1314_v25  ;;  %v2790_v58 = vadd.f32 %v10219_v61, %v2736_v34  ;;  %v2808_v2 = vrot.slane %v2736_v34, 7  ;;  %vm1287_vm4 = vcmp.gt.f32.partialorder %v12175_v40, 0.41421357  ;;  %v12286_v34 = vld [vmem:[%s17214_s5] sm:$0xff] }
  0x66   : > { %v1628_v59 = vsel %vm1520_vm14, %v10083_v13, %v10092_v54  ;;  %v10173_v33 = vrot.slane %v2375_v4, 9  ;;  %v3257_v27 = vmul.f32 %v10263_v24, %v12134_v20  ;;  %v11562_v54 = vpop.eup %11561  ;;  %11567 = vrsqrt.f32 %v12108_v60  ;;  %vm12247_vm0 = vmand %vm1287_vm4, %vm1296_vm13 }
  0x67   : > { %v1673_v32 = vsel %vm1511_vm1, %v10101_v30, %v1628_v59  ;;  %v12202_v20 = vadd.f32 %v10237_v7, %v2943_v18  ;;  %v2097_v41 = vrot.slane %v11562_v54, 7  ;;  %v10057_v21 = vadd.f32 -1.0, %v12175_v40  ;;  %v565_v18 = vld [vmem:[%s11883_s21 + $0x10] sm:$0x77]  ;;  %v12291_v54 = vld [vmem:[%s17214_s5 + $0x18] sm:$0xff] }
  0x68   : > { %v2474_v38 = vsel %vm2366_vm2, %v10173_v33, %v10182_v14  ;;  %v3266_v31 = vmul.f32 %v3257_v27, %v12127_v42  ;;  %v3574_v39 = vrot.slane %v1673_v32, %v11952_v44  ;;  %v3570_v46 = vrot.slane %v1673_v32, %v11959_v47 }
  0x69   : > { %v2519_v28 = vsel %vm2357_vm3, %v10191_v35, %v2474_v38  ;;  %v12222_v51 = vmul.f32 %v2097_v41, %v12217_v50  ;;  %v2988_v17 = vand.u32 2147483647, %v12202_v20  ;;  %v12251_v45 = vadd.f32 %v2808_v2, %v2790_v58  ;;  %v12340_v2 = vld [vmem:[%s17214_s5 + $0x8] sm:$0xff] }
  0x6a   : > { %v3275_v14 = vadd.f32 %v3266_v31, %v12127_v42  ;;  %v10281_v42 = vrot.slane %v3329_v43, 9  ;;  %v3842_v49 = vsel %vm3840_vm6, %v3480_v53, %v3574_v39  ;;  %v3668_v23 = vrot.slane %v2519_v28, %v11952_v44 }
  0x6b   : > { %vm2124_vm14 = vcmp.gt.f32.partialorder %v12222_v51, 2.4142137  ;;  %v2196_v56 = vadd.f32 1.0, %v12222_v51  ;;  %v3841_v8 = vsel %vm3840_vm6, %v3476_v55, %v3570_v46  ;;  %v3664_v53 = vrot.slane %v2519_v28, %v11959_v47 }
  0x6c   : > { %v3284_v6 = vadd.f32 %v3275_v14, %v3185_v62  ;;  %v2160_v5 = vsel %vm2124_vm14, %v12222_v51, 1.0  ;;  %vm2997_vm1 = vcmp.gt.f32.partialorder %v2988_v17, 0.0  ;;  %vm3876_vm2 = vcmask 1042432   ;;  %vm12302_vm8 = vmxor %vm2124_vm14, %vm11784_vm15  ;;  %v12322_v14 = vld [vmem:[%s11889_s24 + $0x10] sm:$0x77] }
  0x6d   : > { %v11564_v10 = vpop.eup %11563  ;;  %11569 = vrcp.f32 %v2160_v5  ;;  %vm17243_vm3 = vcmask 1043456   ;;  %v3860_v59 = vsel %vm3858_vm9, %v3842_v49, %v3668_v23  ;;  %v3859_v4 = vsel %vm3858_vm9, %v3841_v8, %v3664_v53 }
  0x6e   : > { %v3311_v57 = vsub.f32 3.1415927, %v3284_v6  ;;  %v10290_v12 = vrot.slane %v3284_v6, 9  ;;  %v1368_v29 = vmul.f32 %v11564_v10, %v10057_v21  ;;  %11571 = vrcp.f32 %v2196_v56 }
  0x6f   : > { %v11566_v13 = vpop.eup %11565  ;;  %11573 = vrsqrt.f32 %v12251_v45  ;;  %v3006_v24 = vsel %vm2997_vm1, %v2988_v17, 1.0  ;;  %v12275_v11 = vsub.f32 %v565_v18, %v547_v15  ;;  %vm17242_vm5 = vcmask 31744  }
  0x70   : > { %v10272_v55 = vrot.slane %v3311_v57, 9  ;;  %v11568_v30 = vpop.eup %11567  ;;  %v1332_v19 = vsub.f32 0.0, %v11566_v13  ;;  %v1377_v1 = vsel %vm12247_vm0, %v1368_v29, %v12175_v40  ;;  %11575 = vrcp.f32 %v3006_v24 }
  0x71   : > { %vm2133_vm10 = vcmp.gt.f32.partialorder %v12222_v51, 0.41421357  ;;  %v10147_v61 = vadd.f32 -1.0, %v12222_v51  ;;  %v759_v38 = vrot.slane %v12275_v11, 5  ;;  %v793_v31 = vrot.slane %v12275_v11, 7 }
  0x72   : > { %v3410_v9 = vsel %vm3302_vm11, %v10272_v55, %v10281_v42  ;;  %v12269_v26 = vsel %vm1278_vm7, %v1332_v19, %v1377_v1  ;;  %v12314_v62 = vrot.slane %v12275_v11, 6  ;;  %v691_v36 = vmul.f32 %v11568_v30, %v12108_v60  ;;  %vm12330_vm11 = vmand %vm2133_vm10, %vm12302_vm8 }
  0x73   : > { %v3455_v52 = vsel %vm3293_vm12, %v10290_v12, %v3410_v9  ;;  %v12273_v32 = vmul.f32 %v12269_v26, %v12269_v26  ;;  %v12324_v43 = vrot.slane %v759_v38, 4  ;;  %vm2843_vm12 = vcmp.eq.f32.partialorder %v12251_v45, inf  ;;  %v12375_v9 = vld [vmem:[%s17214_s5 + $0x10] sm:$0xff] }
  0x74   : > { %v3762_v7 = vrot.slane %v3455_v52, %v11952_v44  ;;  %v3758_v25 = vrot.slane %v3455_v52, %v11959_v47  ;;  %v811_v6 = vmul.f32 %v793_v31, %v12322_v14  ;;  %v892_v21 = vrot.slane %v12314_v62, 4 }
  0x75   : > { %v1422_v35 = vmul.f32 0.080537446, %v12273_v32  ;;  %v2846_v56 = vand.u32 2147483648, %v12251_v45  ;;  %v784_v57 = vmul.f32 %v12324_v43, %v12322_v14  ;;  %vm2845_vm4 = vcmp.eq.f32.partialorder %v12251_v45, 0.0 }
  0x76   : > { %v12278_v33 = vsel %vm3876_vm2, %v3860_v59, %v3762_v7  ;;  %v12281_v27 = vsel %vm3876_vm2, %v3859_v4, %v3758_v25  ;;  %v10022_v8 = vrot.slane %v811_v6, 9  ;;  %v910_v5 = vmul.f32 %v892_v21, %v12322_v14 }
  0x77   : > { %17254 = vst [vmem:[#allocation3_spill] sm:$0xff] %v12278_v33  ;;  %17255 = vst [vmem:[#allocation4_spill] sm:$0xff] %v12281_v27  ;;  %10299 = vmatprep.subr.msk.mxu0 %vm17243_vm3, %v12278_v33  ;;  %11443 = vmatprep.subr.msk.mxu1 %vm17243_vm3, %v12278_v33  ;;  %v11570_v39 = vpop.eup %11569  ;;  %v10066_v41 = vadd.f32 -0.13877685, %v1422_v35  ;;  %v883_v53 = vmul.f32 %v12314_v62, %v12322_v14  ;;  %v1117_v55 = vmul.f32 %v12275_v11, %v12322_v14 }
  0x78   : > { %10300 = vmatpush1.msk.msra.mxu0 %vm17243_vm3, %v12281_v27  ;;  %11444 = vmatpush1.msk.msra.mxu1 %vm17243_vm3, %v12281_v27  ;;  %v11572_v46 = vpop.eup %11571  ;;  %v2178_v58 = vsub.f32 0.0, %v11570_v39  ;;  %v856_v19 = vsub.f32 %v784_v57, %v10022_v8  ;;  %v928_v1 = vrot.slane %v910_v5, 6  ;;  %vm692_vm13 = vcmp.eq.f32.partialorder %v12108_v60, inf }
  0x79   : > { %10301 = vmatmul.mubr.msk.f32.vlgmr.msra.gmra.mrb[0].mxu0 %vm17242_vm5, %v12286_v34  ;;  %10304 = vmatmul.mubr.msk.f32.vlgmr.msra.gmra.mrb[0].mxu1 %vm17242_vm5, %v12291_v54  ;;  %v11574_v17 = vpop.eup %11573  ;;  %v1440_v42 = vmul.f32 %v10066_v41, %v12273_v32  ;;  %v2214_v49 = vmul.f32 %v11572_v46, %v10147_v61  ;;  %vm694_vm1 = vcmp.eq.f32.partialorder %v12108_v60, 0.0  ;;  %v695_v4 = vand.u32 2147483648, %v12108_v60 }
  0x7a   : > { %4057 = vmatprep.mubr.f32.mxu0 %v17224_v0  ;;  %4140 = vmatprep.mubr.f32.mxu1 %v17224_v0  ;;  %v2842_v23 = vmul.f32 %v11574_v17, %v12251_v45  ;;  %v11576_v29 = vpop.eup %11575  ;;  %vm1539_vm10 = vcmp.gt.f32.partialorder %v12166_v63, 0.0  ;;  %v955_v35 = vmul.f32 %v856_v19, %v856_v19  ;;  %v10040_v37 = vrot.slane %v1117_v55, 9 }
  0x7b   : > { %v1449_v10 = vadd.f32 0.19977711, %v1440_v42  ;;  %v2223_v12 = vsel %vm12330_vm11, %v2214_v49, %v12222_v51  ;;  %v3033_v59 = vrot.slane %v11576_v29, 7  ;;  %v693_v61 = vsel %vm692_vm13, %v12108_v60, %v691_v36 }
  0x7c   : > { %v12366_v13 = vsel %vm2124_vm14, %v2178_v58, %v2223_v12  ;;  %v2844_v30 = vsel %vm2843_vm12, %v12251_v45, %v2842_v23  ;;  %v946_v45 = vsub.f32 %v883_v53, %v928_v1  ;;  %v10049_v58 = vrot.slane %v1117_v55, 10  ;;  %v12409_v23 = vld [vmem:[%s11895_s27 + $0x10] sm:$0x77] }
  0x7d   : > { %10302 = vmatmul.mubr.msk.f32.gmra.mrb[2].mxu0 %vm17242_vm5, %v12340_v2  ;;  %v1458_v15 = vmul.f32 %v1449_v10, %v12273_v32  ;;  %v2259_v18 = vmul.f32 %v12366_v13, %v12366_v13  ;;  %v12382_v52 = vsel %vm2845_vm4, %v2846_v56, %v2844_v30  ;;  %v1395_v6 = vsel %vm12247_vm0, 0.7853982, %v17224_v0 }
  0x7e   : > { %4063 = vmatprep.mubr.f32.mxu0 %v17224_v0  ;;  %v12388_v25 = vmul.f32 %v3033_v59, %v12382_v52  ;;  %v964_v63 = vmul.f32 %v946_v45, %v946_v45  ;;  %v12405_v36 = vsel %vm1539_vm10, 1.5707964, %v17224_v0  ;;  %v1027_v42 = vrot.slane %v955_v35, 7 }
  0x7f   : > { %v10075_v24 = vadd.f32 -0.3333295, %v1458_v15  ;;  %v2268_v7 = vmul.f32 0.080537446, %v2259_v18  ;;  %v1162_v49 = vadd.f32 %v10040_v37, %v1117_v55  ;;  %vm2385_vm12 = vcmp.gt.f32.partialorder %v12217_v50, 0.0 }
  0x80   : > { %vm3060_vm8 = vcmp.gt.f32.partialorder %v12388_v25, 2.4142137  ;;  %v3132_v46 = vadd.f32 1.0, %v12388_v25  ;;  %v10031_v17 = vrot.slane %v964_v63, 9  ;;  %v1963_v3 = vmul.f32 %v12275_v11, %v12409_v23 }
  0x81   : > { %10303 = vmatmul.mubr.msk.f32.gmra.mrb[4].mxu0 %vm17242_vm5, %v12375_v9  ;;  %v1476_v38 = vmul.f32 %v10075_v24, %v12273_v32  ;;  %v10156_v39 = vadd.f32 -0.13877685, %v2268_v7  ;;  %v3096_v41 = vsel %vm3060_vm8, %v12388_v25, 1.0  ;;  %v12412_v5 = vadd.f32 %v10049_v58, %v1162_v49  ;;  %vm3078_vm0 = vmxor %vm3060_vm8, %vm11784_vm15 }
  0x82   : > { %4229 = vmatprep.mubr.f32.mxu0 %v17224_v0  ;;  %11577 = vrcp.f32 %v3096_v41  ;;  %v1009_v8 = vadd.f32 %v10031_v17, %v955_v35  ;;  %v12418_v10 = vsel %vm694_vm1, %v695_v4, %v693_v61  ;;  %v1404_v12 = vsel %vm1278_vm7, 1.5707964, %v1395_v6 }
  0x83   : > { %v2286_v32 = vmul.f32 %v10156_v39, %v2259_v18  ;;  %11579 = vrcp.f32 %v3132_v46  ;;  %v1485_v56 = vmul.f32 %v1476_v38, %v12269_v26  ;;  %v10093_v53 = vrot.slane %v12405_v36, 9 }
  0x84   : > { %v12423_v29 = vadd.f32 %v1027_v42, %v1009_v8  ;;  %v1207_v50 = vand.u32 2147483647, %v12412_v5  ;;  %v1693_v30 = vmul.f32 %v793_v31, %v12409_v23  ;;  %v1756_v60 = vmul.f32 %v892_v21, %v12409_v23 }
  0x85   : > { %v2295_v57 = vadd.f32 0.19977711, %v2286_v32  ;;  %v1494_v19 = vadd.f32 %v1485_v56, %v12269_v26  ;;  %v12434_v40 = vsel %vm2385_vm12, 1.5707964, %v17224_v0  ;;  %v595_v15 = vmul.f32 %v12275_v11, %v12275_v11 }
  0x86   : > { %11581 = vrsqrt.f32 %v12423_v29  ;;  %v1684_v59 = vmul.f32 %v12324_v43, %v12409_v23  ;;  %v1747_v31 = vmul.f32 %v12314_v62, %v12409_v23  ;;  %v10130_v4 = vrot.slane %v1963_v3, 9 }
  0x87   : > { %v2304_v55 = vmul.f32 %v2295_v57, %v2259_v18  ;;  %vm3069_vm7 = vcmp.gt.f32.partialorder %v12388_v25, 0.41421357  ;;  %v10246_v26 = vadd.f32 -1.0, %v12388_v25  ;;  %vm1216_vm4 = vcmp.gt.f32.partialorder %v1207_v50, 0.0 }
  0x88   : > { %v2241_v11 = vsel %vm12330_vm11, 0.7853982, %v17224_v0  ;;  %v1225_v21 = vsel %vm1216_vm4, %v1207_v50, 1.0  ;;  %v10112_v43 = vrot.slane %v1693_v30, 9  ;;  %v1774_v7 = vrot.slane %v1756_v60, 6  ;;  %vm12457_vm1 = vmand %vm3069_vm7, %vm3078_vm0 }
  0x89   : > { %v10165_v1 = vadd.f32 -0.3333295, %v2304_v55  ;;  %v12451_v62 = vadd.f32 %v1494_v19, %v1404_v12  ;;  %v10004_v35 = vrot.slane %v595_v15, 9  ;;  %11583 = vrcp.f32 %v1225_v21 }
  0x8a   : > { %vm1521_vm13 = vcmp.lt.f32.partialorder %v12045_v48, 0.0  ;;  %v1738_v38 = vsub.f32 %v1684_v59, %v10112_v43  ;;  %v1792_v39 = vsub.f32 %v1747_v31, %v1774_v7  ;;  %v2008_v41 = vadd.f32 %v10130_v4, %v1963_v3 }
  0x8b   : > { %v2322_v24 = vmul.f32 %v10165_v1, %v2259_v18  ;;  %v2250_v46 = vsel %vm2124_vm14, 1.5707964, %v2241_v11  ;;  %v10183_v58 = vrot.slane %v12434_v40, 9  ;;  %v10139_v42 = vrot.slane %v1963_v3, 10 }
  0x8c   : > { %v11578_v45 = vpop.eup %11577  ;;  %v1801_v32 = vmul.f32 %v1738_v38, %v1738_v38  ;;  %v1810_v17 = vmul.f32 %v1792_v39, %v1792_v39  ;;  %v10202_v49 = vrot.slane %v12409_v23, 9  ;;  %vm1512_vm11 = vcmp.gt.f32.partialorder %v12045_v48, 0.0 }
  0x8d   : > { %v2331_v18 = vmul.f32 %v2322_v24, %v12366_v13  ;;  %v11580_v37 = vpop.eup %11579  ;;  %v3114_v28 = vsub.f32 0.0, %v11578_v45  ;;  %v1530_v56 = vsub.f32 3.1415927, %v12451_v62  ;;  %v640_v51 = vadd.f32 %v10004_v35, %v595_v15 }
  0x8e   : > { %v3150_v6 = vmul.f32 %v11580_v37, %v10246_v26  ;;  %v10013_v8 = vrot.slane %v595_v15, 10  ;;  %v10121_v12 = vrot.slane %v1810_v17, 9  ;;  %v1873_v55 = vrot.slane %v1801_v32, 7 }
  0x8f   : > { %v2340_v63 = vadd.f32 %v2331_v18, %v12366_v13  ;;  %v12475_v50 = vadd.f32 %v10139_v42, %v2008_v41  ;;  %v2575_v60 = vrot.slane %v12409_v23, 7  ;;  %v2647_v19 = vrot.slane %v12409_v23, 6 }
  0x90   : > { %v3159_v57 = vsel %vm12457_vm1, %v3150_v6, %v12388_v25  ;;  %v11582_v1 = vpop.eup %11581  ;;  %vm2367_vm14 = vcmp.lt.f32.partialorder %v12118_v16, 0.0  ;;  %vm1068_vm10 = vcmp.eq.f32.partialorder %v12423_v29, inf  ;;  %v1071_v15 = vand.u32 2147483648, %v12423_v29 }
  0x91   : > { %v12473_v13 = vsel %vm3060_vm8, %v3114_v28, %v3159_v57  ;;  %v12477_v3 = vadd.f32 %v2340_v63, %v2250_v46  ;;  %v1855_v59 = vadd.f32 %v10121_v12, %v1801_v32  ;;  %v2053_v31 = vand.u32 2147483647, %v12475_v50 }
  0x92   : > { %v3195_v30 = vmul.f32 %v12473_v13, %v12473_v13  ;;  %v10084_v4 = vrot.slane %v1530_v56, 9  ;;  %v1067_v26 = vmul.f32 %v11582_v1, %v12423_v29  ;;  %vm1070_vm12 = vcmp.eq.f32.partialorder %v12423_v29, 0.0 }
  0x93   : > { %v10102_v11 = vrot.slane %v12451_v62, 9  ;;  %vm3321_vm7 = vcmp.gt.f32.partialorder %v12382_v52, 0.0  ;;  %v12491_v21 = vadd.f32 %v10013_v8, %v640_v51  ;;  %v12493_v43 = vadd.f32 %v1873_v55, %v1855_v59  ;;  %v11584_v7 = vpop.eup %11583 }
  0x94   : > { %v3204_v24 = vmul.f32 0.080537446, %v3195_v30  ;;  %vm2358_vm0 = vcmp.gt.f32.partialorder %v12118_v16, 0.0  ;;  %v2376_v45 = vsub.f32 3.1415927, %v12477_v3  ;;  %v1069_v35 = vsel %vm1068_vm10, %v12423_v29, %v1067_v26 }
  0x95   : > { %vm2062_vm4 = vcmp.gt.f32.partialorder %v2053_v31, 0.0  ;;  %v12500_v37 = vsel %vm1070_vm12, %v1071_v15, %v1069_v35  ;;  %v1252_v62 = vrot.slane %v11584_v7, 7  ;;  %11585 = vrsqrt.f32 %v12493_v43 }
  0x96   : > { %v10255_v18 = vadd.f32 -0.13877685, %v3204_v24  ;;  %v2593_v28 = vmul.f32 %v2575_v60, %v12322_v14  ;;  %v1629_v38 = vsel %vm1521_vm13, %v10084_v4, %v10093_v53  ;;  %v3484_v41 = vrot.slane %v12418_v10, %v11959_v47 }
  0x97   : > { %v2566_v46 = vmul.f32 %v10202_v49, %v12322_v14  ;;  %v12514_v29 = vsel %vm3321_vm7, 1.5707964, %v17224_v0  ;;  %v12517_v63 = vmul.f32 %v1252_v62, %v12500_v37  ;;  %v2071_v6 = vsel %vm2062_vm4, %v2053_v31, 1.0 }
  0x98   : > { %v3222_v39 = vmul.f32 %v10255_v18, %v3195_v30  ;;  %v2674_v32 = vrot.slane %v2647_v19, 4  ;;  %v10174_v36 = vrot.slane %v2376_v45, 9  ;;  %v3177_v53 = vsel %vm12457_vm1, 0.7853982, %v17224_v0 }
  0x99   : > { %11587 = vrsqrt.f32 %v12491_v21  ;;  %v1674_v42 = vsel %vm1512_vm11, %v10102_v11, %v1629_v38  ;;  %vm1279_vm13 = vcmp.gt.f32.partialorder %v12517_v63, 2.4142137  ;;  %v1351_v52 = vadd.f32 1.0, %v12517_v63 }
  0x9a   : > { %v3231_v17 = vadd.f32 0.19977711, %v3222_v39  ;;  %v10211_v49 = vrot.slane %v2593_v28, 9  ;;  %v10192_v56 = vrot.slane %v12477_v3, 9  ;;  %v1315_v51 = vsel %vm1279_vm13, %v12517_v63, 1.0  ;;  %vm12571_vm12 = vmxor %vm1279_vm13, %vm11784_vm15 }
  0x9b   : > { %11589 = vrcp.f32 %v2071_v6  ;;  %v2665_v61 = vmul.f32 %v2647_v19, %v12322_v14  ;;  %v2692_v8 = vmul.f32 %v2674_v32, %v12322_v14  ;;  %v2899_v48 = vmul.f32 %v12409_v23, %v12322_v14  ;;  %v548_v39 = vld [vmem:[%s11878_s18 + $0x18] sm:$0x77] }
  0x9c   : > { %v3240_v57 = vmul.f32 %v3231_v17, %v3195_v30  ;;  %11591 = vrcp.f32 %v1315_v51  ;;  %v2475_v12 = vsel %vm2367_vm14, %v10174_v36, %v10183_v58  ;;  %v3488_v3 = vrot.slane %v12418_v10, %v11952_v44 }
  0x9d   : > { %11593 = vrcp.f32 %v1351_v52  ;;  %v10282_v60 = vrot.slane %v12514_v29, 9  ;;  %v2638_v1 = vsub.f32 %v2566_v46, %v10211_v49  ;;  %v2710_v15 = vrot.slane %v2692_v8, 6  ;;  %v566_v46 = vld [vmem:[%s11883_s21 + $0x18] sm:$0x77] }
  0x9e   : > { %v10264_v55 = vadd.f32 -0.3333295, %v3240_v57  ;;  %v10229_v19 = vrot.slane %v2899_v48, 9  ;;  %v3186_v59 = vsel %vm3060_vm8, 1.5707964, %v3177_v53  ;;  %v3582_v14 = vrot.slane %v1674_v42, %v11952_v44 }
  0x9f   : > { %v10238_v23 = vrot.slane %v2899_v48, 10  ;;  %v11586_v40 = vpop.eup %11585  ;;  %v2520_v58 = vsel %vm2358_vm0, %v10192_v56, %v2475_v12  ;;  %vm3303_vm1 = vcmp.lt.f32.partialorder %v12202_v20, 0.0  ;;  %vm1914_vm11 = vcmp.eq.f32.partialorder %v12493_v43, inf }
  0xa0   : > { %v3258_v31 = vmul.f32 %v10264_v55, %v3195_v30  ;;  %v2728_v4 = vsub.f32 %v2665_v61, %v2710_v15  ;;  %v2944_v24 = vadd.f32 %v10229_v19, %v2899_v48  ;;  %vm3294_vm8 = vcmp.gt.f32.partialorder %v12202_v20, 0.0 }
  0xa1   : > { %v3578_v25 = vrot.slane %v1674_v42, %v11959_v47  ;;  %v1913_v30 = vmul.f32 %v11586_v40, %v12493_v43  ;;  %v1917_v11 = vand.u32 2147483648, %v12493_v43  ;;  %vm1916_vm14 = vcmp.eq.f32.partialorder %v12493_v43, 0.0 }
  0xa2   : > { %v3267_v26 = vmul.f32 %v3258_v31, %v12473_v13  ;;  %v2737_v16 = vmul.f32 %v2638_v1, %v2638_v1  ;;  %v2746_v7 = vmul.f32 %v2728_v4, %v2728_v4  ;;  %v12555_v45 = vadd.f32 %v10238_v23, %v2944_v24 }
  0xa3   : > { %v12557_v18 = vpop.eup %11587  ;;  %v3676_v62 = vrot.slane %v2520_v58, %v11952_v44  ;;  %v3844_v28 = vsel %vm3840_vm6, %v3488_v3, %v3582_v14  ;;  %v1915_v38 = vsel %vm1914_vm11, %v12493_v43, %v1913_v30  ;;  %vm1288_vm10 = vcmp.gt.f32.partialorder %v12517_v63, 0.41421357 }
  0xa4   : > { %v3276_v35 = vadd.f32 %v3267_v26, %v12473_v13  ;;  %v10058_v13 = vadd.f32 -1.0, %v12517_v63  ;;  %v10220_v32 = vrot.slane %v2746_v7, 9  ;;  %v2989_v36 = vand.u32 2147483647, %v12555_v45  ;;  %vm12591_vm0 = vmand %vm1288_vm10, %vm12571_vm12 }
  0xa5   : > { %v11590_v53 = vpop.eup %11589  ;;  %v3672_v42 = vrot.slane %v2520_v58, %v11959_v47  ;;  %v3843_v52 = vsel %vm3840_vm6, %v3484_v41, %v3578_v25  ;;  %v12584_v49 = vsel %vm1916_vm14, %v1917_v11, %v1915_v38  ;;  %v2809_v61 = vrot.slane %v2737_v16, 7 }
  0xa6   : > { %v3285_v17 = vadd.f32 %v3276_v35, %v3186_v59  ;;  %v11592_v56 = vpop.eup %11591  ;;  %v2098_v57 = vrot.slane %v11590_v53, 7  ;;  %v2791_v51 = vadd.f32 %v10220_v32, %v2737_v16  ;;  %vm2998_vm7 = vcmp.gt.f32.partialorder %v2989_v36, 0.0  ;;  %v12660_v32 = vld [vmem:[%s11895_s27 + $0x18] sm:$0x77] }
  0xa7   : > { %v11594_v8 = vpop.eup %11593  ;;  %v3862_v12 = vsel %vm3858_vm9, %v3844_v28, %v3676_v62  ;;  %v1333_v43 = vsub.f32 0.0, %v11592_v56  ;;  %v12595_v41 = vsub.f32 %v566_v46, %v548_v39  ;;  %v3007_v15 = vsel %vm2998_vm7, %v2989_v36, 1.0  ;;  %v12643_v28 = vld [vmem:[%s11889_s24 + $0x18] sm:$0x77] }
  0xa8   : > { %v3312_v48 = vsub.f32 3.1415927, %v3285_v17  ;;  %v10291_v55 = vrot.slane %v3285_v17, 9  ;;  %v1369_v3 = vmul.f32 %v11594_v8, %v10058_v13  ;;  %v12598_v1 = vmul.f32 %v2098_v57, %v12584_v49 }
  0xa9   : > { %v3861_v59 = vsel %vm3858_vm9, %v3843_v52, %v3672_v42  ;;  %v761_v31 = vrot.slane %v12595_v41, 5  ;;  %v794_v14 = vrot.slane %v12595_v41, 7  ;;  %v12607_v40 = vadd.f32 %v2809_v61, %v2791_v51 }
  0xaa   : > { %v10273_v19 = vrot.slane %v3312_v48, 9  ;;  %v1378_v23 = vsel %vm12591_vm0, %v1369_v3, %v12517_v63  ;;  %vm2125_vm4 = vcmp.gt.f32.partialorder %v12598_v1, 2.4142137  ;;  %11595 = vrcp.f32 %v3007_v15 }
  0xab   : > { %v12615_v4 = vsel %vm1279_vm13, %v1333_v43, %v1378_v23  ;;  %v2161_v24 = vsel %vm2125_vm4, %v12598_v1, 1.0  ;;  %v2197_v26 = vadd.f32 1.0, %v12598_v1  ;;  %v762_v16 = vrot.slane %v761_v31, 4  ;;  %vm12668_vm14 = vmxor %vm2125_vm4, %vm11784_vm15 }
  0xac   : > { %v3411_v58 = vsel %vm3303_vm1, %v10273_v19, %v10282_v60  ;;  %v12625_v29 = vmul.f32 %v12615_v4, %v12615_v4  ;;  %11597 = vrcp.f32 %v2161_v24  ;;  %v12628_v60 = vrot.slane %v12595_v41, 6 }
  0xad   : > { %v3456_v25 = vsel %vm3294_vm8, %v10291_v55, %v3411_v58  ;;  %11599 = vrcp.f32 %v2197_v26  ;;  %v785_v38 = vmul.f32 %v762_v16, %v12643_v28  ;;  %v812_v39 = vmul.f32 %v794_v14, %v12643_v28 }
  0xae   : > { %v3766_v30 = vrot.slane %v3456_v25, %v11959_v47  ;;  %v3770_v11 = vrot.slane %v3456_v25, %v11952_v44  ;;  %v1423_v7 = vmul.f32 0.080537446, %v12625_v29  ;;  %11601 = vrsqrt.f32 %v12607_v40 }
  0xaf   : > { %v893_v46 = vrot.slane %v12628_v60, 4  ;;  %vm699_vm1 = vcmp.eq.f32.partialorder %v12491_v21, inf  ;;  %v1118_v13 = vmul.f32 %v12595_v41, %v12643_v28  ;;  %vm701_vm11 = vcmp.eq.f32.partialorder %v12491_v21, 0.0 }
  0xb0   : > { %v12635_v20 = vsel %vm3876_vm2, %v3862_v12, %v3770_v11  ;;  %v12638_v35 = vsel %vm3876_vm2, %v3861_v59, %v3766_v30  ;;  %v10067_v62 = vadd.f32 -0.13877685, %v1423_v7  ;;  %vm2134_vm8 = vcmp.gt.f32.partialorder %v12598_v1, 0.41421357 }
  0xb1   : > { %17266 = vst [vmem:[#allocation5_spill] sm:$0xff] %v12635_v20  ;;  %17267 = vst [vmem:[#allocation6_spill] sm:$0xff] %v12638_v35  ;;  %10305 = vmatprep.subr.msk.mxu1 %vm17243_vm3, %v12635_v20  ;;  %v10023_v36 = vrot.slane %v812_v39, 9  ;;  %v884_v53 = vmul.f32 %v12628_v60, %v12643_v28  ;;  %v10148_v56 = vadd.f32 -1.0, %v12598_v1  ;;  %v10041_v57 = vrot.slane %v1118_v13, 9 }
  0xb2   : > { %10306 = vmatpush1.msk.msra.mxu1 %vm17243_vm3, %v12638_v35  ;;  %v1441_v6 = vmul.f32 %v10067_v62, %v12625_v29  ;;  %v10050_v51 = vrot.slane %v1118_v13, 10  ;;  %v698_v61 = vmul.f32 %v12557_v18, %v12491_v21  ;;  %v1694_v12 = vmul.f32 %v794_v14, %v12660_v32  ;;  %vm12685_vm7 = vmand %vm2134_vm8, %vm12668_vm14 }
  0xb3   : > { %10307 = vmatmul.mubr.msk.f32.vlgmr.msra.gmra.mrb[2].mxu1 %vm17242_vm5, %v12286_v34  ;;  %v911_v34 = vmul.f32 %v893_v46, %v12643_v28  ;;  %v857_v8 = vsub.f32 %v785_v38, %v10023_v36  ;;  %vm2850_vm10 = vcmp.eq.f32.partialorder %v12607_v40, inf  ;;  %vm2852_vm12 = vcmp.eq.f32.partialorder %v12607_v40, 0.0 }
  0xb4   : > { %4146 = vmatprep.mubr.f32.mxu1 %v17224_v0  ;;  %v11596_v17 = vpop.eup %11595  ;;  %v1450_v42 = vadd.f32 0.19977711, %v1441_v6  ;;  %v1163_v3 = vadd.f32 %v10041_v57, %v1118_v13  ;;  %v2853_v59 = vand.u32 2147483648, %v12607_v40  ;;  %v1685_v31 = vmul.f32 %v762_v16, %v12660_v32 }
  0xb5   : > { %v929_v48 = vrot.slane %v911_v34, 6  ;;  %v3034_v58 = vrot.slane %v11596_v17, 7  ;;  %v1757_v26 = vmul.f32 %v893_v46, %v12660_v32  ;;  %v956_v30 = vmul.f32 %v857_v8, %v857_v8 }
  0xb6   : > { %v11598_v43 = vpop.eup %11597  ;;  %v1459_v55 = vmul.f32 %v1450_v42, %v12625_v29  ;;  %v12692_v24 = vadd.f32 %v10050_v51, %v1163_v3  ;;  %v10113_v7 = vrot.slane %v1694_v12, 9  ;;  %v700_v62 = vsel %vm699_vm1, %v12491_v21, %v698_v61 }
  0xb7   : > { %10308 = vmatmul.mubr.msk.f32.gmra.mrb[4].mxu1 %vm17242_vm5, %v12340_v2  ;;  %v11600_v15 = vpop.eup %11599  ;;  %v2179_v19 = vsub.f32 0.0, %v11598_v43  ;;  %v947_v2 = vsub.f32 %v884_v53, %v929_v48  ;;  %v702_v38 = vand.u32 2147483648, %v12491_v21  ;;  %v1775_v17 = vrot.slane %v1757_v26, 6 }
  0xb8   : > { %4152 = vmatprep.mubr.f32.mxu1 %v17224_v0  ;;  %v11602_v14 = vpop.eup %11601  ;;  %v2215_v23 = vmul.f32 %v11600_v15, %v10148_v56  ;;  %v10076_v39 = vadd.f32 -0.3333295, %v1459_v55  ;;  %v1208_v36 = vand.u32 2147483647, %v12692_v24  ;;  %v1028_v56 = vrot.slane %v956_v30, 7 }
  0xb9   : > { %v2849_v25 = vmul.f32 %v11602_v14, %v12607_v40  ;;  %v965_v11 = vmul.f32 %v947_v2, %v947_v2  ;;  %v1739_v57 = vsub.f32 %v1685_v31, %v10113_v7  ;;  %v12727_v51 = vsel %vm701_vm11, %v702_v38, %v700_v62 }
  0xba   : > { %v2224_v16 = vsel %vm12685_vm7, %v2215_v23, %v12598_v1  ;;  %v1477_v61 = vmul.f32 %v10076_v39, %v12625_v29  ;;  %vm1540_vm1 = vcmp.gt.f32.partialorder %v12500_v37, 0.0  ;;  %vm1217_vm14 = vcmp.gt.f32.partialorder %v1208_v36, 0.0 }
  0xbb   : > { %10309 = vmatmul.mubr.msk.f32.gmra.mrb[6].mxu1 %vm17242_vm5, %v12375_v9  ;;  %v12707_v46 = vsel %vm2125_vm4, %v2179_v19, %v2224_v16  ;;  %v2851_v6 = vsel %vm2850_vm10, %v12607_v40, %v2849_v25  ;;  %v10032_v13 = vrot.slane %v965_v11, 9  ;;  %v1748_v9 = vmul.f32 %v12628_v60, %v12660_v32 }
  0xbc   : > { %4158 = vmatprep.mubr.f32.mxu1 %v17224_v0  ;;  %v2260_v53 = vmul.f32 %v12707_v46, %v12707_v46  ;;  %v12718_v34 = vsel %vm2852_vm12, %v2853_v59, %v2851_v6  ;;  %v1396_v60 = vsel %vm12591_vm0, 0.7853982, %v17224_v0  ;;  %v12744_v48 = vmul.f32 %v12595_v41, %v12595_v41 }
  0xbd   : > { %v12723_v42 = vmul.f32 %v3034_v58, %v12718_v34  ;;  %v1010_v52 = vadd.f32 %v10032_v13, %v956_v30  ;;  %v1793_v12 = vsub.f32 %v1748_v9, %v1775_v17  ;;  %v1802_v43 = vmul.f32 %v1739_v57, %v1739_v57 }
  0xbe   : > { %v2269_v40 = vmul.f32 0.080537446, %v2260_v53  ;;  %v1486_v55 = vmul.f32 %v1477_v61, %v12615_v4  ;;  %v1226_v15 = vsel %vm1217_vm14, %v1208_v36, 1.0  ;;  %v1405_v19 = vsel %vm1279_vm13, 1.5707964, %v1396_v60 }
  0xbf   : > { %10310 = vmatmul.mubr.msk.f32.gmra.mrb[8].mxu1 %vm17242_vm5, %v12291_v54  ;;  %vm3061_vm8 = vcmp.gt.f32.partialorder %v12723_v42, 2.4142137  ;;  %v3133_v8 = vadd.f32 1.0, %v12723_v42  ;;  %v1964_v54 = vmul.f32 %v12595_v41, %v12660_v32  ;;  %v12748_v10 = vadd.f32 %v1028_v56, %v1010_v52 }
  0xc0   : > { %4318 = vmatprep.mubr.f32.mxu1 %v17224_v0  ;;  %v10157_v21 = vadd.f32 -0.13877685, %v2269_v40  ;;  %v3097_v29 = vsel %vm3061_vm8, %v12723_v42, 1.0  ;;  %v12756_v59 = vsel %vm1540_vm1, 1.5707964, %v17224_v0  ;;  %v2576_v41 = vrot.slane %v12660_v32, 7  ;;  %vm12775_vm11 = vmxor %vm3061_vm8, %vm11784_vm15 }
  0xc1   : > { %11603 = vrcp.f32 %v3097_v29  ;;  %vm2386_vm0 = vcmp.gt.f32.partialorder %v12584_v49, 0.0  ;;  %v10005_v31 = vrot.slane %v12744_v48, 9  ;;  %v10203_v14 = vrot.slane %v12660_v32, 9 }
  0xc2   : > { %v2287_v3 = vmul.f32 %v10157_v21, %v2260_v53  ;;  %11605 = vrcp.f32 %v3133_v8  ;;  %v2242_v63 = vsel %vm12685_vm7, 0.7853982, %v17224_v0  ;;  %v1811_v23 = vmul.f32 %v1793_v12, %v1793_v12 }
  0xc3   : > { %11607 = vrsqrt.f32 %v12748_v10  ;;  %v10131_v37 = vrot.slane %v1964_v54, 9  ;;  %v1495_v58 = vadd.f32 %v1486_v55, %v12615_v4  ;;  %v1874_v25 = vrot.slane %v1802_v43, 7 }
  0xc4   : > { %v2296_v2 = vadd.f32 0.19977711, %v2287_v3  ;;  %11609 = vrcp.f32 %v1226_v15  ;;  %v10140_v30 = vrot.slane %v1964_v54, 10  ;;  %v10122_v11 = vrot.slane %v1811_v23, 9 }
  0xc5   : > { %v2009_v7 = vadd.f32 %v10131_v37, %v1964_v54  ;;  %v2594_v62 = vmul.f32 %v2576_v41, %v12643_v28  ;;  %v2648_v38 = vrot.slane %v12660_v32, 6  ;;  %vm3070_vm13 = vcmp.gt.f32.partialorder %v12723_v42, 0.41421357 }
  0xc6   : > { %v2305_v26 = vmul.f32 %v2296_v2, %v2260_v53  ;;  %v641_v18 = vadd.f32 %v10005_v31, %v12744_v48  ;;  %v10014_v16 = vrot.slane %v12744_v48, 10  ;;  %v10247_v6 = vadd.f32 -1.0, %v12723_v42 }
  0xc7   : > { %v1856_v13 = vadd.f32 %v10122_v11, %v1802_v43  ;;  %v12780_v36 = vadd.f32 %v10140_v30, %v2009_v7  ;;  %v2675_v9 = vrot.slane %v2648_v38, 4  ;;  %v2251_v17 = vsel %vm2125_vm4, 1.5707964, %v2242_v63  ;;  %vm12800_vm4 = vmand %vm3070_vm13, %vm12775_vm11 }
  0xc8   : > { %v10166_v39 = vadd.f32 -0.3333295, %v2305_v26  ;;  %v12787_v56 = vsel %vm2386_vm0, 1.5707964, %v17224_v0  ;;  %v2567_v57 = vmul.f32 %v10203_v14, %v12643_v28  ;;  %v12790_v40 = vadd.f32 %v1495_v58, %v1405_v19 }
  0xc9   : > { %v12792_v60 = vadd.f32 %v1874_v25, %v1856_v13  ;;  %v2054_v8 = vand.u32 2147483647, %v12780_v36  ;;  %v10212_v21 = vrot.slane %v2594_v62, 9  ;;  %vm1075_vm10 = vcmp.eq.f32.partialorder %v12748_v10, inf }
  0xca   : > { %v2323_v52 = vmul.f32 %v10166_v39, %v2260_v53  ;;  %v2693_v48 = vmul.f32 %v2675_v9, %v12643_v28  ;;  %vm1522_vm12 = vcmp.lt.f32.partialorder %v12412_v5, 0.0  ;;  %v1078_v43 = vand.u32 2147483648, %v12748_v10 }
  0xcb   : > { %v11604_v61 = vpop.eup %11603  ;;  %11611 = vrsqrt.f32 %v12792_v60  ;;  %v2666_v55 = vmul.f32 %v2648_v38, %v12643_v28  ;;  %vm1077_vm7 = vcmp.eq.f32.partialorder %v12748_v10, 0.0  ;;  %vm2063_vm1 = vcmp.gt.f32.partialorder %v2054_v8, 0.0 }
  0xcc   : > { %v11606_v29 = vpop.eup %11605  ;;  %v2332_v1 = vmul.f32 %v2323_v52, %v12707_v46  ;;  %v3115_v53 = vsub.f32 0.0, %v11604_v61  ;;  %v2072_v2 = vsel %vm2063_vm1, %v2054_v8, 1.0  ;;  %v2639_v31 = vsub.f32 %v2567_v57, %v10212_v21 }
  0xcd   : > { %v11608_v54 = vpop.eup %11607  ;;  %v3151_v12 = vmul.f32 %v11606_v29, %v10247_v6  ;;  %v2711_v14 = vrot.slane %v2693_v48, 6  ;;  %v1531_v63 = vsub.f32 3.1415927, %v12790_v40  ;;  %vm1513_vm14 = vcmp.gt.f32.partialorder %v12412_v5, 0.0 }
  0xce   : > { %v2341_v3 = vadd.f32 %v2332_v1, %v12707_v46  ;;  %v1074_v15 = vmul.f32 %v11608_v54, %v12748_v10  ;;  %v11610_v19 = vpop.eup %11609  ;;  %11613 = vrcp.f32 %v2072_v2  ;;  %v10094_v30 = vrot.slane %v12756_v59, 9 }
  0xcf   : > { %v3160_v41 = vsel %vm12800_vm4, %v3151_v12, %v12723_v42  ;;  %v1253_v37 = vrot.slane %v11610_v19, 7  ;;  %v2729_v25 = vsub.f32 %v2666_v55, %v2711_v14  ;;  %v3492_v7 = vrot.slane %v12727_v51, %v11959_v47 }
  0xd0   : > { %v12819_v23 = vsel %vm3061_vm8, %v3115_v53, %v3160_v41  ;;  %v1076_v46 = vsel %vm1075_vm10, %v12748_v10, %v1074_v15  ;;  %v12832_v11 = vadd.f32 %v2341_v3, %v2251_v17  ;;  %v2738_v38 = vmul.f32 %v2639_v31, %v2639_v31  ;;  %v549_v31 = vld [vmem:[%s11878_s18 + $0x20] sm:$0x77] }
  0xd1   : > { %v12827_v58 = vmul.f32 %v12819_v23, %v12819_v23  ;;  %v12829_v26 = vsel %vm1077_vm7, %v1078_v43, %v1076_v46  ;;  %v2747_v39 = vmul.f32 %v2729_v25, %v2729_v25  ;;  %v2900_v4 = vmul.f32 %v12660_v32, %v12643_v28 }
  0xd2   : > { %v12837_v10 = vmul.f32 %v1253_v37, %v12829_v26  ;;  %v10085_v6 = vrot.slane %v1531_v63, 9  ;;  %vm2368_vm0 = vcmp.lt.f32.partialorder %v12475_v50, 0.0  ;;  %v10184_v59 = vrot.slane %v12787_v56, 9 }
  0xd3   : > { %v3205_v62 = vmul.f32 0.080537446, %v12827_v58  ;;  %v12844_v13 = vadd.f32 %v10014_v16, %v641_v18  ;;  %vm1921_vm11 = vcmp.eq.f32.partialorder %v12792_v60, inf  ;;  %v2377_v28 = vsub.f32 3.1415927, %v12832_v11 }
  0xd4   : > { %vm1280_vm13 = vcmp.gt.f32.partialorder %v12837_v10, 2.4142137  ;;  %v1352_v52 = vadd.f32 1.0, %v12837_v10  ;;  %v10221_v32 = vrot.slane %v2747_v39, 9  ;;  %v10230_v57 = vrot.slane %v2900_v4, 9 }
  0xd5   : > { %v10256_v9 = vadd.f32 -0.13877685, %v3205_v62  ;;  %v1316_v17 = vsel %vm1280_vm13, %v12837_v10, 1.0  ;;  %v11612_v61 = vpop.eup %11611  ;;  %vm2359_vm10 = vcmp.gt.f32.partialorder %v12475_v50, 0.0  ;;  %v1924_v16 = vand.u32 2147483648, %v12792_v60 }
  0xd6   : > { %11615 = vrcp.f32 %v1316_v17  ;;  %v2810_v56 = vrot.slane %v2738_v38, 7  ;;  %v1630_v8 = vsel %vm1522_vm12, %v10085_v6, %v10094_v30  ;;  %v10103_v21 = vrot.slane %v12790_v40, 9  ;;  %vm12893_vm12 = vmxor %vm1280_vm13, %vm11784_vm15 }
  0xd7   : > { %v3223_v18 = vmul.f32 %v10256_v9, %v12827_v58  ;;  %11617 = vrcp.f32 %v1352_v52  ;;  %v1920_v29 = vmul.f32 %v11612_v61, %v12792_v60  ;;  %vm1923_vm7 = vcmp.eq.f32.partialorder %v12792_v60, 0.0 }
  0xd8   : > { %v2792_v53 = vadd.f32 %v10221_v32, %v2738_v38  ;;  %v2945_v48 = vadd.f32 %v10230_v57, %v2900_v4  ;;  %v10239_v54 = vrot.slane %v2900_v4, 10  ;;  %v10175_v12 = vrot.slane %v2377_v28, 9  ;;  %v11614_v55 = vpop.eup %11613 }
  0xd9   : > { %v3232_v1 = vadd.f32 0.19977711, %v3223_v18  ;;  %v3178_v43 = vsel %vm12800_vm4, 0.7853982, %v17224_v0  ;;  %vm3322_vm1 = vcmp.gt.f32.partialorder %v12718_v34, 0.0  ;;  %v1922_v40 = vsel %vm1921_vm11, %v12792_v60, %v1920_v29 }
  0xda   : > { %v12869_v15 = vsel %vm1923_vm7, %v1924_v16, %v1922_v40  ;;  %v12871_v19 = vadd.f32 %v2810_v56, %v2792_v53  ;;  %v12873_v41 = vadd.f32 %v10239_v54, %v2945_v48  ;;  %v1675_v2 = vsel %vm1513_vm14, %v10103_v21, %v1630_v8  ;;  %v567_v60 = vld [vmem:[%s11883_s21 + $0x20] sm:$0x77] }
  0xdb   : > { %v3241_v3 = vmul.f32 %v3232_v1, %v12827_v58  ;;  %v3496_v49 = vrot.slane %v12727_v51, %v11952_v44  ;;  %11619 = vrsqrt.f32 %v12844_v13  ;;  %v2099_v34 = vrot.slane %v11614_v55, 7 }
  0xdc   : > { %v3187_v14 = vsel %vm3061_vm8, 1.5707964, %v3178_v43  ;;  %v12885_v46 = vsel %vm3322_vm1, 1.5707964, %v17224_v0  ;;  %11621 = vrsqrt.f32 %v12871_v19  ;;  %v10193_v5 = vrot.slane %v12832_v11, 9 }
  0xdd   : > { %v10265_v63 = vadd.f32 -0.3333295, %v3241_v3  ;;  %vm1289_vm4 = vcmp.gt.f32.partialorder %v12837_v10, 0.41421357  ;;  %v10059_v42 = vadd.f32 -1.0, %v12837_v10  ;;  %v12899_v25 = vmul.f32 %v2099_v34, %v12869_v15 }
  0xde   : > { %v2476_v30 = vsel %vm2368_vm0, %v10175_v12, %v10184_v59  ;;  %v3586_v11 = vrot.slane %v1675_v2, %v11959_v47  ;;  %v2990_v38 = vand.u32 2147483647, %v12873_v41  ;;  %v3590_v4 = vrot.slane %v1675_v2, %v11952_v44  ;;  %vm12917_vm0 = vmand %vm1289_vm4, %vm12893_vm12  ;;  %v12950_v12 = vld [vmem:[%s11889_s24 + $0x20] sm:$0x77] }
  0xdf   : > { %v3259_v62 = vmul.f32 %v10265_v63, %v12827_v58  ;;  %vm2126_vm8 = vcmp.gt.f32.partialorder %v12899_v25, 2.4142137  ;;  %v2198_v6 = vadd.f32 1.0, %v12899_v25  ;;  %v12909_v9 = vsub.f32 %v567_v60, %v549_v31 }
  0xe0   : > { %v11616_v39 = vpop.eup %11615  ;;  %vm3295_vm14 = vcmp.gt.f32.partialorder %v12555_v45, 0.0  ;;  %v2162_v28 = vsel %vm2126_vm8, %v12899_v25, 1.0  ;;  %vm2999_vm11 = vcmp.gt.f32.partialorder %v2990_v38, 0.0  ;;  %v2521_v32 = vsel %vm2359_vm10, %v10193_v5, %v2476_v30  ;;  %vm12974_vm12 = vmxor %vm2126_vm8, %vm11784_vm15 }
  0xe1   : > { %v11618_v17 = vpop.eup %11617  ;;  %v3268_v52 = vmul.f32 %v3259_v62, %v12819_v23  ;;  %v1334_v59 = vsub.f32 0.0, %v11616_v39  ;;  %11623 = vrcp.f32 %v2162_v28  ;;  %v3008_v61 = vsel %vm2999_vm11, %v2990_v38, 1.0 }
  0xe2   : > { %v1370_v57 = vmul.f32 %v11618_v17, %v10059_v42  ;;  %vm3304_vm7 = vcmp.lt.f32.partialorder %v12555_v45, 0.0  ;;  %11625 = vrcp.f32 %v2198_v6  ;;  %v763_v16 = vrot.slane %v12909_v9, 5 }
  0xe3   : > { %v3277_v18 = vadd.f32 %v3268_v52, %v12819_v23  ;;  %v10283_v56 = vrot.slane %v12885_v46, 9  ;;  %v3846_v8 = vsel %vm3840_vm6, %v3496_v49, %v3590_v4  ;;  %11627 = vrcp.f32 %v3008_v61 }
  0xe4   : > { %v1379_v50 = vsel %vm12917_vm0, %v1370_v57, %v12837_v10  ;;  %v3680_v29 = vrot.slane %v2521_v32, %v11959_v47  ;;  %v3684_v23 = vrot.slane %v2521_v32, %v11952_v44  ;;  %v3845_v48 = vsel %vm3840_vm6, %v3492_v7, %v3586_v11 }
  0xe5   : > { %v3286_v21 = vadd.f32 %v3277_v18, %v3187_v14  ;;  %v12938_v1 = vsel %vm1280_vm13, %v1334_v59, %v1379_v50  ;;  %v11620_v53 = vpop.eup %11619  ;;  %vm2857_vm10 = vcmp.eq.f32.partialorder %v12871_v19, inf  ;;  %v795_v43 = vrot.slane %v12909_v9, 7 }
  0xe6   : > { %v12946_v54 = vmul.f32 %v12938_v1, %v12938_v1  ;;  %v11622_v40 = vpop.eup %11621  ;;  %v12953_v2 = vrot.slane %v763_v16, 4  ;;  %v12956_v49 = vrot.slane %v12909_v9, 6  ;;  %v12965_v31 = vmul.f32 %v12909_v9, %v12950_v12 }
  0xe7   : > { %v3313_v55 = vsub.f32 3.1415927, %v3286_v21  ;;  %v10292_v3 = vrot.slane %v3286_v21, 9  ;;  %v2856_v7 = vmul.f32 %v11622_v40, %v12871_v19  ;;  %v813_v34 = vmul.f32 %v795_v43, %v12950_v12 }
  0xe8   : > { %v1424_v51 = vmul.f32 0.080537446, %v12946_v54  ;;  %v3864_v14 = vsel %vm3858_vm9, %v3846_v8, %v3684_v23  ;;  %v3863_v63 = vsel %vm3858_vm9, %v3845_v48, %v3680_v29  ;;  %vm2859_vm1 = vcmp.eq.f32.partialorder %v12871_v19, 0.0 }
  0xe9   : > { %v10274_v60 = vrot.slane %v3313_v55, 9  ;;  %vm2135_vm4 = vcmp.gt.f32.partialorder %v12899_v25, 0.41421357  ;;  %v10149_v37 = vadd.f32 -1.0, %v12899_v25  ;;  %v2860_v42 = vand.u32 2147483648, %v12871_v19 }
  0xea   : > { %v10068_v46 = vadd.f32 -0.13877685, %v1424_v51  ;;  %v2858_v62 = vsel %vm2857_vm10, %v12871_v19, %v2856_v7  ;;  %v786_v11 = vmul.f32 %v12953_v2, %v12950_v12  ;;  %v894_v38 = vrot.slane %v12956_v49, 4  ;;  %vm12999_vm11 = vmand %vm2135_vm4, %vm12974_vm12 }
  0xeb   : > { %v3412_v30 = vsel %vm3304_vm7, %v10274_v60, %v10283_v56  ;;  %v11624_v39 = vpop.eup %11623  ;;  %v10024_v17 = vrot.slane %v813_v34, 9  ;;  %v10042_v52 = vrot.slane %v12965_v31, 9  ;;  %v705_v57 = vmul.f32 %v11620_v53, %v12844_v13  ;;  %v13038_v60 = vld [vmem:[%s17214_s5] sm:$0xff] }
  0xec   : > { %v3457_v4 = vsel %vm3295_vm14, %v10292_v3, %v3412_v30  ;;  %v1442_v6 = vmul.f32 %v10068_v46, %v12946_v54  ;;  %v11626_v59 = vpop.eup %11625  ;;  %v2180_v45 = vsub.f32 0.0, %v11624_v39  ;;  %v13005_v8 = vsel %vm2859_vm1, %v2860_v42, %v2858_v62  ;;  %v13058_v42 = vld [vmem:[%s11895_s27 + $0x20] sm:$0x77] }
  0xed   : > { %v3774_v28 = vrot.slane %v3457_v4, %v11959_v47  ;;  %v3778_v32 = vrot.slane %v3457_v4, %v11952_v44  ;;  %v11628_v18 = vpop.eup %11627  ;;  %v2216_v56 = vmul.f32 %v11626_v59, %v10149_v37  ;;  %v885_v50 = vmul.f32 %v12956_v49, %v12950_v12 }
  0xee   : > { %v1451_v16 = vadd.f32 0.19977711, %v1442_v6  ;;  %v3035_v23 = vrot.slane %v11628_v18, 7  ;;  %v912_v53 = vmul.f32 %v894_v38, %v12950_v12  ;;  %v858_v40 = vsub.f32 %v786_v11, %v10024_v17  ;;  %v13069_v6 = vld [vmem:[%s17214_s5 + $0x8] sm:$0xff] }
  0xef   : > { %v13010_v21 = vsel %vm3876_vm2, %v3864_v14, %v3778_v32  ;;  %v13013_v29 = vsel %vm3876_vm2, %v3863_v63, %v3774_v28  ;;  %v2225_v48 = vsel %vm12999_vm11, %v2216_v56, %v12899_v25  ;;  %v1164_v55 = vadd.f32 %v10042_v52, %v12965_v31 }
  0xf0   : > { %17284 = vst [vmem:[#allocation7_spill] sm:$0xff] %v13010_v21  ;;  %17285 = vst [vmem:[#allocation8_spill] sm:$0xff] %v13013_v29  ;;  %10311 = vmatprep.subr.msk.mxu0 %vm17243_vm3, %v13010_v21  ;;  %v1460_v19 = vmul.f32 %v1451_v16, %v12946_v54  ;;  %v13029_v3 = vsel %vm2126_vm8, %v2180_v45, %v2225_v48  ;;  %v13032_v51 = vmul.f32 %v3035_v23, %v13005_v8  ;;  %v13096_v23 = vld [vmem:[%s17214_s5 + $0x10] sm:$0xff] }
  0xf1   : > { %10312 = vmatpush1.msk.msra.mxu0 %vm17243_vm3, %v13013_v29  ;;  %v930_v7 = vrot.slane %v912_v53, 6  ;;  %v10051_v34 = vrot.slane %v12965_v31, 10  ;;  %vm706_vm14 = vcmp.eq.f32.partialorder %v12844_v13, inf  ;;  %vm708_vm7 = vcmp.eq.f32.partialorder %v12844_v13, 0.0 }
  0xf2   : > { %10313 = vmatmul.mubr.msk.f32.vlgmr.msra.gmra.mrb[6].mxu0 %vm17242_vm5, %v13038_v60  ;;  %v10077_v14 = vadd.f32 -0.3333295, %v1460_v19  ;;  %v13046_v63 = vmul.f32 %v13029_v3, %v13029_v3  ;;  %v709_v31 = vand.u32 2147483648, %v12844_v13  ;;  %vm1541_vm10 = vcmp.gt.f32.partialorder %v12829_v26, 0.0 }
  0xf3   : > { %4235 = vmatprep.mubr.f32.mxu0 %v17224_v0  ;;  %vm3062_vm1 = vcmp.gt.f32.partialorder %v13032_v51, 2.4142137  ;;  %v3134_v46 = vadd.f32 1.0, %v13032_v51  ;;  %v948_v30 = vsub.f32 %v885_v50, %v930_v7  ;;  %v957_v62 = vmul.f32 %v858_v40, %v858_v40 }
  0xf4   : > { %v2270_v5 = vmul.f32 0.080537446, %v13046_v63  ;;  %v3098_v37 = vsel %vm3062_vm1, %v13032_v51, 1.0  ;;  %v707_v11 = vsel %vm706_vm14, %v12844_v13, %v705_v57  ;;  %v13061_v39 = vadd.f32 %v10051_v34, %v1164_v55 }
  0xf5   : > { %11629 = vrcp.f32 %v3098_v37  ;;  %v1695_v4 = vmul.f32 %v795_v43, %v13058_v42  ;;  %v1478_v17 = vmul.f32 %v10077_v14, %v12946_v54  ;;  %v13077_v59 = vsel %vm1541_vm10, 1.5707964, %v17224_v0  ;;  %v13130_v37 = vld [vmem:[%s17214_s5 + $0x18] sm:$0xff] }
  0xf6   : > { %10314 = vmatmul.mubr.msk.f32.gmra.mrb[8].mxu0 %vm17242_vm5, %v13069_v6  ;;  %v10158_v52 = vadd.f32 -0.13877685, %v2270_v5  ;;  %11631 = vrcp.f32 %v3134_v46  ;;  %v966_v43 = vmul.f32 %v948_v30, %v948_v30  ;;  %v1209_v28 = vand.u32 2147483647, %v13061_v39 }
  0xf7   : > { %4241 = vmatprep.mubr.f32.mxu0 %v17224_v0  ;;  %v13083_v32 = vsel %vm708_vm7, %v709_v31, %v707_v11  ;;  %v1397_v54 = vsel %vm12917_vm0, 0.7853982, %v17224_v0  ;;  %v1029_v45 = vrot.slane %v957_v62, 7  ;;  %v1686_v26 = vmul.f32 %v12953_v2, %v13058_v42 }
  0xf8   : > { %v2288_v57 = vmul.f32 %v10158_v52, %v13046_v63  ;;  %v10033_v18 = vrot.slane %v966_v43, 9  ;;  %vm1218_vm4 = vcmp.gt.f32.partialorder %v1209_v28, 0.0  ;;  %v10114_v16 = vrot.slane %v1695_v4, 9 }
  0xf9   : > { %v1487_v56 = vmul.f32 %v1478_v17, %v12938_v1  ;;  %v10095_v50 = vrot.slane %v13077_v59, 9  ;;  %v1227_v58 = vsel %vm1218_vm4, %v1209_v28, 1.0  ;;  %v1406_v53 = vsel %vm1280_vm13, 1.5707964, %v1397_v54  ;;  %vm13116_vm13 = vmxor %vm3062_vm1, %vm11784_vm15 }
  0xfa   : > { %v2297_v13 = vadd.f32 0.19977711, %v2288_v57  ;;  %10315 = vmatmul.mubr.msk.f32.gmra.mrb[10].mxu0 %vm17242_vm5, %v13096_v23  ;;  %vm3071_vm0 = vcmp.gt.f32.partialorder %v13032_v51, 0.41421357  ;;  %v1011_v2 = vadd.f32 %v10033_v18, %v957_v62  ;;  %v1758_v19 = vmul.f32 %v894_v38, %v13058_v42 }
  0xfb   : > { %4247 = vmatprep.mubr.f32.mxu0 %v17224_v0  ;;  %v10248_v40 = vadd.f32 -1.0, %v13032_v51  ;;  %v1749_v55 = vmul.f32 %v12956_v49, %v13058_v42  ;;  %v1965_v10 = vmul.f32 %v12909_v9, %v13058_v42  ;;  %11633 = vrcp.f32 %v1227_v58  ;;  %vm13147_vm14 = vmand %vm3071_vm0, %vm13116_vm13 }
  0xfc   : > { %v2306_v48 = vmul.f32 %v2297_v13, %v13046_v63  ;;  %v13120_v38 = vadd.f32 %v1029_v45, %v1011_v2  ;;  %v1740_v34 = vsub.f32 %v1686_v26, %v10114_v16  ;;  %v1776_v14 = vrot.slane %v1758_v19, 6 }
  0xfd   : > { %v1496_v31 = vadd.f32 %v1487_v56, %v12938_v1  ;;  %v13125_v49 = vmul.f32 %v12909_v9, %v12909_v9  ;;  %v10132_v5 = vrot.slane %v1965_v10, 9  ;;  %vm2387_vm12 = vcmp.gt.f32.partialorder %v12869_v15, 0.0 }
  0xfe   : > { %v10167_v46 = vadd.f32 -0.3333295, %v2306_v48  ;;  %10316 = vmatmul.mubr.msk.f32.gmra.mrb[12].mxu0 %vm17242_vm5, %v13130_v37  ;;  %v3500_v1 = vrot.slane %v13083_v32, %v11959_v47  ;;  %11635 = vrsqrt.f32 %v13120_v38  ;;  %v10141_v62 = vrot.slane %v1965_v10, 10 }
  0xff   : > { %v11630_v30 = vpop.eup %11629  ;;  %4407 = vmatprep.mubr.f32.mxu0 %v17224_v0  ;;  %v2243_v11 = vsel %vm12999_vm11, 0.7853982, %v17224_v0  ;;  %v1794_v43 = vsub.f32 %v1749_v55, %v1776_v14  ;;  %v3504_v54 = vrot.slane %v13083_v32, %v11952_v44  ;;  %v1803_v57 = vmul.f32 %v1740_v34, %v1740_v34 }
 0x100   : > { %v11632_v9 = vpop.eup %11631  ;;  %v2324_v4 = vmul.f32 %v10167_v46, %v13046_v63  ;;  %v3116_v52 = vsub.f32 0.0, %v11630_v30  ;;  %v2010_v45 = vadd.f32 %v10132_v5, %v1965_v10  ;;  %v13153_v61 = vadd.f32 %v1496_v31, %v1406_v53 }
 0x101   : > { %v3152_v28 = vmul.f32 %v11632_v9, %v10248_v40  ;;  %v10006_v18 = vrot.slane %v13125_v49, 9  ;;  %v1812_v26 = vmul.f32 %v1794_v43, %v1794_v43  ;;  %v2252_v16 = vsel %vm2126_vm8, 1.5707964, %v2243_v11 }
 0x102   : > { %v2333_v63 = vmul.f32 %v2324_v4, %v13029_v3  ;;  %v13162_v56 = vsel %vm2387_vm12, 1.5707964, %v17224_v0  ;;  %v13167_v58 = vadd.f32 %v10141_v62, %v2010_v45  ;;  %v10015_v25 = vrot.slane %v13125_v49, 10 }
 0x103   : > { %v3161_v13 = vsel %vm13147_vm14, %v3152_v28, %v13032_v51  ;;  %v2577_v19 = vrot.slane %v13058_v42, 7  ;;  %vm1523_vm8 = vcmp.lt.f32.partialorder %v12692_v24, 0.0  ;;  %v10123_v48 = vrot.slane %v1812_v26, 9 }
 0x104   : > { %v2342_v53 = vadd.f32 %v2333_v63, %v13029_v3  ;;  %v13172_v2 = vsel %vm3062_vm1, %v3116_v52, %v3161_v13  ;;  %v1875_v40 = vrot.slane %v1803_v57, 7  ;;  %v2055_v55 = vand.u32 2147483647, %v13167_v58 }
 0x105   : > { %v13179_v15 = vmul.f32 %v13172_v2, %v13172_v2  ;;  %v1532_v3 = vsub.f32 3.1415927, %v13153_v61  ;;  %v642_v7 = vadd.f32 %v10006_v18, %v13125_v49  ;;  %v10204_v34 = vrot.slane %v13058_v42, 9  ;;  %v11634_v14 = vpop.eup %11633 }
 0x106   : > { %v13183_v10 = vadd.f32 %v2342_v53, %v2252_v16  ;;  %vm2369_vm11 = vcmp.lt.f32.partialorder %v12780_v36, 0.0  ;;  %v1857_v46 = vadd.f32 %v10123_v48, %v1803_v57  ;;  %vm2064_vm7 = vcmp.gt.f32.partialorder %v2055_v55, 0.0 }
 0x107   : > { %v3206_v31 = vmul.f32 0.080537446, %v13179_v15  ;;  %v2649_v5 = vrot.slane %v13058_v42, 6  ;;  %vm1514_vm10 = vcmp.gt.f32.partialorder %v12692_v24, 0.0  ;;  %vm1082_vm4 = vcmp.eq.f32.partialorder %v13120_v38, inf }
 0x108   : > { %vm1084_vm0 = vcmp.eq.f32.partialorder %v13120_v38, 0.0  ;;  %v2073_v30 = vsel %vm2064_vm7, %v2055_v55, 1.0  ;;  %v2595_v49 = vmul.f32 %v2577_v19, %v12950_v12  ;;  %v11636_v62 = vpop.eup %11635  ;;  %v1085_v11 = vand.u32 2147483648, %v13120_v38 }
 0x109   : > { %v10257_v9 = vadd.f32 -0.13877685, %v3206_v31  ;;  %v13195_v4 = vadd.f32 %v1875_v40, %v1857_v46  ;;  %11637 = vrcp.f32 %v2073_v30  ;;  %vm2360_vm13 = vcmp.gt.f32.partialorder %v12780_v36, 0.0 }
 0x10a   : > { %v2378_v52 = vsub.f32 3.1415927, %v13183_v10  ;;  %v1081_v43 = vmul.f32 %v11636_v62, %v13120_v38  ;;  %v1254_v28 = vrot.slane %v11634_v14, 7  ;;  %v2676_v57 = vrot.slane %v2649_v5, 4 }
 0x10b   : > { %v10086_v45 = vrot.slane %v1532_v3, 9  ;;  %v3224_v63 = vmul.f32 %v10257_v9, %v13179_v15  ;;  %vm3323_vm12 = vcmp.gt.f32.partialorder %v13005_v8, 0.0  ;;  %11639 = vrsqrt.f32 %v13195_v4 }
 0x10c   : > { %v1083_v18 = vsel %vm1082_vm4, %v13120_v38, %v1081_v43  ;;  %v2568_v26 = vmul.f32 %v10204_v34, %v12950_v12  ;;  %v10213_v16 = vrot.slane %v2595_v49, 9  ;;  %v2694_v13 = vmul.f32 %v2676_v57, %v12950_v12 }
 0x10d   : > { %v10185_v53 = vrot.slane %v13162_v56, 9  ;;  %v3179_v19 = vsel %vm13147_vm14, 0.7853982, %v17224_v0  ;;  %v3233_v48 = vadd.f32 0.19977711, %v3224_v63  ;;  %v13214_v40 = vsel %vm1084_vm0, %v1085_v11, %v1083_v18 }
 0x10e   : > { %v10176_v55 = vrot.slane %v2378_v52, 9  ;;  %v13216_v3 = vadd.f32 %v10015_v25, %v642_v7  ;;  %v13219_v14 = vmul.f32 %v1254_v28, %v13214_v40  ;;  %v2667_v34 = vmul.f32 %v2649_v5, %v12950_v12 }
 0x10f   : > { %v10104_v31 = vrot.slane %v13153_v61, 9  ;;  %v3242_v56 = vmul.f32 %v3233_v48, %v13179_v15  ;;  %v13227_v17 = vsel %vm3323_vm12, 1.5707964, %v17224_v0  ;;  %v2712_v38 = vrot.slane %v2694_v13, 6  ;;  %v550_v48 = vld [vmem:[%s11878_s18 + $0x28] sm:$0x77] }
 0x110   : > { %v1631_v25 = vsel %vm1523_vm8, %v10086_v45, %v10095_v50  ;;  %v3188_v7 = vsel %vm3062_vm1, 1.5707964, %v3179_v19  ;;  %vm1281_vm14 = vcmp.gt.f32.partialorder %v13219_v14, 2.4142137  ;;  %v2640_v46 = vsub.f32 %v2568_v26, %v10213_v16 }
 0x111   : > { %v10194_v61 = vrot.slane %v13183_v10, 9  ;;  %v10266_v5 = vadd.f32 -0.3333295, %v3242_v56  ;;  %v1317_v8 = vsel %vm1281_vm14, %v13219_v14, 1.0  ;;  %v1353_v30 = vadd.f32 1.0, %v13219_v14  ;;  %vm1299_vm4 = vmxor %vm1281_vm14, %vm11784_vm15 }
 0x112   : > { %v2477_v59 = vsel %vm2369_vm11, %v10176_v55, %v10185_v53  ;;  %11641 = vrcp.f32 %v1317_v8  ;;  %v2730_v50 = vsub.f32 %v2667_v34, %v2712_v38  ;;  %v2901_v51 = vmul.f32 %v13058_v42, %v12950_v12  ;;  %v568_v55 = vld [vmem:[%s11883_s21 + $0x28] sm:$0x77] }
 0x113   : > { %v11638_v49 = vpop.eup %11637  ;;  %v1676_v62 = vsel %vm1514_vm10, %v10104_v31, %v1631_v25  ;;  %v3260_v10 = vmul.f32 %v10266_v5, %v13179_v15  ;;  %11643 = vrcp.f32 %v1353_v30  ;;  %vm1928_vm1 = vcmp.eq.f32.partialorder %v13195_v4, inf }
 0x114   : > { %vm3305_vm8 = vcmp.lt.f32.partialorder %v12873_v41, 0.0  ;;  %vm1930_vm7 = vcmp.eq.f32.partialorder %v13195_v4, 0.0  ;;  %v2739_v9 = vmul.f32 %v2640_v46, %v2640_v46  ;;  %v2748_v11 = vmul.f32 %v2730_v50, %v2730_v50 }
 0x115   : > { %v10231_v52 = vrot.slane %v2901_v51, 9  ;;  %v11640_v43 = vpop.eup %11639  ;;  %v2522_v12 = vsel %vm2360_vm13, %v10194_v61, %v2477_v59  ;;  %v3269_v42 = vmul.f32 %v3260_v10, %v13172_v2  ;;  %vm3296_vm11 = vcmp.gt.f32.partialorder %v12873_v41, 0.0 }
 0x116   : > { %v1931_v24 = vand.u32 2147483648, %v13195_v4  ;;  %v10240_v15 = vrot.slane %v2901_v51, 10  ;;  %v1927_v28 = vmul.f32 %v11640_v43, %v13195_v4  ;;  %v2100_v57 = vrot.slane %v11638_v49, 7 }
 0x117   : > { %v10222_v45 = vrot.slane %v2748_v11, 9  ;;  %v2946_v63 = vadd.f32 %v10231_v52, %v2901_v51  ;;  %v3278_v18 = vadd.f32 %v3269_v42, %v13172_v2  ;;  %v3594_v26 = vrot.slane %v1676_v62, %v11959_v47 }
 0x118   : > { %v3598_v36 = vrot.slane %v1676_v62, %v11952_v44  ;;  %11645 = vrsqrt.f32 %v13216_v3  ;;  %v10284_v16 = vrot.slane %v13227_v17, 9  ;;  %v1929_v13 = vsel %vm1928_vm1, %v13195_v4, %v1927_v28 }
 0x119   : > { %v2793_v53 = vadd.f32 %v10222_v45, %v2739_v9  ;;  %v2811_v19 = vrot.slane %v2739_v9, 7  ;;  %v3287_v34 = vadd.f32 %v3278_v18, %v3188_v7  ;;  %v3688_v31 = vrot.slane %v2522_v12, %v11959_v47 }
 0x11a   : > { %v13270_v2 = vsel %vm1930_vm7, %v1931_v24, %v1929_v13  ;;  %v13272_v56 = vadd.f32 %v10240_v15, %v2946_v63  ;;  %v3692_v38 = vrot.slane %v2522_v12, %v11952_v44  ;;  %vm1290_vm10 = vcmp.gt.f32.partialorder %v13219_v14, 0.41421357 }
 0x11b   : > { %v10060_v17 = vadd.f32 -1.0, %v13219_v14  ;;  %v13281_v25 = vmul.f32 %v2100_v57, %v13270_v2  ;;  %v3314_v7 = vsub.f32 3.1415927, %v3287_v34  ;;  %v3848_v4 = vsel %vm3840_vm6, %v3504_v54, %v3598_v36  ;;  %vm13299_vm13 = vmand %vm1290_vm10, %vm1299_vm4  ;;  %v13339_v36 = vld [vmem:[%s11889_s24 + $0x28] sm:$0x77] }
 0x11c   : > { %v3847_v46 = vsel %vm3840_vm6, %v3500_v1, %v3594_v26  ;;  %v13291_v61 = vsub.f32 %v568_v55, %v550_v48  ;;  %v11642_v5 = vpop.eup %11641  ;;  %v10293_v8 = vrot.slane %v3287_v34, 9  ;;  %v13295_v59 = vadd.f32 %v2811_v19, %v2793_v53 }
 0x11d   : > { %vm2127_vm0 = vcmp.gt.f32.partialorder %v13281_v25, 2.4142137  ;;  %v2199_v30 = vadd.f32 1.0, %v13281_v25  ;;  %v11644_v50 = vpop.eup %11643  ;;  %v10275_v51 = vrot.slane %v3314_v7, 9  ;;  %v1335_v32 = vsub.f32 0.0, %v11642_v5 }
 0x11e   : > { %v2163_v1 = vsel %vm2127_vm0, %v13281_v25, 1.0  ;;  %v2991_v49 = vand.u32 2147483647, %v13272_v56  ;;  %v3866_v62 = vsel %vm3858_vm9, %v3848_v4, %v3692_v38  ;;  %v3865_v10 = vsel %vm3858_vm9, %v3847_v46, %v3688_v31 }
 0x11f   : > { %v1371_v9 = vmul.f32 %v11644_v50, %v10060_v17  ;;  %11647 = vrcp.f32 %v2163_v1  ;;  %v3413_v11 = vsel %vm3305_vm8, %v10275_v51, %v10284_v16  ;;  %v765_v52 = vrot.slane %v13291_v61, 5  ;;  %vm2145_vm8 = vmxor %vm2127_vm0, %vm11784_vm15 }
 0x120   : > { %11649 = vrcp.f32 %v2199_v30  ;;  %v796_v43 = vrot.slane %v13291_v61, 7  ;;  %v3458_v12 = vsel %vm3296_vm11, %v10293_v8, %v3413_v11  ;;  %v13320_v24 = vrot.slane %v13291_v61, 6 }
 0x121   : > { %v1380_v42 = vsel %vm13299_vm13, %v1371_v9, %v13219_v14  ;;  %11651 = vrsqrt.f32 %v13295_v59  ;;  %v3782_v28 = vrot.slane %v3458_v12, %v11959_v47  ;;  %v3786_v57 = vrot.slane %v3458_v12, %v11952_v44 }
 0x122   : > { %v11646_v15 = vpop.eup %11645  ;;  %v13326_v45 = vsel %vm1281_vm14, %v1335_v32, %v1380_v42  ;;  %vm3000_vm12 = vcmp.gt.f32.partialorder %v2991_v49, 0.0  ;;  %v766_v16 = vrot.slane %v765_v52, 4  ;;  %v814_v53 = vmul.f32 %v796_v43, %v13339_v36  ;;  %v13376_v52 = vld [vmem:[%s11895_s27 + $0x28] sm:$0x77] }
 0x123   : > { %v13330_v41 = vmul.f32 %v13326_v45, %v13326_v45  ;;  %v3009_v63 = vsel %vm3000_vm12, %v2991_v49, 1.0  ;;  %v13333_v18 = vsel %vm3876_vm2, %v3866_v62, %v3786_v57  ;;  %v13336_v26 = vsel %vm3876_vm2, %v3865_v10, %v3782_v28 }
 0x124   : > { %17292 = vst [vmem:[#allocation9_spill] sm:$0xff] %v13333_v18  ;;  %17293 = vst [vmem:[#allocation10_spill] sm:$0xff] %v13336_v26  ;;  %11653 = vrcp.f32 %v3009_v63  ;;  %10317 = vmatprep.subr.msk.mxu1 %vm17243_vm3, %v13333_v18  ;;  %v787_v19 = vmul.f32 %v766_v16, %v13339_v36  ;;  %v895_v48 = vrot.slane %v13320_v24, 4  ;;  %v1120_v55 = vmul.f32 %v13291_v61, %v13339_v36 }
 0x125   : > { %v1425_v13 = vmul.f32 0.080537446, %v13330_v41  ;;  %10318 = vmatpush1.msk.msra.mxu1 %vm17243_vm3, %v13336_v26  ;;  %vm2136_vm1 = vcmp.gt.f32.partialorder %v13281_v25, 0.41421357  ;;  %v10150_v31 = vadd.f32 -1.0, %v13281_v25  ;;  %v10025_v38 = vrot.slane %v814_v53, 9 }
 0x126   : > { %10319 = vmatmul.mubr.msk.f32.vlgmr.msra.gmra.mrb[10].mxu1 %vm17242_vm5, %v13038_v60  ;;  %v886_v17 = vmul.f32 %v13320_v24, %v13339_v36  ;;  %v913_v7 = vmul.f32 %v895_v48, %v13339_v36  ;;  %v10043_v4 = vrot.slane %v1120_v55, 9  ;;  %vm713_vm7 = vcmp.eq.f32.partialorder %v13216_v3, inf  ;;  %vm13364_vm11 = vmand %vm2136_vm1, %vm2145_vm8 }
 0x127   : > { %v10069_v34 = vadd.f32 -0.13877685, %v1425_v13  ;;  %4324 = vmatprep.mubr.f32.mxu1 %v17224_v0  ;;  %v10052_v5 = vrot.slane %v1120_v55, 10  ;;  %v859_v51 = vsub.f32 %v787_v19, %v10025_v38  ;;  %vm2864_vm10 = vcmp.eq.f32.partialorder %v13295_v59, inf }
 0x128   : > { %v931_v32 = vrot.slane %v913_v7, 6  ;;  %v1165_v1 = vadd.f32 %v10043_v4, %v1120_v55  ;;  %v2867_v9 = vand.u32 2147483648, %v13295_v59  ;;  %vm2866_vm4 = vcmp.eq.f32.partialorder %v13295_v59, 0.0 }
 0x129   : > { %v11648_v46 = vpop.eup %11647  ;;  %v1443_v60 = vmul.f32 %v10069_v34, %v13330_v41  ;;  %v712_v28 = vmul.f32 %v11646_v15, %v13216_v3  ;;  %v958_v55 = vmul.f32 %v859_v51, %v859_v51  ;;  %vm715_vm12 = vcmp.eq.f32.partialorder %v13216_v3, 0.0 }
 0x12a   : > { %v11650_v8 = vpop.eup %11649  ;;  %v2181_v50 = vsub.f32 0.0, %v11648_v46  ;;  %10320 = vmatmul.mubr.msk.f32.gmra.mrb[12].mxu1 %vm17242_vm5, %v13069_v6  ;;  %v949_v12 = vsub.f32 %v886_v17, %v931_v32  ;;  %v13378_v42 = vadd.f32 %v10052_v5, %v1165_v1  ;;  %v1696_v6 = vmul.f32 %v796_v43, %v13376_v52 }
 0x12b   : > { %v11652_v49 = vpop.eup %11651  ;;  %v1452_v62 = vadd.f32 0.19977711, %v1443_v60  ;;  %v2217_v10 = vmul.f32 %v11650_v8, %v10150_v31  ;;  %4330 = vmatprep.mubr.f32.mxu1 %v17224_v0  ;;  %v1687_v4 = vmul.f32 %v766_v16, %v13376_v52  ;;  %v716_v8 = vand.u32 2147483648, %v13216_v3 }
 0x12c   : > { %v2863_v11 = vmul.f32 %v11652_v49, %v13295_v59  ;;  %v967_v34 = vmul.f32 %v949_v12, %v949_v12  ;;  %v1210_v7 = vand.u32 2147483647, %v13378_v42  ;;  %v10115_v5 = vrot.slane %v1696_v6, 9 }
 0x12d   : > { %v1461_v57 = vmul.f32 %v1452_v62, %v13330_v41  ;;  %v2226_v63 = vsel %vm13364_vm11, %v2217_v10, %v13281_v25  ;;  %v1759_v51 = vmul.f32 %v895_v48, %v13376_v52  ;;  %v714_v32 = vsel %vm713_vm7, %v13216_v3, %v712_v28 }
 0x12e   : > { %v11654_v13 = vpop.eup %11653  ;;  %v13388_v53 = vsel %vm2127_vm0, %v2181_v50, %v2226_v63  ;;  %v2865_v19 = vsel %vm2864_vm10, %v13295_v59, %v2863_v11  ;;  %10321 = vmatmul.mubr.msk.f32.gmra.mrb[14].mxu1 %vm17242_vm5, %v13096_v23  ;;  %v10034_v43 = vrot.slane %v967_v34, 9  ;;  %v1030_v23 = vrot.slane %v958_v55, 7 }
 0x12f   : > { %v10078_v31 = vadd.f32 -0.3333295, %v1461_v57  ;;  %v2262_v15 = vmul.f32 %v13388_v53, %v13388_v53  ;;  %v13395_v38 = vsel %vm2866_vm4, %v2867_v9, %v2865_v19  ;;  %v3036_v17 = vrot.slane %v11654_v13, 7  ;;  %4336 = vmatprep.mubr.f32.mxu1 %v17224_v0 }
 0x130   : > { %v1012_v50 = vadd.f32 %v10034_v43, %v958_v55  ;;  %vm1219_vm8 = vcmp.gt.f32.partialorder %v1210_v7, 0.0  ;;  %v1750_v49 = vmul.f32 %v13320_v24, %v13376_v52  ;;  %v1777_v11 = vrot.slane %v1759_v51, 6 }
 0x131   : > { %v1479_v46 = vmul.f32 %v10078_v31, %v13330_v41  ;;  %v2271_v60 = vmul.f32 0.080537446, %v2262_v15  ;;  %v13405_v59 = vmul.f32 %v3036_v17, %v13395_v38  ;;  %v1398_v41 = vsel %vm13299_vm13, 0.7853982, %v17224_v0 }
 0x132   : > { %10322 = vmatmul.mubr.msk.f32.gmra.mrb[16].mxu1 %vm17242_vm5, %v13130_v37  ;;  %v1741_v37 = vsub.f32 %v1687_v4, %v10115_v5  ;;  %v13426_v9 = vadd.f32 %v1030_v23, %v1012_v50  ;;  %v1228_v54 = vsel %vm1219_vm8, %v1210_v7, 1.0  ;;  %v13430_v28 = vsel %vm715_vm12, %v716_v8, %v714_v32 }
 0x133   : > { %v10159_v1 = vadd.f32 -0.13877685, %v2271_v60  ;;  %vm3063_vm1 = vcmp.gt.f32.partialorder %v13405_v59, 2.4142137  ;;  %v3135_v48 = vadd.f32 1.0, %v13405_v59  ;;  %4496 = vmatprep.mubr.f32.mxu1 %v17224_v0  ;;  %v1488_v62 = vmul.f32 %v1479_v46, %v13326_v45 }
 0x134   : > { %v3099_v16 = vsel %vm3063_vm1, %v13405_v59, 1.0  ;;  %v1407_v24 = vsel %vm1281_vm14, 1.5707964, %v1398_v41  ;;  %vm1542_vm13 = vcmp.gt.f32.partialorder %v13214_v40, 0.0  ;;  %v1795_v6 = vsub.f32 %v1750_v49, %v1777_v11  ;;  %vm3081_vm7 = vmxor %vm3063_vm1, %vm11784_vm15 }
 0x135   : > { %v2289_v10 = vmul.f32 %v10159_v1, %v2262_v15  ;;  %11655 = vrcp.f32 %v3099_v16  ;;  %v1497_v57 = vadd.f32 %v1488_v62, %v13326_v45  ;;  %v1804_v13 = vmul.f32 %v1741_v37, %v1741_v37 }
 0x136   : > { %11657 = vrcp.f32 %v3135_v48  ;;  %v1966_v19 = vmul.f32 %v13291_v61, %v13376_v52  ;;  %v10205_v55 = vrot.slane %v13376_v52, 9  ;;  %v2244_v3 = vsel %vm13364_vm11, 0.7853982, %v17224_v0 }
 0x137   : > { %v2298_v12 = vadd.f32 0.19977711, %v2289_v10  ;;  %11659 = vrcp.f32 %v1228_v54  ;;  %v13445_v14 = vmul.f32 %v13291_v61, %v13291_v61  ;;  %v2578_v45 = vrot.slane %v13376_v52, 7 }
 0x138   : > { %11661 = vrsqrt.f32 %v13426_v9  ;;  %v1813_v31 = vmul.f32 %v1795_v6, %v1795_v6  ;;  %v10133_v17 = vrot.slane %v1966_v19, 9  ;;  %v10142_v43 = vrot.slane %v1966_v19, 10 }
 0x139   : > { %v2307_v63 = vmul.f32 %v2298_v12, %v2262_v15  ;;  %v2650_v7 = vrot.slane %v13376_v52, 6  ;;  %v13449_v4 = vadd.f32 %v1497_v57, %v1407_v24  ;;  %vm3072_vm14 = vcmp.gt.f32.partialorder %v13405_v59, 0.41421357 }
 0x13a   : > { %v10249_v30 = vadd.f32 -1.0, %v13405_v59  ;;  %v10124_v61 = vrot.slane %v1813_v31, 9  ;;  %v1876_v60 = vrot.slane %v1804_v13, 7  ;;  %v2011_v5 = vadd.f32 %v10133_v17, %v1966_v19  ;;  %vm13464_vm11 = vmand %vm3072_vm14, %vm3081_vm7 }
 0x13b   : > { %v10168_v34 = vadd.f32 -0.3333295, %v2307_v63  ;;  %v2596_v8 = vmul.f32 %v2578_v45, %v13339_v36  ;;  %v1551_v23 = vsel %vm1542_vm13, 1.5707964, %v17224_v0  ;;  %v10007_v32 = vrot.slane %v13445_v14, 9 }
 0x13c   : > { %v1858_v48 = vadd.f32 %v10124_v61, %v1804_v13  ;;  %v13468_v49 = vadd.f32 %v10142_v43, %v2011_v5  ;;  %v2677_v62 = vrot.slane %v2650_v7, 4  ;;  %vm1089_vm10 = vcmp.eq.f32.partialorder %v13426_v9, inf }
 0x13d   : > { %v2325_v46 = vmul.f32 %v10168_v34, %v2262_v15  ;;  %v2253_v15 = vsel %vm2127_vm0, 1.5707964, %v2244_v3  ;;  %vm1091_vm0 = vcmp.eq.f32.partialorder %v13426_v9, 0.0  ;;  %v1092_v25 = vand.u32 2147483648, %v13426_v9 }
 0x13e   : > { %v1533_v54 = vsub.f32 3.1415927, %v13449_v4  ;;  %v13474_v11 = vadd.f32 %v1876_v60, %v1858_v48  ;;  %v2569_v12 = vmul.f32 %v10205_v55, %v13339_v36  ;;  %v10214_v24 = vrot.slane %v2596_v8, 9 }
 0x13f   : > { %v11656_v50 = vpop.eup %11655  ;;  %v2334_v51 = vmul.f32 %v2325_v46, %v13388_v53  ;;  %vm1515_vm4 = vcmp.gt.f32.partialorder %v13061_v39, 0.0  ;;  %v2056_v55 = vand.u32 2147483647, %v13468_v49  ;;  %v2695_v3 = vmul.f32 %v2677_v62, %v13339_v36 }
 0x140   : > { %v11658_v1 = vpop.eup %11657  ;;  %v3117_v16 = vsub.f32 0.0, %v11656_v50  ;;  %11663 = vrsqrt.f32 %v13474_v11  ;;  %v643_v34 = vadd.f32 %v10007_v32, %v13445_v14  ;;  %v10016_v45 = vrot.slane %v13445_v14, 10 }
 0x141   : > { %v11660_v10 = vpop.eup %11659  ;;  %v3153_v40 = vmul.f32 %v11658_v1, %v10249_v30  ;;  %v2343_v57 = vadd.f32 %v2334_v51, %v13388_v53  ;;  %vm1524_vm12 = vcmp.lt.f32.partialorder %v13061_v39, 0.0  ;;  %v10096_v17 = vrot.slane %v1551_v23, 9 }
 0x142   : > { %v11662_v37 = vpop.eup %11661  ;;  %v1255_v13 = vrot.slane %v11660_v10, 7  ;;  %vm2388_vm8 = vcmp.gt.f32.partialorder %v13270_v2, 0.0  ;;  %v10087_v46 = vrot.slane %v1533_v54, 9  ;;  %vm13508_vm13 = vcmp.gt.f32.partialorder %v2056_v55, 0.0 }
 0x143   : > { %v3162_v63 = vsel %vm13464_vm11, %v3153_v40, %v13405_v59  ;;  %v1088_v6 = vmul.f32 %v11662_v37, %v13426_v9  ;;  %v13503_v30 = vadd.f32 %v2343_v57, %v2253_v15  ;;  %v2641_v5 = vsub.f32 %v2569_v12, %v10214_v24 }
 0x144   : > { %v13485_v19 = vsel %vm3063_vm1, %v3117_v16, %v3162_v63  ;;  %v2668_v8 = vmul.f32 %v2650_v7, %v13339_v36  ;;  %v2713_v50 = vrot.slane %v2695_v3, 6  ;;  %vm2370_vm14 = vcmp.lt.f32.partialorder %v13167_v58, 0.0 }
 0x145   : > { %v3198_v53 = vmul.f32 %v13485_v19, %v13485_v19  ;;  %v1090_v31 = vsel %vm1089_vm10, %v13426_v9, %v1088_v6  ;;  %v2397_v2 = vsel %vm2388_vm8, 1.5707964, %v17224_v0  ;;  %v13515_v23 = vadd.f32 %v10016_v45, %v643_v34 }
 0x146   : > { %v13501_v43 = vsel %vm1091_vm0, %v1092_v25, %v1090_v31  ;;  %v10105_v15 = vrot.slane %v13449_v4, 9  ;;  %vm3324_vm10 = vcmp.gt.f32.partialorder %v13395_v38, 0.0  ;;  %v2379_v32 = vsub.f32 3.1415927, %v13503_v30 }
 0x147   : > { %v3207_v61 = vmul.f32 0.080537446, %v3198_v53  ;;  %v13506_v60 = vmul.f32 %v1255_v13, %v13501_v43  ;;  %v2074_v16 = vsel %vm13508_vm13, %v2056_v55, 1.0  ;;  %v1632_v48 = vsel %vm1524_vm12, %v10087_v46, %v10096_v17 }
 0x148   : > { %vm2361_vm0 = vcmp.gt.f32.partialorder %v13167_v58, 0.0  ;;  %v2731_v4 = vsub.f32 %v2668_v8, %v2713_v50  ;;  %v2740_v62 = vmul.f32 %v2641_v5, %v2641_v5  ;;  %v10186_v10 = vrot.slane %v2397_v2, 9  ;;  %v569_v50 = vld [vmem:[%s11883_s21 + $0x30] sm:$0x77] }
 0x149   : > { %v10258_v9 = vadd.f32 -0.13877685, %v3207_v61  ;;  %vm1282_vm7 = vcmp.gt.f32.partialorder %v13506_v60, 2.4142137  ;;  %v1354_v7 = vadd.f32 1.0, %v13506_v60  ;;  %v3508_v25 = vrot.slane %v13430_v28, %v11959_v47 }
 0x14a   : > { %v1318_v51 = vsel %vm1282_vm7, %v13506_v60, 1.0  ;;  %v3512_v37 = vrot.slane %v13430_v28, %v11952_v44  ;;  %v11664_v54 = vpop.eup %11663  ;;  %v13537_v12 = vsel %vm3324_vm10, 1.5707964, %v17224_v0  ;;  %v2749_v24 = vmul.f32 %v2731_v4, %v2731_v4  ;;  %v551_v61 = vld [vmem:[%s11878_s18 + $0x30] sm:$0x77] }
 0x14b   : > { %v3225_v1 = vmul.f32 %v10258_v9, %v3198_v53  ;;  %11665 = vrcp.f32 %v1318_v51  ;;  %v2902_v57 = vmul.f32 %v13376_v52, %v13339_v36  ;;  %v1677_v63 = vsel %vm1515_vm4, %v10105_v15, %v1632_v48 }
 0x14c   : > { %11667 = vrcp.f32 %v1354_v7  ;;  %v10177_v6 = vrot.slane %v2379_v32, 9  ;;  %v10223_v55 = vrot.slane %v2749_v24, 9  ;;  %v2812_v3 = vrot.slane %v2740_v62, 7 }
 0x14d   : > { %v3234_v40 = vadd.f32 0.19977711, %v3225_v1  ;;  %11669 = vrcp.f32 %v2074_v16  ;;  %v10232_v34 = vrot.slane %v2902_v57, 9  ;;  %v10241_v38 = vrot.slane %v2902_v57, 10 }
 0x14e   : > { %11671 = vrsqrt.f32 %v13515_v23  ;;  %v3180_v45 = vsel %vm13464_vm11, 0.7853982, %v17224_v0  ;;  %v10285_v36 = vrot.slane %v13537_v12, 9  ;;  %v1934_v39 = vmul.f32 %v11664_v54, %v13474_v11  ;;  %vm13557_vm11 = vmxor %vm1282_vm7, %vm11784_vm15 }
 0x14f   : > { %v3243_v13 = vmul.f32 %v3234_v40, %v3198_v53  ;;  %v3606_v52 = vrot.slane %v1677_v63, %v11952_v44  ;;  %vm1935_vm4 = vcmp.eq.f32.partialorder %v13474_v11, inf  ;;  %v2794_v17 = vadd.f32 %v10223_v55, %v2740_v62 }
 0x150   : > { %v2947_v46 = vadd.f32 %v10232_v34, %v2902_v57  ;;  %v10195_v14 = vrot.slane %v13503_v30, 9  ;;  %vm1291_vm12 = vcmp.gt.f32.partialorder %v13506_v60, 0.41421357  ;;  %v10061_v8 = vadd.f32 -1.0, %v13506_v60 }
 0x151   : > { %v10267_v31 = vadd.f32 -0.3333295, %v3243_v13  ;;  %v2478_v2 = vsel %vm2370_vm14, %v10177_v6, %v10186_v10  ;;  %vm3306_vm8 = vcmp.lt.f32.partialorder %v13272_v56, 0.0  ;;  %v1938_v30 = vand.u32 2147483648, %v13474_v11  ;;  %vm13584_vm10 = vmand %vm1291_vm12, %vm13557_vm11 }
 0x152   : > { %v13569_v9 = vadd.f32 %v10241_v38, %v2947_v46  ;;  %v3189_v51 = vsel %vm3063_vm1, 1.5707964, %v3180_v45  ;;  %vm3297_vm13 = vcmp.gt.f32.partialorder %v13272_v56, 0.0  ;;  %v1936_v32 = vsel %vm1935_vm4, %v13474_v11, %v1934_v39 }
 0x153   : > { %v3261_v5 = vmul.f32 %v10267_v31, %v3198_v53  ;;  %v13567_v53 = vadd.f32 %v2812_v3, %v2794_v17  ;;  %vm1937_vm14 = vcmp.eq.f32.partialorder %v13474_v11, 0.0  ;;  %v3602_v16 = vrot.slane %v1677_v63, %v11959_v47 }
 0x154   : > { %v13589_v4 = vsub.f32 %v569_v50, %v551_v61  ;;  %v2523_v62 = vsel %vm2361_vm0, %v10195_v14, %v2478_v2  ;;  %v2992_v40 = vand.u32 2147483647, %v13569_v9  ;;  %v3850_v24 = vsel %vm3840_vm6, %v3512_v37, %v3606_v52  ;;  %v13623_v61 = vld [vmem:[%s11889_s24 + $0x30] sm:$0x77] }
 0x155   : > { %v11666_v15 = vpop.eup %11665  ;;  %v3270_v7 = vmul.f32 %v3261_v5, %v13485_v19  ;;  %11673 = vrsqrt.f32 %v13567_v53  ;;  %v13596_v57 = vsel %vm1937_vm14, %v1938_v30, %v1936_v32  ;;  %v3696_v3 = vrot.slane %v2523_v62, %v11959_v47 }
 0x156   : > { %v11668_v1 = vpop.eup %11667  ;;  %v1336_v48 = vsub.f32 0.0, %v11666_v15  ;;  %v767_v63 = vrot.slane %v13589_v4, 5  ;;  %v797_v6 = vrot.slane %v13589_v4, 7  ;;  %vm3001_vm1 = vcmp.gt.f32.partialorder %v2992_v40, 0.0 }
 0x157   : > { %v3279_v11 = vadd.f32 %v3270_v7, %v13485_v19  ;;  %v1372_v10 = vmul.f32 %v11668_v1, %v10061_v8  ;;  %v11670_v54 = vpop.eup %11669  ;;  %v3700_v34 = vrot.slane %v2523_v62, %v11952_v44  ;;  %vm720_vm0 = vcmp.eq.f32.partialorder %v13515_v23, inf }
 0x158   : > { %v11672_v13 = vpop.eup %11671  ;;  %v2101_v19 = vrot.slane %v11670_v54, 7  ;;  %v3010_v38 = vsel %vm3001_vm1, %v2992_v40, 1.0  ;;  %v3849_v31 = vsel %vm3840_vm6, %v3508_v25, %v3602_v16  ;;  %v13625_v14 = vrot.slane %v767_v63, 4 }
 0x159   : > { %v3288_v55 = vadd.f32 %v3279_v11, %v3189_v51  ;;  %v1381_v58 = vsel %vm13584_vm10, %v1372_v10, %v13506_v60  ;;  %v719_v46 = vmul.f32 %v11672_v13, %v13515_v23  ;;  %11675 = vrcp.f32 %v3010_v38 }
 0x15a   : > { %v13608_v37 = vsel %vm1282_vm7, %v1336_v48, %v1381_v58  ;;  %v13619_v52 = vmul.f32 %v2101_v19, %v13596_v57  ;;  %vm722_vm4 = vcmp.eq.f32.partialorder %v13515_v23, 0.0  ;;  %v815_v25 = vmul.f32 %v797_v6, %v13623_v61 }
 0x15b   : > { %v3315_v45 = vsub.f32 3.1415927, %v3288_v55  ;;  %v13616_v39 = vmul.f32 %v13608_v37, %v13608_v37  ;;  %v10294_v17 = vrot.slane %v3288_v55, 9  ;;  %v3868_v41 = vsel %vm3858_vm9, %v3850_v24, %v3700_v34 }
 0x15c   : > { %vm2128_vm12 = vcmp.gt.f32.partialorder %v13619_v52, 2.4142137  ;;  %v3867_v8 = vsel %vm3858_vm9, %v3849_v31, %v3696_v3  ;;  %v2200_v2 = vadd.f32 1.0, %v13619_v52  ;;  %vm2871_vm11 = vcmp.eq.f32.partialorder %v13567_v53, inf  ;;  %v13684_v31 = vld [vmem:[%s17214_s5] sm:$0xff] }
 0x15d   : > { %v10276_v5 = vrot.slane %v3315_v45, 9  ;;  %v1426_v28 = vmul.f32 0.080537446, %v13616_v39  ;;  %v2164_v50 = vsel %vm2128_vm12, %v13619_v52, 1.0  ;;  %v788_v32 = vmul.f32 %v13625_v14, %v13623_v61  ;;  %vm13698_vm14 = vmxor %vm2128_vm12, %vm11784_vm15 }
 0x15e   : > { %11677 = vrcp.f32 %v2164_v50  ;;  %v13649_v1 = vrot.slane %v13589_v4, 6  ;;  %v10026_v48 = vrot.slane %v815_v25, 9  ;;  %v2874_v56 = vand.u32 2147483648, %v13567_v53 }
 0x15f   : > { %v3414_v30 = vsel %vm3306_vm8, %v10276_v5, %v10285_v36  ;;  %v10070_v15 = vadd.f32 -0.13877685, %v1426_v28  ;;  %v11674_v51 = vpop.eup %11673  ;;  %11679 = vrcp.f32 %v2200_v2  ;;  %vm2873_vm8 = vcmp.eq.f32.partialorder %v13567_v53, 0.0 }
 0x160   : > { %v3459_v7 = vsel %vm3297_vm13, %v10294_v17, %v3414_v30  ;;  %v2870_v62 = vmul.f32 %v11674_v51, %v13567_v53  ;;  %v896_v11 = vrot.slane %v13649_v1, 4  ;;  %v1121_v24 = vmul.f32 %v13589_v4, %v13623_v61 }
 0x161   : > { %v3790_v12 = vrot.slane %v3459_v7, %v11959_v47  ;;  %v3794_v16 = vrot.slane %v3459_v7, %v11952_v44  ;;  %v1444_v36 = vmul.f32 %v10070_v15, %v13616_v39  ;;  %v723_v63 = vand.u32 2147483648, %v13515_v23 }
 0x162   : > { %v2872_v13 = vsel %vm2871_vm11, %v13567_v53, %v2870_v62  ;;  %v887_v55 = vmul.f32 %v13649_v1, %v13623_v61  ;;  %v914_v58 = vmul.f32 %v896_v11, %v13623_v61  ;;  %v721_v19 = vsel %vm720_vm0, %v13515_v23, %v719_v46  ;;  %v13720_v23 = vld [vmem:[%s17214_s5 + $0x8] sm:$0xff] }
 0x163   : > { %v13659_v10 = vsel %vm3876_vm2, %v3868_v41, %v3794_v16  ;;  %v13662_v40 = vsel %vm3876_vm2, %v3867_v8, %v3790_v12  ;;  %v1453_v54 = vadd.f32 0.19977711, %v1444_v36  ;;  %v860_v34 = vsub.f32 %v788_v32, %v10026_v48  ;;  %v11676_v45 = vpop.eup %11675  ;;  %v13703_v8 = vld [vmem:[%s11895_s27 + $0x30] sm:$0x77] }
 0x164   : > { %17304 = vst [vmem:[#allocation11_spill] sm:$0xff] %v13659_v10  ;;  %17305 = vst [vmem:[#allocation12_spill] sm:$0xff] %v13662_v40  ;;  %10323 = vmatprep.subr.msk.mxu0 %vm17243_vm3, %v13659_v10  ;;  %v10044_v38 = vrot.slane %v1121_v24, 9  ;;  %vm2137_vm13 = vcmp.gt.f32.partialorder %v13619_v52, 0.41421357  ;;  %v10151_v17 = vadd.f32 -1.0, %v13619_v52  ;;  %v13692_v46 = vsel %vm2873_vm8, %v2874_v56, %v2872_v13 }
 0x165   : > { %10324 = vmatpush1.msk.msra.mxu0 %vm17243_vm3, %v13662_v40  ;;  %v1462_v3 = vmul.f32 %v1453_v54, %v13616_v39  ;;  %v932_v5 = vrot.slane %v914_v58, 6  ;;  %v3037_v41 = vrot.slane %v11676_v45, 7  ;;  %v10053_v2 = vrot.slane %v1121_v24, 10  ;;  %vm13731_vm0 = vmand %vm2137_vm13, %vm13698_vm14 }
 0x166   : > { %10325 = vmatmul.mubr.msk.f32.vlgmr.msra.gmra.mrb[14].mxu0 %vm17242_vm5, %v13684_v31  ;;  %v1166_v50 = vadd.f32 %v10044_v38, %v1121_v24  ;;  %v13707_v53 = vsel %vm722_vm4, %v723_v63, %v721_v19  ;;  %v1697_v15 = vmul.f32 %v797_v6, %v13703_v8  ;;  %vm1543_vm1 = vcmp.gt.f32.partialorder %v13501_v43, 0.0 }
 0x167   : > { %4413 = vmatprep.mubr.f32.mxu0 %v17224_v0  ;;  %v10079_v28 = vadd.f32 -0.3333295, %v1462_v3  ;;  %v950_v30 = vsub.f32 %v887_v55, %v932_v5  ;;  %v13715_v32 = vmul.f32 %v3037_v41, %v13692_v46  ;;  %v959_v12 = vmul.f32 %v860_v34, %v860_v34 }
 0x168   : > { %v11678_v51 = vpop.eup %11677  ;;  %v1399_v6 = vsel %vm13584_vm10, 0.7853982, %v17224_v0  ;;  %v1688_v62 = vmul.f32 %v13625_v14, %v13703_v8  ;;  %v13740_v59 = vadd.f32 %v10053_v2, %v1166_v50  ;;  %v10116_v13 = vrot.slane %v1697_v15, 9 }
 0x169   : > { %v1480_v7 = vmul.f32 %v10079_v28, %v13616_v39  ;;  %v11680_v16 = vpop.eup %11679  ;;  %v2182_v36 = vsub.f32 0.0, %v11678_v51  ;;  %v968_v48 = vmul.f32 %v950_v30, %v950_v30  ;;  %vm3064_vm4 = vcmp.gt.f32.partialorder %v13715_v32, 2.4142137  ;;  %v13791_v51 = vld [vmem:[%s17214_s5 + $0x18] sm:$0xff] }
 0x16a   : > { %10326 = vmatmul.mubr.msk.f32.gmra.mrb[16].mxu0 %vm17242_vm5, %v13720_v23  ;;  %v2218_v54 = vmul.f32 %v11680_v16, %v10151_v17  ;;  %v3100_v24 = vsel %vm3064_vm4, %v13715_v32, 1.0  ;;  %v3136_v63 = vadd.f32 1.0, %v13715_v32  ;;  %v1760_v55 = vmul.f32 %v896_v11, %v13703_v8  ;;  %v13762_v11 = vld [vmem:[%s17214_s5 + $0x10] sm:$0xff]  ;;  %vm3082_vm8 = vmxor %vm3064_vm4, %vm11784_vm15 }
 0x16b   : > { %v1489_v56 = vmul.f32 %v1480_v7, %v13608_v37  ;;  %4419 = vmatprep.mubr.f32.mxu0 %v17224_v0  ;;  %v13750_v14 = vsel %vm1543_vm1, 1.5707964, %v17224_v0  ;;  %11681 = vrcp.f32 %v3100_v24  ;;  %v1031_v19 = vrot.slane %v959_v12, 7 }
 0x16c   : > { %v2227_v58 = vsel %vm13731_vm0, %v2218_v54, %v13619_v52  ;;  %11683 = vrcp.f32 %v3136_v63  ;;  %v10035_v43 = vrot.slane %v968_v48, 9  ;;  %v1751_v34 = vmul.f32 %v13649_v1, %v13703_v8 }
 0x16d   : > { %v13757_v3 = vsel %vm2128_vm12, %v2182_v36, %v2227_v58  ;;  %v1408_v38 = vsel %vm1282_vm7, 1.5707964, %v1399_v6  ;;  %v1498_v45 = vadd.f32 %v1489_v56, %v13608_v37  ;;  %v1211_v5 = vand.u32 2147483647, %v13740_v59 }
 0x16e   : > { %10327 = vmatmul.mubr.msk.f32.gmra.mrb[18].mxu0 %vm17242_vm5, %v13762_v11  ;;  %v13773_v17 = vmul.f32 %v13757_v3, %v13757_v3  ;;  %v13779_v28 = vmul.f32 %v13589_v4, %v13589_v4  ;;  %v1013_v25 = vadd.f32 %v10035_v43, %v959_v12  ;;  %v1742_v41 = vsub.f32 %v1688_v62, %v10116_v13 }
 0x16f   : > { %4425 = vmatprep.mubr.f32.mxu0 %v17224_v0  ;;  %v1778_v1 = vrot.slane %v1760_v55, 6  ;;  %v10097_v60 = vrot.slane %v13750_v14, 9  ;;  %v3516_v37 = vrot.slane %v13707_v53, %v11959_v47  ;;  %vm1220_vm7 = vcmp.gt.f32.partialorder %v1211_v5, 0.0 }
 0x170   : > { %v2272_v50 = vmul.f32 0.080537446, %v13773_v17  ;;  %vm2389_vm10 = vcmp.gt.f32.partialorder %v13596_v57, 0.0  ;;  %v13786_v2 = vadd.f32 %v1031_v19, %v1013_v25  ;;  %v1229_v30 = vsel %vm1220_vm7, %v1211_v5, 1.0 }
 0x171   : > { %v1796_v15 = vsub.f32 %v1751_v34, %v1778_v1  ;;  %v13795_v7 = vadd.f32 %v1498_v45, %v1408_v38  ;;  %11685 = vrcp.f32 %v1229_v30  ;;  %v1967_v16 = vmul.f32 %v13589_v4, %v13703_v8 }
 0x172   : > { %10328 = vmatmul.mubr.msk.f32.gmra.mrb[20].mxu0 %vm17242_vm5, %v13791_v51  ;;  %v10160_v12 = vadd.f32 -0.13877685, %v2272_v50  ;;  %v10008_v6 = vrot.slane %v13779_v28, 9  ;;  %11687 = vrsqrt.f32 %v13786_v2  ;;  %v1805_v36 = vmul.f32 %v1742_v41, %v1742_v41 }
 0x173   : > { %4585 = vmatprep.mubr.f32.mxu0 %v17224_v0  ;;  %v2579_v48 = vrot.slane %v13703_v8, 7  ;;  %vm3073_vm11 = vcmp.gt.f32.partialorder %v13715_v32, 0.41421357  ;;  %v10250_v56 = vadd.f32 -1.0, %v13715_v32  ;;  %v1814_v4 = vmul.f32 %v1796_v15, %v1796_v15 }
 0x174   : > { %v2290_v62 = vmul.f32 %v10160_v12, %v13773_v17  ;;  %v2245_v54 = vsel %vm13731_vm0, 0.7853982, %v17224_v0  ;;  %v13815_v24 = vsel %vm2389_vm10, 1.5707964, %v17224_v0  ;;  %v10134_v63 = vrot.slane %v1967_v16, 9  ;;  %vm13819_vm13 = vmand %vm3073_vm11, %vm3082_vm8 }
 0x175   : > { %v10143_v13 = vrot.slane %v1967_v16, 10  ;;  %v11682_v55 = vpop.eup %11681  ;;  %v1534_v58 = vsub.f32 3.1415927, %v13795_v7  ;;  %v10125_v43 = vrot.slane %v1814_v4, 9  ;;  %v10206_v34 = vrot.slane %v13703_v8, 9 }
 0x176   : > { %v2299_v19 = vadd.f32 0.19977711, %v2290_v62  ;;  %v11684_v38 = vpop.eup %11683  ;;  %v3118_v39 = vsub.f32 0.0, %v11682_v55  ;;  %v1877_v5 = vrot.slane %v1805_v36, 7  ;;  %v2012_v25 = vadd.f32 %v10134_v63, %v1967_v16 }
 0x177   : > { %v2651_v57 = vrot.slane %v13703_v8, 6  ;;  %v3154_v1 = vmul.f32 %v11684_v38, %v10250_v56  ;;  %v644_v50 = vadd.f32 %v10008_v6, %v13779_v28  ;;  %v10017_v30 = vrot.slane %v13779_v28, 10 }
 0x178   : > { %v2308_v41 = vmul.f32 %v2299_v19, %v13773_v17  ;;  %vm1525_vm14 = vcmp.lt.f32.partialorder %v13378_v42, 0.0  ;;  %v2254_v15 = vsel %vm2128_vm12, 1.5707964, %v2245_v54  ;;  %v1859_v12 = vadd.f32 %v10125_v43, %v1805_v36 }
 0x179   : > { %v13830_v62 = vadd.f32 %v10143_v13, %v2012_v25  ;;  %v2597_v4 = vmul.f32 %v2579_v48, %v13623_v61  ;;  %v10088_v16 = vrot.slane %v1534_v58, 9  ;;  %v3163_v56 = vsel %vm13819_vm13, %v3154_v1, %v13715_v32 }
 0x17a   : > { %v10169_v63 = vadd.f32 -0.3333295, %v2308_v41  ;;  %v2678_v55 = vrot.slane %v2651_v57, 4  ;;  %v13838_v28 = vsel %vm3064_vm4, %v3118_v39, %v3163_v56  ;;  %v13840_v6 = vadd.f32 %v1877_v5, %v1859_v12 }
 0x17b   : > { %v2057_v52 = vand.u32 2147483647, %v13830_v62  ;;  %v2903_v36 = vmul.f32 %v13703_v8, %v13623_v61  ;;  %v11686_v54 = vpop.eup %11685  ;;  %vm1516_vm12 = vcmp.gt.f32.partialorder %v13378_v42, 0.0  ;;  %v3199_v13 = vmul.f32 %v13838_v28, %v13838_v28 }
 0x17c   : > { %v2326_v48 = vmul.f32 %v10169_v63, %v13773_v17  ;;  %vm1096_vm1 = vcmp.eq.f32.partialorder %v13786_v2, inf  ;;  %vm1098_vm0 = vcmp.eq.f32.partialorder %v13786_v2, 0.0  ;;  %v11688_v58 = vpop.eup %11687  ;;  %v1099_v19 = vand.u32 2147483648, %v13786_v2 }
 0x17d   : > { %11689 = vrsqrt.f32 %v13840_v6  ;;  %v2570_v43 = vmul.f32 %v10206_v34, %v13623_v61  ;;  %v10215_v8 = vrot.slane %v2597_v4, 9  ;;  %v3208_v39 = vmul.f32 0.080537446, %v3199_v13 }
 0x17e   : > { %v2335_v38 = vmul.f32 %v2326_v48, %v13757_v3  ;;  %v1095_v17 = vmul.f32 %v11688_v58, %v13786_v2  ;;  %v1256_v5 = vrot.slane %v11686_v54, 7  ;;  %vm2066_vm7 = vcmp.gt.f32.partialorder %v2057_v52, 0.0 }
 0x17f   : > { %v2669_v25 = vmul.f32 %v2651_v57, %v13623_v61  ;;  %v2696_v41 = vmul.f32 %v2678_v55, %v13623_v61  ;;  %v10233_v1 = vrot.slane %v2903_v36, 9  ;;  %vm2371_vm10 = vcmp.lt.f32.partialorder %v13468_v49, 0.0 }
 0x180   : > { %v2344_v12 = vadd.f32 %v2335_v38, %v13757_v3  ;;  %v10259_v63 = vadd.f32 -0.13877685, %v3208_v39  ;;  %v1097_v34 = vsel %vm1096_vm1, %v13786_v2, %v1095_v17  ;;  %v2075_v4 = vsel %vm2066_vm7, %v2057_v52, 1.0 }
 0x181   : > { %v13865_v56 = vsel %vm1098_vm0, %v1099_v19, %v1097_v34  ;;  %11691 = vrcp.f32 %v2075_v4  ;;  %v2642_v54 = vsub.f32 %v2570_v43, %v10215_v8  ;;  %v2714_v57 = vrot.slane %v2696_v41, 6 }
 0x182   : > { %v2353_v48 = vadd.f32 %v2344_v12, %v2254_v15  ;;  %v3226_v61 = vmul.f32 %v10259_v63, %v3199_v13  ;;  %v3520_v3 = vrot.slane %v13707_v53, %v11952_v44  ;;  %v13870_v55 = vmul.f32 %v1256_v5, %v13865_v56 }
 0x183   : > { %v10106_v58 = vrot.slane %v13795_v7, 9  ;;  %vm2362_vm11 = vcmp.gt.f32.partialorder %v13468_v49, 0.0  ;;  %v2732_v52 = vsub.f32 %v2669_v25, %v2714_v57  ;;  %v2948_v38 = vadd.f32 %v10233_v1, %v2903_v36 }
 0x184   : > { %v10242_v2 = vrot.slane %v2903_v36, 10  ;;  %v1633_v19 = vsel %vm1525_vm14, %v10088_v16, %v10097_v60  ;;  %v2380_v15 = vsub.f32 3.1415927, %v2353_v48  ;;  %v10187_v43 = vrot.slane %v13815_v24, 9 }
 0x185   : > { %v3235_v8 = vadd.f32 0.19977711, %v3226_v61  ;;  %v13879_v39 = vadd.f32 %v10017_v30, %v644_v50  ;;  %vm1283_vm8 = vcmp.gt.f32.partialorder %v13870_v55, 2.4142137  ;;  %v1355_v7 = vadd.f32 1.0, %v13870_v55 }
 0x186   : > { %v2741_v17 = vmul.f32 %v2642_v54, %v2642_v54  ;;  %vm3325_vm1 = vcmp.gt.f32.partialorder %v13692_v46, 0.0  ;;  %v1319_v14 = vsel %vm1283_vm8, %v13870_v55, 1.0  ;;  %v2750_v36 = vmul.f32 %v2732_v52, %v2732_v52 }
 0x187   : > { %v3244_v5 = vmul.f32 %v3235_v8, %v3199_v13  ;;  %v11690_v60 = vpop.eup %11689  ;;  %v13889_v24 = vsel %vm1516_vm12, %v10106_v58, %v1633_v19  ;;  %v10178_v50 = vrot.slane %v2380_v15, 9  ;;  %11693 = vrcp.f32 %v1319_v14 }
 0x188   : > { %v13891_v30 = vadd.f32 %v10242_v2, %v2948_v38  ;;  %11695 = vrcp.f32 %v1355_v7  ;;  %vm1942_vm14 = vcmp.eq.f32.partialorder %v13840_v6, inf  ;;  %v1945_v25 = vand.u32 2147483648, %v13840_v6  ;;  %v552_v7 = vld [vmem:[%s11878_s18 + $0x38] sm:$0x77] }
 0x189   : > { %v10268_v16 = vadd.f32 -0.3333295, %v3244_v5  ;;  %v1941_v41 = vmul.f32 %v11690_v60, %v13840_v6  ;;  %vm1944_vm0 = vcmp.eq.f32.partialorder %v13840_v6, 0.0  ;;  %v10224_v1 = vrot.slane %v2750_v36, 9 }
 0x18a   : > { %v2813_v12 = vrot.slane %v2741_v17, 7  ;;  %v10196_v63 = vrot.slane %v2353_v48, 9  ;;  %v3181_v42 = vsel %vm13819_vm13, 0.7853982, %v17224_v0  ;;  %v2993_v4 = vand.u32 2147483647, %v13891_v30 }
 0x18b   : > { %v3262_v34 = vmul.f32 %v10268_v16, %v3199_v13  ;;  %v11692_v54 = vpop.eup %11691  ;;  %v2479_v57 = vsel %vm2371_vm10, %v10178_v50, %v10187_v43  ;;  %vm3307_vm12 = vcmp.lt.f32.partialorder %v13569_v9, 0.0  ;;  %v3334_v61 = vsel %vm3325_vm1, 1.5707964, %v17224_v0  ;;  %vm13930_vm1 = vmxor %vm1283_vm8, %vm11784_vm15 }
 0x18c   : > { %v1943_v48 = vsel %vm1942_vm14, %v13840_v6, %v1941_v41  ;;  %v2795_v58 = vadd.f32 %v10224_v1, %v2741_v17  ;;  %vm3298_vm13 = vcmp.gt.f32.partialorder %v13569_v9, 0.0  ;;  %v3614_v13 = vrot.slane %v13889_v24, %v11952_v44  ;;  %v570_v17 = vld [vmem:[%s11883_s21 + $0x38] sm:$0x77] }
 0x18d   : > { %v3271_v45 = vmul.f32 %v3262_v34, %v13838_v28  ;;  %11697 = vrsqrt.f32 %v13879_v39  ;;  %v13915_v52 = vsel %vm1944_vm0, %v1945_v25, %v1943_v48  ;;  %v3190_v46 = vsel %vm3064_vm4, 1.5707964, %v3181_v42 }
 0x18e   : > { %v2102_v38 = vrot.slane %v11692_v54, 7  ;;  %v13919_v2 = vadd.f32 %v2813_v12, %v2795_v58  ;;  %vm3002_vm7 = vcmp.gt.f32.partialorder %v2993_v4, 0.0  ;;  %v2524_v19 = vsel %vm2362_vm11, %v10196_v63, %v2479_v57  ;;  %v13973_v58 = vld [vmem:[%s11889_s24 + $0x38] sm:$0x77] }
 0x18f   : > { %v3280_v15 = vadd.f32 %v3271_v45, %v13838_v28  ;;  %v10286_v43 = vrot.slane %v3334_v61, 9  ;;  %v3011_v8 = vsel %vm3002_vm7, %v2993_v4, 1.0  ;;  %vm1292_vm10 = vcmp.gt.f32.partialorder %v13870_v55, 0.41421357 }
 0x190   : > { %v10062_v6 = vadd.f32 -1.0, %v13870_v55  ;;  %v13936_v49 = vmul.f32 %v2102_v38, %v13915_v52  ;;  %11699 = vrsqrt.f32 %v13919_v2  ;;  %v3610_v5 = vrot.slane %v13889_v24, %v11959_v47  ;;  %vm13955_vm11 = vmand %vm1292_vm10, %vm13930_vm1 }
 0x191   : > { %v3289_v28 = vadd.f32 %v3280_v15, %v3190_v46  ;;  %v3852_v14 = vsel %vm3840_vm6, %v3520_v3, %v3614_v13  ;;  %11701 = vrcp.f32 %v3011_v8  ;;  %v11694_v36 = vpop.eup %11693  ;;  %v3708_v60 = vrot.slane %v2524_v19, %v11952_v44 }
 0x192   : > { %vm2129_vm4 = vcmp.gt.f32.partialorder %v13936_v49, 2.4142137  ;;  %v2201_v50 = vadd.f32 1.0, %v13936_v49  ;;  %v13948_v16 = vsub.f32 %v570_v17, %v552_v7  ;;  %v11696_v25 = vpop.eup %11695  ;;  %v3704_v24 = vrot.slane %v2524_v19, %v11959_v47 }
 0x193   : > { %v3316_v41 = vsub.f32 3.1415927, %v3289_v28  ;;  %v1337_v1 = vsub.f32 0.0, %v11694_v36  ;;  %v2165_v12 = vsel %vm2129_vm4, %v13936_v49, 1.0  ;;  %v10295_v63 = vrot.slane %v3289_v28, 9 }
 0x194   : > { %v1373_v42 = vmul.f32 %v11696_v25, %v10062_v6  ;;  %11703 = vrcp.f32 %v2165_v12  ;;  %v769_v34 = vrot.slane %v13948_v16, 5  ;;  %v3851_v54 = vsel %vm3840_vm6, %v3516_v37, %v3610_v5 }
 0x195   : > { %v10277_v4 = vrot.slane %v3316_v41, 9  ;;  %11705 = vrcp.f32 %v2201_v50  ;;  %v798_v57 = vrot.slane %v13948_v16, 7  ;;  %v3870_v61 = vsel %vm3858_vm9, %v3852_v14, %v3708_v60 }
 0x196   : > { %v1382_v48 = vsel %vm13955_vm11, %v1373_v42, %v13870_v55  ;;  %v13981_v37 = vrot.slane %v769_v34, 4  ;;  %v3869_v19 = vsel %vm3858_vm9, %v3851_v54, %v3704_v24  ;;  %vm2878_vm14 = vcmp.eq.f32.partialorder %v13919_v2, inf }
 0x197   : > { %v11698_v45 = vpop.eup %11697  ;;  %v3415_v13 = vsel %vm3307_vm12, %v10277_v4, %v10286_v43  ;;  %v13979_v53 = vsel %vm1283_vm8, %v1337_v1, %v1382_v48  ;;  %v816_v46 = vmul.f32 %v798_v57, %v13973_v58  ;;  %v13994_v43 = vrot.slane %v13948_v16, 6 }
 0x198   : > { %v3460_v38 = vsel %vm3298_vm13, %v10295_v63, %v3415_v13  ;;  %v13991_v15 = vmul.f32 %v13979_v53, %v13979_v53  ;;  %v2881_v17 = vand.u32 2147483648, %v13919_v2  ;;  %v789_v6 = vmul.f32 %v13981_v37, %v13973_v58  ;;  %vm2147_vm13 = vmxor %vm2129_vm4, %vm11784_vm15 }
 0x199   : > { %v3798_v8 = vrot.slane %v3460_v38, %v11959_v47  ;;  %v3802_v7 = vrot.slane %v3460_v38, %v11952_v44  ;;  %v10027_v28 = vrot.slane %v816_v46, 9  ;;  %v897_v5 = vrot.slane %v13994_v43, 4 }
 0x19a   : > { %v11700_v32 = vpop.eup %11699  ;;  %v1427_v9 = vmul.f32 0.080537446, %v13991_v15  ;;  %vm2880_vm0 = vcmp.eq.f32.partialorder %v13919_v2, 0.0  ;;  %vm2138_vm12 = vcmp.gt.f32.partialorder %v13936_v49, 0.41421357  ;;  %v10152_v41 = vadd.f32 -1.0, %v13936_v49 }
 0x19b   : > { %v11702_v14 = vpop.eup %11701  ;;  %v14005_v36 = vsel %vm3876_vm2, %v3870_v61, %v3802_v7  ;;  %v14008_v60 = vsel %vm3876_vm2, %v3869_v19, %v3798_v8  ;;  %v2877_v50 = vmul.f32 %v11700_v32, %v13919_v2  ;;  %v915_v12 = vmul.f32 %v897_v5, %v13973_v58  ;;  %vm14034_vm7 = vmand %vm2138_vm12, %vm2147_vm13 }
 0x19c   : > { %17316 = vst [vmem:[#allocation13_spill] sm:$0xff] %v14005_v36  ;;  %17317 = vst [vmem:[#allocation14_spill] sm:$0xff] %v14008_v60  ;;  %10329 = vmatprep.subr.msk.mxu1 %vm17243_vm3, %v14005_v36  ;;  %v10071_v25 = vadd.f32 -0.13877685, %v1427_v9  ;;  %v3038_v24 = vrot.slane %v11702_v14, 7  ;;  %v861_v4 = vsub.f32 %v789_v6, %v10027_v28  ;;  %v888_v54 = vmul.f32 %v13994_v43, %v13973_v58 }
 0x19d   : > { %10330 = vmatpush1.msk.msra.mxu1 %vm17243_vm3, %v14008_v60  ;;  %v2879_v1 = vsel %vm2878_vm14, %v13919_v2, %v2877_v50  ;;  %v1122_v46 = vmul.f32 %v13948_v16, %v13973_v58  ;;  %v726_v38 = vmul.f32 %v11698_v45, %v13879_v39  ;;  %vm727_vm10 = vcmp.eq.f32.partialorder %v13879_v39, inf }
 0x19e   : > { %v11704_v63 = vpop.eup %11703  ;;  %10331 = vmatmul.mubr.msk.f32.vlgmr.msra.gmra.mrb[18].mxu1 %vm17242_vm5, %v13684_v31  ;;  %v1445_v42 = vmul.f32 %v10071_v25, %v13991_v15  ;;  %v14030_v34 = vsel %vm2880_vm0, %v2881_v17, %v2879_v1  ;;  %v933_v31 = vrot.slane %v915_v12, 6  ;;  %v730_v7 = vand.u32 2147483648, %v13879_v39 }
 0x19f   : > { %v11706_v61 = vpop.eup %11705  ;;  %v2183_v2 = vsub.f32 0.0, %v11704_v63  ;;  %v14039_v13 = vmul.f32 %v3038_v24, %v14030_v34  ;;  %4502 = vmatprep.mubr.f32.mxu1 %v17224_v0  ;;  %vm729_vm14 = vcmp.eq.f32.partialorder %v13879_v39, 0.0  ;;  %v960_v6 = vmul.f32 %v861_v4, %v861_v4 }
 0x1a0   : > { %v1454_v19 = vadd.f32 0.19977711, %v1445_v42  ;;  %v2219_v8 = vmul.f32 %v11706_v61, %v10152_v41  ;;  %v951_v14 = vsub.f32 %v888_v54, %v933_v31  ;;  %v10045_v50 = vrot.slane %v1122_v46, 9 }
 0x1a1   : > { %vm3065_vm1 = vcmp.gt.f32.partialorder %v14039_v13, 2.4142137  ;;  %v3137_v17 = vadd.f32 1.0, %v14039_v13  ;;  %v728_v25 = vsel %vm727_vm10, %v13879_v39, %v726_v38  ;;  %vm1544_vm0 = vcmp.gt.f32.partialorder %v13865_v56, 0.0 }
 0x1a2   : > { %v1463_v32 = vmul.f32 %v1454_v19, %v13991_v15  ;;  %v2228_v9 = vsel %vm14034_vm7, %v2219_v8, %v13936_v49  ;;  %v3101_v45 = vsel %vm3065_vm1, %v14039_v13, 1.0  ;;  %10332 = vmatmul.mubr.msk.f32.gmra.mrb[20].mxu1 %vm17242_vm5, %v13720_v23  ;;  %v14071_v23 = vld [vmem:[%s11895_s27 + $0x38] sm:$0x77]  ;;  %v969_v1 = vmul.f32 %v951_v14, %v951_v14 }
 0x1a3   : > { %v14061_v28 = vsel %vm2129_vm4, %v2183_v2, %v2228_v9  ;;  %11707 = vrcp.f32 %v3101_v45  ;;  %4508 = vmatprep.mubr.f32.mxu1 %v17224_v0  ;;  %v1167_v12 = vadd.f32 %v10045_v50, %v1122_v46  ;;  %v10054_v63 = vrot.slane %v1122_v46, 10 }
 0x1a4   : > { %v10080_v41 = vadd.f32 -0.3333295, %v1463_v32  ;;  %v14067_v24 = vmul.f32 %v14061_v28, %v14061_v28  ;;  %11709 = vrcp.f32 %v3137_v17  ;;  %v1400_v42 = vsel %vm13955_vm11, 0.7853982, %v17224_v0 }
 0x1a5   : > { %v1698_v61 = vmul.f32 %v798_v57, %v14071_v23  ;;  %v10036_v2 = vrot.slane %v969_v1, 9  ;;  %v1032_v31 = vrot.slane %v960_v6, 7  ;;  %v14084_v46 = vadd.f32 %v10054_v63, %v1167_v12 }
 0x1a6   : > { %v1481_v4 = vmul.f32 %v10080_v41, %v13991_v15  ;;  %v2273_v54 = vmul.f32 0.080537446, %v14067_v24  ;;  %10333 = vmatmul.mubr.msk.f32.gmra.mrb[22].mxu1 %vm17242_vm5, %v13762_v11  ;;  %v1689_v3 = vmul.f32 %v13981_v37, %v14071_v23  ;;  %v1761_v11 = vmul.f32 %v897_v5, %v14071_v23 }
 0x1a7   : > { %4514 = vmatprep.mubr.f32.mxu1 %v17224_v0  ;;  %v10117_v19 = vrot.slane %v1698_v61, 9  ;;  %v1409_v57 = vsel %vm1283_vm8, 1.5707964, %v1400_v42  ;;  %vm3074_vm11 = vcmp.gt.f32.partialorder %v14039_v13, 0.41421357  ;;  %v1014_v8 = vadd.f32 %v10036_v2, %v960_v6  ;;  %vm14106_vm8 = vmxor %vm3065_vm1, %vm11784_vm15 }
 0x1a8   : > { %v1490_v15 = vmul.f32 %v1481_v4, %v13979_v53  ;;  %v10161_v38 = vadd.f32 -0.13877685, %v2273_v54  ;;  %v1212_v17 = vand.u32 2147483647, %v14084_v46  ;;  %v10251_v9 = vadd.f32 -1.0, %v14039_v13 }
 0x1a9   : > { %v1752_v5 = vmul.f32 %v13994_v43, %v14071_v23  ;;  %v14110_v45 = vadd.f32 %v1032_v31, %v1014_v8  ;;  %v1779_v6 = vrot.slane %v1761_v11, 6  ;;  %v1968_v43 = vmul.f32 %v13948_v16, %v14071_v23 }
 0x1aa   : > { %v1499_v32 = vadd.f32 %v1490_v15, %v13979_v53  ;;  %v2291_v37 = vmul.f32 %v10161_v38, %v14067_v24  ;;  %10334 = vmatmul.mubr.msk.f32.gmra.mrb[24].mxu1 %vm17242_vm5, %v13791_v51  ;;  %vm1221_vm12 = vcmp.gt.f32.partialorder %v1212_v17, 0.0  ;;  %v1743_v53 = vsub.f32 %v1689_v3, %v10117_v19 }
 0x1ab   : > { %4674 = vmatprep.mubr.f32.mxu1 %v17224_v0  ;;  %v1230_v51 = vsel %vm1221_vm12, %v1212_v17, 1.0  ;;  %v14117_v1 = vsel %vm729_vm14, %v730_v7, %v728_v25  ;;  %v1553_v12 = vsel %vm1544_vm0, 1.5707964, %v17224_v0  ;;  %11711 = vrsqrt.f32 %v14110_v45  ;;  %vm14130_vm14 = vmand %vm3074_vm11, %vm14106_vm8 }
 0x1ac   : > { %v1508_v14 = vadd.f32 %v1499_v32, %v1409_v57  ;;  %v2300_v50 = vadd.f32 0.19977711, %v2291_v37  ;;  %vm1517_vm13 = vcmp.gt.f32.partialorder %v13740_v59, 0.0  ;;  %vm1526_vm10 = vcmp.lt.f32.partialorder %v13740_v59, 0.0 }
 0x1ad   : > { %v11708_v41 = vpop.eup %11707  ;;  %11713 = vrcp.f32 %v1230_v51  ;;  %v1797_v25 = vsub.f32 %v1752_v5, %v1779_v6  ;;  %v1806_v54 = vmul.f32 %v1743_v53, %v1743_v53  ;;  %v10098_v61 = vrot.slane %v1553_v12, 9 }
 0x1ae   : > { %v11710_v63 = vpop.eup %11709  ;;  %v1535_v42 = vsub.f32 3.1415927, %v1508_v14  ;;  %v2309_v4 = vmul.f32 %v2300_v50, %v14067_v24  ;;  %v3119_v56 = vsub.f32 0.0, %v11708_v41  ;;  %v10135_v31 = vrot.slane %v1968_v43, 9 }
 0x1af   : > { %v3155_v7 = vmul.f32 %v11710_v63, %v10251_v9  ;;  %v10144_v3 = vrot.slane %v1968_v43, 10  ;;  %v2246_v15 = vsel %vm14034_vm7, 0.7853982, %v17224_v0  ;;  %vm2390_vm0 = vcmp.gt.f32.partialorder %v13915_v52, 0.0 }
 0x1b0   : > { %v10170_v2 = vadd.f32 -0.3333295, %v2309_v4  ;;  %v1815_v19 = vmul.f32 %v1797_v25, %v1797_v25  ;;  %v10089_v11 = vrot.slane %v1535_v42, 9  ;;  %v2013_v17 = vadd.f32 %v10135_v31, %v1968_v43 }
 0x1b1   : > { %v3164_v38 = vsel %vm14130_vm14, %v3155_v7, %v14039_v13  ;;  %v3524_v48 = vrot.slane %v14117_v1, %v11959_v47  ;;  %v1878_v37 = vrot.slane %v1806_v54, 7  ;;  %vm2372_vm7 = vcmp.lt.f32.partialorder %v13830_v62, 0.0 }
 0x1b2   : > { %v2327_v57 = vmul.f32 %v10170_v2, %v14067_v24  ;;  %v14144_v8 = vsel %vm3065_vm1, %v3119_v56, %v3164_v38  ;;  %v10126_v52 = vrot.slane %v1815_v19, 9  ;;  %v2399_v5 = vsel %vm2390_vm0, 1.5707964, %v17224_v0 }
 0x1b3   : > { %v3200_v32 = vmul.f32 %v14144_v8, %v14144_v8  ;;  %v3528_v24 = vrot.slane %v14117_v1, %v11952_v44  ;;  %v14155_v55 = vadd.f32 %v10144_v3, %v2013_v17  ;;  %v10107_v53 = vrot.slane %v1508_v14, 9 }
 0x1b4   : > { %v2336_v9 = vmul.f32 %v2327_v57, %v14061_v28  ;;  %v2255_v6 = vsel %vm2129_vm4, 1.5707964, %v2246_v15  ;;  %v1860_v51 = vadd.f32 %v10126_v52, %v1806_v54  ;;  %v1634_v43 = vsel %vm1526_vm10, %v10089_v11, %v10098_v61 }
 0x1b5   : > { %v3209_v50 = vmul.f32 0.080537446, %v3200_v32  ;;  %v14164_v12 = vmul.f32 %v13948_v16, %v13948_v16  ;;  %v2058_v63 = vand.u32 2147483647, %v14155_v55  ;;  %v11712_v42 = vpop.eup %11711  ;;  %vm2363_vm11 = vcmp.gt.f32.partialorder %v13830_v62, 0.0  ;;  %v3898_v62 = vld [vmem:[%s17215_s6] sm:$0xff] }
 0x1b6   : > { %v2345_v41 = vadd.f32 %v2336_v9, %v14061_v28  ;;  %vm1103_vm8 = vcmp.eq.f32.partialorder %v14110_v45, inf  ;;  %v1106_v49 = vand.u32 2147483648, %v14110_v45  ;;  %v14170_v4 = vadd.f32 %v1878_v37, %v1860_v51 }
 0x1b7   : > { %v10260_v14 = vadd.f32 -0.13877685, %v3209_v50  ;;  %v1102_v7 = vmul.f32 %v11712_v42, %v14110_v45  ;;  %vm1105_vm4 = vcmp.eq.f32.partialorder %v14110_v45, 0.0  ;;  %vm2067_vm12 = vcmp.gt.f32.partialorder %v2058_v63, 0.0  ;;  %v11714_v16 = vpop.eup %11713 }
 0x1b8   : > { %v2354_v56 = vadd.f32 %v2345_v41, %v2255_v6  ;;  %v14176_v28 = vsel %vm1517_vm13, %v10107_v53, %v1634_v43  ;;  %v10188_v25 = vrot.slane %v2399_v5, 9  ;;  %11715 = vrsqrt.f32 %v14170_v4 }
 0x1b9   : > { %v3227_v54 = vmul.f32 %v10260_v14, %v3200_v32  ;;  %v1104_v2 = vsel %vm1103_vm8, %v14110_v45, %v1102_v7  ;;  %v1257_v31 = vrot.slane %v11714_v16, 7  ;;  %v2580_v3 = vrot.slane %v14071_v23, 7 }
 0x1ba   : > { %v2381_v61 = vsub.f32 3.1415927, %v2354_v56  ;;  %v10009_v38 = vrot.slane %v14164_v12, 9  ;;  %v14182_v19 = vsel %vm1105_vm4, %v1106_v49, %v1104_v2  ;;  %v2076_v11 = vsel %vm2067_vm12, %v2058_v63, 1.0 }
 0x1bb   : > { %v3236_v15 = vadd.f32 0.19977711, %v3227_v54  ;;  %v14185_v59 = vmul.f32 %v1257_v31, %v14182_v19  ;;  %11717 = vrcp.f32 %v2076_v11  ;;  %v10207_v17 = vrot.slane %v14071_v23, 9 }
 0x1bc   : > { %v10179_v57 = vrot.slane %v2381_v61, 9  ;;  %v3182_v45 = vsel %vm14130_vm14, 0.7853982, %v17224_v0  ;;  %vm3326_vm13 = vcmp.gt.f32.partialorder %v14030_v34, 0.0  ;;  %v3622_v37 = vrot.slane %v14176_v28, %v11952_v44 }
 0x1bd   : > { %v3245_v52 = vmul.f32 %v3236_v15, %v3200_v32  ;;  %v10197_v9 = vrot.slane %v2354_v56, 9  ;;  %vm1284_vm10 = vcmp.gt.f32.partialorder %v14185_v59, 2.4142137  ;;  %v2598_v5 = vmul.f32 %v2580_v3, %v13973_v58 }
 0x1be   : > { %v2652_v53 = vrot.slane %v14071_v23, 6  ;;  %v2480_v6 = vsel %vm2372_vm7, %v10179_v57, %v10188_v25  ;;  %v1320_v39 = vsel %vm1284_vm10, %v14185_v59, 1.0  ;;  %v1356_v34 = vadd.f32 1.0, %v14185_v59  ;;  %vm14246_vm8 = vmxor %vm1284_vm10, %vm11784_vm15 }
 0x1bf   : > { %v10269_v50 = vadd.f32 -0.3333295, %v3245_v52  ;;  %v3191_v51 = vsel %vm3065_vm1, 1.5707964, %v3182_v45  ;;  %v14206_v43 = vsel %vm3326_vm13, 1.5707964, %v17224_v0  ;;  %11719 = vrcp.f32 %v1320_v39 }
 0x1c0   : > { %v2571_v41 = vmul.f32 %v10207_v17, %v13973_v58  ;;  %v3618_v42 = vrot.slane %v14176_v28, %v11959_v47  ;;  %v3854_v14 = vsel %vm3840_vm6, %v3528_v24, %v3622_v37  ;;  %11721 = vrcp.f32 %v1356_v34  ;;  %v571_v34 = vld [vmem:[%s11883_s21 + $0x40] sm:$0x7] }
 0x1c1   : > { %v3263_v63 = vmul.f32 %v10269_v50, %v3200_v32  ;;  %v2525_v49 = vsel %vm2363_vm11, %v10197_v9, %v2480_v6  ;;  %vm3308_vm14 = vcmp.lt.f32.partialorder %v13891_v30, 0.0  ;;  %vm1949_vm1 = vcmp.eq.f32.partialorder %v14170_v4, inf  ;;  %v553_v6 = vld [vmem:[%s11878_s18 + $0x40] sm:$0x7] }
 0x1c2   : > { %v10216_v13 = vrot.slane %v2598_v5, 9  ;;  %v2679_v56 = vrot.slane %v2652_v53, 4  ;;  %v11716_v7 = vpop.eup %11715  ;;  %vm3299_vm0 = vcmp.gt.f32.partialorder %v13891_v30, 0.0  ;;  %vm1951_vm7 = vcmp.eq.f32.partialorder %v14170_v4, 0.0 }
 0x1c3   : > { %v3272_v16 = vmul.f32 %v3263_v63, %v14144_v8  ;;  %v1952_v32 = vand.u32 2147483648, %v14170_v4  ;;  %v2904_v24 = vmul.f32 %v14071_v23, %v13973_v58  ;;  %v1948_v28 = vmul.f32 %v11716_v7, %v14170_v4 }
 0x1c4   : > { %v2670_v25 = vmul.f32 %v2652_v53, %v13973_v58  ;;  %v2697_v54 = vmul.f32 %v2679_v56, %v13973_v58  ;;  %v3712_v2 = vrot.slane %v2525_v49, %v11959_v47  ;;  %v3716_v31 = vrot.slane %v2525_v49, %v11952_v44 }
 0x1c5   : > { %v3281_v61 = vadd.f32 %v3272_v16, %v14144_v8  ;;  %v10234_v3 = vrot.slane %v2904_v24, 9  ;;  %v11785_v15 = vmov 0   ;;  %v11718_v23 = vpop.eup %11717  ;;  %v1950_v11 = vsel %vm1949_vm1, %v14170_v4, %v1948_v28 }
 0x1c6   : > { %11527 = vset.pattern.permute.xlu0 %v11785_v15  ;;  %11528 = vset.pattern.permute.xlu1 %v11785_v15  ;;  %v2643_v57 = vsub.f32 %v2571_v41, %v10216_v13  ;;  %v2715_v17 = vrot.slane %v2697_v54, 6  ;;  %v10243_v45 = vrot.slane %v2904_v24, 10  ;;  %v14236_v8 = vsel %vm1951_vm7, %v1952_v32, %v1950_v11 }
 0x1c7   : > { %3904 = vperm.xlu0 %11527, %v3898_v62   ;;  %v3290_v58 = vadd.f32 %v3281_v61, %v3191_v51  ;;  %v2103_v52 = vrot.slane %v11718_v23, 7  ;;  %v2949_v37 = vadd.f32 %v10234_v3, %v2904_v24  ;;  %v3853_v9 = vsel %vm3840_vm6, %v3524_v48, %v3618_v42  ;;  %v3900_v61 = vld [vmem:[%s17215_s6 + $0x10] sm:$0xff] }
 0x1c8   : > { %vm1293_vm11 = vcmp.gt.f32.partialorder %v14185_v59, 0.41421357  ;;  %v10063_v4 = vadd.f32 -1.0, %v14185_v59  ;;  %v2733_v53 = vsub.f32 %v2670_v25, %v2715_v17  ;;  %v10287_v39 = vrot.slane %v14206_v43, 9  ;;  %3914 = vperm.xlu1 %11528, %v3900_v61  }
 0x1c9   : > { %v3317_v50 = vsub.f32 3.1415927, %v3290_v58  ;;  %v3872_v1 = vsel %vm3858_vm9, %v3854_v14, %v3716_v31  ;;  %v14255_v48 = vmul.f32 %v2103_v52, %v14236_v8  ;;  %v11720_v51 = vpop.eup %11719  ;;  %v10296_v41 = vrot.slane %v3290_v58, 9  ;;  %vm14265_vm4 = vmand %vm1293_vm11, %vm14246_vm8 }
 0x1ca   : > { %v2742_v63 = vmul.f32 %v2643_v57, %v2643_v57  ;;  %v2751_v42 = vmul.f32 %v2733_v53, %v2733_v53  ;;  %v14258_v49 = vadd.f32 %v10243_v45, %v2949_v37  ;;  %v11722_v13 = vpop.eup %11721  ;;  %v3871_v7 = vsel %vm3858_vm9, %v3853_v9, %v3712_v2  ;;  %v3899_v2 = vld [vmem:[%s17215_s6 + $0x8] sm:$0xff]  ;;  %v4856_v53 = vld [vmem:[%s17217_s8] sm:$0xff] }
 0x1cb   : > { %v10278_v56 = vrot.slane %v3317_v50, 9  ;;  %v1338_v14 = vsub.f32 0.0, %v11720_v51  ;;  %vm2130_vm12 = vcmp.gt.f32.partialorder %v14255_v48, 2.4142137  ;;  %v1374_v16 = vmul.f32 %v11722_v13, %v10063_v4  ;;  %3909 = vperm.xlu0 %11527, %v3899_v2   ;;  %v3901_v4 = vld [vmem:[%s17215_s6 + $0x18] sm:$0xff] }
 0x1cc   : > { %v2166_v32 = vsel %vm2130_vm12, %v14255_v48, 1.0  ;;  %v2202_v24 = vadd.f32 1.0, %v14255_v48  ;;  %v14274_v62 = vsub.f32 %v571_v34, %v553_v6  ;;  %v10225_v25 = vrot.slane %v2751_v42, 9  ;;  %3919 = vperm.xlu1 %11528, %v3901_v4   ;;  %v14336_v34 = vld [vmem:[%s17214_s5] sm:$0xff]  ;;  %vm2148_vm1 = vmxor %vm2130_vm12, %vm11784_vm15 }
 0x1cd   : > { %v3416_v28 = vsel %vm3308_vm14, %v10278_v56, %v10287_v39  ;;  %11723 = vrcp.f32 %v2166_v32  ;;  %v2994_v54 = vand.u32 2147483647, %v14258_v49  ;;  %v1383_v3 = vsel %vm14265_vm4, %v1374_v16, %v14185_v59 }
 0x1ce   : > { %v3461_v31 = vsel %vm3299_vm0, %v10296_v41, %v3416_v28  ;;  %11725 = vrcp.f32 %v2202_v24  ;;  %v2814_v15 = vrot.slane %v2742_v63, 7  ;;  %v14294_v57 = vsel %vm1284_vm10, %v1338_v14, %v1383_v3  ;;  %v14342_v41 = vld [vmem:[%s11889_s24 + $0x40] sm:$0x7]  ;;  %v4859_v28 = vld [vmem:[%s17217_s8 + $0x18] sm:$0xff] }
 0x1cf   : > { %v3806_v23 = vrot.slane %v3461_v31, %v11959_v47  ;;  %v3810_v11 = vrot.slane %v3461_v31, %v11952_v44  ;;  %v771_v17 = vrot.slane %v14274_v62, 5  ;;  %v10018_v30 = vrot.slane %v14164_v12, 10  ;;  %4862 = vperm.xlu0 %11527, %v4856_v53   ;;  %v8811_v53 = vld [vmem:[%s17220_s11 + $0x8] sm:$0xff] }
 0x1d0   : > { %v14300_v45 = vmul.f32 %v14294_v57, %v14294_v57  ;;  %v2796_v58 = vadd.f32 %v10225_v25, %v2742_v63  ;;  %vm3003_vm13 = vcmp.gt.f32.partialorder %v2994_v54, 0.0  ;;  %v645_v9 = vadd.f32 %v10009_v38, %v14164_v12  ;;  %v4858_v63 = vld [vmem:[%s17217_s8 + $0x10] sm:$0xff] }
 0x1d1   : > { %v14303_v52 = vsel %vm3876_vm2, %v3872_v1, %v3810_v11  ;;  %v14306_v37 = vsel %vm3876_vm2, %v3871_v7, %v3806_v23  ;;  %v3012_v5 = vsel %vm3003_vm13, %v2994_v54, 1.0  ;;  %v14324_v12 = vrot.slane %v771_v17, 4  ;;  %v4857_v1 = vld [vmem:[%s17217_s8 + $0x8] sm:$0xff]  ;;  %v8810_v23 = vld [vmem:[%s17220_s11] sm:$0xff] }
 0x1d2   : > { %17328 = vst [vmem:[#allocation15_spill] sm:$0xff] %v14303_v52  ;;  %17329 = vst [vmem:[#allocation16_spill] sm:$0xff] %v14306_v37  ;;  %10335 = vmatprep.subr.msk.mxu0 %vm17243_vm3, %v14303_v52  ;;  %v1428_v6 = vmul.f32 0.080537446, %v14300_v45  ;;  %v14320_v50 = vadd.f32 %v2814_v15, %v2796_v58  ;;  %11727 = vrcp.f32 %v3012_v5  ;;  %v799_v38 = vrot.slane %v14274_v62, 7  ;;  %4867 = vperm.xlu1 %11528, %v4857_v1   ;;  %v14368_v54 = vld [vmem:[%s17214_s5 + $0x8] sm:$0xff] }
 0x1d3   : > { %10336 = vmatpush1.msk.msra.mxu0 %vm17243_vm3, %v14306_v37  ;;  %v14328_v39 = vrot.slane %v14274_v62, 6  ;;  %v14348_v42 = vadd.f32 %v10018_v30, %v645_v9  ;;  %vm2139_vm14 = vcmp.gt.f32.partialorder %v14255_v48, 0.41421357  ;;  %v10153_v13 = vadd.f32 -1.0, %v14255_v48  ;;  %4872 = vperm.xlu0 %11527, %v4858_v63   ;;  %v14399_v63 = vld [vmem:[%s17214_s5 + $0x10] sm:$0xff] }
 0x1d4   : > { %10337 = vmatmul.mubr.msk.f32.vlgmr.msra.gmra.mrb[22].mxu0 %vm17242_vm5, %v14336_v34  ;;  %v10072_v51 = vadd.f32 -0.13877685, %v1428_v6  ;;  %11729 = vrsqrt.f32 %v14320_v50  ;;  %v817_v56 = vmul.f32 %v799_v38, %v14342_v41  ;;  %v790_v7 = vmul.f32 %v14324_v12, %v14342_v41  ;;  %vm14374_vm0 = vmand %vm2139_vm14, %vm2148_vm1 }
 0x1d5   : > { %4591 = vmatprep.mubr.f32.mxu0 %v17224_v0  ;;  %v898_v14 = vrot.slane %v14328_v39, 4  ;;  %v1123_v16 = vmul.f32 %v14274_v62, %v14342_v41  ;;  %v889_v3 = vmul.f32 %v14328_v39, %v14342_v41  ;;  %11731 = vrsqrt.f32 %v14348_v42 }
 0x1d6   : > { %v1446_v24 = vmul.f32 %v10072_v51, %v14300_v45  ;;  %v10028_v31 = vrot.slane %v817_v56, 9  ;;  %4877 = vperm.xlu1 %11528, %v4859_v28   ;;  %vm2885_vm7 = vcmp.eq.f32.partialorder %v14320_v50, inf  ;;  %vm2887_vm11 = vcmp.eq.f32.partialorder %v14320_v50, 0.0 }
 0x1d7   : > { %v11724_v32 = vpop.eup %11723  ;;  %v916_v15 = vmul.f32 %v898_v14, %v14342_v41  ;;  %v10046_v17 = vrot.slane %v1123_v16, 9  ;;  %v10055_v30 = vrot.slane %v1123_v16, 10  ;;  %8816 = vperm.xlu0 %11527, %v8810_v23   ;;  %vm734_vm14 = vcmp.eq.f32.partialorder %v14348_v42, inf }
 0x1d8   : > { %v11726_v25 = vpop.eup %11725  ;;  %10338 = vmatmul.mubr.msk.f32.gmra.mrb[24].mxu0 %vm17242_vm5, %v14368_v54  ;;  %v2184_v2 = vsub.f32 0.0, %v11724_v32  ;;  %v862_v58 = vsub.f32 %v790_v7, %v10028_v31  ;;  %v1455_v1 = vadd.f32 0.19977711, %v1446_v24  ;;  %v8812_v7 = vld [vmem:[%s17220_s11 + $0x10] sm:$0xff]  ;;  %v14413_v32 = vld [vmem:[%s11895_s27 + $0x40] sm:$0x7] }
 0x1d9   : > { %v2220_v11 = vmul.f32 %v11726_v25, %v10153_v13  ;;  %4597 = vmatprep.mubr.f32.mxu0 %v17224_v0  ;;  %v934_v9 = vrot.slane %v916_v15, 6  ;;  %v1168_v4 = vadd.f32 %v10046_v17, %v1123_v16  ;;  %v2888_v25 = vand.u32 2147483648, %v14320_v50  ;;  %v8813_v17 = vld [vmem:[%s17220_s11 + $0x18] sm:$0xff] }
 0x1da   : > { %v961_v56 = vmul.f32 %v862_v58, %v862_v58  ;;  %v1699_v31 = vmul.f32 %v799_v38, %v14413_v32  ;;  %8821 = vperm.xlu1 %11528, %v8811_v53   ;;  %v14430_v38 = vld [vmem:[%s17214_s5 + $0x18] sm:$0xff]  ;;  %vm736_vm1 = vcmp.eq.f32.partialorder %v14348_v42, 0.0  ;;  %v17334_v52 = vmov 0.0  }
 0x1db   : > { %v2229_v5 = vsel %vm14374_vm0, %v2220_v11, %v14255_v48  ;;  %v952_v13 = vsub.f32 %v889_v3, %v934_v9  ;;  %v14415_v24 = vadd.f32 %v10055_v30, %v1168_v4  ;;  %v1762_v3 = vmul.f32 %v898_v14, %v14413_v32  ;;  %8826 = vperm.xlu0 %11527, %v8812_v7  }
 0x1dc   : > { %v11728_v6 = vpop.eup %11727  ;;  %v14394_v51 = vsel %vm2130_vm12, %v2184_v2, %v2229_v5  ;;  %10339 = vmatmul.mubr.msk.f32.gmra.mrb[26].mxu0 %vm17242_vm5, %v14399_v63  ;;  %v1464_v30 = vmul.f32 %v1455_v1, %v14300_v45  ;;  %v1033_v58 = vrot.slane %v961_v56, 7  ;;  %v8974_v5 = vld [vmem:[%s17222_s13] sm:$0xff]  ;;  %v1753_v1 = vmul.f32 %v14328_v39, %v14413_v32  ;;  %v8975_v39 = vld [vmem:[%s17222_s13 + $0x8] sm:$0xff] }
 0x1dd   : > { %v14408_v16 = vmul.f32 %v14394_v51, %v14394_v51  ;;  %4603 = vmatprep.mubr.f32.mxu0 %v17224_v0  ;;  %v970_v2 = vmul.f32 %v952_v13, %v952_v13  ;;  %v3039_v11 = vrot.slane %v11728_v6, 7  ;;  %v1213_v9 = vand.u32 2147483647, %v14415_v24 }
 0x1de   : > { %v11730_v28 = vpop.eup %11729  ;;  %v1690_v6 = vmul.f32 %v14324_v12, %v14413_v32  ;;  %8831 = vperm.xlu1 %11528, %v8813_v17   ;;  %v10208_v33 = vrot.slane %v14413_v32, 9 }
 0x1df   : > { %v2274_v15 = vmul.f32 0.080537446, %v14408_v16  ;;  %v2884_v23 = vmul.f32 %v11730_v28, %v14320_v50  ;;  %v10037_v14 = vrot.slane %v970_v2, 9  ;;  %v10118_v28 = vrot.slane %v1699_v31, 9  ;;  %8980 = vperm.xlu0 %11527, %v8974_v5  }
 0x1e0   : > { %10340 = vmatmul.mubr.msk.f32.gmra.mrb[28].mxu0 %vm17242_vm5, %v14430_v38  ;;  %v1780_v2 = vrot.slane %v1762_v3, 6  ;;  %vm1222_vm8 = vcmp.gt.f32.partialorder %v1213_v9, 0.0 }
 0x1e1   : > { %v10162_v4 = vadd.f32 -0.13877685, %v2274_v15  ;;  %v2886_v53 = vsel %vm2885_vm7, %v14320_v50, %v2884_v23  ;;  %10845 = vmatprep.mubr.msk.f32.mxu0 %vm17242_vm5, %v14336_v34  ;;  %v1015_v7 = vadd.f32 %v10037_v14, %v961_v56  ;;  %v14451_v15 = vpop.f32.mrb[0].mxu0  ;;  %v11732_v23 = vpop.eup %11731  ;;  %v10081_v50 = vadd.f32 -0.3333295, %v1464_v30  ;;  %v8976_v56 = vld [vmem:[%s17222_s13 + $0x10] sm:$0xff] }
 0x1e2   : > { %v14449_v13 = vsel %vm2887_vm11, %v2888_v25, %v2886_v53  ;;  %v733_v3 = vmul.f32 %v11732_v23, %v14348_v42  ;;  %v1744_v17 = vsub.f32 %v1690_v6, %v10118_v28  ;;  %v1798_v14 = vsub.f32 %v1753_v1, %v1780_v2  ;;  %8985 = vperm.xlu1 %11528, %v8975_v39   ;;  %v14470_v30 = vpop.f32.mrb[1].mxu0  ;;  %v14477_v53 = vpop.f32.mrb[0].mxu1 }
 0x1e3   : > { %v2292_v0 = vmul.f32 %v10162_v4, %v14408_v16  ;;  %v14455_v12 = vmul.f32 %v3039_v11, %v14449_v13  ;;  %v14460_v25 = vadd.f32 %v1033_v58, %v1015_v7  ;;  %v1231_v4 = vsel %vm1222_vm8, %v1213_v9, 1.0  ;;  %8990 = vperm.xlu0 %11527, %v8976_v56   ;;  %17332 = vst [vmem:[#allocation17_spill] sm:$0xff] %v14477_v53  ;;  %v14479_v7 = vpop.f32.mrb[2].mxu0  ;;  %v14484_v1 = vpop.f32.mrb[1].mxu1 }
 0x1e4   : > { %v1482_v6 = vmul.f32 %v10081_v50, %v14300_v45  ;;  %17333 = vst [vmem:[#allocation18_spill] sm:$0xff] %v14484_v1  ;;  %v14486_v28 = vpop.f32.mrb[2].mxu1  ;;  %v737_v9 = vand.u32 2147483648, %v14348_v42  ;;  %v1807_v2 = vmul.f32 %v1744_v17, %v1744_v17  ;;  %v14490_v23 = vpop.f32.mrb[3].mxu0  ;;  %v735_v45 = vsel %vm734_vm14, %v14348_v42, %v733_v3 }
 0x1e5   : > { %v2301_v31 = vadd.f32 0.19977711, %v2292_v0  ;;  %vm3066_vm13 = vcmp.gt.f32.partialorder %v14455_v12, 2.4142137  ;;  %v3138_v5 = vadd.f32 1.0, %v14455_v12  ;;  %v8977_v0 = vld [vmem:[%s17222_s13 + $0x18] sm:$0xff]  ;;  %v1816_v56 = vmul.f32 %v1798_v14, %v1798_v14 }
 0x1e6   : > { %v3102_v11 = vsel %vm3066_vm13, %v14455_v12, 1.0  ;;  %8995 = vperm.xlu1 %11528, %v8977_v0   ;;  %v14492_v39 = vpop.f32.mrb[3].mxu1  ;;  %v1491_v60 = vmul.f32 %v1482_v6, %v14294_v57  ;;  %vm1545_vm7 = vcmp.gt.f32.partialorder %v14182_v19, 0.0  ;;  %v1879_v37 = vrot.slane %v1807_v2, 7 }
 0x1e7   : > { %v2310_v58 = vmul.f32 %v2301_v31, %v14408_v16  ;;  %11733 = vrcp.f32 %v3102_v11  ;;  %v1969_v31 = vmul.f32 %v14274_v62, %v14413_v32  ;;  %v14497_v11 = vpop.f32.mrb[4].mxu0  ;;  %v10127_v0 = vrot.slane %v1816_v56, 9 }
 0x1e8   : > { %11735 = vrsqrt.f32 %v14460_v25  ;;  %v14503_v17 = vpop.f32.mrb[5].mxu0  ;;  %v14513_v26 = vsel %vm736_vm1, %v737_v9, %v735_v45  ;;  %v1401_v19 = vsel %vm14265_vm4, 0.7853982, %v17334_v52  ;;  %v14523_v56 = vsel %vm1545_vm7, 1.5707964, %v17334_v52  ;;  %vm14535_vm4 = vmxor %vm3066_vm13, %vm11784_vm15 }
 0x1e9   : > { %11737 = vrcp.f32 %v3138_v5  ;;  %v10171_v50 = vadd.f32 -0.3333295, %v2310_v58  ;;  %v14499_v5 = vpop.f32.mrb[4].mxu1  ;;  %v10136_v3 = vrot.slane %v1969_v31, 9  ;;  %v10145_v58 = vrot.slane %v1969_v31, 10  ;;  %v14509_v36 = vpop.f32.mrb[6].mxu0 }
 0x1ea   : > { %11739 = vrcp.f32 %v1231_v4  ;;  %v14505_v4 = vpop.f32.mrb[5].mxu1  ;;  %v14520_v40 = vpop.f32.mrb[7].mxu0  ;;  %v1861_v35 = vadd.f32 %v10127_v0, %v1807_v2  ;;  %v1500_v9 = vadd.f32 %v1491_v60, %v14294_v57  ;;  %vm3075_vm11 = vcmp.gt.f32.partialorder %v14455_v12, 0.41421357 }
 0x1eb   : > { %v14507_v14 = vpop.f32.mrb[6].mxu1  ;;  %v2328_v18 = vmul.f32 %v10171_v50, %v14408_v16  ;;  %v2014_v20 = vadd.f32 %v10136_v3, %v1969_v31  ;;  %v14528_v42 = vpop.f32.mrb[8].mxu0  ;;  %v10252_v45 = vadd.f32 -1.0, %v14455_v12  ;;  %v2581_v16 = vrot.slane %v14413_v32, 7 }
 0x1ec   : > { %v14518_v6 = vpop.f32.mrb[7].mxu1  ;;  %17336 = vst [vmem:[#allocation20_spill] sm:$0xff] %v14528_v42  ;;  %v14543_v50 = vpop.f32.mrb[9].mxu0  ;;  %v1410_v60 = vsel %vm1284_vm10, 1.5707964, %v1401_v19  ;;  %v14547_v57 = vadd.f32 %v1879_v37, %v1861_v35  ;;  %v2653_v3 = vrot.slane %v14413_v32, 6  ;;  %vm14565_vm10 = vmand %vm3075_vm11, %vm14535_vm4 }
 0x1ed   : > { %v14526_v10 = vpop.f32.mrb[8].mxu1  ;;  %17340 = vst [vmem:[#allocation22_spill] sm:$0xff] %v14543_v50  ;;  %v14549_v0 = vadd.f32 %v10145_v58, %v2014_v20  ;;  %v14552_v29 = vpop.f32.mrb[10].mxu0  ;;  %vm1110_vm8 = vcmp.eq.f32.partialorder %v14460_v25, inf  ;;  %vm1112_vm14 = vcmp.eq.f32.partialorder %v14460_v25, 0.0  ;;  %v1113_v27 = vand.u32 2147483648, %v14460_v25 }
 0x1ee   : > { %17335 = vst [vmem:[#allocation19_spill] sm:$0xff] %v14526_v10  ;;  %v14541_v2 = vpop.f32.mrb[9].mxu1  ;;  %17341 = vst [vmem:[#allocation23_spill] sm:$0xff] %v14552_v29  ;;  %v14558_v22 = vpop.f32.mrb[11].mxu0  ;;  %v2337_v35 = vmul.f32 %v2328_v18, %v14394_v51  ;;  %11741 = vrsqrt.f32 %v14547_v57  ;;  %v2247_v18 = vsel %vm14374_vm0, 0.7853982, %v17334_v52  ;;  %v2599_v50 = vmul.f32 %v2581_v16, %v14342_v41 }
 0x1ef   : > { %17339 = vst [vmem:[#allocation21_spill] sm:$0xff] %v14541_v2  ;;  %17342 = vst [vmem:[#allocation24_spill] sm:$0xff] %v14558_v22  ;;  %v14571_v19 = vpop.f32.mrb[12].mxu0  ;;  %v14573_v22 = vadd.f32 %v1500_v9, %v1410_v60  ;;  %v2059_v42 = vand.u32 2147483647, %v14549_v0  ;;  %v10099_v9 = vrot.slane %v14523_v56, 9  ;;  %v2905_v16 = vmul.f32 %v14413_v32, %v14342_v41 }
 0x1f0   : > { %17345 = vst [vmem:[#allocation25_spill] sm:$0xff] %v14571_v19  ;;  %v14579_v2 = vpop.f32.mrb[13].mxu0  ;;  %v2680_v19 = vrot.slane %v2653_v3, 4  ;;  %v2346_v60 = vadd.f32 %v2337_v35, %v14394_v51  ;;  %vm2391_vm0 = vcmp.gt.f32.partialorder %v14236_v8, 0.0  ;;  %v2572_v51 = vmul.f32 %v10208_v33, %v14342_v41 }
 0x1f1   : > { %v11734_v31 = vpop.eup %11733  ;;  %17346 = vst [vmem:[#allocation26_spill] sm:$0xff] %v14579_v2  ;;  %vm14613_vm7 = vcmp.gt.f32.partialorder %v2059_v42, 0.0  ;;  %v10217_v35 = vrot.slane %v2599_v50, 9  ;;  %v14631_v50 = vsel %vm2391_vm0, 1.5707964, %v17334_v52  ;;  %v10244_v10 = vrot.slane %v2905_v16, 10 }
 0x1f2   : > { %v11736_v21 = vpop.eup %11735  ;;  %v3120_v37 = vsub.f32 0.0, %v11734_v31  ;;  %v2077_v2 = vsel %vm14613_vm7, %v2059_v42, 1.0  ;;  %vm1527_vm11 = vcmp.lt.f32.partialorder %v14084_v46, 0.0  ;;  %vm2373_vm4 = vcmp.lt.f32.partialorder %v14155_v55, 0.0 }
 0x1f3   : > { %v11738_v59 = vpop.eup %11737  ;;  %v1109_v58 = vmul.f32 %v11736_v21, %v14460_v25  ;;  %vm1958_vm0 = vcmp.eq.f32.partialorder %v14547_v57, 0.0  ;;  %vm3327_vm3 = vcmp.gt.f32.partialorder %v14449_v13, 0.0 }
 0x1f4   : > { %v11740_v29 = vpop.eup %11739  ;;  %v3156_v43 = vmul.f32 %v11738_v59, %v10252_v45  ;;  %v1536_v59 = vsub.f32 3.1415927, %v14573_v22 }
 0x1f5   : > { %v1111_v21 = vsel %vm1110_vm8, %v14460_v25, %v1109_v58  ;;  %v1258_v31 = vrot.slane %v11740_v29, 7  ;;  %vm2364_vm8 = vcmp.gt.f32.partialorder %v14155_v55, 0.0 }
 0x1f6   : > { %v3165_v61 = vsel %vm14565_vm10, %v3156_v43, %v14455_v12  ;;  %v14591_v45 = vsel %vm1112_vm14, %v1113_v27, %v1111_v21  ;;  %v2256_v27 = vsel %vm2130_vm12, 1.5707964, %v2247_v18  ;;  %v10235_v43 = vrot.slane %v2905_v16, 9 }
 0x1f7   : > { %v14599_v29 = vsel %vm3066_vm13, %v3120_v37, %v3165_v61  ;;  %v14602_v56 = vmul.f32 %v1258_v31, %v14591_v45  ;;  %v2698_v37 = vmul.f32 %v2680_v19, %v14342_v41  ;;  %vm1518_vm12 = vcmp.gt.f32.partialorder %v14084_v46, 0.0 }
 0x1f8   : > { %v14609_v25 = vmul.f32 %v14599_v29, %v14599_v29  ;;  %v14626_v33 = vadd.f32 %v2346_v60, %v2256_v27  ;;  %v2671_v19 = vmul.f32 %v2653_v3, %v14342_v41  ;;  %v11742_v1 = vpop.eup %11741  ;;  %v10090_v53 = vrot.slane %v1536_v59, 9 }
 0x1f9   : > { %vm1285_vm1 = vcmp.gt.f32.partialorder %v14602_v56, 2.4142137  ;;  %v1357_v18 = vadd.f32 1.0, %v14602_v56  ;;  %v14623_v21 = vpop.f32.mrb[10].mxu1  ;;  %v2644_v60 = vsub.f32 %v2572_v51, %v10217_v35  ;;  %v2716_v27 = vrot.slane %v2698_v37, 6 }
 0x1fa   : > { %v3210_v58 = vmul.f32 0.080537446, %v14609_v25  ;;  %v1321_v48 = vsel %vm1285_vm1, %v14602_v56, 1.0  ;;  %v14634_v31 = vpop.f32.mrb[11].mxu1  ;;  %v2950_v41 = vadd.f32 %v10235_v43, %v2905_v16  ;;  %v1955_v35 = vmul.f32 %v11742_v1, %v14547_v57 }
 0x1fb   : > { %11743 = vrcp.f32 %v1321_v48  ;;  %v2734_v32 = vsub.f32 %v2671_v19, %v2716_v27  ;;  %v2743_v48 = vmul.f32 %v2644_v60, %v2644_v60  ;;  %v1635_v16 = vsel %vm1527_vm11, %v10090_v53, %v10099_v9  ;;  %vm14665_vm11 = vmxor %vm1285_vm1, %vm11784_vm15 }
 0x1fc   : > { %v10261_v61 = vadd.f32 -0.13877685, %v3210_v58  ;;  %11745 = vrcp.f32 %v1357_v18  ;;  %v10189_v58 = vrot.slane %v14631_v50, 9  ;;  %v14651_v37 = vadd.f32 %v10244_v10, %v2950_v41 }
 0x1fd   : > { %11747 = vrcp.f32 %v2077_v2  ;;  %v14641_v3 = vpop.f32.mrb[12].mxu1  ;;  %v2382_v2 = vsub.f32 3.1415927, %v14626_v33  ;;  %v10108_v18 = vrot.slane %v14573_v22, 9  ;;  %vm1956_vm14 = vcmp.eq.f32.partialorder %v14547_v57, inf }
 0x1fe   : > { %v3228_v8 = vmul.f32 %v10261_v61, %v14609_v25  ;;  %v14646_v59 = vpop.f32.mrb[13].mxu1  ;;  %v2752_v43 = vmul.f32 %v2734_v32, %v2734_v32  ;;  %v1959_v19 = vand.u32 2147483648, %v14547_v57  ;;  %v2995_v61 = vand.u32 2147483647, %v14651_v37 }
 0x1ff   : > { %17349 = vst [vmem:[#allocation27_spill] sm:$0xff] %v14646_v59  ;;  %vm1294_vm7 = vcmp.gt.f32.partialorder %v14602_v56, 0.41421357  ;;  %v10064_v10 = vadd.f32 -1.0, %v14602_v56  ;;  %v2815_v1 = vrot.slane %v2743_v48, 7  ;;  %v10180_v27 = vrot.slane %v2382_v2, 9 }
 0x200   : > { %v3237_v51 = vadd.f32 0.19977711, %v3228_v8  ;;  %v10226_v53 = vrot.slane %v2752_v43, 9  ;;  %v1957_v41 = vsel %vm1956_vm14, %v14547_v57, %v1955_v35  ;;  %vm3004_vm5 = vcmp.gt.f32.partialorder %v2995_v61, 0.0  ;;  %vm14685_vm14 = vmand %vm1294_vm7, %vm14665_vm11 }
 0x201   : > { %v14659_v60 = vpop.f32.mrb[14].mxu1  ;;  %v1680_v43 = vsel %vm1518_vm12, %v10108_v18, %v1635_v16  ;;  %v14693_v46 = vsel %vm1958_vm0, %v1959_v19, %v1957_v41  ;;  %v2481_v16 = vsel %vm2373_vm4, %v10180_v27, %v10189_v58  ;;  %v3336_v22 = vsel %vm3327_vm3, 1.5707964, %v17334_v52 }
 0x202   : > { %v3246_v50 = vmul.f32 %v3237_v51, %v14609_v25  ;;  %17350 = vst [vmem:[#allocation28_spill] sm:$0xff] %v14659_v60  ;;  %v14670_v9 = vpop.f32.mrb[15].mxu1  ;;  %v3183_v51 = vsel %vm14565_vm10, 0.7853982, %v17334_v52  ;;  %v2797_v42 = vadd.f32 %v10226_v53, %v2743_v48  ;;  %v3013_v60 = vsel %vm3004_vm5, %v2995_v61, 1.0 }
 0x203   : > { %17353 = vst [vmem:[#allocation29_spill] sm:$0xff] %v14670_v9  ;;  %v10198_v9 = vrot.slane %v14626_v33, 9  ;;  %11749 = vrcp.f32 %v3013_v60  ;;  %v3630_v57 = vrot.slane %v1680_v43, %v11952_v44  ;;  %v3532_v60 = vrot.slane %v14513_v26, %v11959_v47 }
 0x204   : > { %v10270_v8 = vadd.f32 -0.3333295, %v3246_v50  ;;  %v2833_v33 = vadd.f32 %v2815_v1, %v2797_v42  ;;  %vm3309_vm3 = vcmp.lt.f32.partialorder %v14258_v49, 0.0  ;;  %v10288_v27 = vrot.slane %v3336_v22, 9 }
 0x205   : > { %v11744_v32 = vpop.eup %11743  ;;  %v14689_v50 = vpop.f32.mrb[16].mxu1  ;;  %v2526_v12 = vsel %vm2364_vm8, %v10198_v9, %v2481_v16  ;;  %vm17357_vm0 = vcmask 1043456   ;;  %vm17359_vm11 = vcmask 31744  }
 0x206   : > { %v11746_v59 = vpop.eup %11745  ;;  %v3264_v2 = vmul.f32 %v10270_v8, %v14609_v25  ;;  %v1339_v20 = vsub.f32 0.0, %v11744_v32  ;;  %v14695_v25 = vpop.f32.mrb[17].mxu1  ;;  %11751 = vrsqrt.f32 %v2833_v33  ;;  %v17356_v8 = vrot.slane %v14513_v26, %v11952_v44  ;;  %vm17358_vm7 = vmmov %vm17357_vm0 }
 0x207   : > { %v11748_v48 = vpop.eup %11747  ;;  %v1375_v61 = vmul.f32 %v11746_v59, %v10064_v10  ;;  %v3192_v59 = vsel %vm3066_vm13, 1.5707964, %v3183_v51  ;;  %v3626_v10 = vrot.slane %v1680_v43, %v11959_v47  ;;  %v3720_v43 = vrot.slane %v2526_v12, %v11959_v47 }
 0x208   : > { %v3273_v18 = vmul.f32 %v3264_v2, %v14599_v29  ;;  %v2104_v53 = vrot.slane %v11748_v48, 7  ;;  %v3856_v55 = vsel %vm3840_vm6, %v17356_v8, %v3630_v57  ;;  %v3724_v2 = vrot.slane %v2526_v12, %v11952_v44 }
 0x209   : > { %v1384_v42 = vsel %vm14685_vm14, %v1375_v61, %v14602_v56  ;;  %v3855_v48 = vsel %vm3840_vm6, %v3532_v60, %v3626_v10  ;;  %vm3300_vm13 = vcmp.gt.f32.partialorder %v14258_v49, 0.0  ;;  %vm2892_vm10 = vcmp.eq.f32.partialorder %v2833_v33, inf }
 0x20a   : > { %v3282_v19 = vadd.f32 %v3273_v18, %v14599_v29  ;;  %v14712_v58 = vsel %vm1285_vm1, %v1339_v20, %v1384_v42  ;;  %v14715_v13 = vmul.f32 %v2104_v53, %v14693_v46  ;;  %v3874_v22 = vsel %vm3858_vm9, %v3856_v55, %v3724_v2 }
 0x20b   : > { %v14724_v1 = vmul.f32 %v14712_v58, %v14712_v58  ;;  %v3873_v53 = vsel %vm3858_vm9, %v3855_v48, %v3720_v43  ;;  %vm2894_vm12 = vcmp.eq.f32.partialorder %v2833_v33, 0.0 }
 0x20c   : > { %v3291_v29 = vadd.f32 %v3282_v19, %v3192_v59  ;;  %vm2131_vm5 = vcmp.gt.f32.partialorder %v14715_v13, 2.4142137  ;;  %v2203_v32 = vadd.f32 1.0, %v14715_v13  ;;  %v2895_v19 = vand.u32 2147483648, %v2833_v33 }
 0x20d   : > { %v1429_v9 = vmul.f32 0.080537446, %v14724_v1  ;;  %v2167_v41 = vsel %vm2131_vm5, %v14715_v13, 1.0  ;;  %v11750_v16 = vpop.eup %11749  ;;  %vm2140_vm4 = vcmp.gt.f32.partialorder %v14715_v13, 0.41421357  ;;  %v10154_v49 = vadd.f32 -1.0, %v14715_v13  ;;  %vm2149_vm8 = vmxor %vm2131_vm5, %vm11784_vm15 }
 0x20e   : > { %v3318_v51 = vsub.f32 3.1415927, %v3291_v29  ;;  %11753 = vrcp.f32 %v2167_v41  ;;  %v10297_v20 = vrot.slane %v3291_v29, 9  ;;  %v3040_v29 = vrot.slane %v11750_v16, 7 }
 0x20f   : > { %v10073_v26 = vadd.f32 -0.13877685, %v1429_v9  ;;  %11755 = vrcp.f32 %v2203_v32 }
 0x210   : > { %v10279_v61 = vrot.slane %v3318_v51, 9  ;;  %v11752_v57 = vpop.eup %11751  ;;  %v601_v51 = vmul.f32 %v14274_v62, %v14274_v62 }
 0x211   : > { %v1447_v59 = vmul.f32 %v10073_v26, %v14724_v1  ;;  %v2891_v10 = vmul.f32 %v11752_v57, %v2833_v33 }
 0x212   : > { %v3417_v18 = vsel %vm3309_vm3, %v10279_v61, %v10288_v27  ;;  %vm14774_vm3 = vmand %vm2140_vm4, %vm2149_vm8  ;;  %v10010_v61 = vrot.slane %v601_v51, 9  ;;  %v10019_v57 = vrot.slane %v601_v51, 10 }
 0x213   : > { %v3462_v42 = vsel %vm3300_vm13, %v10297_v20, %v3417_v18  ;;  %v1456_v55 = vadd.f32 0.19977711, %v1447_v59  ;;  %v2893_v9 = vsel %vm2892_vm10, %v2833_v33, %v2891_v10  ;;  %vm17362_vm10 = vmmov %vm17359_vm11  ;;  %v2248_v35 = vsel %vm14774_vm3, 0.7853982, %v17334_v52 }
 0x214   : > { %v3814_v12 = vrot.slane %v3462_v42, %v11959_v47  ;;  %v3818_v60 = vrot.slane %v3462_v42, %v11952_v44  ;;  %v14761_v41 = vsel %vm2894_vm12, %v2895_v19, %v2893_v9  ;;  %v646_v59 = vadd.f32 %v10010_v61, %v601_v51  ;;  %vm17363_vm12 = vmmov %vm17362_vm10 }
 0x215   : > { %v14768_v43 = vmul.f32 %v3040_v29, %v14761_v41  ;;  %v1465_v48 = vmul.f32 %v1456_v55, %v14724_v1 }
 0x216   : > { %v14751_v27 = vsel %vm3876_vm2, %v3874_v22, %v3818_v60  ;;  %v14754_v8 = vsel %vm3876_vm2, %v3873_v53, %v3814_v12  ;;  %v14797_v60 = vadd.f32 %v10019_v57, %v646_v59 }
 0x217   : > { %10341 = vmatprep.subr.msk.mxu1 %vm17357_vm0, %v14751_v27  ;;  %vm3067_vm13 = vcmp.gt.f32.partialorder %v14768_v43, 2.4142137  ;;  %v10082_v22 = vadd.f32 -0.3333295, %v1465_v48  ;;  %vm3076_vm4 = vcmp.gt.f32.partialorder %v14768_v43, 0.41421357  ;;  %vm17364_vm0 = vmmov %vm17362_vm10 }
 0x218   : > { %v11754_v32 = vpop.eup %11753  ;;  %10342 = vmatpush1.msk.msra.mxu1 %vm17358_vm7, %v14754_v8  ;;  %v3103_v62 = vsel %vm3067_vm13, %v14768_v43, 1.0  ;;  %vm3085_vm8 = vmxor %vm3067_vm13, %vm11784_vm15  ;;  %v10253_v29 = vadd.f32 -1.0, %v14768_v43  ;;  %vm1546_vm15 = vcmp.gt.f32.partialorder %v14591_v45, 0.0 }
 0x219   : > { %v11756_v2 = vpop.eup %11755  ;;  %10343 = vmatmul.mubr.msk.f32.vlgmr.msra.gmra.mrb[26].mxu1 %vm17359_vm11, %v14336_v34  ;;  %v2185_v20 = vsub.f32 0.0, %v11754_v32  ;;  %v3139_v34 = vadd.f32 1.0, %v14768_v43  ;;  %11757 = vrcp.f32 %v3103_v62  ;;  %v1483_v19 = vmul.f32 %v10082_v22, %v14724_v1  ;;  %vm14808_vm7 = vmand %vm3076_vm4, %vm3085_vm8 }
 0x21a   : > { %4680 = vmatprep.mubr.f32.mxu1 %v17334_v52  ;;  %v2221_v26 = vmul.f32 %v11756_v2, %v10154_v49  ;;  %v1402_v2 = vsel %vm14685_vm14, 0.7853982, %v17334_v52  ;;  %vm741_vm14 = vcmp.eq.f32.partialorder %v14797_v60, inf  ;;  %vm743_vm11 = vcmp.eq.f32.partialorder %v14797_v60, 0.0 }
 0x21b   : > { %11759 = vrcp.f32 %v3139_v34  ;;  %v1492_v1 = vmul.f32 %v1483_v19, %v14712_v58  ;;  %v1411_v61 = vsel %vm1285_vm1, 1.5707964, %v1402_v2  ;;  %v2257_v19 = vsel %vm2131_vm5, 1.5707964, %v2248_v35 }
 0x21c   : > { %v2230_v16 = vsel %vm14774_vm3, %v2221_v26, %v14715_v13  ;;  %11761 = vrsqrt.f32 %v14797_v60  ;;  %vm2392_vm1 = vcmp.gt.f32.partialorder %v14693_v46, 0.0  ;;  %v744_v2 = vand.u32 2147483648, %v14797_v60 }
 0x21d   : > { %10344 = vmatmul.mubr.msk.f32.gmra.mrb[28].mxu1 %vm17362_vm10, %v14368_v54  ;;  %v2239_v18 = vsel %vm2131_vm5, %v2185_v20, %v2230_v16  ;;  %v1501_v26 = vadd.f32 %v1492_v1, %v14712_v58  ;;  %v2401_v45 = vsel %vm2392_vm1, 1.5707964, %v17334_v52  ;;  %vm1528_vm5 = vcmp.lt.f32.partialorder %v14415_v24, 0.0 }
 0x21e   : > { %v2266_v53 = vmul.f32 %v2239_v18, %v2239_v18  ;;  %4686 = vmatprep.mubr.f32.mxu1 %v17334_v52  ;;  %vm1519_vm3 = vcmp.gt.f32.partialorder %v14415_v24, 0.0  ;;  %vm2374_vm10 = vcmp.lt.f32.partialorder %v14549_v0, 0.0  ;;  %v3184_v35 = vsel %vm14808_vm7, 0.7853982, %v17334_v52 }
 0x21f   : > { %v1510_v57 = vadd.f32 %v1501_v26, %v1411_v61  ;;  %vm2365_vm4 = vcmp.gt.f32.partialorder %v14549_v0, 0.0  ;;  %vm3301_vm8 = vcmp.gt.f32.partialorder %v14651_v37, 0.0 }
 0x220   : > { %v2275_v42 = vmul.f32 0.080537446, %v2266_v53 }
 0x221   : > { %10345 = vmatmul.mubr.msk.f32.gmra.mrb[30].mxu1 %vm17363_vm12, %v14399_v63  ;;  %vm3328_vm12 = vcmp.gt.f32.partialorder %v14761_v41, 0.0 }
 0x222   : > { %v10163_v12 = vadd.f32 -0.13877685, %v2275_v42  ;;  %4692 = vmatprep.mubr.f32.mxu1 %v17334_v52 }
 0x223   : > { %v11758_v49 = vpop.eup %11757 }
 0x224   : > { %v2293_v10 = vmul.f32 %v10163_v12, %v2266_v53  ;;  %v3121_v51 = vsub.f32 0.0, %v11758_v49 }
 0x225   : > { %10346 = vmatmul.mubr.msk.f32.gmra.mrb[32].mxu1 %vm17364_vm0, %v14430_v38  ;;  %v11760_v9 = vpop.eup %11759 }
 0x226   : > { %v2302_v55 = vadd.f32 0.19977711, %v2293_v10  ;;  %4957 = vmatprep.mubr.f32.mxu1 %v17334_v52  ;;  %v3157_v48 = vmul.f32 %v11760_v9, %v10253_v29  ;;  %v11762_v10 = vpop.eup %11761  ;;  %v1537_v29 = vsub.f32 3.1415927, %v1510_v57 }
 0x228   : > { %v2311_v20 = vmul.f32 %v2302_v55, %v2266_v53  ;;  %v3166_v34 = vsel %vm14808_vm7, %v3157_v48, %v14768_v43  ;;  %v1555_v55 = vsel %vm1546_vm15, 1.5707964, %v17334_v52  ;;  %v10091_v13 = vrot.slane %v1537_v29, 9  ;;  %vm17370_vm7 = vmmov %vm17364_vm0 }
 0x229   : > { %v3175_v16 = vsel %vm3067_vm13, %v3121_v51, %v3166_v34  ;;  %v10100_v51 = vrot.slane %v1555_v55, 9  ;;  %v10109_v48 = vrot.slane %v1510_v57, 9  ;;  %vm17244_vm15 = vcmask 261120  }
 0x22a   : > { %v10172_v62 = vadd.f32 -0.3333295, %v2311_v20  ;;  %v3202_v59 = vmul.f32 %v3175_v16, %v3175_v16 }
 0x22b   : > { %v1636_v61 = vsel %vm1528_vm5, %v10091_v13, %v10100_v51 }
 0x22c   : > { %v2329_v22 = vmul.f32 %v10172_v62, %v2266_v53  ;;  %v3211_v58 = vmul.f32 0.080537446, %v3202_v59  ;;  %v740_v53 = vmul.f32 %v11762_v10, %v14797_v60  ;;  %v10190_v62 = vrot.slane %v2401_v45, 9 }
 0x22e   : > { %v2338_v42 = vmul.f32 %v2329_v22, %v2239_v18  ;;  %v10262_v56 = vadd.f32 -0.13877685, %v3211_v58  ;;  %v742_v20 = vsel %vm741_vm14, %v14797_v60, %v740_v53  ;;  %v1681_v60 = vsel %vm1519_vm3, %v10109_v48, %v1636_v61 }
 0x22f   : > { %v745_v58 = vsel %vm743_vm11, %v744_v2, %v742_v20  ;;  %v3634_v24 = vrot.slane %v1681_v60, %v11959_v47 }
 0x230   : > { %v2347_v12 = vadd.f32 %v2338_v42, %v2239_v18  ;;  %v3229_v1 = vmul.f32 %v10262_v56, %v3202_v59  ;;  %v3193_v56 = vsel %vm3067_vm13, 1.5707964, %v3184_v35  ;;  %v3540_v41 = vrot.slane %v745_v58, %v11959_v47 }
 0x231   : > { %vm3310_vm13 = vcmp.lt.f32.partialorder %v14651_v37, 0.0 }
 0x232   : > { %v2356_v49 = vadd.f32 %v2347_v12, %v2257_v19  ;;  %v3238_v33 = vadd.f32 0.19977711, %v3229_v1  ;;  %v3857_v13 = vsel %vm3840_vm6, %v3540_v41, %v3634_v24  ;;  %vm17367_vm6 = vcmask 1043456  }
 0x234   : > { %v2383_v9 = vsub.f32 3.1415927, %v2356_v49  ;;  %v3247_v18 = vmul.f32 %v3238_v33, %v3202_v59  ;;  %v10199_v19 = vrot.slane %v2356_v49, 9 }
 0x236   : > { %v10271_v46 = vadd.f32 -0.3333295, %v3247_v18  ;;  %v10181_v26 = vrot.slane %v2383_v9, 9 }
 0x238   : > { %v3265_v22 = vmul.f32 %v10271_v46, %v3202_v59  ;;  %v2482_v57 = vsel %vm2374_vm10, %v10181_v26, %v10190_v62  ;;  %v3337_v59 = vsel %vm3328_vm12, 1.5707964, %v17334_v52 }
 0x239   : > { %v4409_v34 = vpop.f32.mrb[14].mxu0  ;;  %v2527_v49 = vsel %vm2365_vm4, %v10199_v19, %v2482_v57  ;;  %v10289_v33 = vrot.slane %v3337_v59, 9 }
 0x23a   : > { %v4411_v42 = vpop.f32.mrb[15].mxu0  ;;  %v3274_v12 = vmul.f32 %v3265_v22, %v3175_v16 }
 0x23c   : > { %v3283_v32 = vadd.f32 %v3274_v12, %v3175_v16  ;;  %v3728_v16 = vrot.slane %v2527_v49, %v11959_v47 }
 0x23d   : > { %v14850_v10 = vpop.f32.mrb[16].mxu0 }
 0x23e   : > { %v14852_v29 = vpop.f32.mrb[17].mxu0  ;;  %v3292_v1 = vadd.f32 %v3283_v32, %v3193_v56  ;;  %v3875_v20 = vsel %vm3858_vm9, %v3857_v13, %v3728_v16  ;;  %vm17368_vm9 = vmmov %vm17367_vm6  ;;  %v17372_v16 = vld [vmem:[#allocation18_spill] sm:$0xff] }
 0x240   : > { %v3319_v0 = vsub.f32 3.1415927, %v3292_v1  ;;  %v10298_v43 = vrot.slane %v3292_v1, 9 }
 0x241   : > { %v14857_v55 = vpop.f32.mrb[18].mxu0 }
 0x242   : > { %v14859_v53 = vpop.f32.mrb[19].mxu0  ;;  %v10280_v9 = vrot.slane %v3319_v0, 9 }
 0x244   : > { %v3418_v45 = vsel %vm3310_vm13, %v10280_v9, %v10289_v33 }
 0x245   : > { %v14865_v51 = vpop.f32.mrb[20].mxu0  ;;  %v3463_v46 = vsel %vm3301_vm8, %v10298_v43, %v3418_v45 }
 0x246   : > { %v14867_v18 = vpop.permute.xlu0 %3904  ;;  %v14869_v2 = vpop.f32.mrb[21].mxu0  ;;  %v3822_v37 = vrot.slane %v3463_v46, %v11959_v47 }
 0x247   : > { %v4054_v48 = vadd.f32 %v14451_v15, %v14867_v18  ;;  %v4056_v26 = vadd.f32 %v14470_v30, %v14867_v18  ;;  %v4143_v62 = vadd.f32 %v14486_v28, %v14867_v18  ;;  %v4145_v61 = vadd.f32 %v14492_v39, %v14867_v18 }
 0x248   : > { %v14883_v35 = vadd.f32 %v14509_v36, %v14867_v18  ;;  %v14887_v22 = vadd.f32 %v14520_v40, %v14867_v18  ;;  %v14891_v15 = vadd.f32 %v14623_v21, %v14867_v18  ;;  %v14894_v30 = vsel %vm3876_vm2, %v3875_v20, %v3822_v37  ;;  %vm17369_vm2 = vmmov %vm17364_vm0 }
 0x249   : > { %v14898_v28 = vadd.f32 %v14634_v31, %v14867_v18  ;;  %10843 = vmatprep.subr.msk.mxu0 %vm17367_vm6, %v14894_v30  ;;  %v4784_v36 = vmax.f32 %v4054_v48, 0.0  ;;  %v14903_v39 = vadd.f32 %v4409_v34, %v14867_v18  ;;  %v4785_v40 = vmax.f32 %v4056_v26, 0.0  ;;  %v14910_v31 = vpop.permute.xlu1 %3914  ;;  %v17374_v48 = vld [vmem:[#allocation20_spill] sm:$0xff] }
 0x24a   : > { %10844 = vmatpush3.msk.msra.mxu0 %vm17368_vm9, %v14894_v30  ;;  %v4786_v21 = vmax.f32 %v4143_v62, 0.0  ;;  %v4787_v58 = vmax.f32 %v4145_v61, 0.0  ;;  %v4788_v19 = vmax.f32 %v14883_v35, 0.0  ;;  %v14912_v12 = vpop.permute.xlu0 %3909  ;;  %v4789_v60 = vmax.f32 %v14887_v22, 0.0  ;;  %v17375_v61 = vld [vmem:[#allocation21_spill] sm:$0xff]  ;;  %v17376_v22 = vld [vmem:[#allocation22_spill] sm:$0xff] }
 0x24b   : > { %10846 = vmatmul.mubr.msk.f32.vlgmr.msra.gmra.mrb[30].mxu0 %vm17369_vm2, %v14368_v54  ;;  %v4790_v34 = vmax.f32 %v14891_v15, 0.0  ;;  %v4791_v57 = vmax.f32 %v14898_v28, 0.0  ;;  %v14918_v56 = vadd.f32 %v4411_v42, %v14867_v18  ;;  %v4060_v32 = vadd.f32 %v14479_v7, %v14912_v12 }
 0x24c   : > { %10848 = vmatprep.mubr.msk.f32.mxu0 %vm17364_vm0, %v14399_v63  ;;  %v4062_v54 = vadd.f32 %v14490_v23, %v14912_v12  ;;  %v4066_v59 = vadd.f32 %v14497_v11, %v14910_v31  ;;  %v4149_v49 = vadd.f32 %v14499_v5, %v14912_v12  ;;  %v4068_v1 = vadd.f32 %v14503_v17, %v14910_v31 }
 0x24d   : > { %v4151_v42 = vadd.f32 %v14505_v4, %v14912_v12  ;;  %v4155_v63 = vadd.f32 %v14507_v14, %v14910_v31  ;;  %v4792_v7 = vmax.f32 %v14903_v39, 0.0  ;;  %v4801_v41 = vmax.f32 %v4060_v32, 0.0  ;;  %v14941_v5 = vpop.permute.xlu1 %3919  ;;  %v17371_v14 = vld [vmem:[#allocation17_spill] sm:$0xff] }
 0x24e   : > { %v4802_v24 = vmax.f32 %v4062_v54, 0.0  ;;  %v4803_v23 = vmax.f32 %v4149_v49, 0.0  ;;  %v4157_v11 = vadd.f32 %v14518_v6, %v14910_v31  ;;  %v4818_v17 = vmax.f32 %v4066_v59, 0.0 }
 0x24f   : > { %10849 = vmatmul.mubr.msk.f32.gmra.mrb[32].mxu0 %vm17370_vm7, %v14430_v38  ;;  %v4819_v0 = vmax.f32 %v4068_v1, 0.0  ;;  %v4804_v33 = vmax.f32 %v4151_v42, 0.0  ;;  %v4820_v4 = vmax.f32 %v4155_v63, 0.0  ;;  %v4072_v43 = vadd.f32 %v17371_v14, %v14941_v5  ;;  %v17373_v38 = vld [vmem:[#allocation19_spill] sm:$0xff] }
 0x250   : > { %v4074_v9 = vadd.f32 %v17372_v16, %v14941_v5  ;;  %v10941_v13 = vpack.c.bf16 %v4801_v41, %v4784_v36  ;;  %v10939_v45 = vpack.c.bf16 %v4802_v24, %v4785_v40  ;;  %5046 = vmatprep.mubr.f32.mxu0 %v17334_v52  ;;  %v10949_v6 = vpack.c.bf16 %v4803_v23, %v4786_v21  ;;  %v17378_v23 = vld [vmem:[#allocation24_spill] sm:$0xff] }
 0x251   : > { %v10947_v46 = vpack.c.bf16 %v4804_v33, %v4787_v58  ;;  %v4161_v20 = vadd.f32 %v17373_v38, %v14941_v5  ;;  %v4238_v26 = vadd.f32 %v17374_v48, %v14912_v12  ;;  %v4835_v37 = vmax.f32 %v4072_v43, 0.0  ;;  %v17377_v58 = vld [vmem:[#allocation23_spill] sm:$0xff]  ;;  %v17379_v43 = vld [vmem:[#allocation25_spill] sm:$0xff] }
 0x252   : > { %v4836_v62 = vmax.f32 %v4074_v9, 0.0  ;;  %10940 = vmatprep.subr.bf16.mxu1 %v10939_v45  ;;  %v4163_v35 = vadd.f32 %v17375_v61, %v14941_v5  ;;  %v4240_v36 = vadd.f32 %v17376_v22, %v14912_v12  ;;  %v4821_v40 = vmax.f32 %v4157_v11, 0.0 }
 0x253   : > { %10942 = vmatpush1.bf16.msra.mxu1 %v10941_v13  ;;  %v4837_v32 = vmax.f32 %v4161_v20, 0.0  ;;  %v4805_v21 = vmax.f32 %v4238_v26, 0.0  ;;  %10948 = vmatprep.subr.bf16.mxu0 %v10947_v46  ;;  %v4244_v54 = vadd.f32 %v17377_v58, %v14910_v31  ;;  %v10945_v59 = vpack.c.bf16 %v4835_v37, %v4818_v17  ;;  %v14967_v17 = vld [vmem:[%s17216_s7] sm:$0xff] }
 0x254   : > { %v10943_v49 = vpack.c.bf16 %v4836_v62, %v4819_v0  ;;  %v4838_v1 = vmax.f32 %v4163_v35, 0.0  ;;  %v4806_v42 = vmax.f32 %v4240_v36, 0.0  ;;  %10950 = vmatpush1.bf16.msra.mxu0 %v10949_v6  ;;  %v4246_v33 = vadd.f32 %v17378_v23, %v14910_v31  ;;  %v17383_v6 = vld [vmem:[#allocation29_spill] sm:$0xff] }
 0x255   : > { %v10953_v63 = vpack.c.bf16 %v4837_v32, %v4820_v4  ;;  %v10957_v41 = vpack.c.bf16 %v4805_v21, %v4788_v19  ;;  %v4822_v24 = vmax.f32 %v4244_v54, 0.0  ;;  %v4250_v16 = vadd.f32 %v17379_v43, %v14941_v5  ;;  %v17380_v19 = vld [vmem:[#allocation26_spill] sm:$0xff]  ;;  %v17381_v4 = vld [vmem:[#allocation27_spill] sm:$0xff] }
 0x256   : > { %10944 = vmatprep.subr.bf16.mxu1 %v10943_v49  ;;  %v10951_v11 = vpack.c.bf16 %v4838_v1, %v4821_v40  ;;  %v10955_v14 = vpack.c.bf16 %v4806_v42, %v4789_v60  ;;  %v4327_v9 = vadd.f32 %v14641_v3, %v14912_v12  ;;  %v4252_v0 = vadd.f32 %v17380_v19, %v14941_v5  ;;  %v17382_v60 = vld [vmem:[#allocation28_spill] sm:$0xff] }
 0x257   : > { %10946 = vmatpush1.bf16.msra.mxu1 %v10945_v59  ;;  %v4329_v13 = vadd.f32 %v17381_v4, %v14912_v12  ;;  %v4333_v45 = vadd.f32 %v17382_v60, %v14910_v31  ;;  %v4335_v46 = vadd.f32 %v17383_v6, %v14910_v31  ;;  %v4839_v38 = vmax.f32 %v4250_v16, 0.0 }
 0x258   : > { %v4807_v3 = vmax.f32 %v4327_v9, 0.0  ;;  %10952 = vmatprep.subr.bf16.mxu0 %v10951_v11  ;;  %10956 = vmatprep.subr.bf16.mxu1 %v10955_v14  ;;  %v4339_v20 = vadd.f32 %v14689_v50, %v14941_v5  ;;  %v4416_v48 = vadd.f32 %v14850_v10, %v14912_v12  ;;  %v4823_v26 = vmax.f32 %v4246_v33, 0.0  ;;  %v14989_v50 = vld [vmem:[%s17216_s7 + $0x8] sm:$0xff] }
 0x259   : > { %v4840_v37 = vmax.f32 %v4252_v0, 0.0  ;;  %v4808_v62 = vmax.f32 %v4329_v13, 0.0  ;;  %10954 = vmatpush1.bf16.msra.mxu0 %v10953_v63  ;;  %v4824_v61 = vmax.f32 %v4333_v45, 0.0  ;;  %v10961_v35 = vpack.c.bf16 %v4839_v38, %v4822_v24 }
 0x25a   : > { %10352 = vmatmul.mubr.msk.f32.vlgmr.msra.gmra.mrb[34].mxu1 %vm17244_vm15, %v14967_v17  ;;  %v10965_v22 = vpack.c.bf16 %v4807_v3, %v4790_v34  ;;  %v4841_v36 = vmax.f32 %v4339_v20, 0.0  ;;  %v4809_v40 = vmax.f32 %v4416_v48, 0.0  ;;  %v4825_v21 = vmax.f32 %v4335_v46, 0.0 }
 0x25b   : > { %4963 = vmatprep.mubr.f32.mxu1 %v17334_v52  ;;  %v10959_v10 = vpack.c.bf16 %v4840_v37, %v4823_v26  ;;  %v10963_v32 = vpack.c.bf16 %v4808_v62, %v4791_v57  ;;  %10958 = vmatpush1.bf16.msra.mxu1 %v10957_v41  ;;  %v4341_v58 = vadd.f32 %v14695_v25, %v14941_v5  ;;  %v15028_v41 = vld [vmem:[%s17216_s7 + $0x18] sm:$0xff] }
 0x25c   : > { %10356 = vmatmul.mubr.msk.f32.vlgmr.msra.gmra.mrb[34].mxu0 %vm17244_vm15, %v14967_v17  ;;  %v10969_v15 = vpack.c.bf16 %v4841_v36, %v4824_v61  ;;  %v10973_v34 = vpack.c.bf16 %v4809_v40, %v4792_v7  ;;  %v4418_v54 = vadd.f32 %v14852_v29, %v14912_v12  ;;  %v4422_v59 = vadd.f32 %v14857_v55, %v14910_v31 }
 0x25d   : > { %5052 = vmatprep.mubr.f32.mxu0 %v17334_v52  ;;  %10960 = vmatprep.subr.bf16.mxu1 %v10959_v10  ;;  %v4842_v28 = vmax.f32 %v4341_v58, 0.0  ;;  %v4424_v25 = vadd.f32 %v14859_v53, %v14910_v31  ;;  %v4428_v57 = vadd.f32 %v14865_v51, %v14941_v5  ;;  %v4430_v39 = vadd.f32 %v14869_v2, %v14941_v5  ;;  %v15017_v53 = vld [vmem:[%s17216_s7 + $0x10] sm:$0xff] }
 0x25e   : > { %10353 = vmatmul.mubr.msk.f32.gmra.mrb[36].mxu1 %vm17244_vm15, %v14989_v50  ;;  %v4793_v29 = vmax.f32 %v14918_v56, 0.0  ;;  %10964 = vmatprep.subr.bf16.mxu0 %v10963_v32  ;;  %v4810_v55 = vmax.f32 %v4418_v54, 0.0  ;;  %v4826_v7 = vmax.f32 %v4422_v59, 0.0 }
 0x25f   : > { %4969 = vmatprep.mubr.f32.mxu1 %v17334_v52  ;;  %v10967_v49 = vpack.c.bf16 %v4842_v28, %v4825_v21  ;;  %10962 = vmatpush1.bf16.msra.mxu1 %v10961_v35  ;;  %v4827_v51 = vmax.f32 %v4424_v25, 0.0  ;;  %v4843_v1 = vmax.f32 %v4428_v57, 0.0  ;;  %v4844_v2 = vmax.f32 %v4430_v39, 0.0 }
 0x260   : > { %10357 = vmatmul.mubr.msk.f32.gmra.mrb[36].mxu0 %vm17244_vm15, %v14989_v50  ;;  %v10971_v42 = vpack.c.bf16 %v4810_v55, %v4793_v29 }
 0x261   : > { %10966 = vmatpush1.bf16.msra.mxu0 %v10965_v22  ;;  %5058 = vmatprep.mubr.f32.mxu0 %v17334_v52  ;;  %v10977_v56 = vpack.c.bf16 %v4843_v1, %v4826_v7  ;;  %v10975_v63 = vpack.c.bf16 %v4844_v2, %v4827_v51 }
 0x262   : > { %10354 = vmatmul.mubr.msk.f32.gmra.mrb[38].mxu1 %vm17244_vm15, %v15017_v53  ;;  %10968 = vmatprep.subr.bf16.mxu0 %v10967_v49 }
 0x263   : > { %4975 = vmatprep.mubr.f32.mxu1 %v17334_v52  ;;  %10972 = vmatprep.subr.bf16.mxu1 %v10971_v42 }
 0x264   : > { %10358 = vmatmul.mubr.msk.f32.gmra.mrb[38].mxu0 %vm17244_vm15, %v15017_v53 }
 0x265   : > { %5064 = vmatprep.mubr.f32.mxu0 %v17334_v52  ;;  %10970 = vmatpush1.bf16.msra.mxu0 %v10969_v15 }
 0x266   : > { %10355 = vmatmul.mubr.msk.f32.gmra.mrb[40].mxu1 %vm17244_vm15, %v15028_v41 }
 0x267   : > { %5135 = vmatprep.mubr.f32.mxu1 %v17334_v52 }
 0x268   : > { %10359 = vmatmul.mubr.msk.f32.gmra.mrb[40].mxu0 %vm17244_vm15, %v15028_v41 }
 0x269   : > { %5224 = vmatprep.mubr.f32.mxu0 %v17334_v52 }
 0x26a   : > { %10360 = vmatmul.mubr.msk.f32.vlgmr.msra.gmra.mrb[42].mxu1 %vm17244_vm15, %v14967_v17 }
 0x26b   : > { %5141 = vmatprep.mubr.f32.mxu1 %v17334_v52  ;;  %10974 = vmatpush1.bf16.msra.mxu1 %v10973_v34 }
 0x26c   : > { %10364 = vmatmul.mubr.msk.f32.vlgmr.msra.gmra.mrb[42].mxu0 %vm17244_vm15, %v14967_v17  ;;  %10976 = vmatprep.subr.bf16.mxu1 %v10975_v63 }
 0x26d   : > { %5230 = vmatprep.mubr.f32.mxu0 %v17334_v52 }
 0x26e   : > { %10361 = vmatmul.mubr.msk.f32.gmra.mrb[44].mxu1 %vm17244_vm15, %v14989_v50 }
 0x26f   : > { %5147 = vmatprep.mubr.f32.mxu1 %v17334_v52  ;;  %10978 = vmatpush1.bf16.msra.mxu1 %v10977_v56 }
 0x270   : > { %10365 = vmatmul.mubr.msk.f32.gmra.mrb[44].mxu0 %vm17244_vm15, %v14989_v50 }
 0x271   : > { %v4498_v24 = vpop.f32.mrb[18].mxu1  ;;  %5236 = vmatprep.mubr.f32.mxu0 %v17334_v52 }
 0x272   : > { %v4500_v23 = vpop.f32.mrb[19].mxu1  ;;  %v4499_v33 = vadd.f32 %v4498_v24, %v14867_v18  ;;  %10362 = vmatmul.mubr.msk.f32.gmra.mrb[46].mxu1 %vm17244_vm15, %v15017_v53 }
 0x273   : > { %v4501_v11 = vadd.f32 %v4500_v23, %v14867_v18  ;;  %5153 = vmatprep.mubr.f32.mxu1 %v17334_v52 }
 0x274   : > { %10366 = vmatmul.mubr.msk.f32.gmra.mrb[46].mxu0 %vm17244_vm15, %v15017_v53  ;;  %v4794_v19 = vmax.f32 %v4499_v33, 0.0 }
 0x275   : > { %v4504_v14 = vpop.f32.mrb[20].mxu1  ;;  %5242 = vmatprep.mubr.f32.mxu0 %v17334_v52  ;;  %v4795_v4 = vmax.f32 %v4501_v11, 0.0 }
 0x276   : > { %v4505_v43 = vadd.f32 %v4504_v14, %v14912_v12  ;;  %v4506_v16 = vpop.f32.mrb[21].mxu1  ;;  %10363 = vmatmul.mubr.msk.f32.gmra.mrb[48].mxu1 %vm17244_vm15, %v15028_v41 }
 0x277   : > { %v4507_v9 = vadd.f32 %v4506_v16, %v14912_v12  ;;  %5313 = vmatprep.mubr.f32.mxu1 %v17334_v52 }
 0x278   : > { %v4811_v0 = vmax.f32 %v4505_v43, 0.0  ;;  %10367 = vmatmul.mubr.msk.f32.gmra.mrb[48].mxu0 %vm17244_vm15, %v15028_v41 }
 0x279   : > { %v4812_v13 = vmax.f32 %v4507_v9, 0.0  ;;  %v4510_v60 = vpop.f32.mrb[22].mxu1  ;;  %5402 = vmatprep.mubr.f32.mxu0 %v17334_v52 }
 0x27a   : > { %v10981_v45 = vpack.c.bf16 %v4811_v0, %v4794_v19  ;;  %v4512_v6 = vpop.f32.mrb[23].mxu1  ;;  %v4511_v38 = vadd.f32 %v4510_v60, %v14910_v31  ;;  %10368 = vmatmul.mubr.msk.f32.vlgmr.msra.gmra.mrb[50].mxu1 %vm17244_vm15, %v14967_v17 }
 0x27b   : > { %v10979_v46 = vpack.c.bf16 %v4812_v13, %v4795_v4  ;;  %v4513_v3 = vadd.f32 %v4512_v6, %v14910_v31  ;;  %5319 = vmatprep.mubr.f32.mxu1 %v17334_v52  ;;  %v17384_v6 = vld [vmem:[#allocation2_spill] sm:$0xff] }
 0x27c   : > { %v4828_v62 = vmax.f32 %v4511_v38, 0.0 }
 0x27d   : > { %v4516_v20 = vpop.f32.mrb[24].mxu1  ;;  %10980 = vmatprep.subr.bf16.mxu0 %v10979_v46  ;;  %v4829_v35 = vmax.f32 %v4513_v3, 0.0  ;;  %v5781_v46 = vsub.s32 1, %v17384_v6 }
 0x27e   : > { %v4517_v48 = vadd.f32 %v4516_v20, %v14941_v5  ;;  %v4518_v26 = vpop.f32.mrb[25].mxu1  ;;  %10982 = vmatpush1.bf16.msra.mxu0 %v10981_v45  ;;  %10369 = vmatmul.mubr.msk.f32.gmra.mrb[52].mxu1 %vm17244_vm15, %v14989_v50  ;;  %v15128_v20 = vld [vmem:[%s15122_s16] sm:$0xff] }
 0x27f   : > { %v4519_v37 = vadd.f32 %v4518_v26, %v14941_v5  ;;  %5325 = vmatprep.mubr.f32.mxu1 %v17334_v52 }
 0x280   : > { %v4845_v61 = vmax.f32 %v4517_v48, 0.0 }
 0x281   : > { %v4846_v22 = vmax.f32 %v4519_v37, 0.0 }
 0x282   : > { %v10985_v36 = vpack.c.bf16 %v4845_v61, %v4828_v62  ;;  %10370 = vmatmul.mubr.msk.f32.gmra.mrb[54].mxu1 %vm17244_vm15, %v15017_v53 }
 0x283   : > { %v10983_v40 = vpack.c.bf16 %v4846_v22, %v4829_v35  ;;  %5331 = vmatprep.mubr.f32.mxu1 %v17334_v52  ;;  %v15133_v22 = vrot.slane %v15128_v20, %v5781_v46 }
 0x285   : > { %10984 = vmatprep.subr.bf16.mxu0 %v10983_v40  ;;  %v15137_v40 = vadd.s32 8, %v17384_v6  ;;  %vm5844_vm1 = vcmp.eq.s32.totalorder %v17384_v6, %v15133_v22 }
 0x286   : > { %10986 = vmatpush1.bf16.msra.mxu0 %v10985_v36  ;;  %10371 = vmatmul.mubr.msk.f32.gmra.mrb[56].mxu1 %vm17244_vm15, %v15028_v41 }
 0x287   : > { %5491 = vmatprep.mubr.f32.mxu1 %v17334_v52  ;;  %vm5861_vm14 = vcmp.eq.s32.totalorder %v15137_v40, %v15133_v22 }
 0x288   : > { %vm11011_vm5 = vmpackc.low %vm5861_vm14, %vm5844_vm1 }
 0x289   : > { %10372 = vmatmul.mubr.msk.f32.vlgmr.msra.gmra.mrb[50].mxu0 %vm17244_vm15, %v14967_v17 }
 0x28a   : > { %5408 = vmatprep.mubr.f32.mxu0 %v17334_v52 }
 0x28d   : > { %10373 = vmatmul.mubr.msk.f32.gmra.mrb[52].mxu0 %vm17244_vm15, %v14989_v50 }
 0x28e   : > { %5414 = vmatprep.mubr.f32.mxu0 %v17334_v52 }
 0x291   : > { %10374 = vmatmul.mubr.msk.f32.gmra.mrb[54].mxu0 %vm17244_vm15, %v15017_v53 }
 0x292   : > { %5420 = vmatprep.mubr.f32.mxu0 %v17334_v52 }
 0x295   : > { %10375 = vmatmul.mubr.msk.f32.gmra.mrb[56].mxu0 %vm17244_vm15, %v15028_v41 }
 0x296   : > { %5580 = vmatprep.mubr.f32.mxu0 %v17334_v52 }
 0x2a7   : > { %v4587_v10 = vpop.f32.mrb[22].mxu0 }
 0x2a8   : > { %v4589_v32 = vpop.f32.mrb[23].mxu0  ;;  %v4588_v21 = vadd.f32 %v4587_v10, %v14867_v18 }
 0x2a9   : > { %v4590_v58 = vadd.f32 %v4589_v32, %v14867_v18 }
 0x2aa   : > { %v4796_v28 = vmax.f32 %v4588_v21, 0.0 }
 0x2ab   : > { %v4593_v15 = vpop.f32.mrb[24].mxu0  ;;  %v4797_v57 = vmax.f32 %v4590_v58, 0.0 }
 0x2ac   : > { %v4594_v34 = vadd.f32 %v4593_v15, %v14912_v12  ;;  %v4595_v54 = vpop.f32.mrb[25].mxu0  ;;  %v15143_v15 = vrot.slane %v15128_v20, %v11959_v47 }
 0x2ad   : > { %v4596_v59 = vadd.f32 %v4595_v54, %v14912_v12 }
 0x2ae   : > { %v4813_v25 = vmax.f32 %v4594_v34, 0.0  ;;  %vm5843_vm11 = vcmp.eq.s32.totalorder %v17384_v6, %v15143_v15  ;;  %vm5860_vm3 = vcmp.eq.s32.totalorder %v15137_v40, %v15143_v15 }
 0x2af   : > { %v4814_v39 = vmax.f32 %v4596_v59, 0.0  ;;  %v4599_v29 = vpop.f32.mrb[26].mxu0  ;;  %vm11013_vm4 = vmpackc.low %vm5860_vm3, %vm5843_vm11 }
 0x2b0   : > { %v10989_v55 = vpack.c.bf16 %v4813_v25, %v4796_v28  ;;  %v4601_v7 = vpop.f32.mrb[27].mxu0  ;;  %v4600_v51 = vadd.f32 %v4599_v29, %v14910_v31 }
 0x2b1   : > { %v10987_v49 = vpack.c.bf16 %v4814_v39, %v4797_v57  ;;  %v4602_v1 = vadd.f32 %v4601_v7, %v14910_v31  ;;  %v15151_v57 = vadd.s32 16, %v17384_v6  ;;  %v15154_v39 = vadd.s32 24, %v17384_v6 }
 0x2b2   : > { %v4830_v24 = vmax.f32 %v4600_v51, 0.0  ;;  %v15165_v7 = vadd.s32 32, %v17384_v6  ;;  %v11786_v51 = vmov 1.0|1.0  }
 0x2b3   : > { %v4605_v2 = vpop.f32.mrb[28].mxu0  ;;  %10988 = vmatprep.subr.bf16.mxu1 %v10987_v49  ;;  %v4831_v33 = vmax.f32 %v4602_v1, 0.0  ;;  %vm5878_vm10 = vcmp.eq.s32.totalorder %v15151_v57, %v15133_v22  ;;  %vm5895_vm12 = vcmp.eq.s32.totalorder %v15154_v39, %v15133_v22  ;;  %v15168_v49 = vadd.s32 40, %v17384_v6 }
 0x2b4   : > { %v4606_v42 = vadd.f32 %v4605_v2, %v14941_v5  ;;  %v4607_v56 = vpop.f32.mrb[29].mxu0  ;;  %10990 = vmatpush1.bf16.msra.mxu1 %v10989_v55  ;;  %vm11015_vm13 = vmpackc.low %vm5895_vm12, %vm5878_vm10  ;;  %vm5877_vm8 = vcmp.eq.s32.totalorder %v15151_v57, %v15143_v15  ;;  %vm5894_vm6 = vcmp.eq.s32.totalorder %v15154_v39, %v15143_v15  ;;  %vm5912_vm9 = vcmp.eq.s32.totalorder %v15165_v7, %v15133_v22 }
 0x2b5   : > { %v4608_v63 = vadd.f32 %v4607_v56, %v14941_v5  ;;  %vm5929_vm2 = vcmp.eq.s32.totalorder %v15168_v49, %v15133_v22  ;;  %vm11017_vm0 = vmpackc.low %vm5894_vm6, %vm5877_vm8  ;;  %vm5911_vm1 = vcmp.eq.s32.totalorder %v15165_v7, %v15143_v15  ;;  %vm5928_vm14 = vcmp.eq.s32.totalorder %v15168_v49, %v15143_v15 }
 0x2b6   : > { %v4847_v23 = vmax.f32 %v4606_v42, 0.0  ;;  %vm11019_vm7 = vmpackc.low %vm5929_vm2, %vm5912_vm9  ;;  %v15204_v1 = vadd.s32 56, %v17384_v6  ;;  %v15216_v2 = vadd.s32 64, %v17384_v6  ;;  %v15219_v42 = vadd.s32 72, %v17384_v6 }
 0x2b7   : > { %v4848_v11 = vmax.f32 %v4608_v63, 0.0  ;;  %v5789_v56 = vsub.s32 3, %v17384_v6 }
 0x2b8   : > { %v10993_v14 = vpack.c.bf16 %v4847_v23, %v4830_v24  ;;  %vm5963_vm3 = vcmp.eq.s32.totalorder %v15204_v1, %v15133_v22  ;;  %vm5980_vm8 = vcmp.eq.s32.totalorder %v15216_v2, %v15133_v22  ;;  %vm5997_vm6 = vcmp.eq.s32.totalorder %v15219_v42, %v15133_v22 }
 0x2b9   : > { %v10991_v43 = vpack.c.bf16 %v4848_v11, %v4831_v33  ;;  %vm11027_vm9 = vmpackc.low %vm5997_vm6, %vm5980_vm8  ;;  %v5785_v11 = vsub.s32 2, %v17384_v6 }
 0x2bb   : > { %10992 = vmatprep.subr.bf16.mxu1 %v10991_v43  ;;  %v15234_v43 = vrot.slane %v15128_v20, %v5789_v56 }
 0x2bc   : > { %10994 = vmatpush1.bf16.msra.mxu1 %v10993_v14 }
 0x2bd   : > { %vm5846_vm2 = vcmp.eq.s32.totalorder %v17384_v6, %v15234_v43  ;;  %vm5931_vm8 = vcmp.eq.s32.totalorder %v15168_v49, %v15234_v43 }
 0x2bf   : > { %10376 = vmatmul.mubr.msk.f32.vlgmr.msra.gmra.mrb[58].mxu1 %vm17244_vm15, %v14967_v17 }
 0x2c0   : > { %5497 = vmatprep.mubr.f32.mxu1 %v17334_v52 }
 0x2c3   : > { %10377 = vmatmul.mubr.msk.f32.gmra.mrb[60].mxu1 %vm17244_vm15, %v14989_v50 }
 0x2c4   : > { %5503 = vmatprep.mubr.f32.mxu1 %v17334_v52 }
 0x2c7   : > { %10378 = vmatmul.mubr.msk.f32.gmra.mrb[62].mxu1 %vm17244_vm15, %v15017_v53 }
 0x2c8   : > { %5509 = vmatprep.mubr.f32.mxu1 %v17334_v52 }
 0x2cb   : > { %10379 = vmatmul.mubr.msk.f32.gmra.mrb[64].mxu1 %vm17244_vm15, %v15028_v41 }
 0x2cc   : > { %10859 = vmatprep.mubr.msk.f32.mxu1 %vm17244_vm15, %v14967_v17 }
 0x2ec   : > { %v4676_v16 = vpop.f32.mrb[26].mxu1 }
 0x2ed   : > { %v4678_v9 = vpop.f32.mrb[27].mxu1  ;;  %v4677_v19 = vadd.f32 %v4676_v16, %v14867_v18 }
 0x2ee   : > { %v4679_v0 = vadd.f32 %v4678_v9, %v14867_v18 }
 0x2ef   : > { %v4798_v38 = vmax.f32 %v4677_v19, 0.0 }
 0x2f0   : > { %v4682_v4 = vpop.f32.mrb[28].mxu1  ;;  %v4799_v48 = vmax.f32 %v4679_v0, 0.0 }
 0x2f1   : > { %v4683_v13 = vadd.f32 %v4682_v4, %v14912_v12  ;;  %v4684_v60 = vpop.f32.mrb[29].mxu1 }
 0x2f2   : > { %v4685_v45 = vadd.f32 %v4684_v60, %v14912_v12 }
 0x2f3   : > { %v4815_v3 = vmax.f32 %v4683_v13, 0.0 }
 0x2f4   : > { %v4816_v26 = vmax.f32 %v4685_v45, 0.0  ;;  %v4688_v37 = vpop.f32.mrb[30].mxu1 }
 0x2f5   : > { %v10997_v62 = vpack.c.bf16 %v4815_v3, %v4798_v38  ;;  %v4690_v61 = vpop.f32.mrb[31].mxu1  ;;  %v4689_v36 = vadd.f32 %v4688_v37, %v14910_v31 }
 0x2f6   : > { %v10995_v35 = vpack.c.bf16 %v4816_v26, %v4799_v48  ;;  %v4691_v10 = vadd.f32 %v4690_v61, %v14910_v31  ;;  %v15279_v61 = vpop.permute.xlu1 %4867 }
 0x2f7   : > { %v4832_v54 = vmax.f32 %v4689_v36, 0.0 }
 0x2f8   : > { %v4694_v32 = vpop.f32.mrb[32].mxu1  ;;  %10996 = vmatprep.subr.bf16.mxu0 %v10995_v35  ;;  %v4833_v28 = vmax.f32 %v4691_v10, 0.0 }
 0x2f9   : > { %v4695_v21 = vadd.f32 %v4694_v32, %v14941_v5  ;;  %v4696_v58 = vpop.f32.mrb[33].mxu1  ;;  %10998 = vmatpush1.bf16.msra.mxu0 %v10997_v62 }
 0x2fa   : > { %v4697_v34 = vadd.f32 %v4696_v58, %v14941_v5 }
 0x2fb   : > { %v4849_v59 = vmax.f32 %v4695_v21, 0.0 }
 0x2fc   : > { %v4850_v25 = vmax.f32 %v4697_v34, 0.0 }
 0x2fd   : > { %v11001_v29 = vpack.c.bf16 %v4849_v59, %v4832_v54 }
 0x2fe   : > { %v10999_v55 = vpack.c.bf16 %v4850_v25, %v4833_v28 }
 0x300   : > { %11000 = vmatprep.subr.bf16.mxu0 %v10999_v55 }
 0x301   : > { %11002 = vmatpush1.bf16.msra.mxu0 %v11001_v29 }
 0x302   : > { %11012 = vmatprep.subr.msk.bf16.mxu0 %vm11011_vm5, %v11786_v51  ;;  %vm11021_vm5 = vmpackc.low %vm5928_vm14, %vm5911_vm1 }
 0x304   : > { %10380 = vmatmul.mubr.msk.f32.vlgmr.msra.gmra.mrb[58].mxu0 %vm17244_vm15, %v14967_v17  ;;  %v15201_v17 = vadd.s32 48, %v17384_v6 }
 0x305   : > { %5586 = vmatprep.mubr.f32.mxu0 %v17334_v52  ;;  %11014 = vmatpush1.bf16.msk.msra.mxu0 %vm11013_vm4, %v11786_v51  ;;  %vm5962_vm4 = vcmp.eq.s32.totalorder %v15204_v1, %v15143_v15 }
 0x306   : > { %11016 = vmatprep.subr.msk.bf16.mxu0 %vm11015_vm13, %v11786_v51  ;;  %vm5946_vm11 = vcmp.eq.s32.totalorder %v15201_v17, %v15133_v22  ;;  %vm5945_vm12 = vcmp.eq.s32.totalorder %v15201_v17, %v15143_v15 }
 0x307   : > { %vm11023_vm10 = vmpackc.low %vm5963_vm3, %vm5946_vm11  ;;  %vm5897_vm11 = vcmp.eq.s32.totalorder %v15154_v39, %v15234_v43 }
 0x308   : > { %10381 = vmatmul.mubr.msk.f32.gmra.mrb[60].mxu0 %vm17244_vm15, %v14989_v50  ;;  %vm11025_vm13 = vmpackc.low %vm5962_vm4, %vm5945_vm12 }
 0x309   : > { %5592 = vmatprep.mubr.f32.mxu0 %v17334_v52  ;;  %11018 = vmatpush1.bf16.msk.msra.mxu0 %vm11017_vm0, %v11786_v51  ;;  %vm5863_vm0 = vcmp.eq.s32.totalorder %v15137_v40, %v15234_v43 }
 0x30a   : > { %11020 = vmatprep.subr.msk.bf16.mxu0 %vm11019_vm7, %v11786_v51  ;;  %vm11043_vm7 = vmpackc.low %vm5863_vm0, %vm5846_vm2 }
 0x30c   : > { %10382 = vmatmul.mubr.msk.f32.gmra.mrb[62].mxu0 %vm17244_vm15, %v15017_v53 }
 0x30d   : > { %5598 = vmatprep.mubr.f32.mxu0 %v17334_v52  ;;  %11022 = vmatpush1.bf16.msk.msra.mxu0 %vm11021_vm5, %v11786_v51  ;;  %vm5880_vm5 = vcmp.eq.s32.totalorder %v15151_v57, %v15234_v43 }
 0x30e   : > { %11024 = vmatprep.subr.msk.bf16.mxu0 %vm11023_vm10, %v11786_v51  ;;  %vm11047_vm10 = vmpackc.low %vm5897_vm11, %vm5880_vm5 }
 0x310   : > { %10383 = vmatmul.mubr.msk.f32.gmra.mrb[64].mxu0 %vm17244_vm15, %v15028_v41 }
 0x311   : > { %6451 = vmatprep.mubr.f32.mxu0 %v17334_v52  ;;  %11026 = vmatpush1.bf16.msk.msra.mxu0 %vm11025_vm13, %v11786_v51  ;;  %vm5914_vm13 = vcmp.eq.s32.totalorder %v15165_v7, %v15234_v43 }
 0x312   : > { %11028 = vmatprep.subr.msk.bf16.mxu0 %vm11027_vm9, %v11786_v51  ;;  %vm11051_vm9 = vmpackc.low %vm5931_vm8, %vm5914_vm13  ;;  %vm5979_vm8 = vcmp.eq.s32.totalorder %v15216_v2, %v15143_v15 }
 0x31e   : > { %v10847_v63 = vpop.f32.mrb[30].mxu0 }
 0x31f   : > { %v4771_v24 = vadd.f32 %v10847_v63, %v14912_v12  ;;  %v4765_v23 = vpop.f32.mrb[31].mxu0 }
 0x320   : > { %v4766_v33 = vadd.f32 %v4765_v23, %v14867_v18  ;;  %v15241_v18 = vrot.slane %v15128_v20, %v5785_v11 }
 0x321   : > { %v4817_v14 = vmax.f32 %v4771_v24, 0.0 }
 0x322   : > { %v4800_v16 = vmax.f32 %v4766_v33, 0.0  ;;  %v10850_v9 = vpop.f32.mrb[32].mxu0  ;;  %vm5845_vm1 = vcmp.eq.s32.totalorder %v17384_v6, %v15241_v18  ;;  %vm5862_vm14 = vcmp.eq.s32.totalorder %v15137_v40, %v15241_v18  ;;  %vm5879_vm12 = vcmp.eq.s32.totalorder %v15151_v57, %v15241_v18 }
 0x323   : > { %v4781_v19 = vadd.f32 %v10850_v9, %v14941_v5  ;;  %v4775_v0 = vpop.f32.mrb[33].mxu0  ;;  %vm11045_vm3 = vmpackc.low %vm5862_vm14, %vm5845_vm1  ;;  %vm5896_vm4 = vcmp.eq.s32.totalorder %v15154_v39, %v15241_v18  ;;  %vm5913_vm2 = vcmp.eq.s32.totalorder %v15165_v7, %v15241_v18  ;;  %vm5930_vm0 = vcmp.eq.s32.totalorder %v15168_v49, %v15241_v18 }
 0x324   : > { %v11003_v4 = vpack.c.bf16 %v4817_v14, %v4800_v16  ;;  %v4776_v13 = vadd.f32 %v4775_v0, %v14910_v31  ;;  %v15256_v31 = vpop.permute.xlu0 %4862  ;;  %vm15275_vm6 = vmpackc.low %vm5896_vm4, %vm5879_vm12  ;;  %vm5965_vm1 = vcmp.eq.s32.totalorder %v15204_v1, %v15234_v43  ;;  %vm5947_vm5 = vcmp.eq.s32.totalorder %v15201_v17, %v15241_v18  ;;  %v15337_v0 = vpop.permute.xlu1 %4877 }
 0x325   : > { %v4851_v12 = vmax.f32 %v4781_v19, 0.0  ;;  %vm15305_vm14 = vmpackc.low %vm5930_vm0, %vm5913_vm2  ;;  %vm5999_vm12 = vcmp.eq.s32.totalorder %v15219_v42, %v15234_v43  ;;  %vm5998_vm0 = vcmp.eq.s32.totalorder %v15219_v42, %v15241_v18 }
 0x326   : > { %v4834_v60 = vmax.f32 %v4776_v13, 0.0  ;;  %11004 = vmatprep.subr.bf16.mxu1 %v11003_v4 }
 0x327   : > { %11006 = vmatpush3.bf16.msra.mxu1 %v11003_v4 }
 0x328   : > { %v11007_v5 = vpack.c.bf16 %v4851_v12, %v4834_v60  ;;  %v15311_v28 = vpop.permute.xlu0 %4872 }
 0x32a   : > { %11008 = vmatprep.subr.bf16.mxu1 %v11007_v5 }
 0x32b   : > { %11010 = vmatpush3.bf16.msra.mxu1 %v11007_v5 }
 0x32c   : > { %11044 = vmatprep.subr.msk.bf16.mxu1 %vm11043_vm7, %v11786_v51  ;;  %vm5948_vm7 = vcmp.eq.s32.totalorder %v15201_v17, %v15234_v43 }
 0x32d   : > { %v4959_v45 = vpop.f32.mrb[34].mxu1  ;;  %vm11055_vm11 = vmpackc.low %vm5965_vm1, %vm5948_vm7 }
 0x32e   : > { %10860 = vmatmul.mubr.msk.f32.vlgmr.msra.gmra.mrb[66].mxu1 %vm17244_vm15, %v14989_v50  ;;  %v4960_v38 = vadd.f32 %v4959_v45, %v15256_v31  ;;  %v4961_v3 = vpop.f32.mrb[35].mxu1 }
 0x32f   : > { %10862 = vmatprep.mubr.msk.f32.mxu1 %vm17244_vm15, %v15017_v53  ;;  %v4962_v48 = vadd.f32 %v4961_v3, %v15256_v31  ;;  %v5048_v26 = vpop.f32.mrb[34].mxu0  ;;  %11046 = vmatpush1.bf16.msk.msra.mxu1 %vm11045_vm3, %v11786_v51  ;;  %vm5964_vm3 = vcmp.eq.s32.totalorder %v15204_v1, %v15241_v18 }
 0x330   : > { %v5049_v37 = vadd.f32 %v5048_v26, %v15256_v31  ;;  %v5050_v50 = vpop.f32.mrb[35].mxu0  ;;  %11048 = vmatprep.subr.msk.bf16.mxu1 %vm11047_vm10, %v11786_v51  ;;  %vm5982_vm10 = vcmp.eq.s32.totalorder %v15216_v2, %v15234_v43  ;;  %vm11057_vm4 = vmpackc.low %vm5964_vm3, %vm5947_vm5 }
 0x331   : > { %v5690_v35 = vmax.f32 %v4960_v38, %v4962_v48  ;;  %v4965_v36 = vpop.f32.mrb[36].mxu1  ;;  %v15282_v53 = vadd.f32 %v5050_v50, %v15256_v31  ;;  %vm11059_vm13 = vmpackc.low %vm5999_vm12, %vm5982_vm10 }
 0x332   : > { %10863 = vmatmul.mubr.msk.f32.gmra.mrb[68].mxu1 %vm17244_vm15, %v15028_v41  ;;  %v4966_v10 = vadd.f32 %v4965_v36, %v15279_v61  ;;  %v4967_v32 = vpop.f32.mrb[37].mxu1 }
 0x333   : > { %v4968_v21 = vadd.f32 %v4967_v32, %v15279_v61  ;;  %v5694_v58 = vmax.f32 %v5690_v35, %v5049_v37  ;;  %v5054_v34 = vpop.f32.mrb[36].mxu0  ;;  %11050 = vmatpush1.bf16.msk.msra.mxu1 %vm15275_vm6, %v11786_v51  ;;  %6540 = vmatprep.mubr.f32.mxu1 %v17334_v52  ;;  %vm5996_vm6 = vcmp.eq.s32.totalorder %v15219_v42, %v15143_v15 }
 0x334   : > { %v5055_v41 = vadd.f32 %v5054_v34, %v15279_v61  ;;  %v5056_v54 = vpop.f32.mrb[37].mxu0  ;;  %11052 = vmatprep.subr.msk.bf16.mxu1 %vm11051_vm9, %v11786_v51  ;;  %vm5981_vm9 = vcmp.eq.s32.totalorder %v15216_v2, %v15241_v18  ;;  %vm11029_vm2 = vmpackc.low %vm5996_vm6, %vm5979_vm8 }
 0x335   : > { %v5691_v25 = vmax.f32 %v4966_v10, %v4968_v21  ;;  %v4971_v29 = vpop.f32.mrb[38].mxu1  ;;  %v5698_v55 = vmax.f32 %v5694_v58, %v15282_v53  ;;  %v5057_v63 = vadd.f32 %v5056_v54, %v15279_v61  ;;  %11030 = vmatpush1.bf16.msk.msra.mxu0 %vm11029_vm2, %v11786_v51  ;;  %vm11061_vm7 = vmpackc.low %vm5998_vm0, %vm5981_vm9 }
 0x336   : > { %v4972_v24 = vadd.f32 %v4971_v29, %v15311_v28  ;;  %v4973_v23 = vpop.f32.mrb[39].mxu1 }
 0x337   : > { %v4974_v33 = vadd.f32 %v4973_v23, %v15311_v28  ;;  %v5695_v14 = vmax.f32 %v5691_v25, %v5055_v41  ;;  %v5060_v16 = vpop.f32.mrb[38].mxu0  ;;  %11054 = vmatpush1.bf16.msk.msra.mxu1 %vm15305_vm14, %v11786_v51 }
 0x338   : > { %v5061_v9 = vadd.f32 %v5060_v16, %v15311_v28  ;;  %v5062_v19 = vpop.f32.mrb[39].mxu0  ;;  %11056 = vmatprep.subr.msk.bf16.mxu1 %vm11055_vm11, %v11786_v51 }
 0x339   : > { %v5692_v4 = vmax.f32 %v4972_v24, %v4974_v33  ;;  %v4977_v13 = vpop.f32.mrb[40].mxu1  ;;  %v5699_v12 = vmax.f32 %v5695_v14, %v5057_v63  ;;  %v5063_v60 = vadd.f32 %v5062_v19, %v15311_v28 }
 0x33a   : > { %v4978_v5 = vadd.f32 %v4977_v13, %v15337_v0  ;;  %v4979_v45 = vpop.f32.mrb[41].mxu1 }
 0x33b   : > { %v4980_v38 = vadd.f32 %v4979_v45, %v15337_v0  ;;  %v5696_v3 = vmax.f32 %v5692_v4, %v5061_v9  ;;  %v5066_v48 = vpop.f32.mrb[40].mxu0  ;;  %11058 = vmatpush1.bf16.msk.msra.mxu1 %vm11057_vm4, %v11786_v51 }
 0x33c   : > { %v5067_v26 = vadd.f32 %v5066_v48, %v15337_v0  ;;  %v5068_v37 = vpop.f32.mrb[41].mxu0  ;;  %11060 = vmatprep.subr.msk.bf16.mxu1 %vm11059_vm13, %v11786_v51 }
 0x33d   : > { %v5693_v50 = vmax.f32 %v4978_v5, %v4980_v38  ;;  %v5137_v62 = vpop.f32.mrb[42].mxu1  ;;  %v5700_v35 = vmax.f32 %v5696_v3, %v5063_v60  ;;  %v5069_v36 = vadd.f32 %v5068_v37, %v15337_v0 }
 0x33e   : > { %v5138_v53 = vadd.f32 %v5137_v62, %v15256_v31  ;;  %v5139_v10 = vpop.f32.mrb[43].mxu1 }
 0x33f   : > { %v5140_v32 = vadd.f32 %v5139_v10, %v15256_v31  ;;  %v5697_v21 = vmax.f32 %v5693_v50, %v5067_v26  ;;  %v5226_v58 = vpop.f32.mrb[42].mxu0  ;;  %11062 = vmatpush1.bf16.msk.msra.mxu1 %vm11061_vm7, %v11786_v51 }
 0x340   : > { %v5702_v34 = vmax.f32 %v5698_v55, %v5138_v53  ;;  %v5227_v41 = vadd.f32 %v5226_v58, %v15256_v31  ;;  %v5228_v54 = vpop.f32.mrb[43].mxu0 }
 0x341   : > { %v5143_v59 = vpop.f32.mrb[44].mxu1  ;;  %v5701_v25 = vmax.f32 %v5697_v21, %v5069_v36  ;;  %v5229_v23 = vadd.f32 %v5228_v54, %v15256_v31 }
 0x342   : > { %v5706_v29 = vmax.f32 %v5702_v34, %v5140_v32  ;;  %v5144_v63 = vadd.f32 %v5143_v59, %v15279_v61  ;;  %v5145_v24 = vpop.f32.mrb[45].mxu1 }
 0x343   : > { %v5146_v33 = vadd.f32 %v5145_v24, %v15279_v61  ;;  %v5232_v14 = vpop.f32.mrb[44].mxu0 }
 0x344   : > { %v5703_v16 = vmax.f32 %v5699_v12, %v5144_v63  ;;  %v5710_v9 = vmax.f32 %v5706_v29, %v5227_v41  ;;  %v5233_v19 = vadd.f32 %v5232_v14, %v15279_v61  ;;  %v5234_v4 = vpop.f32.mrb[45].mxu0 }
 0x345   : > { %v5149_v55 = vpop.f32.mrb[46].mxu1  ;;  %v5235_v38 = vadd.f32 %v5234_v4, %v15279_v61 }
 0x346   : > { %v5707_v13 = vmax.f32 %v5703_v16, %v5146_v33  ;;  %v5150_v60 = vadd.f32 %v5149_v55, %v15311_v28  ;;  %v5151_v5 = vpop.f32.mrb[47].mxu1  ;;  %v5714_v45 = vmax.f32 %v5710_v9, %v5229_v23 }
 0x347   : > { %v5152_v3 = vadd.f32 %v5151_v5, %v15311_v28  ;;  %v5238_v48 = vpop.f32.mrb[46].mxu0 }
 0x348   : > { %v5704_v26 = vmax.f32 %v5700_v35, %v5150_v60  ;;  %v5711_v37 = vmax.f32 %v5707_v13, %v5233_v19  ;;  %v5239_v50 = vadd.f32 %v5238_v48, %v15311_v28  ;;  %v5240_v12 = vpop.f32.mrb[47].mxu0 }
 0x349   : > { %v5155_v62 = vpop.f32.mrb[48].mxu1  ;;  %v5241_v21 = vadd.f32 %v5240_v12, %v15311_v28 }
 0x34a   : > { %v5708_v36 = vmax.f32 %v5704_v26, %v5152_v3  ;;  %v5156_v53 = vadd.f32 %v5155_v62, %v15337_v0  ;;  %v5157_v10 = vpop.f32.mrb[49].mxu1  ;;  %v5715_v32 = vmax.f32 %v5711_v37, %v5235_v38 }
 0x34b   : > { %v5158_v58 = vadd.f32 %v5157_v10, %v15337_v0  ;;  %v5244_v34 = vpop.f32.mrb[48].mxu0 }
 0x34c   : > { %v5705_v41 = vmax.f32 %v5701_v25, %v5156_v53  ;;  %v5712_v54 = vmax.f32 %v5708_v36, %v5239_v50  ;;  %v5245_v59 = vadd.f32 %v5244_v34, %v15337_v0  ;;  %v5246_v35 = vpop.f32.mrb[49].mxu0 }
 0x34d   : > { %v5315_v29 = vpop.f32.mrb[50].mxu1  ;;  %v5247_v14 = vadd.f32 %v5246_v35, %v15337_v0 }
 0x34e   : > { %v5709_v63 = vmax.f32 %v5705_v41, %v5158_v58  ;;  %v5316_v24 = vadd.f32 %v5315_v29, %v15256_v31  ;;  %v5716_v23 = vmax.f32 %v5712_v54, %v5241_v21  ;;  %v5317_v33 = vpop.f32.mrb[51].mxu1  ;;  %v15385_v21 = vadd.s32 88, %v17384_v6 }
 0x34f   : > { %v5318_v16 = vadd.f32 %v5317_v33, %v15256_v31 }
 0x350   : > { %v5718_v9 = vmax.f32 %v5714_v45, %v5316_v24  ;;  %v5713_v19 = vmax.f32 %v5709_v63, %v5245_v59  ;;  %vm6031_vm14 = vcmp.eq.s32.totalorder %v15385_v21, %v15133_v22  ;;  %vm6033_vm3 = vcmp.eq.s32.totalorder %v15385_v21, %v15234_v43 }
 0x351   : > { %v5321_v4 = vpop.f32.mrb[52].mxu1  ;;  %vm6030_vm4 = vcmp.eq.s32.totalorder %v15385_v21, %v15143_v15  ;;  %vm6032_vm8 = vcmp.eq.s32.totalorder %v15385_v21, %v15241_v18 }
 0x352   : > { %v5722_v55 = vmax.f32 %v5718_v9, %v5318_v16  ;;  %v5322_v25 = vadd.f32 %v5321_v4, %v15279_v61  ;;  %v5717_v13 = vmax.f32 %v5713_v19, %v5247_v14  ;;  %v5323_v60 = vpop.f32.mrb[53].mxu1  ;;  %v15417_v14 = vadd.s32 96, %v17384_v6 }
 0x353   : > { %v5324_v5 = vadd.f32 %v5323_v60, %v15279_v61  ;;  %v15420_v16 = vadd.s32 104, %v17384_v6 }
 0x354   : > { %v5719_v38 = vmax.f32 %v5715_v32, %v5322_v25  ;;  %v15382_v32 = vadd.s32 80, %v17384_v6  ;;  %vm6048_vm2 = vcmp.eq.s32.totalorder %v15417_v14, %v15133_v22  ;;  %vm6050_vm7 = vcmp.eq.s32.totalorder %v15417_v14, %v15234_v43 }
 0x355   : > { %v5327_v3 = vpop.f32.mrb[54].mxu1  ;;  %vm6065_vm0 = vcmp.eq.s32.totalorder %v15420_v16, %v15133_v22 }
 0x356   : > { %v5723_v48 = vmax.f32 %v5719_v38, %v5324_v5  ;;  %v5328_v26 = vadd.f32 %v5327_v3, %v15311_v28  ;;  %v5329_v37 = vpop.f32.mrb[55].mxu1  ;;  %vm6014_vm1 = vcmp.eq.s32.totalorder %v15382_v32, %v15133_v22  ;;  %vm6016_vm11 = vcmp.eq.s32.totalorder %v15382_v32, %v15234_v43 }
 0x357   : > { %v5330_v50 = vadd.f32 %v5329_v37, %v15311_v28  ;;  %vm11031_vm5 = vmpackc.low %vm6031_vm14, %vm6014_vm1  ;;  %vm6013_vm10 = vcmp.eq.s32.totalorder %v15382_v32, %v15143_v15  ;;  %vm6015_vm13 = vcmp.eq.s32.totalorder %v15382_v32, %v15241_v18  ;;  %vm6067_vm14 = vcmp.eq.s32.totalorder %v15420_v16, %v15234_v43 }
 0x358   : > { %v5720_v12 = vmax.f32 %v5716_v23, %v5328_v26  ;;  %11032 = vmatprep.subr.msk.bf16.mxu0 %vm11031_vm5, %v11786_v51  ;;  %vm11063_vm12 = vmpackc.low %vm6033_vm3, %vm6016_vm11  ;;  %vm6047_vm11 = vcmp.eq.s32.totalorder %v15417_v14, %v15143_v15  ;;  %vm6064_vm3 = vcmp.eq.s32.totalorder %v15420_v16, %v15143_v15 }
 0x359   : > { %v5333_v45 = vpop.f32.mrb[56].mxu1  ;;  %11064 = vmatprep.subr.msk.bf16.mxu1 %vm11063_vm12, %v11786_v51  ;;  %vm11033_vm6 = vmpackc.low %vm6030_vm4, %vm6013_vm10  ;;  %vm6049_vm10 = vcmp.eq.s32.totalorder %v15417_v14, %v15241_v18  ;;  %vm6066_vm12 = vcmp.eq.s32.totalorder %v15420_v16, %v15241_v18 }
 0x35a   : > { %v5724_v36 = vmax.f32 %v5720_v12, %v5330_v50  ;;  %v5334_v53 = vadd.f32 %v5333_v45, %v15337_v0  ;;  %v5335_v10 = vpop.f32.mrb[57].mxu1  ;;  %11034 = vmatpush1.bf16.msk.msra.mxu0 %vm11033_vm6, %v11786_v51  ;;  %vm11065_vm9 = vmpackc.low %vm6032_vm8, %vm6015_vm13  ;;  %v5797_v45 = vsub.s32 5, %v17384_v6 }
 0x35b   : > { %v5336_v41 = vadd.f32 %v5335_v10, %v15337_v0  ;;  %11066 = vmatpush1.bf16.msk.msra.mxu1 %vm11065_vm9, %v11786_v51  ;;  %vm11035_vm1 = vmpackc.low %vm6065_vm0, %vm6048_vm2  ;;  %v15476_v10 = vadd.s32 120, %v17384_v6 }
 0x35c   : > { %v5404_v62 = vpop.f32.mrb[50].mxu0  ;;  %v5721_v59 = vmax.f32 %v5717_v13, %v5334_v53  ;;  %11036 = vmatprep.subr.msk.bf16.mxu0 %vm11035_vm1, %v11786_v51  ;;  %vm11067_vm5 = vmpackc.low %vm6067_vm14, %vm6050_vm7  ;;  %v15473_v53 = vadd.s32 112, %v17384_v6 }
 0x35d   : > { %v5405_v58 = vadd.f32 %v5404_v62, %v15256_v31  ;;  %v5406_v34 = vpop.f32.mrb[51].mxu0  ;;  %11068 = vmatprep.subr.msk.bf16.mxu1 %vm11067_vm5, %v11786_v51  ;;  %v5805_v62 = vsub.s32 7, %v17384_v6  ;;  %vm11037_vm4 = vmpackc.low %vm6064_vm3, %vm6047_vm11  ;;  %vm6099_vm6 = vcmp.eq.s32.totalorder %v15476_v10, %v15133_v22  ;;  %vm6101_vm2 = vcmp.eq.s32.totalorder %v15476_v10, %v15234_v43 }
 0x35e   : > { %v15391_v54 = vadd.f32 %v5406_v34, %v15256_v31  ;;  %v5725_v63 = vmax.f32 %v5721_v59, %v5336_v41  ;;  %11038 = vmatpush1.bf16.msk.msra.mxu0 %vm11037_vm4, %v11786_v51  ;;  %vm11069_vm13 = vmpackc.low %vm6066_vm12, %vm6049_vm10  ;;  %vm6082_vm8 = vcmp.eq.s32.totalorder %v15473_v53, %v15133_v22  ;;  %vm6084_vm9 = vcmp.eq.s32.totalorder %v15473_v53, %v15234_v43 }
 0x35f   : > { %v15397_v35 = vmax.f32 %v5722_v55, %v5405_v58  ;;  %v15481_v58 = vrot.slane %v15128_v20, %v5805_v62  ;;  %11070 = vmatpush1.bf16.msk.msra.mxu1 %vm11069_vm13, %v11786_v51  ;;  %vm11039_vm0 = vmpackc.low %vm6099_vm6, %vm6082_vm8  ;;  %vm6081_vm7 = vcmp.eq.s32.totalorder %v15473_v53, %v15143_v15  ;;  %vm6098_vm1 = vcmp.eq.s32.totalorder %v15476_v10, %v15143_v15 }
 0x360   : > { %v5410_v29 = vpop.f32.mrb[52].mxu0  ;;  %vm6083_vm14 = vcmp.eq.s32.totalorder %v15473_v53, %v15241_v18  ;;  %vm6100_vm5 = vcmp.eq.s32.totalorder %v15476_v10, %v15241_v18  ;;  %11040 = vmatprep.subr.msk.bf16.mxu0 %vm11039_vm0, %v11786_v51  ;;  %vm11071_vm11 = vmpackc.low %vm6101_vm2, %vm6084_vm9 }
 0x361   : > { %v5730_v24 = vmax.f32 %v15397_v35, %v15391_v54  ;;  %v5411_v23 = vadd.f32 %v5410_v29, %v15279_v61  ;;  %v5412_v33 = vpop.f32.mrb[53].mxu0  ;;  %11072 = vmatprep.subr.msk.bf16.mxu1 %vm11071_vm11, %v11786_v51  ;;  %vm11041_vm12 = vmpackc.low %vm6098_vm1, %vm6081_vm7  ;;  %vm5850_vm4 = vcmp.eq.s32.totalorder %v17384_v6, %v15481_v58  ;;  %vm5867_vm13 = vcmp.eq.s32.totalorder %v15137_v40, %v15481_v58 }
 0x362   : > { %v15423_v9 = vadd.f32 %v5412_v33, %v15279_v61  ;;  %11042 = vmatpush1.bf16.msk.msra.mxu0 %vm11041_vm12, %v11786_v51  ;;  %vm11073_vm8 = vmpackc.low %vm6100_vm5, %vm6083_vm14 }
 0x363   : > { %v15426_v19 = vmax.f32 %v5723_v48, %v5411_v23  ;;  %11074 = vmatpush1.bf16.msk.msra.mxu1 %vm11073_vm8, %v11786_v51  ;;  %vm11107_vm9 = vmpackc.low %vm5867_vm13, %vm5850_vm4 }
 0x364   : > { %v5416_v4 = vpop.f32.mrb[54].mxu0  ;;  %11108 = vmatprep.subr.msk.bf16.mxu1 %vm11107_vm9, %v11786_v51 }
 0x365   : > { %v5731_v55 = vmax.f32 %v15426_v19, %v15423_v9  ;;  %v5417_v25 = vadd.f32 %v5416_v4, %v15311_v28  ;;  %v5418_v13 = vpop.f32.mrb[55].mxu0 }
 0x366   : > { %v15442_v60 = vadd.f32 %v5418_v13, %v15311_v28 }
 0x367   : > { %v15445_v5 = vmax.f32 %v5724_v36, %v5417_v25  ;;  %v15470_v36 = vrot.slane %v15128_v20, %v5797_v45 }
 0x368   : > { %v5422_v38 = vpop.f32.mrb[56].mxu0 }
 0x369   : > { %v5732_v3 = vmax.f32 %v15445_v5, %v15442_v60  ;;  %v5423_v48 = vadd.f32 %v5422_v38, %v15337_v0  ;;  %v5424_v26 = vpop.f32.mrb[57].mxu0  ;;  %vm5848_vm3 = vcmp.eq.s32.totalorder %v17384_v6, %v15470_v36  ;;  %vm5865_vm10 = vcmp.eq.s32.totalorder %v15137_v40, %v15470_v36 }
 0x36a   : > { %v15451_v37 = vadd.f32 %v5424_v26, %v15337_v0  ;;  %vm11075_vm6 = vmpackc.low %vm5865_vm10, %vm5848_vm3  ;;  %vm5882_vm14 = vcmp.eq.s32.totalorder %v15151_v57, %v15470_v36  ;;  %vm5899_vm5 = vcmp.eq.s32.totalorder %v15154_v39, %v15470_v36  ;;  %vm5884_vm3 = vcmp.eq.s32.totalorder %v15151_v57, %v15481_v58 }
 0x36b   : > { %v15453_v50 = vmax.f32 %v5725_v63, %v5423_v48  ;;  %11076 = vmatprep.subr.msk.bf16.mxu0 %vm11075_vm6, %v11786_v51  ;;  %vm5901_vm10 = vcmp.eq.s32.totalorder %v15154_v39, %v15481_v58  ;;  %vm15581_vm8 = vmpackc.low %vm5899_vm5, %vm5882_vm14  ;;  %vm5918_vm14 = vcmp.eq.s32.totalorder %v15165_v7, %v15481_v58  ;;  %vm5935_vm5 = vcmp.eq.s32.totalorder %v15168_v49, %v15481_v58 }
 0x36c   : > { %vm6069_vm15 = vcmp.eq.s32.totalorder %v15420_v16, %v15470_v36 }
 0x36d   : > { %v5733_v12 = vmax.f32 %v15453_v50, %v15451_v37 }
 0x392   : > { %v5493_v22 = vpop.f32.mrb[58].mxu1 }
 0x393   : > { %v5494_v15 = vadd.f32 %v5493_v22, %v15256_v31  ;;  %v5495_v43 = vpop.f32.mrb[59].mxu1 }
 0x394   : > { %v5496_v18 = vadd.f32 %v5495_v43, %v15256_v31 }
 0x395   : > { %v5734_v34 = vmax.f32 %v5730_v24, %v5494_v15 }
 0x396   : > { %v5499_v41 = vpop.f32.mrb[60].mxu1 }
 0x397   : > { %v5738_v59 = vmax.f32 %v5734_v34, %v5496_v18  ;;  %v5500_v29 = vadd.f32 %v5499_v41, %v15279_v61  ;;  %v5501_v63 = vpop.f32.mrb[61].mxu1 }
 0x398   : > { %v5502_v23 = vadd.f32 %v5501_v63, %v15279_v61 }
 0x399   : > { %v5735_v33 = vmax.f32 %v5731_v55, %v5500_v29 }
 0x39a   : > { %v5505_v4 = vpop.f32.mrb[62].mxu1 }
 0x39b   : > { %v5739_v25 = vmax.f32 %v5735_v33, %v5502_v23  ;;  %v5506_v13 = vadd.f32 %v5505_v4, %v15311_v28  ;;  %v5507_v60 = vpop.f32.mrb[63].mxu1 }
 0x39c   : > { %v5508_v5 = vadd.f32 %v5507_v60, %v15311_v28 }
 0x39d   : > { %v5736_v54 = vmax.f32 %v5732_v3, %v5506_v13 }
 0x39e   : > { %v5511_v35 = vpop.f32.mrb[64].mxu1 }
 0x39f   : > { %v5740_v24 = vmax.f32 %v5736_v54, %v5508_v5  ;;  %v5512_v38 = vadd.f32 %v5511_v35, %v15337_v0  ;;  %v5513_v48 = vpop.f32.mrb[65].mxu1 }
 0x3a0   : > { %v5514_v26 = vadd.f32 %v5513_v48, %v15337_v0 }
 0x3a1   : > { %v5737_v37 = vmax.f32 %v5733_v12, %v5512_v38 }
 0x3a3   : > { %v5741_v50 = vmax.f32 %v5737_v37, %v5514_v26  ;;  %v5801_v26 = vsub.s32 6, %v17384_v6 }
 0x3a5   : > { %v15545_v37 = vrot.slane %v15128_v20, %v5801_v26 }
 0x3a7   : > { %vm5849_vm7 = vcmp.eq.s32.totalorder %v17384_v6, %v15545_v37  ;;  %vm5866_vm1 = vcmp.eq.s32.totalorder %v15137_v40, %v15545_v37  ;;  %vm5883_vm6 = vcmp.eq.s32.totalorder %v15151_v57, %v15545_v37  ;;  %vm5900_vm9 = vcmp.eq.s32.totalorder %v15154_v39, %v15545_v37 }
 0x3a8   : > { %vm15570_vm12 = vmpackc.low %vm5866_vm1, %vm5849_vm7  ;;  %vm5933_vm7 = vcmp.eq.s32.totalorder %v15168_v49, %v15470_v36 }
 0x3d7   : > { %v5582_v22 = vpop.f32.mrb[58].mxu0 }
 0x3d8   : > { %v5583_v9 = vadd.f32 %v5582_v22, %v15256_v31  ;;  %v5584_v19 = vpop.f32.mrb[59].mxu0 }
 0x3d9   : > { %v5585_v55 = vadd.f32 %v5584_v19, %v15256_v31 }
 0x3da   : > { %v5742_v15 = vmax.f32 %v5738_v59, %v5583_v9 }
 0x3db   : > { %v5588_v43 = vpop.f32.mrb[60].mxu0 }
 0x3dc   : > { %v5746_v18 = vmax.f32 %v5742_v15, %v5585_v55  ;;  %v5589_v3 = vadd.f32 %v5588_v43, %v15279_v61  ;;  %v5590_v34 = vpop.f32.mrb[61].mxu0 }
 0x3dd   : > { %v5591_v41 = vadd.f32 %v5590_v34, %v15279_v61 }
 0x3de   : > { %v5743_v29 = vmax.f32 %v5739_v25, %v5589_v3  ;;  %v15540_v25 = vrot.slane %v15128_v20, %v11952_v44 }
 0x3df   : > { %v5594_v63 = vpop.f32.mrb[62].mxu0 }
 0x3e0   : > { %v5747_v23 = vmax.f32 %v5743_v29, %v5591_v41  ;;  %v5595_v12 = vadd.f32 %v5594_v63, %v15311_v28  ;;  %v5596_v33 = vpop.f32.mrb[63].mxu0  ;;  %vm5847_vm2 = vcmp.eq.s32.totalorder %v17384_v6, %v15540_v25  ;;  %vm5864_vm0 = vcmp.eq.s32.totalorder %v15137_v40, %v15540_v25 }
 0x3e1   : > { %v5597_v4 = vadd.f32 %v5596_v33, %v15311_v28  ;;  %vm15561_vm11 = vmpackc.low %vm5864_vm0, %vm5847_vm2  ;;  %vm5881_vm4 = vcmp.eq.s32.totalorder %v15151_v57, %v15540_v25  ;;  %vm5898_vm13 = vcmp.eq.s32.totalorder %v15154_v39, %v15540_v25  ;;  %vm5916_vm0 = vcmp.eq.s32.totalorder %v15165_v7, %v15470_v36 }
 0x3e2   : > { %v5744_v13 = vmax.f32 %v5740_v24, %v5595_v12  ;;  %vm15589_vm2 = vmpackc.low %vm5901_vm10, %vm5884_vm3  ;;  %vm5915_vm10 = vcmp.eq.s32.totalorder %v15165_v7, %v15540_v25 }
 0x3e3   : > { %v5600_v60 = vpop.f32.mrb[64].mxu0  ;;  %vm15599_vm1 = vmpackc.low %vm5898_vm13, %vm5881_vm4  ;;  %vm5932_vm4 = vcmp.eq.s32.totalorder %v15168_v49, %v15540_v25  ;;  %vm5934_vm13 = vcmp.eq.s32.totalorder %v15168_v49, %v15545_v37 }
 0x3e4   : > { %v5748_v5 = vmax.f32 %v5744_v13, %v5597_v4  ;;  %v5601_v59 = vadd.f32 %v5600_v60, %v15337_v0  ;;  %v5602_v54 = vpop.f32.mrb[65].mxu0  ;;  %vm15613_vm3 = vmpackc.low %vm5900_vm9, %vm5883_vm6  ;;  %vm5950_vm9 = vcmp.eq.s32.totalorder %v15201_v17, %v15470_v36 }
 0x3e5   : > { %v5603_v35 = vadd.f32 %v5602_v54, %v15337_v0  ;;  %vm15648_vm6 = vmpackc.low %vm5935_vm5, %vm5918_vm14  ;;  %vm5949_vm5 = vcmp.eq.s32.totalorder %v15201_v17, %v15540_v25 }
 0x3e6   : > { %v5745_v38 = vmax.f32 %v5741_v50, %v5601_v59 }
 0x3e8   : > { %v5749_v48 = vmax.f32 %v5745_v38, %v5603_v35 }
 0x401   : > { %v10861_v24 = vpop.f32.mrb[66].mxu1 }
 0x402   : > { %v5677_v22 = vadd.f32 %v10861_v24, %v15279_v61  ;;  %v5671_v9 = vpop.f32.mrb[67].mxu1 }
 0x403   : > { %v5672_v50 = vadd.f32 %v5671_v9, %v15256_v31 }
 0x404   : > { %v5751_v20 = vmax.f32 %v5747_v23, %v5677_v22 }
 0x405   : > { %v5750_v61 = vmax.f32 %v5746_v18, %v5672_v50  ;;  %v10864_v19 = vpop.f32.mrb[68].mxu1  ;;  %v15816_v50 = vld [vmem:[%s15122_s16 + $0x8] sm:$0xff] }
 0x406   : > { %v5687_v31 = vadd.f32 %v10864_v19, %v15337_v0  ;;  %v5681_v15 = vpop.f32.mrb[69].mxu1  ;;  %v15621_v23 = vmax.f32 %v5751_v20, 0.0  ;;  %v15858_v55 = vrot.slane %v15816_v50, %v5781_v46  ;;  %v15879_v46 = vrot.slane %v15816_v50, %v11959_v47  ;;  %v16807_v20 = vld [vmem:[%s17218_s9] sm:$0xff]  ;;  %v16829_v19 = vld [vmem:[%s17218_s9 + $0x10] sm:$0xff] }
 0x407   : > { %v15578_v18 = vmax.f32 %v5750_v61, 0.0  ;;  %v5682_v3 = vadd.f32 %v5681_v15, %v15311_v28  ;;  %v15898_v47 = vrot.slane %v15816_v50, %v5785_v11  ;;  %v17435_v11 = vmov 0  ;;  %v16818_v61 = vld [vmem:[%s17218_s9 + $0x8] sm:$0xff] }
 0x408   : > { %v5753_v0 = vmax.f32 %v5749_v48, %v5687_v31  ;;  %v15867_v31 = vrot.slane %v15816_v50, %v5789_v56  ;;  %v16200_v24 = vrot.slane %v15816_v50, %v5797_v45  ;;  %v16209_v22 = vrot.slane %v15816_v50, %v5805_v62 }
 0x409   : > { %v5752_v28 = vmax.f32 %v5748_v5, %v5682_v3  ;;  %6452 = vmatmul.mubr.f32.vlgmr.msra.gmra.mrb[66].mxu0 %v15578_v18  ;;  %6541 = vmatmul.mubr.f32.vlgmr.msra.gmra.mrb[70].mxu1 %v15578_v18  ;;  %v16221_v45 = vrot.slane %v15816_v50, %v11952_v44  ;;  %v16240_v44 = vrot.slane %v15816_v50, %v5801_v26  ;;  %v17484_v26 = vmov 0 }
 0x40a   : > { %11078 = vmatpush1.bf16.msk.msra.mxu0 %vm15561_vm11, %v11786_v51  ;;  %11110 = vmatpush1.bf16.msk.msra.mxu1 %vm15570_vm12, %v11786_v51  ;;  %vm15631_vm11 = vmpackc.low %vm5933_vm7, %vm5916_vm0  ;;  %vm5917_vm12 = vcmp.eq.s32.totalorder %v15165_v7, %v15545_v37  ;;  %vm5967_vm0 = vcmp.eq.s32.totalorder %v15204_v1, %v15470_v36  ;;  %vm5969_vm7 = vcmp.eq.s32.totalorder %v15204_v1, %v15481_v58  ;;  %v15742_v38 = vmax.f32 %v5753_v0, 0.0 }
 0x40b   : > { %6457 = vmatprep.mubr.f32.mxu0 %v17334_v52  ;;  %6546 = vmatprep.mubr.f32.mxu1 %v17334_v52  ;;  %vm15675_vm14 = vmpackc.low %vm5934_vm13, %vm5917_vm12  ;;  %v15683_v60 = vmax.f32 %v5752_v28, 0.0  ;;  %vm5984_vm13 = vcmp.eq.s32.totalorder %v15216_v2, %v15470_v36  ;;  %v17523_v0 = vmov 0  ;;  %v16548_v28 = vld [vmem:[%s15122_s16 + $0x10] ss:$0 sm:$0xff]  ;;  %s544_s16 = scalar_lea.vmem %s17223_s14, %s10788_s26 }
 0x40c   : > { %11080 = vmatprep.subr.msk.bf16.mxu0 %vm15581_vm8, %v11786_v51  ;;  %11112 = vmatprep.subr.msk.bf16.mxu1 %vm15589_vm2, %v11786_v51  ;;  %vm15661_vm8 = vmpackc.low %vm5932_vm4, %vm5915_vm10  ;;  %vm5952_vm2 = vcmp.eq.s32.totalorder %v15201_v17, %v15481_v58  ;;  %vm5966_vm10 = vcmp.eq.s32.totalorder %v15204_v1, %v15540_v25  ;;  %vm5968_vm4 = vcmp.eq.s32.totalorder %v15204_v1, %v15545_v37 }
 0x40d   : > { %6458 = vmatmul.mubr.f32.gmra.mrb[68].mxu0 %v15621_v23  ;;  %6547 = vmatmul.mubr.f32.gmra.mrb[72].mxu1 %v15621_v23  ;;  %vm15707_vm12 = vmpackc.low %vm5969_vm7, %vm5952_vm2  ;;  %vm5983_vm7 = vcmp.eq.s32.totalorder %v15216_v2, %v15540_v25 }
 0x40e   : > { %11082 = vmatpush1.bf16.msk.msra.mxu0 %vm15599_vm1, %v11786_v51  ;;  %11114 = vmatpush1.bf16.msk.msra.mxu1 %vm15613_vm3, %v11786_v51  ;;  %vm15690_vm1 = vmpackc.low %vm5967_vm0, %vm5950_vm9  ;;  %vm5951_vm3 = vcmp.eq.s32.totalorder %v15201_v17, %v15545_v37  ;;  %vm6001_vm9 = vcmp.eq.s32.totalorder %v15219_v42, %v15470_v36  ;;  %vm6003_vm0 = vcmp.eq.s32.totalorder %v15219_v42, %v15481_v58 }
 0x40f   : > { %6463 = vmatprep.mubr.f32.mxu0 %v17334_v52  ;;  %6552 = vmatprep.mubr.f32.mxu1 %v17334_v52  ;;  %vm15734_vm2 = vmpackc.low %vm5968_vm4, %vm5951_vm3  ;;  %vm6018_vm4 = vcmp.eq.s32.totalorder %v15382_v32, %v15470_v36 }
 0x410   : > { %11084 = vmatprep.subr.msk.bf16.mxu0 %vm15631_vm11, %v11786_v51  ;;  %11116 = vmatprep.subr.msk.bf16.mxu1 %vm15648_vm6, %v11786_v51  ;;  %vm15720_vm11 = vmpackc.low %vm5966_vm10, %vm5949_vm5  ;;  %vm5986_vm6 = vcmp.eq.s32.totalorder %v15216_v2, %v15481_v58  ;;  %vm6000_vm5 = vcmp.eq.s32.totalorder %v15219_v42, %v15540_v25  ;;  %vm6002_vm10 = vcmp.eq.s32.totalorder %v15219_v42, %v15545_v37 }
 0x411   : > { %6464 = vmatmul.mubr.f32.gmra.mrb[70].mxu0 %v15683_v60  ;;  %6553 = vmatmul.mubr.f32.gmra.mrb[74].mxu1 %v15683_v60  ;;  %vm11123_vm3 = vmpackc.low %vm6003_vm0, %vm5986_vm6  ;;  %vm6017_vm0 = vcmp.eq.s32.totalorder %v15382_v32, %v15540_v25 }
 0x412   : > { %11086 = vmatpush1.bf16.msk.msra.mxu0 %vm15661_vm8, %v11786_v51  ;;  %11118 = vmatpush1.bf16.msk.msra.mxu1 %vm15675_vm14, %v11786_v51  ;;  %vm15749_vm8 = vmpackc.low %vm6001_vm9, %vm5984_vm13  ;;  %vm5985_vm14 = vcmp.eq.s32.totalorder %v15216_v2, %v15545_v37  ;;  %vm6035_vm13 = vcmp.eq.s32.totalorder %v15385_v21, %v15470_v36  ;;  %vm6037_vm9 = vcmp.eq.s32.totalorder %v15385_v21, %v15481_v58 }
 0x413   : > { %6469 = vmatprep.mubr.f32.mxu0 %v17334_v52  ;;  %6558 = vmatprep.mubr.f32.mxu1 %v17334_v52  ;;  %vm15789_vm6 = vmpackc.low %vm6002_vm10, %vm5985_vm14  ;;  %vm6052_vm10 = vcmp.eq.s32.totalorder %v15417_v14, %v15470_v36 }
 0x414   : > { %11088 = vmatprep.subr.msk.bf16.mxu0 %vm15690_vm1, %v11786_v51  ;;  %11120 = vmatprep.subr.msk.bf16.mxu1 %vm15707_vm12, %v11786_v51  ;;  %vm15775_vm1 = vmpackc.low %vm6000_vm5, %vm5983_vm7  ;;  %vm6020_vm12 = vcmp.eq.s32.totalorder %v15382_v32, %v15481_v58  ;;  %vm6034_vm7 = vcmp.eq.s32.totalorder %v15385_v21, %v15540_v25  ;;  %vm6036_vm5 = vcmp.eq.s32.totalorder %v15385_v21, %v15545_v37 }
 0x415   : > { %6470 = vmatmul.mubr.f32.gmra.mrb[72].mxu0 %v15742_v38  ;;  %6559 = vmatmul.mubr.f32.gmra.mrb[76].mxu1 %v15742_v38  ;;  %vm11127_vm14 = vmpackc.low %vm6037_vm9, %vm6020_vm12  ;;  %vm6051_vm12 = vcmp.eq.s32.totalorder %v15417_v14, %v15540_v25  ;;  %vm6068_vm9 = vcmp.eq.s32.totalorder %v15420_v16, %v15540_v25 }
 0x416   : > { %11090 = vmatpush1.bf16.msk.msra.mxu0 %vm15720_vm11, %v11786_v51  ;;  %11122 = vmatpush1.bf16.msk.msra.mxu1 %vm15734_vm2, %v11786_v51  ;;  %vm15801_vm11 = vmpackc.low %vm6035_vm13, %vm6018_vm4  ;;  %vm6019_vm2 = vcmp.eq.s32.totalorder %v15382_v32, %v15545_v37  ;;  %vm6071_vm4 = vcmp.eq.s32.totalorder %v15420_v16, %v15481_v58 }
 0x417   : > { %11092 = vmatprep.subr.msk.bf16.mxu0 %vm15749_vm8, %v11786_v51  ;;  %11124 = vmatprep.subr.msk.bf16.mxu1 %vm11123_vm3, %v11786_v51  ;;  %vm15818_vm8 = vmpackc.low %vm6034_vm7, %vm6017_vm0  ;;  %vm6054_vm3 = vcmp.eq.s32.totalorder %v15417_v14, %v15481_v58  ;;  %vm6070_vm0 = vcmp.eq.s32.totalorder %v15420_v16, %v15545_v37 }
 0x418   : > { %6629 = vmatprep.mubr.f32.mxu0 %v17334_v52  ;;  %6718 = vmatprep.mubr.f32.mxu1 %v17334_v52  ;;  %vm15832_vm13 = vmpackc.low %vm6036_vm5, %vm6019_vm2  ;;  %vm6088_vm5 = vcmp.eq.s32.totalorder %v15473_v53, %v15481_v58 }
 0x419   : > { %vm11131_vm7 = vmpackc.low %vm6071_vm4, %vm6054_vm3  ;;  %vm6085_vm3 = vcmp.eq.s32.totalorder %v15473_v53, %v15540_v25  ;;  %vm6102_vm4 = vcmp.eq.s32.totalorder %v15476_v10, %v15540_v25 }
 0x41a   : > { %11094 = vmatpush1.bf16.msk.msra.mxu0 %vm15775_vm1, %v11786_v51  ;;  %11126 = vmatpush1.bf16.msk.msra.mxu1 %vm15789_vm6, %v11786_v51  ;;  %vm15847_vm1 = vmpackc.low %vm6069_vm15, %vm6052_vm10  ;;  %vm6053_vm6 = vcmp.eq.s32.totalorder %v15417_v14, %v15545_v37  ;;  %vm6103_vm15 = vcmp.eq.s32.totalorder %v15476_v10, %v15470_v36 }
 0x41b   : > { %11096 = vmatprep.subr.msk.bf16.mxu0 %vm15801_vm11, %v11786_v51  ;;  %11128 = vmatprep.subr.msk.bf16.mxu1 %vm11127_vm14, %v11786_v51  ;;  %vm6086_vm11 = vcmp.eq.s32.totalorder %v15473_v53, %v15470_v36  ;;  %vm15869_vm2 = vmpackc.low %vm6068_vm9, %vm6051_vm12  ;;  %vm6105_vm14 = vcmp.eq.s32.totalorder %v15476_v10, %v15481_v58  ;;  %vm6104_vm12 = vcmp.eq.s32.totalorder %v15476_v10, %v15545_v37 }
 0x41c   : > { %vm15887_vm10 = vmpackc.low %vm6070_vm0, %vm6053_vm6  ;;  %vm5852_vm6 = vcmp.eq.s32.totalorder %v17384_v6, %v15858_v55  ;;  %vm5869_vm0 = vcmp.eq.s32.totalorder %v15137_v40, %v15858_v55 }
 0x41d   : > { %vm11135_vm9 = vmpackc.low %vm6105_vm14, %vm6088_vm5  ;;  %vm5851_vm5 = vcmp.eq.s32.totalorder %v17384_v6, %v15879_v46  ;;  %vm5868_vm14 = vcmp.eq.s32.totalorder %v15137_v40, %v15879_v46 }
 0x41e   : > { %11098 = vmatpush1.bf16.msk.msra.mxu0 %vm15818_vm8, %v11786_v51  ;;  %11130 = vmatpush1.bf16.msk.msra.mxu1 %vm15832_vm13, %v11786_v51  ;;  %vm11103_vm8 = vmpackc.low %vm6103_vm15, %vm6086_vm11  ;;  %vm6087_vm13 = vcmp.eq.s32.totalorder %v15473_v53, %v15545_v37  ;;  %vm5871_vm11 = vcmp.eq.s32.totalorder %v15137_v40, %v15867_v31 }
 0x41f   : > { %11100 = vmatprep.subr.msk.bf16.mxu0 %vm15847_vm1, %v11786_v51  ;;  %11132 = vmatprep.subr.msk.bf16.mxu1 %vm11131_vm7, %v11786_v51  ;;  %vm15915_vm1 = vmpackc.low %vm6102_vm4, %vm6085_vm3  ;;  %vm5854_vm7 = vcmp.eq.s32.totalorder %v17384_v6, %v15867_v31  ;;  %vm5853_vm4 = vcmp.eq.s32.totalorder %v17384_v6, %v15898_v47 }
 0x420   : > { %v17436_v11 = vsel %vm15915_vm1, 4294967295, %v17435_v11  ;;  %vm11137_vm15 = vmpackc.low %vm6104_vm12, %vm6087_vm13  ;;  %vm5903_vm13 = vcmp.eq.s32.totalorder %v15154_v39, %v15858_v55 }
 0x421   : > { %vm11139_vm3 = vmpackc.low %vm5869_vm0, %vm5852_vm6  ;;  %vm17439_vm6 = vnez %v17436_v11 }
 0x422   : > { %11102 = vmatpush1.bf16.msk.msra.mxu0 %vm15869_vm2, %v11786_v51  ;;  %11134 = vmatpush1.bf16.msk.msra.mxu1 %vm15887_vm10, %v11786_v51  ;;  %vm5870_vm2 = vcmp.eq.s32.totalorder %v15137_v40, %v15898_v47  ;;  %vm11171_vm1 = vmpackc.low %vm5871_vm11, %vm5854_vm7  ;;  %vm5886_vm10 = vcmp.eq.s32.totalorder %v15151_v57, %v15858_v55  ;;  %vm5885_vm7 = vcmp.eq.s32.totalorder %v15151_v57, %v15879_v46 }
 0x423   : > { %11104 = vmatprep.subr.msk.bf16.mxu0 %vm11103_vm8, %v11786_v51  ;;  %11136 = vmatprep.subr.msk.bf16.mxu1 %vm11135_vm9, %v11786_v51  ;;  %vm15943_vm12 = vmpackc.low %vm5868_vm14, %vm5851_vm5  ;;  %vm5888_vm8 = vcmp.eq.s32.totalorder %v15151_v57, %v15867_v31  ;;  %vm5905_vm9 = vcmp.eq.s32.totalorder %v15154_v39, %v15867_v31  ;;  %vm5902_vm11 = vcmp.eq.s32.totalorder %v15154_v39, %v15879_v46 }
 0x424   : > { %vm15955_vm0 = vmpackc.low %vm5870_vm2, %vm5853_vm4  ;;  %vm5904_vm14 = vcmp.eq.s32.totalorder %v15154_v39, %v15898_v47  ;;  %vm5920_vm2 = vcmp.eq.s32.totalorder %v15165_v7, %v15858_v55 }
 0x425   : > { %vm15965_vm5 = vmpackc.low %vm5903_vm13, %vm5886_vm10  ;;  %vm5922_vm10 = vcmp.eq.s32.totalorder %v15165_v7, %v15867_v31  ;;  %vm5939_vm13 = vcmp.eq.s32.totalorder %v15168_v49, %v15867_v31 }
 0x426   : > { %11106 = vmatpush1.bf16.msk.msra.mxu0 %vm17439_vm6, %v11786_v51  ;;  %11138 = vmatpush1.bf16.msk.msra.mxu1 %vm11137_vm15, %v11786_v51  ;;  %vm5887_vm15 = vcmp.eq.s32.totalorder %v15151_v57, %v15898_v47  ;;  %vm15973_vm4 = vmpackc.low %vm5905_vm9, %vm5888_vm8  ;;  %vm5919_vm9 = vcmp.eq.s32.totalorder %v15165_v7, %v15879_v46  ;;  %vm5936_vm6 = vcmp.eq.s32.totalorder %v15168_v49, %v15879_v46 }
 0x427   : > { %11140 = vmatprep.subr.msk.bf16.mxu0 %vm11139_vm3, %v11786_v51  ;;  %11172 = vmatprep.subr.msk.bf16.mxu1 %vm11171_vm1, %v11786_v51  ;;  %vm5937_vm1 = vcmp.eq.s32.totalorder %v15168_v49, %v15858_v55  ;;  %vm15983_vm3 = vmpackc.low %vm5902_vm11, %vm5885_vm7 }
 0x428   : > { %vm15997_vm8 = vmpackc.low %vm5904_vm14, %vm5887_vm15  ;;  %vm5954_vm15 = vcmp.eq.s32.totalorder %v15201_v17, %v15858_v55  ;;  %vm5971_vm14 = vcmp.eq.s32.totalorder %v15204_v1, %v15858_v55 }
 0x429   : > { %6630 = vmatmul.mubr.f32.vlgmr.msra.gmra.mrb[74].mxu0 %v15578_v18  ;;  %6719 = vmatmul.mubr.f32.vlgmr.msra.gmra.mrb[78].mxu1 %v15578_v18  ;;  %vm16007_vm7 = vmpackc.low %vm5937_vm1, %vm5920_vm2 }
 0x42a   : > { %11142 = vmatpush1.bf16.msk.msra.mxu0 %vm15943_vm12, %v11786_v51  ;;  %11174 = vmatpush1.bf16.msk.msra.mxu1 %vm15955_vm0, %v11786_v51  ;;  %vm5921_vm12 = vcmp.eq.s32.totalorder %v15165_v7, %v15898_v47  ;;  %vm5938_vm0 = vcmp.eq.s32.totalorder %v15168_v49, %v15898_v47  ;;  %vm16021_vm11 = vmpackc.low %vm5939_vm13, %vm5922_vm10  ;;  %vm5953_vm10 = vcmp.eq.s32.totalorder %v15201_v17, %v15879_v46 }
 0x42b   : > { %6635 = vmatprep.mubr.f32.mxu0 %v17334_v52  ;;  %6724 = vmatprep.mubr.f32.mxu1 %v17334_v52  ;;  %vm16031_vm2 = vmpackc.low %vm5936_vm6, %vm5919_vm9  ;;  %vm5970_vm13 = vcmp.eq.s32.totalorder %v15204_v1, %v15879_v46 }
 0x42c   : > { %11144 = vmatprep.subr.msk.bf16.mxu0 %vm15965_vm5, %v11786_v51  ;;  %11176 = vmatprep.subr.msk.bf16.mxu1 %vm15973_vm4, %v11786_v51  ;;  %vm5956_vm5 = vcmp.eq.s32.totalorder %v15201_v17, %v15867_v31  ;;  %vm5973_vm4 = vcmp.eq.s32.totalorder %v15204_v1, %v15867_v31  ;;  %vm16045_vm1 = vmpackc.low %vm5938_vm0, %vm5921_vm12  ;;  %vm5988_vm12 = vcmp.eq.s32.totalorder %v15216_v2, %v15858_v55 }
 0x42d   : > { %6636 = vmatmul.mubr.f32.gmra.mrb[76].mxu0 %v15621_v23  ;;  %6725 = vmatmul.mubr.f32.gmra.mrb[80].mxu1 %v15621_v23  ;;  %vm16055_vm9 = vmpackc.low %vm5971_vm14, %vm5954_vm15  ;;  %vm6005_vm0 = vcmp.eq.s32.totalorder %v15219_v42, %v15858_v55 }
 0x42e   : > { %11146 = vmatpush1.bf16.msk.msra.mxu0 %vm15983_vm3, %v11786_v51  ;;  %11178 = vmatpush1.bf16.msk.msra.mxu1 %vm15997_vm8, %v11786_v51  ;;  %vm5955_vm3 = vcmp.eq.s32.totalorder %v15201_v17, %v15898_v47  ;;  %vm5972_vm8 = vcmp.eq.s32.totalorder %v15204_v1, %v15898_v47  ;;  %vm16069_vm6 = vmpackc.low %vm5973_vm4, %vm5956_vm5  ;;  %vm5987_vm5 = vcmp.eq.s32.totalorder %v15216_v2, %v15879_v46 }
 0x42f   : > { %6641 = vmatprep.mubr.f32.mxu0 %v17334_v52  ;;  %6730 = vmatprep.mubr.f32.mxu1 %v17334_v52  ;;  %vm16079_vm15 = vmpackc.low %vm5970_vm13, %vm5953_vm10  ;;  %vm6004_vm4 = vcmp.eq.s32.totalorder %v15219_v42, %v15879_v46 }
 0x430   : > { %11148 = vmatprep.subr.msk.bf16.mxu0 %vm16007_vm7, %v11786_v51  ;;  %11180 = vmatprep.subr.msk.bf16.mxu1 %vm16021_vm11, %v11786_v51  ;;  %vm5990_vm7 = vcmp.eq.s32.totalorder %v15216_v2, %v15867_v31  ;;  %vm6007_vm11 = vcmp.eq.s32.totalorder %v15219_v42, %v15867_v31  ;;  %vm16093_vm14 = vmpackc.low %vm5972_vm8, %vm5955_vm3  ;;  %vm6022_vm3 = vcmp.eq.s32.totalorder %v15382_v32, %v15858_v55 }
 0x431   : > { %6642 = vmatmul.mubr.f32.gmra.mrb[78].mxu0 %v15683_v60  ;;  %6731 = vmatmul.mubr.f32.gmra.mrb[82].mxu1 %v15683_v60  ;;  %vm16103_vm10 = vmpackc.low %vm6005_vm0, %vm5988_vm12  ;;  %vm6039_vm8 = vcmp.eq.s32.totalorder %v15385_v21, %v15858_v55 }
 0x432   : > { %11150 = vmatpush1.bf16.msk.msra.mxu0 %vm16031_vm2, %v11786_v51  ;;  %11182 = vmatpush1.bf16.msk.msra.mxu1 %vm16045_vm1, %v11786_v51  ;;  %vm5989_vm2 = vcmp.eq.s32.totalorder %v15216_v2, %v15898_v47  ;;  %vm6006_vm1 = vcmp.eq.s32.totalorder %v15219_v42, %v15898_v47  ;;  %vm11187_vm13 = vmpackc.low %vm6007_vm11, %vm5990_vm7  ;;  %vm6021_vm7 = vcmp.eq.s32.totalorder %v15382_v32, %v15879_v46 }
 0x433   : > { %6647 = vmatprep.mubr.f32.mxu0 %v17334_v52  ;;  %6736 = vmatprep.mubr.f32.mxu1 %v17334_v52  ;;  %vm16123_vm12 = vmpackc.low %vm6004_vm4, %vm5987_vm5  ;;  %vm6038_vm11 = vcmp.eq.s32.totalorder %v15385_v21, %v15879_v46  ;;  %vm6040_vm5 = vcmp.eq.s32.totalorder %v15385_v21, %v15898_v47 }
 0x434   : > { %11152 = vmatprep.subr.msk.bf16.mxu0 %vm16055_vm9, %v11786_v51  ;;  %11184 = vmatprep.subr.msk.bf16.mxu1 %vm16069_vm6, %v11786_v51  ;;  %vm6024_vm9 = vcmp.eq.s32.totalorder %v15382_v32, %v15867_v31  ;;  %vm6041_vm6 = vcmp.eq.s32.totalorder %v15385_v21, %v15867_v31  ;;  %vm16137_vm0 = vmpackc.low %vm6006_vm1, %vm5989_vm2  ;;  %vm6056_vm2 = vcmp.eq.s32.totalorder %v15417_v14, %v15858_v55 }
 0x435   : > { %6648 = vmatmul.mubr.f32.gmra.mrb[80].mxu0 %v15742_v38  ;;  %6737 = vmatmul.mubr.f32.gmra.mrb[84].mxu1 %v15742_v38  ;;  %vm11191_vm4 = vmpackc.low %vm6041_vm6, %vm6024_vm9  ;;  %vm6073_vm1 = vcmp.eq.s32.totalorder %v15420_v16, %v15858_v55  ;;  %vm6055_vm9 = vcmp.eq.s32.totalorder %v15417_v14, %v15879_v46  ;;  %vm6072_vm6 = vcmp.eq.s32.totalorder %v15420_v16, %v15879_v46 }
 0x436   : > { %11154 = vmatpush1.bf16.msk.msra.mxu0 %vm16079_vm15, %v11786_v51  ;;  %11186 = vmatpush1.bf16.msk.msra.mxu1 %vm16093_vm14, %v11786_v51  ;;  %vm16149_vm15 = vmpackc.low %vm6039_vm8, %vm6022_vm3  ;;  %vm6023_vm14 = vcmp.eq.s32.totalorder %v15382_v32, %v15898_v47  ;;  %vm6075_vm3 = vcmp.eq.s32.totalorder %v15420_v16, %v15867_v31 }
 0x437   : > { %11156 = vmatprep.subr.msk.bf16.mxu0 %vm16103_vm10, %v11786_v51  ;;  %11188 = vmatprep.subr.msk.bf16.mxu1 %vm11187_vm13, %v11786_v51  ;;  %vm16163_vm10 = vmpackc.low %vm6038_vm11, %vm6021_vm7  ;;  %vm6058_vm13 = vcmp.eq.s32.totalorder %v15417_v14, %v15867_v31  ;;  %vm6074_vm7 = vcmp.eq.s32.totalorder %v15420_v16, %v15898_v47 }
 0x438   : > { %6807 = vmatprep.mubr.f32.mxu0 %v17334_v52  ;;  %6896 = vmatprep.mubr.f32.mxu1 %v17334_v52  ;;  %vm16177_vm8 = vmpackc.low %vm6040_vm5, %vm6023_vm14  ;;  %vm6107_vm14 = vcmp.eq.s32.totalorder %v15476_v10, %v15858_v55 }
 0x439   : > { %vm11195_vm11 = vmpackc.low %vm6075_vm3, %vm6058_vm13  ;;  %vm6089_vm13 = vcmp.eq.s32.totalorder %v15473_v53, %v15879_v46  ;;  %vm6106_vm3 = vcmp.eq.s32.totalorder %v15476_v10, %v15879_v46 }
 0x43a   : > { %11158 = vmatpush1.bf16.msk.msra.mxu0 %vm16123_vm12, %v11786_v51  ;;  %11190 = vmatpush1.bf16.msk.msra.mxu1 %vm16137_vm0, %v11786_v51  ;;  %vm16189_vm12 = vmpackc.low %vm6073_vm1, %vm6056_vm2  ;;  %vm6057_vm0 = vcmp.eq.s32.totalorder %v15417_v14, %v15898_v47  ;;  %vm6109_vm2 = vcmp.eq.s32.totalorder %v15476_v10, %v15867_v31 }
 0x43b   : > { %11160 = vmatprep.subr.msk.bf16.mxu0 %vm16149_vm15, %v11786_v51  ;;  %11192 = vmatprep.subr.msk.bf16.mxu1 %vm11191_vm4, %v11786_v51  ;;  %vm6090_vm15 = vcmp.eq.s32.totalorder %v15473_v53, %v15858_v55  ;;  %vm16211_vm5 = vmpackc.low %vm6072_vm6, %vm6055_vm9  ;;  %vm6092_vm4 = vcmp.eq.s32.totalorder %v15473_v53, %v15867_v31  ;;  %vm6108_vm9 = vcmp.eq.s32.totalorder %v15476_v10, %v15898_v47  ;;  %v16840_v55 = vld [vmem:[%s17218_s9 + $0x18] sm:$0xff] }
 0x43c   : > { %vm16229_vm1 = vmpackc.low %vm6074_vm7, %vm6057_vm0  ;;  %vm5856_vm0 = vcmp.eq.s32.totalorder %v17384_v6, %v16200_v24  ;;  %vm5873_vm7 = vcmp.eq.s32.totalorder %v15137_v40, %v16200_v24 }
 0x43d   : > { %vm11199_vm6 = vmpackc.low %vm6109_vm2, %vm6092_vm4  ;;  %vm5855_vm4 = vcmp.eq.s32.totalorder %v17384_v6, %v16221_v45  ;;  %vm5872_vm2 = vcmp.eq.s32.totalorder %v15137_v40, %v16221_v45 }
 0x43e   : > { %11162 = vmatpush1.bf16.msk.msra.mxu0 %vm16163_vm10, %v11786_v51  ;;  %11194 = vmatpush1.bf16.msk.msra.mxu1 %vm16177_vm8, %v11786_v51  ;;  %vm11167_vm10 = vmpackc.low %vm6107_vm14, %vm6090_vm15  ;;  %vm6091_vm8 = vcmp.eq.s32.totalorder %v15473_v53, %v15898_v47  ;;  %vm5875_vm15 = vcmp.eq.s32.totalorder %v15137_v40, %v16209_v22 }
 0x43f   : > { %11164 = vmatprep.subr.msk.bf16.mxu0 %vm16189_vm12, %v11786_v51  ;;  %11196 = vmatprep.subr.msk.bf16.mxu1 %vm11195_vm11, %v11786_v51  ;;  %vm16257_vm12 = vmpackc.low %vm6106_vm3, %vm6089_vm13  ;;  %vm5858_vm11 = vcmp.eq.s32.totalorder %v17384_v6, %v16209_v22  ;;  %vm5857_vm3 = vcmp.eq.s32.totalorder %v17384_v6, %v16240_v44 }
 0x440   : > { %v17485_v26 = vsel %vm16257_vm12, 4294967295, %v17484_v26  ;;  %vm11201_vm14 = vmpackc.low %vm6108_vm9, %vm6091_vm8  ;;  %vm5907_vm8 = vcmp.eq.s32.totalorder %v15154_v39, %v16200_v24 }
 0x441   : > { %vm11203_vm13 = vmpackc.low %vm5873_vm7, %vm5856_vm0  ;;  %vm17488_vm0 = vnez %v17485_v26 }
 0x442   : > { %11166 = vmatpush1.bf16.msk.msra.mxu0 %vm16211_vm5, %v11786_v51  ;;  %11198 = vmatpush1.bf16.msk.msra.mxu1 %vm16229_vm1, %v11786_v51  ;;  %vm5874_vm5 = vcmp.eq.s32.totalorder %v15137_v40, %v16240_v44  ;;  %vm11235_vm12 = vmpackc.low %vm5875_vm15, %vm5858_vm11  ;;  %vm5890_vm1 = vcmp.eq.s32.totalorder %v15151_v57, %v16200_v24  ;;  %vm5889_vm11 = vcmp.eq.s32.totalorder %v15151_v57, %v16221_v45 }
 0x443   : > { %11168 = vmatprep.subr.msk.bf16.mxu0 %vm11167_vm10, %v11786_v51  ;;  %11200 = vmatprep.subr.msk.bf16.mxu1 %vm11199_vm6, %v11786_v51  ;;  %vm16285_vm9 = vmpackc.low %vm5872_vm2, %vm5855_vm4  ;;  %vm5892_vm10 = vcmp.eq.s32.totalorder %v15151_v57, %v16209_v22  ;;  %vm5909_vm6 = vcmp.eq.s32.totalorder %v15154_v39, %v16209_v22  ;;  %vm5906_vm15 = vcmp.eq.s32.totalorder %v15154_v39, %v16221_v45 }
 0x444   : > { %vm16297_vm7 = vmpackc.low %vm5874_vm5, %vm5857_vm3  ;;  %vm5908_vm2 = vcmp.eq.s32.totalorder %v15154_v39, %v16240_v44  ;;  %vm5924_vm5 = vcmp.eq.s32.totalorder %v15165_v7, %v16200_v24 }
 0x445   : > { %vm16307_vm4 = vmpackc.low %vm5907_vm8, %vm5890_vm1  ;;  %vm5926_vm1 = vcmp.eq.s32.totalorder %v15165_v7, %v16209_v22  ;;  %vm5943_vm8 = vcmp.eq.s32.totalorder %v15168_v49, %v16209_v22 }
 0x446   : > { %11170 = vmatpush1.bf16.msk.msra.mxu0 %vm17488_vm0, %v11786_v51  ;;  %11202 = vmatpush1.bf16.msk.msra.mxu1 %vm11201_vm14, %v11786_v51  ;;  %vm5891_vm14 = vcmp.eq.s32.totalorder %v15151_v57, %v16240_v44  ;;  %vm16315_vm3 = vmpackc.low %vm5909_vm6, %vm5892_vm10  ;;  %vm5923_vm6 = vcmp.eq.s32.totalorder %v15165_v7, %v16221_v45  ;;  %vm5940_vm0 = vcmp.eq.s32.totalorder %v15168_v49, %v16221_v45 }
 0x447   : > { %11204 = vmatprep.subr.msk.bf16.mxu0 %vm11203_vm13, %v11786_v51  ;;  %11236 = vmatprep.subr.msk.bf16.mxu1 %vm11235_vm12, %v11786_v51  ;;  %vm5941_vm12 = vcmp.eq.s32.totalorder %v15168_v49, %v16200_v24  ;;  %vm16325_vm13 = vmpackc.low %vm5906_vm15, %vm5889_vm11 }
 0x448   : > { %vm16339_vm10 = vmpackc.low %vm5908_vm2, %vm5891_vm14  ;;  %vm5958_vm14 = vcmp.eq.s32.totalorder %v15201_v17, %v16200_v24  ;;  %vm5975_vm2 = vcmp.eq.s32.totalorder %v15204_v1, %v16200_v24 }
 0x449   : > { %6808 = vmatmul.mubr.f32.vlgmr.msra.gmra.mrb[82].mxu0 %v15578_v18  ;;  %6897 = vmatmul.mubr.f32.vlgmr.msra.gmra.mrb[86].mxu1 %v15578_v18  ;;  %vm16349_vm11 = vmpackc.low %vm5941_vm12, %vm5924_vm5 }
 0x44a   : > { %11206 = vmatpush1.bf16.msk.msra.mxu0 %vm16285_vm9, %v11786_v51  ;;  %11238 = vmatpush1.bf16.msk.msra.mxu1 %vm16297_vm7, %v11786_v51  ;;  %vm5925_vm9 = vcmp.eq.s32.totalorder %v15165_v7, %v16240_v44  ;;  %vm5942_vm7 = vcmp.eq.s32.totalorder %v15168_v49, %v16240_v44  ;;  %vm16363_vm15 = vmpackc.low %vm5943_vm8, %vm5926_vm1  ;;  %vm5957_vm1 = vcmp.eq.s32.totalorder %v15201_v17, %v16221_v45 }
 0x44b   : > { %6813 = vmatprep.mubr.f32.mxu0 %v17334_v52  ;;  %6902 = vmatprep.mubr.f32.mxu1 %v17334_v52  ;;  %vm16373_vm5 = vmpackc.low %vm5940_vm0, %vm5923_vm6  ;;  %vm5974_vm8 = vcmp.eq.s32.totalorder %v15204_v1, %v16221_v45 }
 0x44c   : > { %11208 = vmatprep.subr.msk.bf16.mxu0 %vm16307_vm4, %v11786_v51  ;;  %11240 = vmatprep.subr.msk.bf16.mxu1 %vm16315_vm3, %v11786_v51  ;;  %vm5960_vm4 = vcmp.eq.s32.totalorder %v15201_v17, %v16209_v22  ;;  %vm5977_vm3 = vcmp.eq.s32.totalorder %v15204_v1, %v16209_v22  ;;  %vm16387_vm12 = vmpackc.low %vm5942_vm7, %vm5925_vm9  ;;  %vm5992_vm9 = vcmp.eq.s32.totalorder %v15216_v2, %v16200_v24 }
 0x44d   : > { %6814 = vmatmul.mubr.f32.gmra.mrb[84].mxu0 %v15621_v23  ;;  %6903 = vmatmul.mubr.f32.gmra.mrb[88].mxu1 %v15621_v23  ;;  %vm16397_vm6 = vmpackc.low %vm5975_vm2, %vm5958_vm14  ;;  %vm6009_vm7 = vcmp.eq.s32.totalorder %v15219_v42, %v16200_v24 }
 0x44e   : > { %11210 = vmatpush1.bf16.msk.msra.mxu0 %vm16325_vm13, %v11786_v51  ;;  %11242 = vmatpush1.bf16.msk.msra.mxu1 %vm16339_vm10, %v11786_v51  ;;  %vm5959_vm13 = vcmp.eq.s32.totalorder %v15201_v17, %v16240_v44  ;;  %vm5976_vm10 = vcmp.eq.s32.totalorder %v15204_v1, %v16240_v44  ;;  %vm16411_vm0 = vmpackc.low %vm5977_vm3, %vm5960_vm4  ;;  %vm5991_vm4 = vcmp.eq.s32.totalorder %v15216_v2, %v16221_v45 }
 0x44f   : > { %6819 = vmatprep.mubr.f32.mxu0 %v17334_v52  ;;  %6908 = vmatprep.mubr.f32.mxu1 %v17334_v52  ;;  %vm16421_vm14 = vmpackc.low %vm5974_vm8, %vm5957_vm1  ;;  %vm6008_vm3 = vcmp.eq.s32.totalorder %v15219_v42, %v16221_v45 }
 0x450   : > { %11212 = vmatprep.subr.msk.bf16.mxu0 %vm16349_vm11, %v11786_v51  ;;  %11244 = vmatprep.subr.msk.bf16.mxu1 %vm16363_vm15, %v11786_v51  ;;  %vm5994_vm11 = vcmp.eq.s32.totalorder %v15216_v2, %v16209_v22  ;;  %vm6011_vm15 = vcmp.eq.s32.totalorder %v15219_v42, %v16209_v22  ;;  %vm16435_vm2 = vmpackc.low %vm5976_vm10, %vm5959_vm13  ;;  %vm6026_vm13 = vcmp.eq.s32.totalorder %v15382_v32, %v16200_v24 }
 0x451   : > { %6820 = vmatmul.mubr.f32.gmra.mrb[86].mxu0 %v15683_v60  ;;  %6909 = vmatmul.mubr.f32.gmra.mrb[90].mxu1 %v15683_v60  ;;  %vm16445_vm1 = vmpackc.low %vm6009_vm7, %vm5992_vm9  ;;  %vm6043_vm10 = vcmp.eq.s32.totalorder %v15385_v21, %v16200_v24 }
 0x452   : > { %11214 = vmatpush1.bf16.msk.msra.mxu0 %vm16373_vm5, %v11786_v51  ;;  %11246 = vmatpush1.bf16.msk.msra.mxu1 %vm16387_vm12, %v11786_v51  ;;  %vm5993_vm5 = vcmp.eq.s32.totalorder %v15216_v2, %v16240_v44  ;;  %vm6010_vm12 = vcmp.eq.s32.totalorder %v15219_v42, %v16240_v44  ;;  %vm11251_vm8 = vmpackc.low %vm6011_vm15, %vm5994_vm11  ;;  %vm6025_vm11 = vcmp.eq.s32.totalorder %v15382_v32, %v16221_v45 }
 0x453   : > { %6825 = vmatprep.mubr.f32.mxu0 %v17334_v52  ;;  %6914 = vmatprep.mubr.f32.mxu1 %v17334_v52  ;;  %vm16465_vm9 = vmpackc.low %vm6008_vm3, %vm5991_vm4  ;;  %vm6042_vm15 = vcmp.eq.s32.totalorder %v15385_v21, %v16221_v45  ;;  %vm6044_vm4 = vcmp.eq.s32.totalorder %v15385_v21, %v16240_v44 }
 0x454   : > { %11216 = vmatprep.subr.msk.bf16.mxu0 %vm16397_vm6, %v11786_v51  ;;  %11248 = vmatprep.subr.msk.bf16.mxu1 %vm16411_vm0, %v11786_v51  ;;  %vm6028_vm6 = vcmp.eq.s32.totalorder %v15382_v32, %v16209_v22  ;;  %vm6045_vm0 = vcmp.eq.s32.totalorder %v15385_v21, %v16209_v22  ;;  %vm16479_vm7 = vmpackc.low %vm6010_vm12, %vm5993_vm5  ;;  %vm6060_vm5 = vcmp.eq.s32.totalorder %v15417_v14, %v16200_v24 }
 0x455   : > { %6826 = vmatmul.mubr.f32.gmra.mrb[88].mxu0 %v15742_v38  ;;  %6915 = vmatmul.mubr.f32.gmra.mrb[92].mxu1 %v15742_v38  ;;  %vm11255_vm3 = vmpackc.low %vm6045_vm0, %vm6028_vm6  ;;  %vm6077_vm12 = vcmp.eq.s32.totalorder %v15420_v16, %v16200_v24  ;;  %vm6059_vm6 = vcmp.eq.s32.totalorder %v15417_v14, %v16221_v45  ;;  %vm6076_vm0 = vcmp.eq.s32.totalorder %v15420_v16, %v16221_v45 }
 0x456   : > { %11218 = vmatpush1.bf16.msk.msra.mxu0 %vm16421_vm14, %v11786_v51  ;;  %11250 = vmatpush1.bf16.msk.msra.mxu1 %vm16435_vm2, %v11786_v51  ;;  %vm16491_vm14 = vmpackc.low %vm6043_vm10, %vm6026_vm13  ;;  %vm6027_vm2 = vcmp.eq.s32.totalorder %v15382_v32, %v16240_v44  ;;  %vm6079_vm13 = vcmp.eq.s32.totalorder %v15420_v16, %v16209_v22 }
 0x457   : > { %11220 = vmatprep.subr.msk.bf16.mxu0 %vm16445_vm1, %v11786_v51  ;;  %11252 = vmatprep.subr.msk.bf16.mxu1 %vm11251_vm8, %v11786_v51  ;;  %vm16505_vm1 = vmpackc.low %vm6042_vm15, %vm6025_vm11  ;;  %vm6062_vm8 = vcmp.eq.s32.totalorder %v15417_v14, %v16209_v22 }
 0x458   : > { %6985 = vmatprep.mubr.f32.mxu0 %v17334_v52  ;;  %7074 = vmatprep.mubr.f32.mxu1 %v17334_v52  ;;  %v17524_v0 = vsel %vm16505_vm1, 4294967295, %v17523_v0  ;;  %vm11257_vm10 = vmpackc.low %vm6044_vm4, %vm6027_vm2  ;;  %vm6094_vm2 = vcmp.eq.s32.totalorder %v15473_v53, %v16200_v24  ;;  %vm6111_vm4 = vcmp.eq.s32.totalorder %v15476_v10, %v16200_v24 }
 0x459   : > { %vm11227_vm11 = vmpackc.low %vm6077_vm12, %vm6060_vm5  ;;  %vm17527_vm5 = vnez %v17524_v0 }
 0x45a   : > { %11222 = vmatpush1.bf16.msk.msra.mxu0 %vm16465_vm9, %v11786_v51  ;;  %11254 = vmatpush1.bf16.msk.msra.mxu1 %vm16479_vm7, %v11786_v51  ;;  %vm6061_vm9 = vcmp.eq.s32.totalorder %v15417_v14, %v16240_v44  ;;  %vm6078_vm7 = vcmp.eq.s32.totalorder %v15420_v16, %v16240_v44  ;;  %vm11259_vm15 = vmpackc.low %vm6079_vm13, %vm6062_vm8  ;;  %vm6093_vm13 = vcmp.eq.s32.totalorder %v15473_v53, %v16221_v45 }
 0x45b   : > { %11224 = vmatprep.subr.msk.bf16.mxu0 %vm16491_vm14, %v11786_v51  ;;  %11256 = vmatprep.subr.msk.bf16.mxu1 %vm11255_vm3, %v11786_v51  ;;  %vm16535_vm1 = vmpackc.low %vm6076_vm0, %vm6059_vm6  ;;  %vm6096_vm14 = vcmp.eq.s32.totalorder %v15473_v53, %v16209_v22  ;;  %vm6113_vm3 = vcmp.eq.s32.totalorder %v15476_v10, %v16209_v22  ;;  %vm6110_vm6 = vcmp.eq.s32.totalorder %v15476_v10, %v16221_v45 }
 0x45c   : > { %vm11261_vm12 = vmpackc.low %vm6078_vm7, %vm6061_vm9  ;;  %vm5859_vm9 = vcmp.eq.s32.totalorder %v17384_v6, %v16548_v28  ;;  %v17528_v6 = vld [vmem:[#allocation3_spill] sm:$0xff] }
 0x45d   : > { %vm11231_vm8 = vmpackc.low %vm6111_vm4, %vm6094_vm2  ;;  %vm5893_vm4 = vcmp.eq.s32.totalorder %v15151_v57, %v16548_v28  ;;  %v17532_v57 = vld [vmem:[#allocation4_spill] sm:$0xff] }
 0x45e   : > { %11226 = vmatpush1.bf16.msk.msra.mxu0 %vm17527_vm5, %v11786_v51  ;;  %11258 = vmatpush1.bf16.msk.msra.mxu1 %vm11257_vm10, %v11786_v51  ;;  %vm11263_vm0 = vmpackc.low %vm6113_vm3, %vm6096_vm14  ;;  %vm6095_vm5 = vcmp.eq.s32.totalorder %v15473_v53, %v16240_v44  ;;  %vm6112_vm10 = vcmp.eq.s32.totalorder %v15476_v10, %v16240_v44  ;;  %vm5910_vm14 = vcmp.eq.s32.totalorder %v15154_v39, %v16548_v28  ;;  %v17534_v39 = vld [vmem:[#allocation7_spill] sm:$0xff] }
 0x45f   : > { %11228 = vmatprep.subr.msk.bf16.mxu0 %vm11227_vm11, %v11786_v51  ;;  %11260 = vmatprep.subr.msk.bf16.mxu1 %vm11259_vm15, %v11786_v51  ;;  %vm5876_vm11 = vcmp.eq.s32.totalorder %v15137_v40, %v16548_v28  ;;  %vm11233_vm7 = vmpackc.low %vm6110_vm6, %vm6093_vm13 }
 0x460   : > { %vm11265_vm15 = vmpackc.low %vm6112_vm10, %vm6095_vm5  ;;  %vm5978_vm5 = vcmp.eq.s32.totalorder %v15204_v1, %v16548_v28  ;;  %v17539_v1 = vld [vmem:[#allocation11_spill] sm:$0xff] }
 0x461   : > { %vm11267_vm2 = vmpackc.low %vm5876_vm11, %vm5859_vm9  ;;  %vm5995_vm11 = vcmp.eq.s32.totalorder %v15216_v2, %v16548_v28  ;;  %v16665_v2 = vld [vmem:[%s17219_s10 + $0x10] sm:$0xff] }
 0x462   : > { %11230 = vmatpush1.bf16.msk.msra.mxu0 %vm16535_vm1, %v11786_v51  ;;  %11262 = vmatpush1.bf16.msk.msra.mxu1 %vm11261_vm12, %v11786_v51  ;;  %vm17529_vm1 = vcmask 1043456   ;;  %vm11271_vm3 = vmpackc.low %vm5910_vm14, %vm5893_vm4  ;;  %vm5927_vm12 = vcmp.eq.s32.totalorder %v15165_v7, %v16548_v28  ;;  %vm6046_vm4 = vcmp.eq.s32.totalorder %v15385_v21, %v16548_v28  ;;  %v16632_v7 = vld [vmem:[%s17219_s10] sm:$0xff] }
 0x463   : > { %11232 = vmatprep.subr.msk.bf16.mxu0 %vm11231_vm8, %v11786_v51  ;;  %11264 = vmatprep.subr.msk.bf16.mxu1 %vm11263_vm0, %v11786_v51  ;;  %vm5944_vm8 = vcmp.eq.s32.totalorder %v15168_v49, %v16548_v28  ;;  %vm17533_vm6 = vmmov %vm17529_vm1  ;;  %vm5961_vm0 = vcmp.eq.s32.totalorder %v15201_v17, %v16548_v28  ;;  %v16647_v49 = vld [vmem:[%s17219_s10 + $0x8] sm:$0xff]  ;;  %v17537_v17 = vld [vmem:[#allocation8_spill] sm:$0xff] }
 0x464   : > { %vm16589_vm13 = vmpackc.low %vm5944_vm8, %vm5927_vm12  ;;  %vm17536_vm12 = vcmask 31744   ;;  %v17546_v21 = vld [vmem:[#allocation6_spill] sm:$0xff] }
 0x465   : > { %vm11279_vm10 = vmpackc.low %vm5978_vm5, %vm5961_vm0  ;;  %vm6097_vm0 = vcmp.eq.s32.totalorder %v15473_v53, %v16548_v28  ;;  %vm6114_vm5 = vcmp.eq.s32.totalorder %v15476_v10, %v16548_v28  ;;  %v17557_v53 = vld [vmem:[#allocation10_spill] sm:$0xff]  ;;  %v17559_v10 = vld [vmem:[#allocation13_spill] sm:$0xff] }
 0x466   : > { %11234 = vmatpush1.bf16.msk.msra.mxu0 %vm11233_vm7, %v11786_v51  ;;  %11266 = vmatpush1.bf16.msk.msra.mxu1 %vm11265_vm15, %v11786_v51  ;;  %vm17535_vm9 = vmmov %vm17529_vm1  ;;  %vm6012_vm7 = vcmp.eq.s32.totalorder %v15219_v42, %v16548_v28  ;;  %v16675_v42 = vld [vmem:[%s17219_s10 + $0x18] sm:$0xff] }
 0x467   : > { %11268 = vmatprep.subr.msk.bf16.mxu0 %vm11267_vm2, %v11786_v51  ;;  %10661 = vmatprep.subr.msk.mxu1 %vm17529_vm1, %v17528_v6  ;;  %vm11283_vm15 = vmpackc.low %vm6012_vm7, %vm5995_vm11  ;;  %vm6063_vm1 = vcmp.eq.s32.totalorder %v15417_v14, %v16548_v28  ;;  %v17548_v14 = vld [vmem:[#allocation9_spill] sm:$0xff] }
 0x468   : > { %vm17538_vm8 = vmmov %vm17533_vm6 }
 0x469   : > { %6986 = vmatmul.mubr.f32.vlgmr.msra.gmra.mrb[90].mxu0 %v15578_v18  ;;  %7075 = vmatmul.mubr.f32.vlgmr.msra.gmra.mrb[94].mxu1 %v15578_v18 }
 0x46a   : > { %11270 = vmatpush3.bf16.msk.msra.mxu0 %vm11267_vm2, %v11786_v51  ;;  %6991 = vmatprep.mubr.f32.mxu0 %v17334_v52  ;;  %vm6029_vm2 = vcmp.eq.s32.totalorder %v15382_v32, %v16548_v28  ;;  %v17543_v32 = vld [vmem:[#allocation5_spill] sm:$0xff] }
 0x46b   : > { %7080 = vmatprep.mubr.f32.mxu1 %v17334_v52  ;;  %11272 = vmatprep.subr.msk.bf16.mxu0 %vm11271_vm3, %v11786_v51  ;;  %vm11287_vm14 = vmpackc.low %vm6046_vm4, %vm6029_vm2 }
 0x46c   : > { %10662 = vmatpush1.msk.msra.mxu1 %vm17533_vm6, %v17532_v57  ;;  %vm17547_vm4 = vmmov %vm17533_vm6 }
 0x46d   : > { %6992 = vmatmul.mubr.f32.gmra.mrb[92].mxu0 %v15621_v23  ;;  %7081 = vmatmul.mubr.f32.gmra.mrb[96].mxu1 %v15621_v23 }
 0x46e   : > { %11274 = vmatpush3.bf16.msk.msra.mxu0 %vm11271_vm3, %v11786_v51  ;;  %6997 = vmatprep.mubr.f32.mxu0 %v17334_v52  ;;  %vm6080_vm3 = vcmp.eq.s32.totalorder %v15420_v16, %v16548_v28  ;;  %v17553_v16 = vld [vmem:[#allocation15_spill] sm:$0xff] }
 0x46f   : > { %7086 = vmatprep.mubr.f32.mxu1 %v17334_v52  ;;  %11276 = vmatprep.subr.msk.bf16.mxu0 %vm16589_vm13, %v11786_v51 }
 0x470   : > { %10673 = vmatprep.subr.msk.mxu1 %vm17535_vm9, %v17534_v39  ;;  %vm11295_vm9 = vmpackc.low %vm6114_vm5, %vm6097_vm0 }
 0x471   : > { %6998 = vmatmul.mubr.f32.gmra.mrb[94].mxu0 %v15683_v60  ;;  %7087 = vmatmul.mubr.f32.gmra.mrb[98].mxu1 %v15683_v60 }
 0x472   : > { %11278 = vmatpush3.bf16.msk.msra.mxu0 %vm16589_vm13, %v11786_v51  ;;  %7003 = vmatprep.mubr.f32.mxu0 %v17334_v52  ;;  %vm11291_vm13 = vmpackc.low %vm6080_vm3, %vm6063_vm1 }
 0x473   : > { %7092 = vmatprep.mubr.f32.mxu1 %v17334_v52  ;;  %11280 = vmatprep.subr.msk.bf16.mxu0 %vm11279_vm10, %v11786_v51  ;;  %vm17551_vm1 = vmmov %vm17547_vm4 }
 0x474   : > { %vm17560_vm0 = vmmov %vm17551_vm1 }
 0x475   : > { %7004 = vmatmul.mubr.f32.gmra.mrb[96].mxu0 %v15742_v38  ;;  %7093 = vmatmul.mubr.f32.gmra.mrb[100].mxu1 %v15742_v38 }
 0x476   : > { %11282 = vmatpush3.bf16.msk.msra.mxu0 %vm11279_vm10, %v11786_v51  ;;  %10897 = vmatprep.mubr.f32.mxu0 %v15578_v18  ;;  %vm17540_vm10 = vmmov %vm17536_vm12  ;;  %v17565_v18 = vld [vmem:[#allocation16_spill] sm:$0xff] }
 0x477   : > { %11284 = vmatprep.subr.msk.bf16.mxu0 %vm11283_vm15, %v11786_v51  ;;  %7268 = vmatprep.mubr.f32.mxu1 %v17334_v52  ;;  %vm17541_vm11 = vmmov %vm17540_vm10 }
 0x478   : > { %vm17542_vm7 = vmmov %vm17540_vm10 }
 0x479   : > { %10663 = vmatmul.mubr.msk.f32.vlgmr.msra.gmra.mrb[102].mxu1 %vm17536_vm12, %v16632_v7  ;;  %vm17545_vm2 = vmmov %vm17542_vm7 }
 0x47a   : > { %11286 = vmatpush3.bf16.msk.msra.mxu0 %vm11283_vm15, %v11786_v51  ;;  %7274 = vmatprep.mubr.f32.mxu1 %v17334_v52  ;;  %vm17544_vm15 = vmmov %vm17533_vm6 }
 0x47b   : > { %11288 = vmatprep.subr.msk.bf16.mxu0 %vm11287_vm14, %v11786_v51  ;;  %10674 = vmatpush1.msk.msra.mxu1 %vm17538_vm8, %v17537_v17  ;;  %vm17552_vm3 = vmmov %vm17545_vm2 }
 0x47c   : > { %10685 = vmatprep.subr.msk.mxu1 %vm17533_vm6, %v17539_v1  ;;  %vm17554_vm12 = vmmov %vm17551_vm1 }
 0x47d   : > { %10664 = vmatmul.mubr.msk.f32.gmra.mrb[104].mxu1 %vm17540_vm10, %v16647_v49  ;;  %vm17555_vm8 = vmmov %vm17545_vm2 }
 0x47e   : > { %11290 = vmatpush3.bf16.msk.msra.mxu0 %vm11287_vm14, %v11786_v51  ;;  %7280 = vmatprep.mubr.f32.mxu1 %v17334_v52  ;;  %vm17549_vm14 = vmmov %vm17547_vm4 }
 0x47f   : > { %11292 = vmatprep.subr.msk.bf16.mxu0 %vm11291_vm13, %v11786_v51  ;;  %vm17558_vm6 = vmmov %vm17551_vm1 }
 0x480   : > { %vm17561_vm5 = vmmov %vm17545_vm2 }
 0x481   : > { %10665 = vmatmul.mubr.msk.f32.gmra.mrb[106].mxu1 %vm17541_vm11, %v16665_v2  ;;  %vm17562_vm10 = vmmov %vm17545_vm2 }
 0x482   : > { %11294 = vmatpush3.bf16.msk.msra.mxu0 %vm11291_vm13, %v11786_v51  ;;  %7286 = vmatprep.mubr.f32.mxu1 %v17334_v52  ;;  %vm17556_vm13 = vmmov %vm17545_vm2 }
 0x483   : > { %11296 = vmatprep.subr.msk.bf16.mxu0 %vm11295_vm9, %v11786_v51  ;;  %vm17564_vm11 = vmmov %vm17545_vm2 }
 0x485   : > { %10666 = vmatmul.mubr.msk.f32.gmra.mrb[108].mxu1 %vm17542_vm7, %v16675_v42  ;;  %vm17566_vm7 = vmmov %vm17560_vm0 }
 0x486   : > { %11298 = vmatpush3.bf16.msk.msra.mxu0 %vm11295_vm9, %v11786_v51  ;;  %7446 = vmatprep.mubr.f32.mxu1 %v17334_v52  ;;  %v17550_v51 = vld [vmem:[#allocation12_spill] sm:$0xff]  ;;  %vm17563_vm9 = vmmov %vm17545_vm2 }
 0x487   : > { %10667 = vmatprep.subr.msk.mxu0 %vm17544_vm15, %v17543_v32  ;;  %vm17567_vm15 = vmmov %vm17560_vm0 }
 0x489   : > { %10898 = vmatmul.mubr.f32.vlgmr.msra.gmra.mrb[98].mxu0 %v15621_v23  ;;  %10675 = vmatmul.mubr.msk.f32.vlgmr.msra.gmra.mrb[110].mxu1 %vm17545_vm2, %v16632_v7  ;;  %v17571_v23 = vld [vmem:[#allocation14_spill] sm:$0xff] }
 0x48a   : > { %10900 = vmatprep.mubr.f32.mxu0 %v15683_v60  ;;  %10668 = vmatpush1.msk.msra.mxu0 %vm17547_vm4, %v17546_v21  ;;  %vm17568_vm4 = vmmov %vm17545_vm2 }
 0x48b   : > { %7452 = vmatprep.mubr.f32.mxu1 %v17334_v52  ;;  %10679 = vmatprep.subr.msk.mxu0 %vm17549_vm14, %v17548_v14  ;;  %vm17569_vm14 = vmmov %vm17545_vm2 }
 0x48c   : > { %10686 = vmatpush1.msk.msra.mxu1 %vm17551_vm1, %v17550_v51  ;;  %vm17570_vm1 = vmmov %vm17545_vm2 }
 0x48d   : > { %10901 = vmatmul.mubr.f32.gmra.mrb[100].mxu0 %v15742_v38  ;;  %10676 = vmatmul.mubr.msk.f32.gmra.mrb[112].mxu1 %vm17552_vm3, %v16647_v49  ;;  %vm17572_vm3 = vmmov %vm17560_vm0 }
 0x48e   : > { %7357 = vmatprep.mubr.f32.mxu0 %v17334_v52  ;;  %7458 = vmatprep.mubr.f32.mxu1 %v17334_v52 }
 0x48f   : > { %10697 = vmatprep.subr.msk.mxu1 %vm17554_vm12, %v17553_v16  ;;  %vm17573_vm12 = vmmov %vm17560_vm0 }
 0x491   : > { %10669 = vmatmul.mubr.msk.f32.vlgmr.msra.gmra.mrb[102].mxu0 %vm17555_vm8, %v16632_v7  ;;  %10677 = vmatmul.mubr.msk.f32.gmra.mrb[114].mxu1 %vm17556_vm13, %v16665_v2  ;;  %vm17574_vm8 = vmmov %vm17570_vm1 }
 0x492   : > { %7363 = vmatprep.mubr.f32.mxu0 %v17334_v52  ;;  %10680 = vmatpush1.msk.msra.mxu0 %vm17558_vm6, %v17557_v53  ;;  %vm17575_vm13 = vmmov %vm17570_vm1 }
 0x493   : > { %7464 = vmatprep.mubr.f32.mxu1 %v17334_v52  ;;  %10691 = vmatprep.subr.msk.mxu0 %vm17560_vm0, %v17559_v10  ;;  %vm17576_vm6 = vmmov %vm17570_vm1 }
 0x494   : > { %vm17577_vm0 = vmmov %vm17570_vm1 }
 0x495   : > { %10670 = vmatmul.mubr.msk.f32.gmra.mrb[104].mxu0 %vm17561_vm5, %v16647_v49  ;;  %10678 = vmatmul.mubr.msk.f32.gmra.mrb[116].mxu1 %vm17562_vm10, %v16675_v42  ;;  %vm17578_vm5 = vmmov %vm17572_vm3 }
 0x496   : > { %7369 = vmatprep.mubr.f32.mxu0 %v17334_v52  ;;  %7624 = vmatprep.mubr.f32.mxu1 %v17334_v52  ;;  %vm17579_vm10 = vmmov %vm17577_vm0 }
 0x499   : > { %10671 = vmatmul.mubr.msk.f32.gmra.mrb[106].mxu0 %vm17563_vm9, %v16665_v2  ;;  %10687 = vmatmul.mubr.msk.f32.vlgmr.msra.gmra.mrb[118].mxu1 %vm17564_vm11, %v16632_v7  ;;  %vm17580_vm9 = vmmov %vm17577_vm0 }
 0x49a   : > { %7375 = vmatprep.mubr.f32.mxu0 %v17334_v52  ;;  %7630 = vmatprep.mubr.f32.mxu1 %v17334_v52  ;;  %vm17581_vm11 = vmmov %vm17577_vm0 }
 0x49b   : > { %10698 = vmatpush1.msk.msra.mxu1 %vm17566_vm7, %v17565_v18  ;;  %vm17582_vm7 = vmmov %vm17577_vm0 }
 0x49c   : > { %10903 = vmatprep.subr.msk.mxu1 %vm17567_vm15, %v14894_v30  ;;  %vm17583_vm15 = vmmov %vm17572_vm3 }
 0x49d   : > { %10672 = vmatmul.mubr.msk.f32.gmra.mrb[108].mxu0 %vm17545_vm2, %v16675_v42  ;;  %10688 = vmatmul.mubr.msk.f32.gmra.mrb[120].mxu1 %vm17568_vm4, %v16647_v49  ;;  %vm17584_vm2 = vmmov %vm17577_vm0 }
 0x49e   : > { %7535 = vmatprep.mubr.f32.mxu0 %v17334_v52  ;;  %7636 = vmatprep.mubr.f32.mxu1 %v17334_v52  ;;  %vm17585_vm4 = vmmov %vm17577_vm0 }
 0x4a1   : > { %10681 = vmatmul.mubr.msk.f32.vlgmr.msra.gmra.mrb[110].mxu0 %vm17569_vm14, %v16632_v7  ;;  %10689 = vmatmul.mubr.msk.f32.gmra.mrb[122].mxu1 %vm17570_vm1, %v16665_v2  ;;  %vm17586_vm14 = vmmov %vm17577_vm0 }
 0x4a2   : > { %7541 = vmatprep.mubr.f32.mxu0 %v17334_v52  ;;  %10692 = vmatpush1.msk.msra.mxu0 %vm17572_vm3, %v17571_v23  ;;  %vm17587_vm1 = vmmov %vm17577_vm0 }
 0x4a3   : > { %7642 = vmatprep.mubr.f32.mxu1 %v17334_v52  ;;  %10703 = vmatprep.subr.msk.mxu0 %vm17573_vm12, %v14751_v27  ;;  %vm17588_vm3 = vmmov %vm17577_vm0 }
 0x4a4   : > { %vm17589_vm12 = vmmov %vm17577_vm0 }
 0x4a5   : > { %10682 = vmatmul.mubr.msk.f32.gmra.mrb[112].mxu0 %vm17574_vm8, %v16647_v49  ;;  %10690 = vmatmul.mubr.msk.f32.gmra.mrb[124].mxu1 %vm17575_vm13, %v16675_v42  ;;  %vm17590_vm8 = vmmov %vm17577_vm0 }
 0x4a6   : > { %7547 = vmatprep.mubr.f32.mxu0 %v17334_v52  ;;  %7802 = vmatprep.mubr.f32.mxu1 %v17334_v52  ;;  %vm17591_vm13 = vmmov %vm17577_vm0 }
 0x4a9   : > { %10683 = vmatmul.mubr.msk.f32.gmra.mrb[114].mxu0 %vm17576_vm6, %v16665_v2  ;;  %10699 = vmatmul.mubr.msk.f32.vlgmr.msra.gmra.mrb[126].mxu1 %vm17577_vm0, %v16632_v7  ;;  %vm17592_vm6 = vmmov %vm17577_vm0 }
 0x4aa   : > { %7553 = vmatprep.mubr.f32.mxu0 %v17334_v52  ;;  %7808 = vmatprep.mubr.f32.mxu1 %v17334_v52 }
 0x4ab   : > { %10904 = vmatpush3.msk.msra.mxu1 %vm17578_vm5, %v14894_v30  ;;  %vm17593_vm5 = vmmov %vm17577_vm0 }
 0x4ad   : > { %10684 = vmatmul.mubr.msk.f32.gmra.mrb[116].mxu0 %vm17579_vm10, %v16675_v42  ;;  %10700 = vmatmul.mubr.msk.f32.gmra.mrb[128].mxu1 %vm17580_vm9, %v16647_v49  ;;  %vm17594_vm10 = vmmov %vm17577_vm0  ;;  %vm17595_vm9 = vcmask 261120  }
 0x4ae   : > { %7713 = vmatprep.mubr.f32.mxu0 %v17334_v52  ;;  %7814 = vmatprep.mubr.f32.mxu1 %v17334_v52 }
 0x4b1   : > { %10693 = vmatmul.mubr.msk.f32.vlgmr.msra.gmra.mrb[118].mxu0 %vm17581_vm11, %v16632_v7  ;;  %10701 = vmatmul.mubr.msk.f32.gmra.mrb[130].mxu1 %vm17582_vm7, %v16665_v2  ;;  %vm17596_vm11 = vmmov %vm17595_vm9 }
 0x4b2   : > { %7719 = vmatprep.mubr.f32.mxu0 %v17334_v52  ;;  %10704 = vmatpush1.msk.msra.mxu0 %vm17583_vm15, %v14754_v8  ;;  %vm17597_vm7 = vmmov %vm17595_vm9 }
 0x4b3   : > { %7820 = vmatprep.mubr.f32.mxu1 %v17334_v52  ;;  %vm17598_vm15 = vmmov %vm17597_vm7 }
 0x4b5   : > { %10694 = vmatmul.mubr.msk.f32.gmra.mrb[120].mxu0 %vm17584_vm2, %v16647_v49  ;;  %10702 = vmatmul.mubr.msk.f32.gmra.mrb[132].mxu1 %vm17585_vm4, %v16675_v42  ;;  %vm17599_vm2 = vmmov %vm17597_vm7 }
 0x4b6   : > { %7725 = vmatprep.mubr.f32.mxu0 %v17334_v52  ;;  %10905 = vmatprep.mubr.msk.f32.mxu1 %vm17586_vm14, %v16632_v7  ;;  %vm17600_vm4 = vmmov %vm17599_vm2 }
 0x4b7   : > { %vm17601_vm14 = vmmov %vm17599_vm2 }
 0x4b9   : > { %10695 = vmatmul.mubr.msk.f32.gmra.mrb[122].mxu0 %vm17587_vm1, %v16665_v2  ;;  %10906 = vmatmul.mubr.msk.f32.vlgmr.msra.gmra.mrb[134].mxu1 %vm17588_vm3, %v16647_v49  ;;  %vm17602_vm1 = vmmov %vm17599_vm2 }
 0x4ba   : > { %7731 = vmatprep.mubr.f32.mxu0 %v17334_v52  ;;  %10908 = vmatprep.mubr.msk.f32.mxu1 %vm17589_vm12, %v16665_v2  ;;  %vm17603_vm3 = vmmov %vm17602_vm1 }
 0x4bb   : > { %vm17604_vm12 = vmmov %vm17602_vm1 }
 0x4bd   : > { %10696 = vmatmul.mubr.msk.f32.gmra.mrb[124].mxu0 %vm17590_vm8, %v16675_v42  ;;  %10909 = vmatmul.mubr.msk.f32.gmra.mrb[136].mxu1 %vm17591_vm13, %v16675_v42  ;;  %vm17605_vm8 = vmmov %vm17602_vm1 }
 0x4be   : > { %7891 = vmatprep.mubr.f32.mxu0 %v17334_v52  ;;  %8077 = vmatprep.mubr.f32.mxu1 %v17334_v52  ;;  %vm17606_vm13 = vmmov %vm17602_vm1 }
 0x4c1   : > { %10705 = vmatmul.mubr.msk.f32.vlgmr.msra.gmra.mrb[126].mxu0 %vm17592_vm6, %v16632_v7  ;;  %vm17607_vm6 = vmmov %vm17602_vm1 }
 0x4c2   : > { %7897 = vmatprep.mubr.f32.mxu0 %v17334_v52 }
 0x4c5   : > { %10706 = vmatmul.mubr.msk.f32.gmra.mrb[128].mxu0 %vm17577_vm0, %v16647_v49  ;;  %vm17608_vm0 = vmmov %vm17602_vm1 }
 0x4c6   : > { %7903 = vmatprep.mubr.f32.mxu0 %v17334_v52 }
 0x4c9   : > { %10707 = vmatmul.mubr.msk.f32.gmra.mrb[130].mxu0 %vm17593_vm5, %v16665_v2  ;;  %vm17609_vm5 = vmmov %vm17608_vm0 }
 0x4ca   : > { %7909 = vmatprep.mubr.f32.mxu0 %v17334_v52 }
 0x4cd   : > { %10708 = vmatmul.mubr.msk.f32.gmra.mrb[132].mxu0 %vm17594_vm10, %v16675_v42  ;;  %vm17610_vm10 = vmmov %vm17608_vm0 }
 0x4ce   : > { %8166 = vmatprep.mubr.f32.mxu0 %v17334_v52 }
 0x4dc   : > { %v6453_v27 = vpop.f32.mrb[66].mxu0  ;;  %v6542_v8 = vpop.f32.mrb[70].mxu1 }
 0x4dd   : > { %v6455_v30 = vpop.f32.mrb[67].mxu0  ;;  %v6544_v60 = vpop.f32.mrb[71].mxu1 }
 0x4e0   : > { %v6459_v38 = vpop.f32.mrb[68].mxu0  ;;  %v6548_v29 = vpop.f32.mrb[72].mxu1 }
 0x4e1   : > { %v11301_v63 = vpack.c.bf16 %v6459_v38, %v6453_v27  ;;  %v11309_v12 = vpack.c.bf16 %v6548_v29, %v6542_v8  ;;  %v6461_v33 = vpop.f32.mrb[69].mxu0  ;;  %v6550_v4 = vpop.f32.mrb[73].mxu1 }
 0x4e2   : > { %v11299_v13 = vpack.c.bf16 %v6461_v33, %v6455_v30  ;;  %v11307_v5 = vpack.c.bf16 %v6550_v4, %v6544_v60 }
 0x4e4   : > { %v6465_v59 = vpop.f32.mrb[70].mxu0  ;;  %v6554_v54 = vpop.f32.mrb[74].mxu1  ;;  %11300 = vmatprep.subr.bf16.mxu1 %v11299_v13  ;;  %11308 = vmatprep.subr.bf16.mxu0 %v11307_v5 }
 0x4e5   : > { %v6467_v35 = vpop.f32.mrb[71].mxu0  ;;  %v6556_v48 = vpop.f32.mrb[75].mxu1  ;;  %11302 = vmatpush1.bf16.msra.mxu1 %v11301_v63  ;;  %11310 = vmatpush1.bf16.msra.mxu0 %v11309_v12 }
 0x4e8   : > { %v6471_v24 = vpop.f32.mrb[72].mxu0  ;;  %v6560_v22 = vpop.f32.mrb[76].mxu1 }
 0x4e9   : > { %v11305_v9 = vpack.c.bf16 %v6471_v24, %v6465_v59  ;;  %v11313_v45 = vpack.c.bf16 %v6560_v22, %v6554_v54  ;;  %v6473_v62 = vpop.f32.mrb[73].mxu0  ;;  %v6562_v44 = vpop.f32.mrb[77].mxu1 }
 0x4ea   : > { %v11303_v26 = vpack.c.bf16 %v6473_v62, %v6467_v35  ;;  %v11311_v50 = vpack.c.bf16 %v6562_v44, %v6556_v48 }
 0x4ec   : > { %11304 = vmatprep.subr.bf16.mxu1 %v11303_v26  ;;  %11312 = vmatprep.subr.bf16.mxu0 %v11311_v50 }
 0x4ed   : > { %11306 = vmatpush1.bf16.msra.mxu1 %v11305_v9  ;;  %11314 = vmatpush1.bf16.msra.mxu0 %v11313_v45 }
 0x4f0   : > { %10714 = vmatmul.mubr.msk.f32.vlgmr.msra.gmra.mrb[102].mxu1 %vm17595_vm9, %v16807_v20  ;;  %10718 = vmatmul.mubr.msk.f32.vlgmr.msra.gmra.mrb[102].mxu0 %vm17596_vm11, %v16807_v20  ;;  %vm17611_vm9 = vmmov %vm17608_vm0 }
 0x4f1   : > { %8083 = vmatprep.mubr.f32.mxu1 %v17334_v52  ;;  %8172 = vmatprep.mubr.f32.mxu0 %v17334_v52  ;;  %vm17612_vm11 = vmmov %vm17608_vm0 }
 0x4f4   : > { %10715 = vmatmul.mubr.msk.f32.gmra.mrb[104].mxu1 %vm17597_vm7, %v16818_v61  ;;  %10719 = vmatmul.mubr.msk.f32.gmra.mrb[104].mxu0 %vm17598_vm15, %v16818_v61  ;;  %vm17613_vm7 = vmmov %vm17608_vm0 }
 0x4f5   : > { %8089 = vmatprep.mubr.f32.mxu1 %v17334_v52  ;;  %8178 = vmatprep.mubr.f32.mxu0 %v17334_v52  ;;  %vm17614_vm15 = vmmov %vm17608_vm0 }
 0x4f8   : > { %10716 = vmatmul.mubr.msk.f32.gmra.mrb[106].mxu1 %vm17599_vm2, %v16829_v19  ;;  %10720 = vmatmul.mubr.msk.f32.gmra.mrb[106].mxu0 %vm17600_vm4, %v16829_v19  ;;  %vm17615_vm2 = vmmov %vm17608_vm0 }
 0x4f9   : > { %8095 = vmatprep.mubr.f32.mxu1 %v17334_v52  ;;  %8184 = vmatprep.mubr.f32.mxu0 %v17334_v52  ;;  %vm17616_vm4 = vmmov %vm17608_vm0 }
 0x4fc   : > { %v6631_v31 = vpop.f32.mrb[74].mxu0  ;;  %v6720_v15 = vpop.f32.mrb[78].mxu1  ;;  %10717 = vmatmul.mubr.msk.f32.gmra.mrb[108].mxu1 %vm17601_vm14, %v16840_v55  ;;  %10721 = vmatmul.mubr.msk.f32.gmra.mrb[108].mxu0 %vm17602_vm1, %v16840_v55  ;;  %vm17617_vm14 = vmmov %vm17608_vm0 }
 0x4fd   : > { %v6633_v46 = vpop.f32.mrb[75].mxu0  ;;  %v6722_v56 = vpop.f32.mrb[79].mxu1  ;;  %8255 = vmatprep.mubr.f32.mxu1 %v17334_v52  ;;  %8344 = vmatprep.mubr.f32.mxu0 %v17334_v52  ;;  %vm17618_vm1 = vmmov %vm17608_vm0 }
 0x500   : > { %v6637_v47 = vpop.f32.mrb[76].mxu0  ;;  %v6726_v11 = vpop.f32.mrb[80].mxu1 }
 0x501   : > { %v11317_v36 = vpack.c.bf16 %v6637_v47, %v6631_v31  ;;  %v11325_v58 = vpack.c.bf16 %v6726_v11, %v6720_v15  ;;  %v6639_v25 = vpop.f32.mrb[77].mxu0  ;;  %v6728_v37 = vpop.f32.mrb[81].mxu1 }
 0x502   : > { %v11315_v43 = vpack.c.bf16 %v6639_v25, %v6633_v46  ;;  %v11323_v3 = vpack.c.bf16 %v6728_v37, %v6722_v56 }
 0x504   : > { %v6643_v34 = vpop.f32.mrb[78].mxu0  ;;  %v6732_v0 = vpop.f32.mrb[82].mxu1  ;;  %11316 = vmatprep.subr.bf16.mxu1 %v11315_v43  ;;  %11324 = vmatprep.subr.bf16.mxu0 %v11323_v3 }
 0x505   : > { %v6645_v41 = vpop.f32.mrb[79].mxu0  ;;  %v6734_v28 = vpop.f32.mrb[83].mxu1  ;;  %11318 = vmatpush1.bf16.msra.mxu1 %v11317_v36  ;;  %11326 = vmatpush1.bf16.msra.mxu0 %v11325_v58 }
 0x508   : > { %v6649_v6 = vpop.f32.mrb[80].mxu0  ;;  %v6738_v40 = vpop.f32.mrb[84].mxu1 }
 0x509   : > { %v11321_v57 = vpack.c.bf16 %v6649_v6, %v6643_v34  ;;  %v11329_v39 = vpack.c.bf16 %v6738_v40, %v6732_v0  ;;  %v6651_v7 = vpop.f32.mrb[81].mxu0  ;;  %v6740_v49 = vpop.f32.mrb[85].mxu1 }
 0x50a   : > { %v11319_v17 = vpack.c.bf16 %v6651_v7, %v6645_v41  ;;  %v11327_v1 = vpack.c.bf16 %v6740_v49, %v6734_v28 }
 0x50c   : > { %11320 = vmatprep.subr.bf16.mxu1 %v11319_v17  ;;  %11328 = vmatprep.subr.bf16.mxu0 %v11327_v1  ;;  %v16928_v17 = vpop.permute.xlu0 %8816  ;;  %v16930_v1 = vpop.permute.xlu1 %8821 }
 0x50d   : > { %11322 = vmatpush1.bf16.msra.mxu1 %v11321_v57  ;;  %11330 = vmatpush1.bf16.msra.mxu0 %v11329_v39 }
 0x510   : > { %10722 = vmatmul.mubr.msk.f32.vlgmr.msra.gmra.mrb[110].mxu1 %vm17603_vm3, %v16807_v20  ;;  %10726 = vmatmul.mubr.msk.f32.vlgmr.msra.gmra.mrb[110].mxu0 %vm17604_vm12, %v16807_v20  ;;  %vm17619_vm3 = vmmov %vm17608_vm0 }
 0x511   : > { %8261 = vmatprep.mubr.f32.mxu1 %v17334_v52  ;;  %8350 = vmatprep.mubr.f32.mxu0 %v17334_v52  ;;  %vm17620_vm12 = vmmov %vm17608_vm0 }
 0x514   : > { %10723 = vmatmul.mubr.msk.f32.gmra.mrb[112].mxu1 %vm17605_vm8, %v16818_v61  ;;  %10727 = vmatmul.mubr.msk.f32.gmra.mrb[112].mxu0 %vm17606_vm13, %v16818_v61  ;;  %vm17621_vm8 = vmmov %vm17608_vm0 }
 0x515   : > { %8267 = vmatprep.mubr.f32.mxu1 %v17334_v52  ;;  %8356 = vmatprep.mubr.f32.mxu0 %v17334_v52  ;;  %vm17622_vm13 = vmmov %vm17608_vm0 }
 0x518   : > { %10724 = vmatmul.mubr.msk.f32.gmra.mrb[114].mxu1 %vm17607_vm6, %v16829_v19  ;;  %10728 = vmatmul.mubr.msk.f32.gmra.mrb[114].mxu0 %vm17608_vm0, %v16829_v19  ;;  %vm17623_vm6 = vmmov %vm17608_vm0 }
 0x519   : > { %8273 = vmatprep.mubr.f32.mxu1 %v17334_v52  ;;  %8362 = vmatprep.mubr.f32.mxu0 %v17334_v52 }
 0x51c   : > { %v6809_v2 = vpop.f32.mrb[82].mxu0  ;;  %v6898_v42 = vpop.f32.mrb[86].mxu1  ;;  %10725 = vmatmul.mubr.msk.f32.gmra.mrb[116].mxu1 %vm17609_vm5, %v16840_v55  ;;  %10729 = vmatmul.mubr.msk.f32.gmra.mrb[116].mxu0 %vm17610_vm10, %v16840_v55  ;;  %vm17624_vm5 = vmmov %vm17608_vm0 }
 0x51d   : > { %v6811_v32 = vpop.f32.mrb[83].mxu0  ;;  %v6900_v21 = vpop.f32.mrb[87].mxu1  ;;  %8433 = vmatprep.mubr.f32.mxu1 %v17334_v52  ;;  %8522 = vmatprep.mubr.f32.mxu0 %v17334_v52  ;;  %vm17625_vm10 = vmmov %vm17608_vm0 }
 0x520   : > { %v6815_v14 = vpop.f32.mrb[84].mxu0  ;;  %v6904_v51 = vpop.f32.mrb[88].mxu1 }
 0x521   : > { %v11333_v16 = vpack.c.bf16 %v6815_v14, %v6809_v2  ;;  %v11341_v53 = vpack.c.bf16 %v6904_v51, %v6898_v42  ;;  %v6817_v10 = vpop.f32.mrb[85].mxu0  ;;  %v6906_v18 = vpop.f32.mrb[89].mxu1 }
 0x522   : > { %v11331_v23 = vpack.c.bf16 %v6817_v10, %v6811_v32  ;;  %v11339_v27 = vpack.c.bf16 %v6906_v18, %v6900_v21 }
 0x524   : > { %v6821_v8 = vpop.f32.mrb[86].mxu0  ;;  %v6910_v30 = vpop.f32.mrb[90].mxu1  ;;  %11332 = vmatprep.subr.bf16.mxu1 %v11331_v23  ;;  %11340 = vmatprep.subr.bf16.mxu0 %v11339_v27 }
 0x525   : > { %v6823_v60 = vpop.f32.mrb[87].mxu0  ;;  %v6912_v38 = vpop.f32.mrb[91].mxu1  ;;  %11334 = vmatpush1.bf16.msra.mxu1 %v11333_v16  ;;  %11342 = vmatpush1.bf16.msra.mxu0 %v11341_v53 }
 0x528   : > { %v6827_v29 = vpop.f32.mrb[88].mxu0  ;;  %v6916_v63 = vpop.f32.mrb[92].mxu1 }
 0x529   : > { %v11337_v12 = vpack.c.bf16 %v6827_v29, %v6821_v8  ;;  %v11345_v33 = vpack.c.bf16 %v6916_v63, %v6910_v30  ;;  %v6829_v4 = vpop.f32.mrb[89].mxu0  ;;  %v6918_v13 = vpop.f32.mrb[93].mxu1 }
 0x52a   : > { %v11335_v5 = vpack.c.bf16 %v6829_v4, %v6823_v60  ;;  %v11343_v59 = vpack.c.bf16 %v6918_v13, %v6912_v38 }
 0x52c   : > { %11336 = vmatprep.subr.bf16.mxu1 %v11335_v5  ;;  %11344 = vmatprep.subr.bf16.mxu0 %v11343_v59  ;;  %v16940_v59 = vpop.permute.xlu0 %8826 }
 0x52d   : > { %11338 = vmatpush1.bf16.msra.mxu1 %v11337_v12  ;;  %11346 = vmatpush1.bf16.msra.mxu0 %v11345_v33 }
 0x530   : > { %10730 = vmatmul.mubr.msk.f32.vlgmr.msra.gmra.mrb[118].mxu1 %vm17611_vm9, %v16807_v20  ;;  %10734 = vmatmul.mubr.msk.f32.vlgmr.msra.gmra.mrb[118].mxu0 %vm17612_vm11, %v16807_v20  ;;  %vm17626_vm9 = vmmov %vm17608_vm0 }
 0x531   : > { %8439 = vmatprep.mubr.f32.mxu1 %v17334_v52  ;;  %8528 = vmatprep.mubr.f32.mxu0 %v17334_v52  ;;  %vm17627_vm11 = vmmov %vm17608_vm0 }
 0x534   : > { %10731 = vmatmul.mubr.msk.f32.gmra.mrb[120].mxu1 %vm17613_vm7, %v16818_v61  ;;  %10735 = vmatmul.mubr.msk.f32.gmra.mrb[120].mxu0 %vm17614_vm15, %v16818_v61  ;;  %vm17628_vm7 = vmmov %vm17608_vm0 }
 0x535   : > { %8445 = vmatprep.mubr.f32.mxu1 %v17334_v52  ;;  %8534 = vmatprep.mubr.f32.mxu0 %v17334_v52  ;;  %vm17629_vm15 = vmmov %vm17608_vm0 }
 0x538   : > { %10732 = vmatmul.mubr.msk.f32.gmra.mrb[122].mxu1 %vm17615_vm2, %v16829_v19  ;;  %10736 = vmatmul.mubr.msk.f32.gmra.mrb[122].mxu0 %vm17616_vm4, %v16829_v19  ;;  %vm17630_vm2 = vmmov %vm17608_vm0 }
 0x539   : > { %8451 = vmatprep.mubr.f32.mxu1 %v17334_v52  ;;  %8540 = vmatprep.mubr.f32.mxu0 %v17334_v52  ;;  %vm17631_vm4 = vmmov %vm17608_vm0 }
 0x53c   : > { %v6987_v54 = vpop.f32.mrb[90].mxu0  ;;  %v7076_v35 = vpop.f32.mrb[94].mxu1  ;;  %10733 = vmatmul.mubr.msk.f32.gmra.mrb[124].mxu1 %vm17617_vm14, %v16840_v55  ;;  %10737 = vmatmul.mubr.msk.f32.gmra.mrb[124].mxu0 %vm17618_vm1, %v16840_v55  ;;  %vm17632_vm14 = vmmov %vm17608_vm0 }
 0x53d   : > { %v6989_v48 = vpop.f32.mrb[91].mxu0  ;;  %v7078_v24 = vpop.f32.mrb[95].mxu1  ;;  %8611 = vmatprep.mubr.f32.mxu1 %v17334_v52  ;;  %8700 = vmatprep.mubr.f32.mxu0 %v17334_v52  ;;  %vm17633_vm1 = vmmov %vm17608_vm0 }
 0x540   : > { %v6993_v22 = vpop.f32.mrb[92].mxu0  ;;  %v7082_v9 = vpop.f32.mrb[96].mxu1 }
 0x541   : > { %v11349_v45 = vpack.c.bf16 %v6993_v22, %v6987_v54  ;;  %v11357_v62 = vpack.c.bf16 %v7082_v9, %v7076_v35  ;;  %v6995_v44 = vpop.f32.mrb[93].mxu0  ;;  %v7084_v26 = vpop.f32.mrb[97].mxu1 }
 0x542   : > { %v11347_v50 = vpack.c.bf16 %v6995_v44, %v6989_v48  ;;  %v11355_v31 = vpack.c.bf16 %v7084_v26, %v7078_v24  ;;  %v16942_v48 = vpop.permute.xlu1 %8831 }
 0x544   : > { %v6999_v15 = vpop.f32.mrb[94].mxu0  ;;  %v7088_v46 = vpop.f32.mrb[98].mxu1  ;;  %11348 = vmatprep.subr.bf16.mxu1 %v11347_v50  ;;  %11356 = vmatprep.subr.bf16.mxu0 %v11355_v31 }
 0x545   : > { %v7001_v56 = vpop.f32.mrb[95].mxu0  ;;  %v7090_v47 = vpop.f32.mrb[99].mxu1  ;;  %11350 = vmatpush1.bf16.msra.mxu1 %v11349_v45  ;;  %11358 = vmatpush1.bf16.msra.mxu0 %v11357_v62 }
 0x548   : > { %v7005_v11 = vpop.f32.mrb[96].mxu0  ;;  %v7094_v36 = vpop.f32.mrb[100].mxu1 }
 0x549   : > { %v11353_v58 = vpack.c.bf16 %v7005_v11, %v6999_v15  ;;  %v11361_v25 = vpack.c.bf16 %v7094_v36, %v7088_v46  ;;  %v7007_v37 = vpop.f32.mrb[97].mxu0  ;;  %v7096_v43 = vpop.f32.mrb[101].mxu1 }
 0x54a   : > { %v11351_v3 = vpack.c.bf16 %v7007_v37, %v7001_v56  ;;  %v11359_v34 = vpack.c.bf16 %v7096_v43, %v7090_v47 }
 0x54c   : > { %11352 = vmatprep.subr.bf16.mxu1 %v11351_v3  ;;  %11360 = vmatprep.subr.bf16.mxu0 %v11359_v34 }
 0x54d   : > { %11354 = vmatpush1.bf16.msra.mxu1 %v11353_v58  ;;  %11362 = vmatpush1.bf16.msra.mxu0 %v11361_v25 }
 0x550   : > { %10738 = vmatmul.mubr.msk.f32.vlgmr.msra.gmra.mrb[126].mxu1 %vm17619_vm3, %v16807_v20  ;;  %10742 = vmatmul.mubr.msk.f32.vlgmr.msra.gmra.mrb[126].mxu0 %vm17620_vm12, %v16807_v20  ;;  %vm17634_vm3 = vmmov %vm17608_vm0 }
 0x551   : > { %8617 = vmatprep.mubr.f32.mxu1 %v17334_v52  ;;  %8706 = vmatprep.mubr.f32.mxu0 %v17334_v52  ;;  %vm17635_vm12 = vmmov %vm17608_vm0 }
 0x554   : > { %10739 = vmatmul.mubr.msk.f32.gmra.mrb[128].mxu1 %vm17621_vm8, %v16818_v61  ;;  %10743 = vmatmul.mubr.msk.f32.gmra.mrb[128].mxu0 %vm17622_vm13, %v16818_v61  ;;  %vm17636_vm8 = vmmov %vm17608_vm0 }
 0x555   : > { %8623 = vmatprep.mubr.f32.mxu1 %v17334_v52  ;;  %8712 = vmatprep.mubr.f32.mxu0 %v17334_v52  ;;  %vm17637_vm13 = vmmov %vm17608_vm0 }
 0x558   : > { %10740 = vmatmul.mubr.msk.f32.gmra.mrb[130].mxu1 %vm17623_vm6, %v16829_v19  ;;  %10744 = vmatmul.mubr.msk.f32.gmra.mrb[130].mxu0 %vm17608_vm0, %v16829_v19  ;;  %vm17638_vm6 = vmmov %vm17608_vm0 }
 0x559   : > { %8629 = vmatprep.mubr.f32.mxu1 %v17334_v52  ;;  %8718 = vmatprep.mubr.f32.mxu0 %v17334_v52 }
 0x55c   : > { %v10899_v0 = vpop.f32.mrb[98].mxu0  ;;  %10741 = vmatmul.mubr.msk.f32.gmra.mrb[132].mxu1 %vm17624_vm5, %v16840_v55  ;;  %10745 = vmatmul.mubr.msk.f32.gmra.mrb[132].mxu0 %vm17625_vm10, %v16840_v55  ;;  %vm17639_vm5 = vmmov %vm17608_vm0 }
 0x55d   : > { %v7165_v41 = vpop.f32.mrb[99].mxu0  ;;  %10919 = vmatprep.mubr.msk.f32.mxu1 %vm17626_vm9, %v16807_v20  ;;  %9074 = vmatprep.mubr.f32.mxu0 %v17334_v52  ;;  %vm17640_vm10 = vmmov %vm17608_vm0 }
 0x55e   : > { %v11363_v28 = vpack.c.bf16 %v10899_v0, %v7165_v41  ;;  %vm17641_vm9 = vmmov %vm17608_vm0 }
 0x560   : > { %v10902_v6 = vpop.f32.mrb[100].mxu0  ;;  %11364 = vmatprep.subr.bf16.mxu1 %v11363_v28 }
 0x561   : > { %v7175_v40 = vpop.f32.mrb[101].mxu0  ;;  %11366 = vmatpush3.bf16.msra.mxu1 %v11363_v28 }
 0x562   : > { %v11367_v57 = vpack.c.bf16 %v10902_v6, %v7175_v40  ;;  %v16955_v6 = vld [vmem:[%s17221_s12] sm:$0xff]  ;;  %v16966_v40 = vld [vmem:[%s17221_s12 + $0x8] sm:$0xff] }
 0x564   : > { %11368 = vmatprep.subr.bf16.mxu1 %v11367_v57 }
 0x565   : > { %11370 = vmatpush3.bf16.msra.mxu1 %v11367_v57  ;;  %v16977_v57 = vld [vmem:[%s17221_s12 + $0x10] sm:$0xff] }
 0x568   : > { %10920 = vmatmul.mubr.msk.f32.vlgmr.msra.gmra.mrb[134].mxu1 %vm17627_vm11, %v16818_v61  ;;  %vm17642_vm11 = vmmov %vm17608_vm0 }
 0x569   : > { %10922 = vmatprep.mubr.msk.f32.mxu1 %vm17628_vm7, %v16829_v19  ;;  %vm17643_vm7 = vmmov %vm17608_vm0 }
 0x56c   : > { %10923 = vmatmul.mubr.msk.f32.gmra.mrb[136].mxu1 %vm17629_vm15, %v16840_v55  ;;  %vm17644_vm15 = vmmov %vm17608_vm0 }
 0x56d   : > { %9163 = vmatprep.mubr.f32.mxu1 %v17334_v52 }
 0x5c3   : > { %v8079_v20 = vpop.f32.mrb[102].mxu1  ;;  %v8168_v39 = vpop.f32.mrb[102].mxu0 }
 0x5c4   : > { %v8081_v7 = vpop.f32.mrb[103].mxu1  ;;  %v8170_v49 = vpop.f32.mrb[103].mxu0  ;;  %v8834_v2 = vadd.f32 %v16928_v17, %v8079_v20  ;;  %v8836_v61 = vadd.f32 %v16928_v17, %v8168_v39 }
 0x5c5   : > { %v8835_v42 = vadd.f32 %v16928_v17, %v8081_v7  ;;  %v8837_v19 = vadd.f32 %v16928_v17, %v8170_v49 }
 0x5c6   : > { %v8902_v18 = vmax.f32 %v8834_v2, 0.0  ;;  %v8904_v23 = vmax.f32 %v8836_v61, 0.0  ;;  %v16988_v2 = vld [vmem:[%s17221_s12 + $0x18] sm:$0xff] }
 0x5c7   : > { %v8085_v32 = vpop.f32.mrb[104].mxu1  ;;  %v8174_v55 = vpop.f32.mrb[104].mxu0  ;;  %v8903_v30 = vmax.f32 %v8835_v42, 0.0  ;;  %v8905_v60 = vmax.f32 %v8837_v19, 0.0 }
 0x5c8   : > { %v8851_v21 = vadd.f32 %v16930_v1, %v8085_v32  ;;  %v8853_v14 = vadd.f32 %v16930_v1, %v8174_v55  ;;  %v8087_v51 = vpop.f32.mrb[105].mxu1  ;;  %v8176_v16 = vpop.f32.mrb[105].mxu0 }
 0x5c9   : > { %v8852_v53 = vadd.f32 %v16930_v1, %v8087_v51  ;;  %v8854_v10 = vadd.f32 %v16930_v1, %v8176_v16 }
 0x5ca   : > { %v8919_v27 = vmax.f32 %v8851_v21, 0.0  ;;  %v8921_v8 = vmax.f32 %v8853_v14, 0.0 }
 0x5cb   : > { %v8920_v38 = vmax.f32 %v8852_v53, 0.0  ;;  %v8922_v29 = vmax.f32 %v8854_v10, 0.0  ;;  %v8091_v63 = vpop.f32.mrb[106].mxu1  ;;  %v8180_v12 = vpop.f32.mrb[106].mxu0 }
 0x5cc   : > { %v11373_v33 = vpack.c.bf16 %v8919_v27, %v8902_v18  ;;  %v11381_v4 = vpack.c.bf16 %v8921_v8, %v8904_v23  ;;  %v8093_v13 = vpop.f32.mrb[107].mxu1  ;;  %v8182_v5 = vpop.f32.mrb[107].mxu0  ;;  %v8868_v24 = vadd.f32 %v16940_v59, %v8091_v63  ;;  %v8870_v22 = vadd.f32 %v16940_v59, %v8180_v12 }
 0x5cd   : > { %v11371_v54 = vpack.c.bf16 %v8920_v38, %v8903_v30  ;;  %v11379_v35 = vpack.c.bf16 %v8922_v29, %v8905_v60  ;;  %v8869_v9 = vadd.f32 %v16940_v59, %v8093_v13  ;;  %v8871_v45 = vadd.f32 %v16940_v59, %v8182_v5 }
 0x5ce   : > { %v8936_v47 = vmax.f32 %v8868_v24, 0.0  ;;  %v8938_v11 = vmax.f32 %v8870_v22, 0.0 }
 0x5cf   : > { %v8097_v62 = vpop.f32.mrb[108].mxu1  ;;  %v8186_v44 = vpop.f32.mrb[108].mxu0  ;;  %11372 = vmatprep.subr.bf16.mxu0 %v11371_v54  ;;  %11380 = vmatprep.subr.bf16.mxu1 %v11379_v35  ;;  %v8937_v25 = vmax.f32 %v8869_v9, 0.0  ;;  %v8939_v37 = vmax.f32 %v8871_v45, 0.0 }
 0x5d0   : > { %v8885_v26 = vadd.f32 %v16942_v48, %v8097_v62  ;;  %v8887_v50 = vadd.f32 %v16942_v48, %v8186_v44  ;;  %v8099_v31 = vpop.f32.mrb[109].mxu1  ;;  %v8188_v15 = vpop.f32.mrb[109].mxu0  ;;  %11374 = vmatpush1.bf16.msra.mxu0 %v11373_v33  ;;  %11382 = vmatpush1.bf16.msra.mxu1 %v11381_v4 }
 0x5d1   : > { %v8886_v46 = vadd.f32 %v16942_v48, %v8099_v31  ;;  %v8888_v56 = vadd.f32 %v16942_v48, %v8188_v15 }
 0x5d2   : > { %v8953_v36 = vmax.f32 %v8885_v26, 0.0  ;;  %v8955_v58 = vmax.f32 %v8887_v50, 0.0 }
 0x5d3   : > { %v8954_v43 = vmax.f32 %v8886_v46, 0.0  ;;  %v8956_v3 = vmax.f32 %v8888_v56, 0.0 }
 0x5d4   : > { %v11377_v34 = vpack.c.bf16 %v8953_v36, %v8936_v47  ;;  %v11385_v0 = vpack.c.bf16 %v8955_v58, %v8938_v11 }
 0x5d5   : > { %v11375_v41 = vpack.c.bf16 %v8954_v43, %v8937_v25  ;;  %v11383_v28 = vpack.c.bf16 %v8956_v3, %v8939_v37 }
 0x5d7   : > { %11376 = vmatprep.subr.bf16.mxu0 %v11375_v41  ;;  %11384 = vmatprep.subr.bf16.mxu1 %v11383_v28 }
 0x5d8   : > { %11378 = vmatpush1.bf16.msra.mxu0 %v11377_v34  ;;  %11386 = vmatpush1.bf16.msra.mxu1 %v11385_v0 }
 0x5db   : > { %10750 = vmatmul.mubr.msk.f32.vlgmr.msra.gmra.mrb[134].mxu0 %vm17630_vm2, %v16955_v6  ;;  %10754 = vmatmul.mubr.msk.f32.vlgmr.msra.gmra.mrb[138].mxu1 %vm17631_vm4, %v16955_v6  ;;  %vm17645_vm2 = vmmov %vm17608_vm0 }
 0x5dc   : > { %9080 = vmatprep.mubr.f32.mxu0 %v17334_v52  ;;  %9169 = vmatprep.mubr.f32.mxu1 %v17334_v52  ;;  %vm17646_vm4 = vmmov %vm17608_vm0 }
 0x5df   : > { %10751 = vmatmul.mubr.msk.f32.gmra.mrb[136].mxu0 %vm17632_vm14, %v16966_v40  ;;  %10755 = vmatmul.mubr.msk.f32.gmra.mrb[140].mxu1 %vm17633_vm1, %v16966_v40  ;;  %vm17647_vm14 = vmmov %vm17608_vm0 }
 0x5e0   : > { %9086 = vmatprep.mubr.f32.mxu0 %v17334_v52  ;;  %9175 = vmatprep.mubr.f32.mxu1 %v17334_v52  ;;  %vm17648_vm1 = vmmov %vm17608_vm0 }
 0x5e3   : > { %v8257_v20 = vpop.f32.mrb[110].mxu1  ;;  %v8346_v39 = vpop.f32.mrb[110].mxu0  ;;  %10752 = vmatmul.mubr.msk.f32.gmra.mrb[138].mxu0 %vm17634_vm3, %v16977_v57  ;;  %10756 = vmatmul.mubr.msk.f32.gmra.mrb[142].mxu1 %vm17635_vm12, %v16977_v57  ;;  %vm17649_vm3 = vmmov %vm17608_vm0 }
 0x5e4   : > { %v8259_v7 = vpop.f32.mrb[111].mxu1  ;;  %v8348_v49 = vpop.f32.mrb[111].mxu0  ;;  %9092 = vmatprep.mubr.f32.mxu0 %v17334_v52  ;;  %9181 = vmatprep.mubr.f32.mxu1 %v17334_v52  ;;  %v8838_v61 = vadd.f32 %v16928_v17, %v8257_v20  ;;  %v8840_v42 = vadd.f32 %v16928_v17, %v8346_v39  ;;  %vm17650_vm12 = vmmov %vm17608_vm0 }
 0x5e5   : > { %v8839_v19 = vadd.f32 %v16928_v17, %v8259_v7  ;;  %v8841_v32 = vadd.f32 %v16928_v17, %v8348_v49 }
 0x5e6   : > { %v8906_v23 = vmax.f32 %v8838_v61, 0.0  ;;  %v8908_v27 = vmax.f32 %v8840_v42, 0.0 }
 0x5e7   : > { %v8263_v55 = vpop.f32.mrb[112].mxu1  ;;  %v8352_v21 = vpop.f32.mrb[112].mxu0  ;;  %10753 = vmatmul.mubr.msk.f32.gmra.mrb[140].mxu0 %vm17636_vm8, %v16988_v2  ;;  %10757 = vmatmul.mubr.msk.f32.gmra.mrb[144].mxu1 %vm17637_vm13, %v16988_v2  ;;  %v8907_v60 = vmax.f32 %v8839_v19, 0.0  ;;  %v8909_v38 = vmax.f32 %v8841_v32, 0.0  ;;  %vm17651_vm8 = vmmov %vm17608_vm0 }
 0x5e8   : > { %v8855_v14 = vadd.f32 %v16930_v1, %v8263_v55  ;;  %v8857_v51 = vadd.f32 %v16930_v1, %v8352_v21  ;;  %v8265_v16 = vpop.f32.mrb[113].mxu1  ;;  %v8354_v53 = vpop.f32.mrb[113].mxu0  ;;  %9252 = vmatprep.mubr.f32.mxu0 %v17334_v52  ;;  %9341 = vmatprep.mubr.f32.mxu1 %v17334_v52  ;;  %vm17652_vm13 = vmmov %vm17608_vm0 }
 0x5e9   : > { %v8856_v10 = vadd.f32 %v16930_v1, %v8265_v16  ;;  %v8858_v18 = vadd.f32 %v16930_v1, %v8354_v53 }
 0x5ea   : > { %v8923_v8 = vmax.f32 %v8855_v14, 0.0  ;;  %v8925_v30 = vmax.f32 %v8857_v51, 0.0 }
 0x5eb   : > { %v8924_v29 = vmax.f32 %v8856_v10, 0.0  ;;  %v8926_v63 = vmax.f32 %v8858_v18, 0.0  ;;  %v8269_v12 = vpop.f32.mrb[114].mxu1  ;;  %v8358_v33 = vpop.f32.mrb[114].mxu0 }
 0x5ec   : > { %v11389_v4 = vpack.c.bf16 %v8923_v8, %v8906_v23  ;;  %v11397_v13 = vpack.c.bf16 %v8925_v30, %v8908_v27  ;;  %v8271_v5 = vpop.f32.mrb[115].mxu1  ;;  %v8360_v54 = vpop.f32.mrb[115].mxu0  ;;  %v8872_v22 = vadd.f32 %v16940_v59, %v8269_v12  ;;  %v8874_v9 = vadd.f32 %v16940_v59, %v8358_v33 }
 0x5ed   : > { %v11387_v35 = vpack.c.bf16 %v8924_v29, %v8907_v60  ;;  %v11395_v24 = vpack.c.bf16 %v8926_v63, %v8909_v38  ;;  %v8873_v45 = vadd.f32 %v16940_v59, %v8271_v5  ;;  %v8875_v62 = vadd.f32 %v16940_v59, %v8360_v54 }
 0x5ee   : > { %v8940_v11 = vmax.f32 %v8872_v22, 0.0  ;;  %v8942_v36 = vmax.f32 %v8874_v9, 0.0 }
 0x5ef   : > { %v8275_v44 = vpop.f32.mrb[116].mxu1  ;;  %v8364_v26 = vpop.f32.mrb[116].mxu0  ;;  %11388 = vmatprep.subr.bf16.mxu0 %v11387_v35  ;;  %11396 = vmatprep.subr.bf16.mxu1 %v11395_v24  ;;  %v8941_v37 = vmax.f32 %v8873_v45, 0.0  ;;  %v8943_v43 = vmax.f32 %v8875_v62, 0.0 }
 0x5f0   : > { %v8889_v50 = vadd.f32 %v16942_v48, %v8275_v44  ;;  %v8891_v31 = vadd.f32 %v16942_v48, %v8364_v26  ;;  %v8277_v15 = vpop.f32.mrb[117].mxu1  ;;  %v8366_v46 = vpop.f32.mrb[117].mxu0  ;;  %11390 = vmatpush1.bf16.msra.mxu0 %v11389_v4  ;;  %11398 = vmatpush1.bf16.msra.mxu1 %v11397_v13 }
 0x5f1   : > { %v8890_v56 = vadd.f32 %v16942_v48, %v8277_v15  ;;  %v8892_v47 = vadd.f32 %v16942_v48, %v8366_v46 }
 0x5f2   : > { %v8957_v58 = vmax.f32 %v8889_v50, 0.0  ;;  %v8959_v25 = vmax.f32 %v8891_v31, 0.0 }
 0x5f3   : > { %v8958_v3 = vmax.f32 %v8890_v56, 0.0  ;;  %v8960_v34 = vmax.f32 %v8892_v47, 0.0 }
 0x5f4   : > { %v11393_v0 = vpack.c.bf16 %v8957_v58, %v8940_v11  ;;  %v11401_v41 = vpack.c.bf16 %v8959_v25, %v8942_v36 }
 0x5f5   : > { %v11391_v28 = vpack.c.bf16 %v8958_v3, %v8941_v37  ;;  %v11399_v20 = vpack.c.bf16 %v8960_v34, %v8943_v43 }
 0x5f7   : > { %11392 = vmatprep.subr.bf16.mxu0 %v11391_v28  ;;  %11400 = vmatprep.subr.bf16.mxu1 %v11399_v20 }
 0x5f8   : > { %11394 = vmatpush1.bf16.msra.mxu0 %v11393_v0  ;;  %11402 = vmatpush1.bf16.msra.mxu1 %v11401_v41 }
 0x5fb   : > { %10758 = vmatmul.mubr.msk.f32.vlgmr.msra.gmra.mrb[142].mxu0 %vm17638_vm6, %v16955_v6  ;;  %10762 = vmatmul.mubr.msk.f32.vlgmr.msra.gmra.mrb[146].mxu1 %vm17608_vm0, %v16955_v6  ;;  %vm17653_vm6 = vmmov %vm17608_vm0 }
 0x5fc   : > { %9258 = vmatprep.mubr.f32.mxu0 %v17334_v52  ;;  %9347 = vmatprep.mubr.f32.mxu1 %v17334_v52 }
 0x5ff   : > { %10759 = vmatmul.mubr.msk.f32.gmra.mrb[144].mxu0 %vm17639_vm5, %v16966_v40  ;;  %10763 = vmatmul.mubr.msk.f32.gmra.mrb[148].mxu1 %vm17640_vm10, %v16966_v40  ;;  %vm17654_vm5 = vmmov %vm17608_vm0 }
 0x600   : > { %9264 = vmatprep.mubr.f32.mxu0 %v17334_v52  ;;  %9353 = vmatprep.mubr.f32.mxu1 %v17334_v52  ;;  %vm17655_vm10 = vmmov %vm17608_vm0 }
 0x603   : > { %v8435_v39 = vpop.f32.mrb[118].mxu1  ;;  %v8524_v7 = vpop.f32.mrb[118].mxu0  ;;  %10760 = vmatmul.mubr.msk.f32.gmra.mrb[146].mxu0 %vm17641_vm9, %v16977_v57  ;;  %10764 = vmatmul.mubr.msk.f32.gmra.mrb[150].mxu1 %vm17642_vm11, %v16977_v57  ;;  %vm17656_vm9 = vmmov %vm17608_vm0 }
 0x604   : > { %v8437_v49 = vpop.f32.mrb[119].mxu1  ;;  %v8526_v61 = vpop.f32.mrb[119].mxu0  ;;  %9270 = vmatprep.mubr.f32.mxu0 %v17334_v52  ;;  %9359 = vmatprep.mubr.f32.mxu1 %v17334_v52  ;;  %v8842_v42 = vadd.f32 %v16928_v17, %v8435_v39  ;;  %v8844_v19 = vadd.f32 %v16928_v17, %v8524_v7  ;;  %vm17657_vm11 = vmmov %vm17608_vm0 }
 0x605   : > { %v8843_v32 = vadd.f32 %v16928_v17, %v8437_v49  ;;  %v8845_v55 = vadd.f32 %v16928_v17, %v8526_v61 }
 0x606   : > { %v8910_v27 = vmax.f32 %v8842_v42, 0.0  ;;  %v8912_v8 = vmax.f32 %v8844_v19, 0.0 }
 0x607   : > { %v8441_v21 = vpop.f32.mrb[120].mxu1  ;;  %v8530_v14 = vpop.f32.mrb[120].mxu0  ;;  %10761 = vmatmul.mubr.msk.f32.gmra.mrb[148].mxu0 %vm17643_vm7, %v16988_v2  ;;  %10765 = vmatmul.mubr.msk.f32.gmra.mrb[152].mxu1 %vm17644_vm15, %v16988_v2  ;;  %v8911_v38 = vmax.f32 %v8843_v32, 0.0  ;;  %v8913_v29 = vmax.f32 %v8845_v55, 0.0  ;;  %vm17658_vm7 = vmmov %vm17608_vm0 }
 0x608   : > { %v8859_v51 = vadd.f32 %v16930_v1, %v8441_v21  ;;  %v8861_v16 = vadd.f32 %v16930_v1, %v8530_v14  ;;  %v8443_v53 = vpop.f32.mrb[121].mxu1  ;;  %v8532_v10 = vpop.f32.mrb[121].mxu0  ;;  %9430 = vmatprep.mubr.f32.mxu0 %v17334_v52  ;;  %9519 = vmatprep.mubr.f32.mxu1 %v17334_v52  ;;  %vm17659_vm15 = vmmov %vm17608_vm0 }
 0x609   : > { %v8860_v18 = vadd.f32 %v16930_v1, %v8443_v53  ;;  %v8862_v23 = vadd.f32 %v16930_v1, %v8532_v10 }
 0x60a   : > { %v8927_v30 = vmax.f32 %v8859_v51, 0.0  ;;  %v8929_v60 = vmax.f32 %v8861_v16, 0.0 }
 0x60b   : > { %v8928_v63 = vmax.f32 %v8860_v18, 0.0  ;;  %v8930_v12 = vmax.f32 %v8862_v23, 0.0  ;;  %v8447_v33 = vpop.f32.mrb[122].mxu1  ;;  %v8536_v4 = vpop.f32.mrb[122].mxu0 }
 0x60c   : > { %v11405_v13 = vpack.c.bf16 %v8927_v30, %v8910_v27  ;;  %v11413_v5 = vpack.c.bf16 %v8929_v60, %v8912_v8  ;;  %v8449_v54 = vpop.f32.mrb[123].mxu1  ;;  %v8538_v35 = vpop.f32.mrb[123].mxu0  ;;  %v8876_v9 = vadd.f32 %v16940_v59, %v8447_v33  ;;  %v8878_v45 = vadd.f32 %v16940_v59, %v8536_v4 }
 0x60d   : > { %v11403_v24 = vpack.c.bf16 %v8928_v63, %v8911_v38  ;;  %v11411_v22 = vpack.c.bf16 %v8930_v12, %v8913_v29  ;;  %v8877_v62 = vadd.f32 %v16940_v59, %v8449_v54  ;;  %v8879_v44 = vadd.f32 %v16940_v59, %v8538_v35 }
 0x60e   : > { %v8944_v36 = vmax.f32 %v8876_v9, 0.0  ;;  %v8946_v58 = vmax.f32 %v8878_v45, 0.0 }
 0x60f   : > { %v8453_v26 = vpop.f32.mrb[124].mxu1  ;;  %v8542_v50 = vpop.f32.mrb[124].mxu0  ;;  %11404 = vmatprep.subr.bf16.mxu0 %v11403_v24  ;;  %11412 = vmatprep.subr.bf16.mxu1 %v11411_v22  ;;  %v8945_v43 = vmax.f32 %v8877_v62, 0.0  ;;  %v8947_v3 = vmax.f32 %v8879_v44, 0.0 }
 0x610   : > { %v8893_v31 = vadd.f32 %v16942_v48, %v8453_v26  ;;  %v8895_v15 = vadd.f32 %v16942_v48, %v8542_v50  ;;  %v8455_v46 = vpop.f32.mrb[125].mxu1  ;;  %v8544_v56 = vpop.f32.mrb[125].mxu0  ;;  %11406 = vmatpush1.bf16.msra.mxu0 %v11405_v13  ;;  %11414 = vmatpush1.bf16.msra.mxu1 %v11413_v5 }
 0x611   : > { %v8894_v47 = vadd.f32 %v16942_v48, %v8455_v46  ;;  %v8896_v11 = vadd.f32 %v16942_v48, %v8544_v56 }
 0x612   : > { %v8961_v25 = vmax.f32 %v8893_v31, 0.0  ;;  %v8963_v37 = vmax.f32 %v8895_v15, 0.0 }
 0x613   : > { %v8962_v34 = vmax.f32 %v8894_v47, 0.0  ;;  %v8964_v0 = vmax.f32 %v8896_v11, 0.0 }
 0x614   : > { %v11409_v41 = vpack.c.bf16 %v8961_v25, %v8944_v36  ;;  %v11417_v28 = vpack.c.bf16 %v8963_v37, %v8946_v58 }
 0x615   : > { %v11407_v20 = vpack.c.bf16 %v8962_v34, %v8945_v43  ;;  %v11415_v39 = vpack.c.bf16 %v8964_v0, %v8947_v3 }
 0x617   : > { %11408 = vmatprep.subr.bf16.mxu0 %v11407_v20  ;;  %11416 = vmatprep.subr.bf16.mxu1 %v11415_v39 }
 0x618   : > { %11410 = vmatpush1.bf16.msra.mxu0 %v11409_v41  ;;  %11418 = vmatpush1.bf16.msra.mxu1 %v11417_v28 }
 0x61b   : > { %10766 = vmatmul.mubr.msk.f32.vlgmr.msra.gmra.mrb[150].mxu0 %vm17645_vm2, %v16955_v6  ;;  %10770 = vmatmul.mubr.msk.f32.vlgmr.msra.gmra.mrb[154].mxu1 %vm17646_vm4, %v16955_v6  ;;  %vm17660_vm2 = vmmov %vm17608_vm0 }
 0x61c   : > { %9436 = vmatprep.mubr.f32.mxu0 %v17334_v52  ;;  %9525 = vmatprep.mubr.f32.mxu1 %v17334_v52  ;;  %vm17661_vm4 = vmmov %vm17608_vm0 }
 0x61f   : > { %10767 = vmatmul.mubr.msk.f32.gmra.mrb[152].mxu0 %vm17647_vm14, %v16966_v40  ;;  %10771 = vmatmul.mubr.msk.f32.gmra.mrb[156].mxu1 %vm17648_vm1, %v16966_v40  ;;  %vm17662_vm14 = vmmov %vm17608_vm0 }
 0x620   : > { %9442 = vmatprep.mubr.f32.mxu0 %v17334_v52  ;;  %9531 = vmatprep.mubr.f32.mxu1 %v17334_v52  ;;  %vm17663_vm1 = vmmov %vm17608_vm0 }
 0x623   : > { %v8613_v7 = vpop.f32.mrb[126].mxu1  ;;  %v8702_v49 = vpop.f32.mrb[126].mxu0  ;;  %10768 = vmatmul.mubr.msk.f32.gmra.mrb[154].mxu0 %vm17649_vm3, %v16977_v57  ;;  %10772 = vmatmul.mubr.msk.f32.gmra.mrb[158].mxu1 %vm17650_vm12, %v16977_v57  ;;  %vm9883_vm3 = vcmask 7168  }
 0x624   : > { %v8615_v61 = vpop.f32.mrb[127].mxu1  ;;  %v8704_v42 = vpop.f32.mrb[127].mxu0  ;;  %9448 = vmatprep.mubr.f32.mxu0 %v17334_v52  ;;  %9537 = vmatprep.mubr.f32.mxu1 %v17334_v52  ;;  %v8846_v19 = vadd.f32 %v16928_v17, %v8613_v7  ;;  %v8848_v32 = vadd.f32 %v16928_v17, %v8702_v49 }
 0x625   : > { %v8847_v55 = vadd.f32 %v16928_v17, %v8615_v61  ;;  %v8849_v21 = vadd.f32 %v16928_v17, %v8704_v42 }
 0x626   : > { %v8914_v8 = vmax.f32 %v8846_v19, 0.0  ;;  %v8916_v30 = vmax.f32 %v8848_v32, 0.0 }
 0x627   : > { %v8619_v14 = vpop.f32.mrb[128].mxu1  ;;  %v8708_v51 = vpop.f32.mrb[128].mxu0  ;;  %10769 = vmatmul.mubr.msk.f32.gmra.mrb[156].mxu0 %vm17651_vm8, %v16988_v2  ;;  %10773 = vmatmul.mubr.msk.f32.gmra.mrb[160].mxu1 %vm17652_vm13, %v16988_v2  ;;  %v8915_v29 = vmax.f32 %v8847_v55, 0.0  ;;  %v8917_v63 = vmax.f32 %v8849_v21, 0.0 }
 0x628   : > { %v8863_v16 = vadd.f32 %v16930_v1, %v8619_v14  ;;  %v8865_v53 = vadd.f32 %v16930_v1, %v8708_v51  ;;  %v8621_v10 = vpop.f32.mrb[129].mxu1  ;;  %v8710_v18 = vpop.f32.mrb[129].mxu0  ;;  %9608 = vmatprep.mubr.f32.mxu0 %v17334_v52  ;;  %9697 = vmatprep.mubr.f32.mxu1 %v17334_v52 }
 0x629   : > { %v8864_v23 = vadd.f32 %v16930_v1, %v8621_v10  ;;  %v8866_v27 = vadd.f32 %v16930_v1, %v8710_v18 }
 0x62a   : > { %v8931_v60 = vmax.f32 %v8863_v16, 0.0  ;;  %v8933_v38 = vmax.f32 %v8865_v53, 0.0 }
 0x62b   : > { %v8932_v12 = vmax.f32 %v8864_v23, 0.0  ;;  %v8934_v33 = vmax.f32 %v8866_v27, 0.0  ;;  %v8625_v4 = vpop.f32.mrb[130].mxu1  ;;  %v8714_v13 = vpop.f32.mrb[130].mxu0 }
 0x62c   : > { %v11421_v5 = vpack.c.bf16 %v8931_v60, %v8914_v8  ;;  %v11429_v54 = vpack.c.bf16 %v8933_v38, %v8916_v30  ;;  %v8627_v35 = vpop.f32.mrb[131].mxu1  ;;  %v8716_v24 = vpop.f32.mrb[131].mxu0  ;;  %v8880_v45 = vadd.f32 %v16940_v59, %v8625_v4  ;;  %v8882_v62 = vadd.f32 %v16940_v59, %v8714_v13 }
 0x62d   : > { %v11419_v22 = vpack.c.bf16 %v8932_v12, %v8915_v29  ;;  %v11427_v9 = vpack.c.bf16 %v8934_v33, %v8917_v63  ;;  %v8881_v44 = vadd.f32 %v16940_v59, %v8627_v35  ;;  %v8883_v26 = vadd.f32 %v16940_v59, %v8716_v24  ;;  %v17130_v8 = vpop.permute.xlu1 %8985 }
 0x62e   : > { %v8948_v58 = vmax.f32 %v8880_v45, 0.0  ;;  %v8950_v25 = vmax.f32 %v8882_v62, 0.0 }
 0x62f   : > { %v8631_v50 = vpop.f32.mrb[132].mxu1  ;;  %v8720_v31 = vpop.f32.mrb[132].mxu0  ;;  %11420 = vmatprep.subr.bf16.mxu0 %v11419_v22  ;;  %11428 = vmatprep.subr.bf16.mxu1 %v11427_v9  ;;  %v8949_v3 = vmax.f32 %v8881_v44, 0.0  ;;  %v8951_v34 = vmax.f32 %v8883_v26, 0.0 }
 0x630   : > { %v8897_v15 = vadd.f32 %v16942_v48, %v8631_v50  ;;  %v8899_v46 = vadd.f32 %v16942_v48, %v8720_v31  ;;  %v8633_v56 = vpop.f32.mrb[133].mxu1  ;;  %v8722_v47 = vpop.f32.mrb[133].mxu0  ;;  %11422 = vmatpush1.bf16.msra.mxu0 %v11421_v5  ;;  %11430 = vmatpush1.bf16.msra.mxu1 %v11429_v54 }
 0x631   : > { %v8898_v11 = vadd.f32 %v16942_v48, %v8633_v56  ;;  %v8900_v36 = vadd.f32 %v16942_v48, %v8722_v47  ;;  %v17142_v50 = vpop.permute.xlu1 %8995 }
 0x632   : > { %v8965_v37 = vmax.f32 %v8897_v15, 0.0  ;;  %v8967_v43 = vmax.f32 %v8899_v46, 0.0 }
 0x633   : > { %v8966_v0 = vmax.f32 %v8898_v11, 0.0  ;;  %v8968_v41 = vmax.f32 %v8900_v36, 0.0 }
 0x634   : > { %v11425_v28 = vpack.c.bf16 %v8965_v37, %v8948_v58  ;;  %v11433_v20 = vpack.c.bf16 %v8967_v43, %v8950_v25 }
 0x635   : > { %v11423_v39 = vpack.c.bf16 %v8966_v0, %v8949_v3  ;;  %v11431_v7 = vpack.c.bf16 %v8968_v41, %v8951_v34 }
 0x637   : > { %11424 = vmatprep.subr.bf16.mxu0 %v11423_v39  ;;  %11432 = vmatprep.subr.bf16.mxu1 %v11431_v7 }
 0x638   : > { %11426 = vmatpush1.bf16.msra.mxu0 %v11425_v28  ;;  %11434 = vmatpush1.bf16.msra.mxu1 %v11433_v20 }
 0x63b   : > { %v10921_v49 = vpop.f32.mrb[134].mxu1  ;;  %10774 = vmatmul.mubr.msk.f32.vlgmr.msra.gmra.mrb[158].mxu0 %vm17653_vm6, %v16955_v6  ;;  %10778 = vmatmul.mubr.msk.f32.vlgmr.msra.gmra.mrb[162].mxu1 %vm17608_vm0, %v16955_v6 }
 0x63c   : > { %v8867_v61 = vadd.f32 %v10921_v49, %v16930_v1  ;;  %v8791_v42 = vpop.f32.mrb[135].mxu1  ;;  %9614 = vmatprep.mubr.f32.mxu0 %v17334_v52  ;;  %9703 = vmatprep.mubr.f32.mxu1 %v17334_v52 }
 0x63d   : > { %v8850_v19 = vadd.f32 %v16928_v17, %v8791_v42 }
 0x63e   : > { %v8935_v32 = vmax.f32 %v8867_v61, 0.0 }
 0x63f   : > { %v8918_v55 = vmax.f32 %v8850_v19, 0.0  ;;  %v10924_v21 = vpop.f32.mrb[136].mxu1  ;;  %10775 = vmatmul.mubr.msk.f32.gmra.mrb[160].mxu0 %vm17654_vm5, %v16966_v40  ;;  %10779 = vmatmul.mubr.msk.f32.gmra.mrb[164].mxu1 %vm17655_vm10, %v16966_v40 }
 0x640   : > { %v8901_v14 = vadd.f32 %v10924_v21, %v16942_v48  ;;  %v8801_v51 = vpop.f32.mrb[137].mxu1  ;;  %9620 = vmatprep.mubr.f32.mxu0 %v17334_v52  ;;  %9709 = vmatprep.mubr.f32.mxu1 %v17334_v52 }
 0x641   : > { %v11435_v1 = vpack.c.bf16 %v8935_v32, %v8918_v55  ;;  %v8884_v16 = vadd.f32 %v16940_v59, %v8801_v51 }
 0x642   : > { %v8969_v17 = vmax.f32 %v8901_v14, 0.0 }
 0x643   : > { %v8952_v53 = vmax.f32 %v8884_v16, 0.0  ;;  %10776 = vmatmul.mubr.msk.f32.gmra.mrb[162].mxu0 %vm17656_vm9, %v16977_v57  ;;  %10780 = vmatmul.mubr.msk.f32.gmra.mrb[166].mxu1 %vm17657_vm11, %v16977_v57 }
 0x644   : > { %11436 = vmatprep.subr.bf16.mxu0 %v11435_v1  ;;  %9626 = vmatprep.mubr.f32.mxu0 %v17334_v52 }
 0x645   : > { %v11439_v48 = vpack.c.bf16 %v8969_v17, %v8952_v53  ;;  %11438 = vmatpush3.bf16.msra.mxu0 %v11435_v1  ;;  %9715 = vmatprep.mubr.f32.mxu1 %v17334_v52  ;;  %v17126_v52 = vpop.permute.xlu0 %8980 }
 0x647   : > { %10777 = vmatmul.mubr.msk.f32.gmra.mrb[164].mxu0 %vm17658_vm7, %v16988_v2  ;;  %10781 = vmatmul.mubr.msk.f32.gmra.mrb[168].mxu1 %vm17659_vm15, %v16988_v2 }
 0x648   : > { %11440 = vmatprep.subr.bf16.mxu0 %v11439_v48  ;;  %10933 = vmatprep.mubr.msk.f32.mxu0 %vm17660_vm2, %v16955_v6 }
 0x649   : > { %11442 = vmatpush3.bf16.msra.mxu0 %v11439_v48  ;;  %v17136_v4 = vpop.permute.xlu0 %8990 }
 0x64c   : > { %10934 = vmatmul.mubr.msk.f32.vlgmr.msra.gmra.mrb[166].mxu0 %vm17661_vm4, %v16966_v40 }
 0x64d   : > { %10936 = vmatprep.mubr.msk.f32.mxu0 %vm17662_vm14, %v16977_v57 }
 0x650   : > { %10937 = vmatmul.mubr.msk.f32.gmra.mrb[168].mxu0 %vm17663_vm1, %v16988_v2 }
 0x6ae   : > { %v9076_v59 = vpop.f32.mrb[134].mxu0  ;;  %v9165_v10 = vpop.f32.mrb[138].mxu1 }
 0x6af   : > { %v9077_v18 = vadd.f32 %v9076_v59, %v17126_v52  ;;  %v9078_v23 = vpop.f32.mrb[135].mxu0  ;;  %v9167_v27 = vpop.f32.mrb[139].mxu1  ;;  %v9166_v40 = vadd.f32 %v9165_v10, %v17126_v52 }
 0x6b0   : > { %v9079_v6 = vadd.f32 %v9078_v23, %v17126_v52  ;;  %v9168_v63 = vadd.f32 %v9167_v27, %v17126_v52 }
 0x6b2   : > { %v9807_v30 = vmax.f32 %v9077_v18, %v9079_v6  ;;  %v9082_v60 = vpop.f32.mrb[136].mxu0  ;;  %v9171_v57 = vpop.f32.mrb[140].mxu1 }
 0x6b3   : > { %v9083_v38 = vadd.f32 %v9082_v60, %v17130_v8  ;;  %v9084_v2 = vpop.f32.mrb[137].mxu0  ;;  %v9173_v29 = vpop.f32.mrb[141].mxu1  ;;  %v9172_v5 = vadd.f32 %v9171_v57, %v17130_v8 }
 0x6b4   : > { %v9808_v12 = vmax.f32 %v9807_v30, %v9166_v40  ;;  %v9085_v33 = vadd.f32 %v9084_v2, %v17130_v8  ;;  %v9174_v62 = vadd.f32 %v9173_v29, %v17130_v8 }
 0x6b6   : > { %v9809_v13 = vmax.f32 %v9808_v12, %v9168_v63  ;;  %v9825_v54 = vmax.f32 %v9083_v38, %v9085_v33  ;;  %v9088_v35 = vpop.f32.mrb[138].mxu0  ;;  %v9177_v24 = vpop.f32.mrb[142].mxu1 }
 0x6b7   : > { %v9089_v22 = vadd.f32 %v9088_v35, %v17136_v4  ;;  %v9090_v9 = vpop.f32.mrb[139].mxu0  ;;  %v9179_v45 = vpop.f32.mrb[143].mxu1  ;;  %v9178_v15 = vadd.f32 %v9177_v24, %v17136_v4 }
 0x6b8   : > { %v9826_v44 = vmax.f32 %v9825_v54, %v9172_v5  ;;  %v9091_v26 = vadd.f32 %v9090_v9, %v17136_v4  ;;  %v9180_v25 = vadd.f32 %v9179_v45, %v17136_v4 }
 0x6ba   : > { %v9827_v31 = vmax.f32 %v9826_v44, %v9174_v62  ;;  %v9843_v46 = vmax.f32 %v9089_v22, %v9091_v26  ;;  %v9094_v56 = vpop.f32.mrb[140].mxu0  ;;  %v9183_v47 = vpop.f32.mrb[144].mxu1 }
 0x6bb   : > { %v9095_v11 = vadd.f32 %v9094_v56, %v17142_v50  ;;  %v9096_v36 = vpop.f32.mrb[141].mxu0  ;;  %v9185_v58 = vpop.f32.mrb[145].mxu1  ;;  %v9184_v34 = vadd.f32 %v9183_v47, %v17142_v50 }
 0x6bc   : > { %v9844_v37 = vmax.f32 %v9843_v46, %v9178_v15  ;;  %v9097_v43 = vadd.f32 %v9096_v36, %v17142_v50  ;;  %v9186_v41 = vadd.f32 %v9185_v58, %v17142_v50 }
 0x6be   : > { %v9845_v3 = vmax.f32 %v9844_v37, %v9180_v25  ;;  %v9861_v0 = vmax.f32 %v9095_v11, %v9097_v43 }
 0x6c0   : > { %v9862_v28 = vmax.f32 %v9861_v0, %v9184_v34 }
 0x6c2   : > { %v9863_v20 = vmax.f32 %v9862_v28, %v9186_v41 }
 0x6ce   : > { %v9254_v39 = vpop.f32.mrb[142].mxu0  ;;  %v9343_v7 = vpop.f32.mrb[146].mxu1 }
 0x6cf   : > { %v9255_v49 = vadd.f32 %v9254_v39, %v17126_v52  ;;  %v9256_v61 = vpop.f32.mrb[143].mxu0  ;;  %v9345_v42 = vpop.f32.mrb[147].mxu1  ;;  %v9344_v14 = vadd.f32 %v9343_v7, %v17126_v52 }
 0x6d0   : > { %v9257_v19 = vadd.f32 %v9256_v61, %v17126_v52  ;;  %v9346_v48 = vadd.f32 %v9345_v42, %v17126_v52 }
 0x6d1   : > { %v9810_v32 = vmax.f32 %v9809_v13, %v9255_v49 }
 0x6d2   : > { %v9260_v55 = vpop.f32.mrb[144].mxu0  ;;  %v9349_v21 = vpop.f32.mrb[148].mxu1 }
 0x6d3   : > { %v9811_v51 = vmax.f32 %v9810_v32, %v9257_v19  ;;  %v9261_v1 = vadd.f32 %v9260_v55, %v17130_v8  ;;  %v9262_v16 = vpop.f32.mrb[145].mxu0  ;;  %v9351_v17 = vpop.f32.mrb[149].mxu1  ;;  %v9350_v6 = vadd.f32 %v9349_v21, %v17130_v8 }
 0x6d4   : > { %v9263_v53 = vadd.f32 %v9262_v16, %v17130_v8  ;;  %v9352_v2 = vadd.f32 %v9351_v17, %v17130_v8 }
 0x6d5   : > { %v9812_v59 = vmax.f32 %v9811_v51, %v9344_v14  ;;  %v9828_v10 = vmax.f32 %v9827_v31, %v9261_v1 }
 0x6d6   : > { %v9266_v18 = vpop.f32.mrb[146].mxu0  ;;  %v9355_v23 = vpop.f32.mrb[150].mxu1 }
 0x6d7   : > { %v9813_v27 = vmax.f32 %v9812_v59, %v9346_v48  ;;  %v9829_v40 = vmax.f32 %v9828_v10, %v9263_v53  ;;  %v9267_v30 = vadd.f32 %v9266_v18, %v17136_v4  ;;  %v9268_v60 = vpop.f32.mrb[147].mxu0  ;;  %v9357_v57 = vpop.f32.mrb[151].mxu1  ;;  %v9356_v5 = vadd.f32 %v9355_v23, %v17136_v4 }
 0x6d8   : > { %v9269_v38 = vadd.f32 %v9268_v60, %v17136_v4  ;;  %v9358_v45 = vadd.f32 %v9357_v57, %v17136_v4 }
 0x6d9   : > { %v9830_v29 = vmax.f32 %v9829_v40, %v9350_v6  ;;  %v9846_v63 = vmax.f32 %v9845_v3, %v9267_v30 }
 0x6da   : > { %v9272_v12 = vpop.f32.mrb[148].mxu0  ;;  %v9361_v33 = vpop.f32.mrb[152].mxu1 }
 0x6db   : > { %v9831_v13 = vmax.f32 %v9830_v29, %v9352_v2  ;;  %v9847_v54 = vmax.f32 %v9846_v63, %v9269_v38  ;;  %v9273_v35 = vadd.f32 %v9272_v12, %v17142_v50  ;;  %v9274_v24 = vpop.f32.mrb[149].mxu0  ;;  %v9363_v22 = vpop.f32.mrb[153].mxu1  ;;  %v9362_v31 = vadd.f32 %v9361_v33, %v17142_v50 }
 0x6dc   : > { %v9275_v9 = vadd.f32 %v9274_v24, %v17142_v50  ;;  %v9364_v46 = vadd.f32 %v9363_v22, %v17142_v50 }
 0x6dd   : > { %v9848_v62 = vmax.f32 %v9847_v54, %v9356_v5  ;;  %v9864_v44 = vmax.f32 %v9863_v20, %v9273_v35 }
 0x6df   : > { %v9849_v26 = vmax.f32 %v9848_v62, %v9358_v45  ;;  %v9865_v15 = vmax.f32 %v9864_v44, %v9275_v9 }
 0x6e1   : > { %v9866_v56 = vmax.f32 %v9865_v15, %v9362_v31 }
 0x6e3   : > { %v9867_v47 = vmax.f32 %v9866_v56, %v9364_v46 }
 0x6ee   : > { %v9432_v11 = vpop.f32.mrb[150].mxu0  ;;  %v9521_v36 = vpop.f32.mrb[154].mxu1 }
 0x6ef   : > { %v9433_v58 = vadd.f32 %v9432_v11, %v17126_v52  ;;  %v9434_v25 = vpop.f32.mrb[151].mxu0  ;;  %v9523_v37 = vpop.f32.mrb[155].mxu1  ;;  %v9522_v41 = vadd.f32 %v9521_v36, %v17126_v52 }
 0x6f0   : > { %v9435_v43 = vadd.f32 %v9434_v25, %v17126_v52  ;;  %v9524_v61 = vadd.f32 %v9523_v37, %v17126_v52 }
 0x6f1   : > { %v9814_v3 = vmax.f32 %v9813_v27, %v9433_v58 }
 0x6f2   : > { %v9438_v34 = vpop.f32.mrb[152].mxu0  ;;  %v9527_v0 = vpop.f32.mrb[156].mxu1 }
 0x6f3   : > { %v9815_v28 = vmax.f32 %v9814_v3, %v9435_v43  ;;  %v9439_v20 = vadd.f32 %v9438_v34, %v17130_v8  ;;  %v9440_v39 = vpop.f32.mrb[153].mxu0  ;;  %v9529_v7 = vpop.f32.mrb[157].mxu1  ;;  %v9528_v14 = vadd.f32 %v9527_v0, %v17130_v8 }
 0x6f4   : > { %v9441_v49 = vadd.f32 %v9440_v39, %v17130_v8  ;;  %v9530_v48 = vadd.f32 %v9529_v7, %v17130_v8 }
 0x6f5   : > { %v9816_v42 = vmax.f32 %v9815_v28, %v9522_v41  ;;  %v9832_v19 = vmax.f32 %v9831_v13, %v9439_v20 }
 0x6f6   : > { %v9444_v32 = vpop.f32.mrb[154].mxu0  ;;  %v9533_v55 = vpop.f32.mrb[158].mxu1 }
 0x6f7   : > { %v9817_v21 = vmax.f32 %v9816_v42, %v9524_v61  ;;  %v9833_v51 = vmax.f32 %v9832_v19, %v9441_v49  ;;  %v9445_v1 = vadd.f32 %v9444_v32, %v17136_v4  ;;  %v9446_v16 = vpop.f32.mrb[155].mxu0  ;;  %v9535_v17 = vpop.f32.mrb[159].mxu1  ;;  %v9534_v6 = vadd.f32 %v9533_v55, %v17136_v4 }
 0x6f8   : > { %v9447_v53 = vadd.f32 %v9446_v16, %v17136_v4  ;;  %v9536_v2 = vadd.f32 %v9535_v17, %v17136_v4 }
 0x6f9   : > { %v9834_v59 = vmax.f32 %v9833_v51, %v9528_v14  ;;  %v9850_v10 = vmax.f32 %v9849_v26, %v9445_v1 }
 0x6fa   : > { %v9450_v18 = vpop.f32.mrb[156].mxu0  ;;  %v9539_v23 = vpop.f32.mrb[160].mxu1 }
 0x6fb   : > { %v9835_v27 = vmax.f32 %v9834_v59, %v9530_v48  ;;  %v9851_v40 = vmax.f32 %v9850_v10, %v9447_v53  ;;  %v9451_v30 = vadd.f32 %v9450_v18, %v17142_v50  ;;  %v9452_v60 = vpop.f32.mrb[157].mxu0  ;;  %v9541_v57 = vpop.f32.mrb[161].mxu1  ;;  %v9540_v33 = vadd.f32 %v9539_v23, %v17142_v50 }
 0x6fc   : > { %v9453_v38 = vadd.f32 %v9452_v60, %v17142_v50  ;;  %v9542_v5 = vadd.f32 %v9541_v57, %v17142_v50 }
 0x6fd   : > { %v9852_v29 = vmax.f32 %v9851_v40, %v9534_v6  ;;  %v9868_v63 = vmax.f32 %v9867_v47, %v9451_v30 }
 0x6ff   : > { %v9853_v12 = vmax.f32 %v9852_v29, %v9536_v2  ;;  %v9869_v13 = vmax.f32 %v9868_v63, %v9453_v38 }
 0x701   : > { %v9870_v54 = vmax.f32 %v9869_v13, %v9540_v33 }
 0x703   : > { %v9871_v35 = vmax.f32 %v9870_v54, %v9542_v5 }
 0x70e   : > { %v9610_v24 = vpop.f32.mrb[158].mxu0  ;;  %v9699_v22 = vpop.f32.mrb[162].mxu1 }
 0x70f   : > { %v9611_v9 = vadd.f32 %v9610_v24, %v17126_v52  ;;  %v9612_v45 = vpop.f32.mrb[159].mxu0  ;;  %v9701_v62 = vpop.f32.mrb[163].mxu1  ;;  %v9700_v46 = vadd.f32 %v9699_v22, %v17126_v52 }
 0x710   : > { %v9613_v44 = vadd.f32 %v9612_v45, %v17126_v52  ;;  %v9702_v25 = vadd.f32 %v9701_v62, %v17126_v52 }
 0x711   : > { %v9818_v26 = vmax.f32 %v9817_v21, %v9611_v9 }
 0x712   : > { %v9616_v31 = vpop.f32.mrb[160].mxu0  ;;  %v9705_v15 = vpop.f32.mrb[164].mxu1 }
 0x713   : > { %v9819_v56 = vmax.f32 %v9818_v26, %v9613_v44  ;;  %v9617_v47 = vadd.f32 %v9616_v31, %v17130_v8  ;;  %v9618_v11 = vpop.f32.mrb[161].mxu0  ;;  %v9707_v36 = vpop.f32.mrb[165].mxu1  ;;  %v9706_v41 = vadd.f32 %v9705_v15, %v17130_v8 }
 0x714   : > { %v9619_v58 = vadd.f32 %v9618_v11, %v17130_v8  ;;  %v9708_v61 = vadd.f32 %v9707_v36, %v17130_v8 }
 0x715   : > { %v9820_v37 = vmax.f32 %v9819_v56, %v9700_v46  ;;  %v9836_v43 = vmax.f32 %v9835_v27, %v9617_v47 }
 0x716   : > { %v9622_v3 = vpop.f32.mrb[162].mxu0  ;;  %v9711_v34 = vpop.f32.mrb[166].mxu1 }
 0x717   : > { %v9821_v0 = vmax.f32 %v9820_v37, %v9702_v25  ;;  %v9837_v28 = vmax.f32 %v9836_v43, %v9619_v58  ;;  %v9623_v20 = vadd.f32 %v9622_v3, %v17136_v4  ;;  %v9624_v39 = vpop.f32.mrb[163].mxu0  ;;  %v9713_v7 = vpop.f32.mrb[167].mxu1  ;;  %v9712_v14 = vadd.f32 %v9711_v34, %v17136_v4 }
 0x718   : > { %v9625_v49 = vadd.f32 %v9624_v39, %v17136_v4  ;;  %v9714_v48 = vadd.f32 %v9713_v7, %v17136_v4 }
 0x719   : > { %v9838_v42 = vmax.f32 %v9837_v28, %v9706_v41  ;;  %v9854_v19 = vmax.f32 %v9853_v12, %v9623_v20 }
 0x71a   : > { %v9628_v32 = vpop.f32.mrb[164].mxu0  ;;  %v9717_v55 = vpop.f32.mrb[168].mxu1 }
 0x71b   : > { %v9839_v21 = vmax.f32 %v9838_v42, %v9708_v61  ;;  %v9855_v51 = vmax.f32 %v9854_v19, %v9625_v49  ;;  %v9629_v1 = vadd.f32 %v9628_v32, %v17142_v50  ;;  %v9630_v16 = vpop.f32.mrb[165].mxu0  ;;  %v9719_v17 = vpop.f32.mrb[169].mxu1  ;;  %v9718_v23 = vadd.f32 %v9717_v55, %v17142_v50 }
 0x71c   : > { %v9631_v53 = vadd.f32 %v9630_v16, %v17142_v50  ;;  %v9720_v60 = vadd.f32 %v9719_v17, %v17142_v50 }
 0x71d   : > { %v9856_v59 = vmax.f32 %v9855_v51, %v9712_v14  ;;  %v9872_v10 = vmax.f32 %v9871_v35, %v9629_v1 }
 0x71f   : > { %v9857_v18 = vmax.f32 %v9856_v59, %v9714_v48  ;;  %v9873_v27 = vmax.f32 %v9872_v10, %v9631_v53  ;;  %v10935_v6 = vpop.f32.mrb[166].mxu0 }
 0x720   : > { %v9794_v40 = vadd.f32 %v10935_v6, %v17130_v8  ;;  %v9788_v30 = vpop.f32.mrb[167].mxu0 }
 0x721   : > { %v9874_v57 = vmax.f32 %v9873_v27, %v9718_v23  ;;  %v9789_v38 = vadd.f32 %v9788_v30, %v17126_v52 }
 0x722   : > { %v9840_v2 = vmax.f32 %v9839_v21, %v9794_v40 }
 0x723   : > { %v9875_v29 = vmax.f32 %v9874_v57, %v9720_v60  ;;  %v10938_v63 = vpop.f32.mrb[168].mxu0  ;;  %v9822_v12 = vmax.f32 %v9821_v0, %v9789_v38 }
 0x724   : > { %v9804_v33 = vadd.f32 %v10938_v63, %v17142_v50  ;;  %v9798_v13 = vpop.f32.mrb[169].mxu0  ;;  %9841 = vmax.xlane.f32.xlu1 %v9840_v2 }
 0x725   : > { %v9799_v5 = vadd.f32 %v9798_v13, %v17136_v4  ;;  %9823 = vmax.xlane.f32.xlu0 %v9822_v12 }
 0x726   : > { %v9876_v54 = vmax.f32 %v9875_v29, %v9804_v33 }
 0x727   : > { %v9858_v8 = vmax.f32 %v9857_v18, %v9799_v5 }
 0x729   : > { %9859 = vmax.xlane.f32.xlu0 %v9858_v8 }
 0x72d   : > { %9877 = vmax.xlane.f32.xlu0 %v9876_v54 }
 0x7b1   : > { %v9842_v52 = vpop.xlane.xlu1 %9841 }
 0x7b2   : > { %v9880_v35 = vmax.f32 %v9842_v52, 0.0  ;;  %v9824_v24 = vpop.xlane.xlu0 %9823 }
 0x7b3   : > { %v9879_v22 = vmax.f32 %v9824_v24, 0.0 }
 0x7b4   : > { %9885 = vst.msk [vmem:[%s544_s16 + $0x8] sm:$0xff] %vm9883_vm3, %v9880_v35 }
 0x7b5   : > { %9884 = vst.msk [vmem:[%s544_s16] sm:$0xff] %vm9883_vm3, %v9879_v22 }
 0x7b6   : > { %v9860_v50 = vpop.xlane.xlu0 %9859 }
 0x7b7   : > { %v9881_v9 = vmax.f32 %v9860_v50, 0.0 }
 0x7b9   : > { %9886 = vst.msk [vmem:[%s544_s16 + $0x10] sm:$0xff] %vm9883_vm3, %v9881_v9 }
 0x7ba   : > { %v9878_v4 = vpop.xlane.xlu0 %9877 }
 0x7bb   : > { %v9882_v45 = vmax.f32 %v9878_v4, 0.0 }
 0x7bd   : > { %9887 = vst.msk [vmem:[%s544_s16 + $0x18] sm:$0xff] %vm9883_vm3, %v9882_v45 }
 0x7be PF: > { %s24_s29 = sadd.s32 1, %s11781_s29  }
 0x7bf   : > { %p21_p4 = scmp.ge.s32.totalorder %s24_s29, 4  }
 0x7c1   :  { %23 = sbr.rel (!%p21_p4) target bundleno = 1 (0x1), region = 118 }

</bundles_post_ra>
